<compile_context>
chip_gen: v5e
topology: v5e:2x2
jax: 0.10.0
libtpu: 0.0.40
codegen_flags: <defaults>
</compile_context>

<pallas_src>
import functools
import math

import jax
import jax.numpy as jnp
from jax import lax
from jax.experimental import pallas as pl
from jax.experimental.pallas import tpu as pltpu

HIDDEN = 128          # rnn_hidden
INPUT_FEATS = 88      # LSTM input feature dim (hidden_size in the PyTorch module)
D_PAD = 128           # input features zero-padded to one full lane tile
NUM_LAYERS = 2
NUM_CLASSES = 4
SUBLANE = 8           # batch is padded to a multiple of the TPU sublane width
FC_PAD = 128          # FC output padded to a full lane tile


def _sigmoid(x):
    # 1 EUP tanh + 2 cheap VALU ops instead of exp + reciprocal (2 EUP ops);
    # the single EUP slot is the bottleneck of the serial recurrence.
    return 0.5 * jnp.tanh(0.5 * x) + 0.5


# ------------------------------------------------------------------
# Fused Pallas kernel: 2 bidirectional LSTM layers + FC head
# ------------------------------------------------------------------
def _fused_lstm_kernel(T, BP,
                       x_ref, wih0_ref, whh0f_ref, whh0b_ref, b0_ref,
                       wih1_hbm, whh1f_hbm, whh1b_hbm, wfc_hbm,
                       b1_ref, bfc_ref,
                       out_ref,
                       wih1_sc, whh1f_sc, whh1b_sc, wfc_sc,
                       gx_sc, seq_sc, dma_sem):
    """Single grid-less invocation.

    x_ref     : (T*BP, D_PAD) bf16  time-major input, batch padded to BP
    wih0_ref  : (D_PAD, 8H)   bf16  direction-major gates [i,f,g,o]_fwd | [i,f,g,o]_bwd
    whh0*_ref : (H, 4H)       bf16  per-direction recurrent weights
    b0_ref    : (1, 8H)       f32   b_ih + b_hh, direction-major
    wih1/whh1/wfc _hbm : layer-2 + FC weights left in HBM (pl.ANY), DMAd manually
    b1_ref    : (1, 8H) f32 ; bfc_ref : (1, FC_PAD) f32
    out_ref   : (BP, FC_PAD)  f32
    *_sc      : VMEM scratch (layer-2/FC weight landing buffers, input projection,
                merged layer-1 hidden sequence), dma_sem : DMA semaphores (4,)
    """
    H = whh0f_ref.shape[0]
    G = 4 * H   # per-direction gate width

    # ---- start layer-2 / FC weight DMAs; they complete under layer-1 compute ----
    cp_wih1 = pltpu.make_async_copy(wih1_hbm, wih1_sc, dma_sem.at[0])
    cp_whh1f = pltpu.make_async_copy(whh1f_hbm, whh1f_sc, dma_sem.at[1])
    cp_whh1b = pltpu.make_async_copy(whh1b_hbm, whh1b_sc, dma_sem.at[2])
    cp_wfc = pltpu.make_async_copy(wfc_hbm, wfc_sc, dma_sem.at[3])
    cp_wih1.start()
    cp_whh1f.start()
    cp_whh1b.start()
    cp_wfc.start()

    def bidir_layer(whh_f_ref, whh_b_ref, seq_out=None):
        """Fwd + bwd recurrence; state kept in f32, matmul operands cast to bf16."""
        h_f = jnp.zeros((BP, H), jnp.float32)
        h_b = jnp.zeros((BP, H), jnp.float32)
        c_f = jnp.zeros((BP, H), jnp.float32)
        c_b = jnp.zeros((BP, H), jnp.float32)
        last_b = None
        for t in range(T):                      # static unroll: T is small
            fr = t * BP                         # fwd consumes timestep t
            rr = (T - 1 - t) * BP               # bwd consumes timestep T-1-t
            gates_f = gx_sc[fr:fr + BP, 0:G] + jnp.dot(
                h_f.astype(jnp.bfloat16), whh_f_ref[...],
                preferred_element_type=jnp.float32)
            gates_b = gx_sc[rr:rr + BP, G:2 * G] + jnp.dot(
                h_b.astype(jnp.bfloat16), whh_b_ref[...],
                preferred_element_type=jnp.float32)
            # PyTorch gate order i, f, g, o within each direction block.
            i_f = _sigmoid(gates_f[:, 0 * H:1 * H])
            f_f = _sigmoid(gates_f[:, 1 * H:2 * H])
            g_f = jnp.tanh(gates_f[:, 2 * H:3 * H])
            o_f = _sigmoid(gates_f[:, 3 * H:4 * H])
            i_b = _sigmoid(gates_b[:, 0 * H:1 * H])
            f_b = _sigmoid(gates_b[:, 1 * H:2 * H])
            g_b = jnp.tanh(gates_b[:, 2 * H:3 * H])
            o_b = _sigmoid(gates_b[:, 3 * H:4 * H])
            c_f = f_f * c_f + i_f * g_f
            c_b = f_b * c_b + i_b * g_b
            h_f = o_f * jnp.tanh(c_f)
            h_b = o_b * jnp.tanh(c_b)
            if seq_out is not None:
                seq_out[fr:fr + BP, 0:H] = h_f          # fwd output at position t
                seq_out[rr:rr + BP, H:2 * H] = h_b      # bwd output at position T-1-t
            if t == 0:
                last_b = h_b                    # bwd hidden at output position T-1
        return h_f, last_b

    # ---------------- layer 1 ----------------
    # Input projection for every timestep as one batched bf16 MXU matmul.
    gx_sc[...] = (jnp.dot(x_ref[...], wih0_ref[...],
                          preferred_element_type=jnp.float32) + b0_ref[...])
    bidir_layer(whh0f_ref, whh0b_ref, seq_out=seq_sc)

    # ---------------- layer 2 ----------------
    # (inter-layer dropout p=0.1 is identity at inference)
    cp_wih1.wait()
    gx_sc[...] = (jnp.dot(seq_sc[...].astype(jnp.bfloat16), wih1_sc[...],
                          preferred_element_type=jnp.float32) + b1_ref[...])
    cp_whh1f.wait()
    cp_whh1b.wait()
    last_f2, last_b2 = bidir_layer(whh1f_sc, whh1b_sc)

    # ---------------- FC head on out[:, -1, :] ----------------
    cp_wfc.wait()
    last = jnp.concatenate([last_f2, last_b2], axis=1).astype(jnp.bfloat16)
    out_ref[...] = (jnp.dot(last, wfc_sc[...],
                            preferred_element_type=jnp.float32)
                    + bfc_ref[...]).astype(out_ref.dtype)


# ------------------------------------------------------------------
# Forward wrapper (single pallas_call)
# ------------------------------------------------------------------
def lstm_model_forward(kparams, eGemaps):
    """eGemaps: (B, T, 88) batch_first, matching the PyTorch module. Returns (B, C)."""
    B, T, D = eGemaps.shape
    BP = ((B + SUBLANE - 1) // SUBLANE) * SUBLANE
    H = HIDDEN

    # time-major, pad batch to the sublane width and features to a full lane tile,
    # cast to bf16 (MXU operand dtype), flatten to (T*BP, D_PAD)
    x = jnp.transpose(eGemaps, (1, 0, 2)).astype(jnp.float32)
    x = jnp.pad(x, ((0, 0), (0, BP - B), (0, D_PAD - D)))
    x2d = x.reshape(T * BP, D_PAD).astype(jnp.bfloat16)

    kernel = functools.partial(_fused_lstm_kernel, T, BP)
    vmem = pl.BlockSpec(memory_space=pltpu.MemorySpace.VMEM)
    hbm = pl.BlockSpec(memory_space=pl.ANY)

    out_padded = pl.pallas_call(
        kernel,
        out_shape=jax.ShapeDtypeStruct((BP, FC_PAD), jnp.float32),
        in_specs=[vmem, vmem, vmem, vmem, vmem,   # x, wih0, whh0f, whh0b, b0
                  hbm, hbm, hbm, hbm,             # wih1, whh1f, whh1b, wfc (manual DMA)
                  vmem, vmem],                    # b1, bfc
        out_specs=vmem,
        scratch_shapes=[
            pltpu.VMEM((2 * H, 8 * H), jnp.bfloat16),    # wih1 landing buffer
            pltpu.VMEM((H, 4 * H), jnp.bfloat16),        # whh1 fwd landing buffer
            pltpu.VMEM((H, 4 * H), jnp.bfloat16),        # whh1 bwd landing buffer
            pltpu.VMEM((2 * H, FC_PAD), jnp.bfloat16),   # wfc landing buffer
            pltpu.VMEM((T * BP, 8 * H), jnp.float32),    # input projection (both layers)
            pltpu.VMEM((T * BP, 2 * H), jnp.float32),    # layer-1 hidden sequence (fwd|bwd)
            pltpu.SemaphoreType.DMA((4,)),
        ],
    )(x2d,
      kparams["wih0"], kparams["whh0f"], kparams["whh0b"], kparams["b0"],
      kparams["wih1"], kparams["whh1f"], kparams["whh1b"], kparams["wfc"],
      kparams["b1"], kparams["bfc"])
    return out_padded[:B, :NUM_CLASSES]


# ------------------------------------------------------------------
# Parameter init (PyTorch layout) + one-time packing to kernel layout
# ------------------------------------------------------------------
def init_params(key):
    """PyTorch-layout params: nn.LSTM / nn.Linear uniform(-1/sqrt(H), 1/sqrt(H))."""
    params = {"lstm": [], "fc": {}}
    k = 1.0 / math.sqrt(HIDDEN)
    keys = jax.random.split(key, NUM_LAYERS * 2 * 4 + 2)
    idx = 0
    for layer in range(NUM_LAYERS):
        in_size = INPUT_FEATS if layer == 0 else 2 * HIDDEN
        dirs = []
        for _ in range(2):   # forward, backward
            w_ih = jax.random.uniform(keys[idx], (4 * HIDDEN, in_size),
                                      jnp.float32, -k, k); idx += 1
            w_hh = jax.random.uniform(keys[idx], (4 * HIDDEN, HIDDEN),
                                      jnp.float32, -k, k); idx += 1
            b_ih = jax.random.uniform(keys[idx], (4 * HIDDEN,),
                                      jnp.float32, -k, k); idx += 1
            b_hh = jax.random.uniform(keys[idx], (4 * HIDDEN,),
                                      jnp.float32, -k, k); idx += 1
            dirs.append((w_ih, w_hh, b_ih, b_hh))
        params["lstm"].append(dirs)
    kf = 1.0 / math.sqrt(2 * HIDDEN)
    params["fc"]["w"] = jax.random.uniform(keys[idx], (NUM_CLASSES, 2 * HIDDEN),
                                           jnp.float32, -kf, kf); idx += 1
    params["fc"]["b"] = jax.random.uniform(keys[idx], (NUM_CLASSES,),
                                           jnp.float32, -kf, kf)
    return params


def pack_params(params):
    """One-time conversion of PyTorch-layout params to the fused-kernel layout.

    Direction-major gate columns: [i,f,g,o]_fwd (4H) | [i,f,g,o]_bwd (4H).
    All matmul weights are stored in bf16 (f32 accumulation inside the kernel).
    """
    H = HIDDEN
    packed = {}
    for layer in range(NUM_LAYERS):
        (w_ih_f, w_hh_f, b_ih_f, b_hh_f) = params["lstm"][layer][0]
        (w_ih_b, w_hh_b, b_ih_b, b_hh_b) = params["lstm"][layer][1]
        wih = jnp.concatenate([w_ih_f.T, w_ih_b.T], axis=1)        # (D_in, 8H)
        if layer == 0:
            wih = jnp.pad(wih, ((0, D_PAD - INPUT_FEATS), (0, 0)))  # zero rows for padded x
        packed[f"wih{layer}"] = wih.astype(jnp.bfloat16)
        packed[f"whh{layer}f"] = w_hh_f.T.astype(jnp.bfloat16)     # (H, 4H)
        packed[f"whh{layer}b"] = w_hh_b.T.astype(jnp.bfloat16)     # (H, 4H)
        bias = jnp.concatenate([b_ih_f + b_hh_f, b_ih_b + b_hh_b])[None, :]
        packed[f"b{layer}"] = bias.astype(jnp.float32)             # (1, 8H)
    wfc = jnp.zeros((2 * H, FC_PAD), jnp.float32).at[:, :NUM_CLASSES].set(
        params["fc"]["w"].T)
    packed["wfc"] = wfc.astype(jnp.bfloat16)
    packed["bfc"] = jnp.zeros((1, FC_PAD), jnp.float32).at[0, :NUM_CLASSES].set(
        params["fc"]["b"])
    return packed


# ------------------------------------------------------------------
# Pure-JAX reference (eval-mode PyTorch semantics) for correctness check
# ------------------------------------------------------------------
def lstm_model_reference(params, eGemaps):
    H = HIDDEN

    def mm(a, b):
        return jnp.dot(a, b, precision=lax.Precision.HIGHEST)

    def run_dir(xs, w_ih, w_hh, b_ih, b_hh):
        B = xs.shape[1]

        def step(carry, x_t):
            h, c = carry
            g = mm(x_t, w_ih.T) + b_ih + mm(h, w_hh.T) + b_hh
            i = jax.nn.sigmoid(g[:, 0:H])
            f = jax.nn.sigmoid(g[:, H:2 * H])
            gg = jnp.tanh(g[:, 2 * H:3 * H])
            o = jax.nn.sigmoid(g[:, 3 * H:4 * H])
            c = f * c + i * gg
            h = o * jnp.tanh(c)
            return (h, c), h

        init = (jnp.zeros((B, H), jnp.float32), jnp.zeros((B, H), jnp.float32))
        _, hs = lax.scan(step, init, xs)
        return hs

    x = jnp.transpose(eGemaps, (1, 0, 2)).astype(jnp.float32)   # (T, B, D)
    for layer in range(NUM_LAYERS):
        (w_ih_f, w_hh_f, b_ih_f, b_hh_f) = params["lstm"][layer][0]
        (w_ih_b, w_hh_b, b_ih_b, b_hh_b) = params["lstm"][layer][1]
        h_f = run_dir(x, w_ih_f, w_hh_f, b_ih_f, b_hh_f)
        h_b = jnp.flip(run_dir(jnp.flip(x, 0), w_ih_b, w_hh_b, b_ih_b, b_hh_b), 0)
        x = jnp.concatenate([h_f, h_b], axis=-1)
    last = x[-1]
    return mm(last, params["fc"]["w"].T) + params["fc"]["b"]


if __name__ == "__main__":
    key = jax.random.PRNGKey(0)
    pkey, xkey = jax.random.split(key)
    params = init_params(pkey)
    kparams = pack_params(params)      # one-time packing, hoisted out of the forward

    B, T = 2, 8
    eGemaps = jax.random.normal(xkey, (B, T, INPUT_FEATS), dtype=jnp.float32)

    fwd = jax.jit(lstm_model_forward)
    out = jax.block_until_ready(fwd(kparams, eGemaps))
    assert out.shape == (B, NUM_CLASSES), out.shape

    ref = jax.block_until_ready(lstm_model_reference(params, eGemaps))
    assert bool(jnp.allclose(out, ref, rtol=2e-2, atol=2e-2)), (out, ref)

    print("KERNEL_OK")
</pallas_src>

<mosaic_0001>
module attributes {stable_mosaic.version = 11 : i64} {
  func.func @_fused_lstm_kernel(%arg0: memref<64x128xbf16, #tpu.memory_space<vmem>>, %arg1: memref<128x1024xbf16, #tpu.memory_space<vmem>>, %arg2: memref<128x512xbf16, #tpu.memory_space<vmem>>, %arg3: memref<128x512xbf16, #tpu.memory_space<vmem>>, %arg4: memref<1x1024xf32, #tpu.memory_space<vmem>>, %arg5: memref<256x1024xbf16, #tpu.memory_space<any>>, %arg6: memref<128x512xbf16, #tpu.memory_space<any>>, %arg7: memref<128x512xbf16, #tpu.memory_space<any>>, %arg8: memref<256x128xbf16, #tpu.memory_space<any>>, %arg9: memref<1x1024xf32, #tpu.memory_space<vmem>>, %arg10: memref<1x128xf32, #tpu.memory_space<vmem>>, %arg11: memref<8x128xf32, #tpu.memory_space<vmem>>, %arg12: memref<256x1024xbf16, #tpu.memory_space<vmem>>, %arg13: memref<128x512xbf16, #tpu.memory_space<vmem>>, %arg14: memref<128x512xbf16, #tpu.memory_space<vmem>>, %arg15: memref<256x128xbf16, #tpu.memory_space<vmem>>, %arg16: memref<64x1024xf32, #tpu.memory_space<vmem>>, %arg17: memref<64x256xf32, #tpu.memory_space<vmem>>, %arg18: memref<4x!tpu.dma_semaphore, #tpu.memory_space<semaphore_mem>>) attributes {dimension_semantics = [], scalar_prefetch = 0 : i64, scratch_operands = 7 : i64, tpu.core_type = #tpu.core_type<tc>} {
    %c0_i32 = arith.constant 0 : i32
    %0 = tpu.memref_slice %arg18[%c0_i32] : memref<4x!tpu.dma_semaphore, #tpu.memory_space<semaphore_mem>> -> memref<1x!tpu.dma_semaphore, #tpu.memory_space<semaphore_mem>>
    %1 = tpu.memref_squeeze %0 : memref<1x!tpu.dma_semaphore, #tpu.memory_space<semaphore_mem>> -> memref<!tpu.dma_semaphore, #tpu.memory_space<semaphore_mem>>
    tpu.enqueue_dma source(%arg5 : memref<256x1024xbf16, #tpu.memory_space<any>>) target(%arg12 : memref<256x1024xbf16, #tpu.memory_space<vmem>>) target_semaphore(%1 : memref<!tpu.dma_semaphore, #tpu.memory_space<semaphore_mem>>)
    %c1_i32 = arith.constant 1 : i32
    %2 = tpu.memref_slice %arg18[%c1_i32] : memref<4x!tpu.dma_semaphore, #tpu.memory_space<semaphore_mem>> -> memref<1x!tpu.dma_semaphore, #tpu.memory_space<semaphore_mem>>
    %3 = tpu.memref_squeeze %2 : memref<1x!tpu.dma_semaphore, #tpu.memory_space<semaphore_mem>> -> memref<!tpu.dma_semaphore, #tpu.memory_space<semaphore_mem>>
    tpu.enqueue_dma source(%arg6 : memref<128x512xbf16, #tpu.memory_space<any>>) target(%arg13 : memref<128x512xbf16, #tpu.memory_space<vmem>>) target_semaphore(%3 : memref<!tpu.dma_semaphore, #tpu.memory_space<semaphore_mem>>)
    %c2_i32 = arith.constant 2 : i32
    %4 = tpu.memref_slice %arg18[%c2_i32] : memref<4x!tpu.dma_semaphore, #tpu.memory_space<semaphore_mem>> -> memref<1x!tpu.dma_semaphore, #tpu.memory_space<semaphore_mem>>
    %5 = tpu.memref_squeeze %4 : memref<1x!tpu.dma_semaphore, #tpu.memory_space<semaphore_mem>> -> memref<!tpu.dma_semaphore, #tpu.memory_space<semaphore_mem>>
    tpu.enqueue_dma source(%arg7 : memref<128x512xbf16, #tpu.memory_space<any>>) target(%arg14 : memref<128x512xbf16, #tpu.memory_space<vmem>>) target_semaphore(%5 : memref<!tpu.dma_semaphore, #tpu.memory_space<semaphore_mem>>)
    %c3_i32 = arith.constant 3 : i32
    %6 = tpu.memref_slice %arg18[%c3_i32] : memref<4x!tpu.dma_semaphore, #tpu.memory_space<semaphore_mem>> -> memref<1x!tpu.dma_semaphore, #tpu.memory_space<semaphore_mem>>
    %7 = tpu.memref_squeeze %6 : memref<1x!tpu.dma_semaphore, #tpu.memory_space<semaphore_mem>> -> memref<!tpu.dma_semaphore, #tpu.memory_space<semaphore_mem>>
    tpu.enqueue_dma source(%arg8 : memref<256x128xbf16, #tpu.memory_space<any>>) target(%arg15 : memref<256x128xbf16, #tpu.memory_space<vmem>>) target_semaphore(%7 : memref<!tpu.dma_semaphore, #tpu.memory_space<semaphore_mem>>)
    %c0 = arith.constant 0 : index
    %c0_0 = arith.constant 0 : index
    %8 = vector.load %arg0[%c0, %c0_0] : memref<64x128xbf16, #tpu.memory_space<vmem>>, vector<64x128xbf16>
    %c0_1 = arith.constant 0 : index
    %c0_2 = arith.constant 0 : index
    %9 = vector.load %arg1[%c0_1, %c0_2] : memref<128x1024xbf16, #tpu.memory_space<vmem>>, vector<128x1024xbf16>
    %cst = arith.constant dense<0.000000e+00> : vector<64x1024xf32>
    %10 = tpu.matmul %8, %9, %cst {dimension_numbers = #tpu.dot_dimension_numbers<[1], [0], [0], [1], [0, 0, 1, 1], [], []>} : vector<64x128xbf16>, vector<128x1024xbf16>, vector<64x1024xf32> -> vector<64x1024xf32>
    %c0_3 = arith.constant 0 : index
    %c0_4 = arith.constant 0 : index
    %11 = vector.load %arg4[%c0_3, %c0_4] : memref<1x1024xf32, #tpu.memory_space<vmem>>, vector<1x1024xf32>
    %12 = vector.broadcast %11 : vector<1x1024xf32> to vector<64x1024xf32>
    %13 = arith.addf %10, %12 : vector<64x1024xf32>
    %c0_5 = arith.constant 0 : index
    %c0_6 = arith.constant 0 : index
    %14 = vector.load %arg16[%c0_5, %c0_6] : memref<64x1024xf32, #tpu.memory_space<vmem>>, vector<64x1024xf32>
    tpu.vector_store %arg16[%c0_5, %c0_6], %13 {strides = array<i32>} : memref<64x1024xf32, #tpu.memory_space<vmem>>, vector<64x1024xf32>,
    %cst_7 = arith.constant 0.000000e+00 : f32
    %15 = vector.broadcast %cst_7 : f32 to vector<8x128xf32>
    %cst_8 = arith.constant 0.000000e+00 : f32
    %16 = vector.broadcast %cst_8 : f32 to vector<8x128xf32>
    %cst_9 = arith.constant 0.000000e+00 : f32
    %17 = vector.broadcast %cst_9 : f32 to vector<8x128xf32>
    %cst_10 = arith.constant 0.000000e+00 : f32
    %18 = vector.broadcast %cst_10 : f32 to vector<8x128xf32>
    %c0_11 = arith.constant 0 : index
    %c0_12 = arith.constant 0 : index
    %19 = vector.load %arg16[%c0_11, %c0_12] : memref<64x1024xf32, #tpu.memory_space<vmem>>, vector<8x512xf32>
    %20 = arith.truncf %15 : vector<8x128xf32> to vector<8x128xbf16>
    %c0_13 = arith.constant 0 : index
    %c0_14 = arith.constant 0 : index
    %21 = vector.load %arg2[%c0_13, %c0_14] : memref<128x512xbf16, #tpu.memory_space<vmem>>, vector<128x512xbf16>
    %cst_15 = arith.constant dense<0.000000e+00> : vector<8x512xf32>
    %22 = tpu.matmul %20, %21, %cst_15 {dimension_numbers = #tpu.dot_dimension_numbers<[1], [0], [0], [1], [0, 0, 1, 1], [], []>} : vector<8x128xbf16>, vector<128x512xbf16>, vector<8x512xf32> -> vector<8x512xf32>
    %23 = arith.addf %19, %22 : vector<8x512xf32>
    %c56 = arith.constant 56 : index
    %c512 = arith.constant 512 : index
    %24 = vector.load %arg16[%c56, %c512] : memref<64x1024xf32, #tpu.memory_space<vmem>>, vector<8x512xf32>
    %25 = arith.truncf %16 : vector<8x128xf32> to vector<8x128xbf16>
    %c0_16 = arith.constant 0 : index
    %c0_17 = arith.constant 0 : index
    %26 = vector.load %arg3[%c0_16, %c0_17] : memref<128x512xbf16, #tpu.memory_space<vmem>>, vector<128x512xbf16>
    %cst_18 = arith.constant dense<0.000000e+00> : vector<8x512xf32>
    %27 = tpu.matmul %25, %26, %cst_18 {dimension_numbers = #tpu.dot_dimension_numbers<[1], [0], [0], [1], [0, 0, 1, 1], [], []>} : vector<8x128xbf16>, vector<128x512xbf16>, vector<8x512xf32> -> vector<8x512xf32>
    %28 = arith.addf %24, %27 : vector<8x512xf32>
    %29 = vector.extract_strided_slice %23 {offsets = [0, 0], sizes = [8, 128], strides = [1, 1]} : vector<8x512xf32> to vector<8x128xf32>
    %cst_19 = arith.constant 5.000000e-01 : f32
    %30 = vector.broadcast %cst_19 : f32 to vector<8x128xf32>
    %31 = arith.mulf %30, %29 : vector<8x128xf32>
    %32 = math.tanh %31 : vector<8x128xf32>
    %cst_20 = arith.constant 5.000000e-01 : f32
    %33 = vector.broadcast %cst_20 : f32 to vector<8x128xf32>
    %34 = arith.mulf %33, %32 : vector<8x128xf32>
    %cst_21 = arith.constant 5.000000e-01 : f32
    %35 = vector.broadcast %cst_21 : f32 to vector<8x128xf32>
    %36 = arith.addf %34, %35 : vector<8x128xf32>
    %37 = vector.extract_strided_slice %23 {offsets = [0, 128], sizes = [8, 128], strides = [1, 1]} : vector<8x512xf32> to vector<8x128xf32>
    %cst_22 = arith.constant 5.000000e-01 : f32
    %38 = vector.broadcast %cst_22 : f32 to vector<8x128xf32>
    %39 = arith.mulf %38, %37 : vector<8x128xf32>
    %40 = math.tanh %39 : vector<8x128xf32>
    %cst_23 = arith.constant 5.000000e-01 : f32
    %41 = vector.broadcast %cst_23 : f32 to vector<8x128xf32>
    %42 = arith.mulf %41, %40 : vector<8x128xf32>
    %cst_24 = arith.constant 5.000000e-01 : f32
    %43 = vector.broadcast %cst_24 : f32 to vector<8x128xf32>
    %44 = arith.addf %42, %43 : vector<8x128xf32>
    %45 = vector.extract_strided_slice %23 {offsets = [0, 256], sizes = [8, 128], strides = [1, 1]} : vector<8x512xf32> to vector<8x128xf32>
    %46 = math.tanh %45 : vector<8x128xf32>
    %47 = vector.extract_strided_slice %23 {offsets = [0, 384], sizes = [8, 128], strides = [1, 1]} : vector<8x512xf32> to vector<8x128xf32>
    %cst_25 = arith.constant 5.000000e-01 : f32
    %48 = vector.broadcast %cst_25 : f32 to vector<8x128xf32>
    %49 = arith.mulf %48, %47 : vector<8x128xf32>
    %50 = math.tanh %49 : vector<8x128xf32>
    %cst_26 = arith.constant 5.000000e-01 : f32
    %51 = vector.broadcast %cst_26 : f32 to vector<8x128xf32>
    %52 = arith.mulf %51, %50 : vector<8x128xf32>
    %cst_27 = arith.constant 5.000000e-01 : f32
    %53 = vector.broadcast %cst_27 : f32 to vector<8x128xf32>
    %54 = arith.addf %52, %53 : vector<8x128xf32>
    %55 = vector.extract_strided_slice %28 {offsets = [0, 0], sizes = [8, 128], strides = [1, 1]} : vector<8x512xf32> to vector<8x128xf32>
    %cst_28 = arith.constant 5.000000e-01 : f32
    %56 = vector.broadcast %cst_28 : f32 to vector<8x128xf32>
    %57 = arith.mulf %56, %55 : vector<8x128xf32>
    %58 = math.tanh %57 : vector<8x128xf32>
    %cst_29 = arith.constant 5.000000e-01 : f32
    %59 = vector.broadcast %cst_29 : f32 to vector<8x128xf32>
    %60 = arith.mulf %59, %58 : vector<8x128xf32>
    %cst_30 = arith.constant 5.000000e-01 : f32
    %61 = vector.broadcast %cst_30 : f32 to vector<8x128xf32>
    %62 = arith.addf %60, %61 : vector<8x128xf32>
    %63 = vector.extract_strided_slice %28 {offsets = [0, 128], sizes = [8, 128], strides = [1, 1]} : vector<8x512xf32> to vector<8x128xf32>
    %cst_31 = arith.constant 5.000000e-01 : f32
    %64 = vector.broadcast %cst_31 : f32 to vector<8x128xf32>
    %65 = arith.mulf %64, %63 : vector<8x128xf32>
    %66 = math.tanh %65 : vector<8x128xf32>
    %cst_32 = arith.constant 5.000000e-01 : f32
    %67 = vector.broadcast %cst_32 : f32 to vector<8x128xf32>
    %68 = arith.mulf %67, %66 : vector<8x128xf32>
    %cst_33 = arith.constant 5.000000e-01 : f32
    %69 = vector.broadcast %cst_33 : f32 to vector<8x128xf32>
    %70 = arith.addf %68, %69 : vector<8x128xf32>
    %71 = vector.extract_strided_slice %28 {offsets = [0, 256], sizes = [8, 128], strides = [1, 1]} : vector<8x512xf32> to vector<8x128xf32>
    %72 = math.tanh %71 : vector<8x128xf32>
    %73 = vector.extract_strided_slice %28 {offsets = [0, 384], sizes = [8, 128], strides = [1, 1]} : vector<8x512xf32> to vector<8x128xf32>
    %cst_34 = arith.constant 5.000000e-01 : f32
    %74 = vector.broadcast %cst_34 : f32 to vector<8x128xf32>
    %75 = arith.mulf %74, %73 : vector<8x128xf32>
    %76 = math.tanh %75 : vector<8x128xf32>
    %cst_35 = arith.constant 5.000000e-01 : f32
    %77 = vector.broadcast %cst_35 : f32 to vector<8x128xf32>
    %78 = arith.mulf %77, %76 : vector<8x128xf32>
    %cst_36 = arith.constant 5.000000e-01 : f32
    %79 = vector.broadcast %cst_36 : f32 to vector<8x128xf32>
    %80 = arith.addf %78, %79 : vector<8x128xf32>
    %81 = arith.mulf %44, %17 : vector<8x128xf32>
    %82 = arith.mulf %36, %46 : vector<8x128xf32>
    %83 = arith.addf %81, %82 : vector<8x128xf32>
    %84 = arith.mulf %70, %18 : vector<8x128xf32>
    %85 = arith.mulf %62, %72 : vector<8x128xf32>
    %86 = arith.addf %84, %85 : vector<8x128xf32>
    %87 = math.tanh %83 : vector<8x128xf32>
    %88 = arith.mulf %54, %87 : vector<8x128xf32>
    %89 = math.tanh %86 : vector<8x128xf32>
    %90 = arith.mulf %80, %89 : vector<8x128xf32>
    %c0_37 = arith.constant 0 : index
    %c0_38 = arith.constant 0 : index
    %91 = vector.load %arg17[%c0_37, %c0_38] : memref<64x256xf32, #tpu.memory_space<vmem>>, vector<8x128xf32>
    tpu.vector_store %arg17[%c0_37, %c0_38], %88 {strides = array<i32>} : memref<64x256xf32, #tpu.memory_space<vmem>>, vector<8x128xf32>,
    %c56_39 = arith.constant 56 : index
    %c128 = arith.constant 128 : index
    %92 = vector.load %arg17[%c56_39, %c128] : memref<64x256xf32, #tpu.memory_space<vmem>>, vector<8x128xf32>
    tpu.vector_store %arg17[%c56_39, %c128], %90 {strides = array<i32>} : memref<64x256xf32, #tpu.memory_space<vmem>>, vector<8x128xf32>,
    %c8 = arith.constant 8 : index
    %c0_40 = arith.constant 0 : index
    %93 = vector.load %arg16[%c8, %c0_40] : memref<64x1024xf32, #tpu.memory_space<vmem>>, vector<8x512xf32>
    %94 = arith.truncf %88 : vector<8x128xf32> to vector<8x128xbf16>
    %c0_41 = arith.constant 0 : index
    %c0_42 = arith.constant 0 : index
    %95 = vector.load %arg2[%c0_41, %c0_42] : memref<128x512xbf16, #tpu.memory_space<vmem>>, vector<128x512xbf16>
    %cst_43 = arith.constant dense<0.000000e+00> : vector<8x512xf32>
    %96 = tpu.matmul %94, %95, %cst_43 {dimension_numbers = #tpu.dot_dimension_numbers<[1], [0], [0], [1], [0, 0, 1, 1], [], []>} : vector<8x128xbf16>, vector<128x512xbf16>, vector<8x512xf32> -> vector<8x512xf32>
    %97 = arith.addf %93, %96 : vector<8x512xf32>
    %c48 = arith.constant 48 : index
    %c512_44 = arith.constant 512 : index
    %98 = vector.load %arg16[%c48, %c512_44] : memref<64x1024xf32, #tpu.memory_space<vmem>>, vector<8x512xf32>
    %99 = arith.truncf %90 : vector<8x128xf32> to vector<8x128xbf16>
    %c0_45 = arith.constant 0 : index
    %c0_46 = arith.constant 0 : index
    %100 = vector.load %arg3[%c0_45, %c0_46] : memref<128x512xbf16, #tpu.memory_space<vmem>>, vector<128x512xbf16>
    %cst_47 = arith.constant dense<0.000000e+00> : vector<8x512xf32>
    %101 = tpu.matmul %99, %100, %cst_47 {dimension_numbers = #tpu.dot_dimension_numbers<[1], [0], [0], [1], [0, 0, 1, 1], [], []>} : vector<8x128xbf16>, vector<128x512xbf16>, vector<8x512xf32> -> vector<8x512xf32>
    %102 = arith.addf %98, %101 : vector<8x512xf32>
    %103 = vector.extract_strided_slice %97 {offsets = [0, 0], sizes = [8, 128], strides = [1, 1]} : vector<8x512xf32> to vector<8x128xf32>
    %cst_48 = arith.constant 5.000000e-01 : f32
    %104 = vector.broadcast %cst_48 : f32 to vector<8x128xf32>
    %105 = arith.mulf %104, %103 : vector<8x128xf32>
    %106 = math.tanh %105 : vector<8x128xf32>
    %cst_49 = arith.constant 5.000000e-01 : f32
    %107 = vector.broadcast %cst_49 : f32 to vector<8x128xf32>
    %108 = arith.mulf %107, %106 : vector<8x128xf32>
    %cst_50 = arith.constant 5.000000e-01 : f32
    %109 = vector.broadcast %cst_50 : f32 to vector<8x128xf32>
    %110 = arith.addf %108, %109 : vector<8x128xf32>
    %111 = vector.extract_strided_slice %97 {offsets = [0, 128], sizes = [8, 128], strides = [1, 1]} : vector<8x512xf32> to vector<8x128xf32>
    %cst_51 = arith.constant 5.000000e-01 : f32
    %112 = vector.broadcast %cst_51 : f32 to vector<8x128xf32>
    %113 = arith.mulf %112, %111 : vector<8x128xf32>
    %114 = math.tanh %113 : vector<8x128xf32>
    %cst_52 = arith.constant 5.000000e-01 : f32
    %115 = vector.broadcast %cst_52 : f32 to vector<8x128xf32>
    %116 = arith.mulf %115, %114 : vector<8x128xf32>
    %cst_53 = arith.constant 5.000000e-01 : f32
    %117 = vector.broadcast %cst_53 : f32 to vector<8x128xf32>
    %118 = arith.addf %116, %117 : vector<8x128xf32>
    %119 = vector.extract_strided_slice %97 {offsets = [0, 256], sizes = [8, 128], strides = [1, 1]} : vector<8x512xf32> to vector<8x128xf32>
    %120 = math.tanh %119 : vector<8x128xf32>
    %121 = vector.extract_strided_slice %97 {offsets = [0, 384], sizes = [8, 128], strides = [1, 1]} : vector<8x512xf32> to vector<8x128xf32>
    %cst_54 = arith.constant 5.000000e-01 : f32
    %122 = vector.broadcast %cst_54 : f32 to vector<8x128xf32>
    %123 = arith.mulf %122, %121 : vector<8x128xf32>
    %124 = math.tanh %123 : vector<8x128xf32>
    %cst_55 = arith.constant 5.000000e-01 : f32
    %125 = vector.broadcast %cst_55 : f32 to vector<8x128xf32>
    %126 = arith.mulf %125, %124 : vector<8x128xf32>
    %cst_56 = arith.constant 5.000000e-01 : f32
    %127 = vector.broadcast %cst_56 : f32 to vector<8x128xf32>
    %128 = arith.addf %126, %127 : vector<8x128xf32>
    %129 = vector.extract_strided_slice %102 {offsets = [0, 0], sizes = [8, 128], strides = [1, 1]} : vector<8x512xf32> to vector<8x128xf32>
    %cst_57 = arith.constant 5.000000e-01 : f32
    %130 = vector.broadcast %cst_57 : f32 to vector<8x128xf32>
    %131 = arith.mulf %130, %129 : vector<8x128xf32>
    %132 = math.tanh %131 : vector<8x128xf32>
    %cst_58 = arith.constant 5.000000e-01 : f32
    %133 = vector.broadcast %cst_58 : f32 to vector<8x128xf32>
    %134 = arith.mulf %133, %132 : vector<8x128xf32>
    %cst_59 = arith.constant 5.000000e-01 : f32
    %135 = vector.broadcast %cst_59 : f32 to vector<8x128xf32>
    %136 = arith.addf %134, %135 : vector<8x128xf32>
    %137 = vector.extract_strided_slice %102 {offsets = [0, 128], sizes = [8, 128], strides = [1, 1]} : vector<8x512xf32> to vector<8x128xf32>
    %cst_60 = arith.constant 5.000000e-01 : f32
    %138 = vector.broadcast %cst_60 : f32 to vector<8x128xf32>
    %139 = arith.mulf %138, %137 : vector<8x128xf32>
    %140 = math.tanh %139 : vector<8x128xf32>
    %cst_61 = arith.constant 5.000000e-01 : f32
    %141 = vector.broadcast %cst_61 : f32 to vector<8x128xf32>
    %142 = arith.mulf %141, %140 : vector<8x128xf32>
    %cst_62 = arith.constant 5.000000e-01 : f32
    %143 = vector.broadcast %cst_62 : f32 to vector<8x128xf32>
    %144 = arith.addf %142, %143 : vector<8x128xf32>
    %145 = vector.extract_strided_slice %102 {offsets = [0, 256], sizes = [8, 128], strides = [1, 1]} : vector<8x512xf32> to vector<8x128xf32>
    %146 = math.tanh %145 : vector<8x128xf32>
    %147 = vector.extract_strided_slice %102 {offsets = [0, 384], sizes = [8, 128], strides = [1, 1]} : vector<8x512xf32> to vector<8x128xf32>
    %cst_63 = arith.constant 5.000000e-01 : f32
    %148 = vector.broadcast %cst_63 : f32 to vector<8x128xf32>
    %149 = arith.mulf %148, %147 : vector<8x128xf32>
    %150 = math.tanh %149 : vector<8x128xf32>
    %cst_64 = arith.constant 5.000000e-01 : f32
    %151 = vector.broadcast %cst_64 : f32 to vector<8x128xf32>
    %152 = arith.mulf %151, %150 : vector<8x128xf32>
    %cst_65 = arith.constant 5.000000e-01 : f32
    %153 = vector.broadcast %cst_65 : f32 to vector<8x128xf32>
    %154 = arith.addf %152, %153 : vector<8x128xf32>
    %155 = arith.mulf %118, %83 : vector<8x128xf32>
    %156 = arith.mulf %110, %120 : vector<8x128xf32>
    %157 = arith.addf %155, %156 : vector<8x128xf32>
    %158 = arith.mulf %144, %86 : vector<8x128xf32>
    %159 = arith.mulf %136, %146 : vector<8x128xf32>
    %160 = arith.addf %158, %159 : vector<8x128xf32>
    %161 = math.tanh %157 : vector<8x128xf32>
    %162 = arith.mulf %128, %161 : vector<8x128xf32>
    %163 = math.tanh %160 : vector<8x128xf32>
    %164 = arith.mulf %154, %163 : vector<8x128xf32>
    %c8_66 = arith.constant 8 : index
    %c0_67 = arith.constant 0 : index
    %165 = vector.load %arg17[%c8_66, %c0_67] : memref<64x256xf32, #tpu.memory_space<vmem>>, vector<8x128xf32>
    tpu.vector_store %arg17[%c8_66, %c0_67], %162 {strides = array<i32>} : memref<64x256xf32, #tpu.memory_space<vmem>>, vector<8x128xf32>,
    %c48_68 = arith.constant 48 : index
    %c128_69 = arith.constant 128 : index
    %166 = vector.load %arg17[%c48_68, %c128_69] : memref<64x256xf32, #tpu.memory_space<vmem>>, vector<8x128xf32>
    tpu.vector_store %arg17[%c48_68, %c128_69], %164 {strides = array<i32>} : memref<64x256xf32, #tpu.memory_space<vmem>>, vector<8x128xf32>,
    %c16 = arith.constant 16 : index
    %c0_70 = arith.constant 0 : index
    %167 = vector.load %arg16[%c16, %c0_70] : memref<64x1024xf32, #tpu.memory_space<vmem>>, vector<8x512xf32>
    %168 = arith.truncf %162 : vector<8x128xf32> to vector<8x128xbf16>
    %c0_71 = arith.constant 0 : index
    %c0_72 = arith.constant 0 : index
    %169 = vector.load %arg2[%c0_71, %c0_72] : memref<128x512xbf16, #tpu.memory_space<vmem>>, vector<128x512xbf16>
    %cst_73 = arith.constant dense<0.000000e+00> : vector<8x512xf32>
    %170 = tpu.matmul %168, %169, %cst_73 {dimension_numbers = #tpu.dot_dimension_numbers<[1], [0], [0], [1], [0, 0, 1, 1], [], []>} : vector<8x128xbf16>, vector<128x512xbf16>, vector<8x512xf32> -> vector<8x512xf32>
    %171 = arith.addf %167, %170 : vector<8x512xf32>
    %c40 = arith.constant 40 : index
    %c512_74 = arith.constant 512 : index
    %172 = vector.load %arg16[%c40, %c512_74] : memref<64x1024xf32, #tpu.memory_space<vmem>>, vector<8x512xf32>
    %173 = arith.truncf %164 : vector<8x128xf32> to vector<8x128xbf16>
    %c0_75 = arith.constant 0 : index
    %c0_76 = arith.constant 0 : index
    %174 = vector.load %arg3[%c0_75, %c0_76] : memref<128x512xbf16, #tpu.memory_space<vmem>>, vector<128x512xbf16>
    %cst_77 = arith.constant dense<0.000000e+00> : vector<8x512xf32>
    %175 = tpu.matmul %173, %174, %cst_77 {dimension_numbers = #tpu.dot_dimension_numbers<[1], [0], [0], [1], [0, 0, 1, 1], [], []>} : vector<8x128xbf16>, vector<128x512xbf16>, vector<8x512xf32> -> vector<8x512xf32>
    %176 = arith.addf %172, %175 : vector<8x512xf32>
    %177 = vector.extract_strided_slice %171 {offsets = [0, 0], sizes = [8, 128], strides = [1, 1]} : vector<8x512xf32> to vector<8x128xf32>
    %cst_78 = arith.constant 5.000000e-01 : f32
    %178 = vector.broadcast %cst_78 : f32 to vector<8x128xf32>
    %179 = arith.mulf %178, %177 : vector<8x128xf32>
    %180 = math.tanh %179 : vector<8x128xf32>
    %cst_79 = arith.constant 5.000000e-01 : f32
    %181 = vector.broadcast %cst_79 : f32 to vector<8x128xf32>
    %182 = arith.mulf %181, %180 : vector<8x128xf32>
    %cst_80 = arith.constant 5.000000e-01 : f32
    %183 = vector.broadcast %cst_80 : f32 to vector<8x128xf32>
    %184 = arith.addf %182, %183 : vector<8x128xf32>
    %185 = vector.extract_strided_slice %171 {offsets = [0, 128], sizes = [8, 128], strides = [1, 1]} : vector<8x512xf32> to vector<8x128xf32>
    %cst_81 = arith.constant 5.000000e-01 : f32
    %186 = vector.broadcast %cst_81 : f32 to vector<8x128xf32>
    %187 = arith.mulf %186, %185 : vector<8x128xf32>
    %188 = math.tanh %187 : vector<8x128xf32>
    %cst_82 = arith.constant 5.000000e-01 : f32
    %189 = vector.broadcast %cst_82 : f32 to vector<8x128xf32>
    %190 = arith.mulf %189, %188 : vector<8x128xf32>
    %cst_83 = arith.constant 5.000000e-01 : f32
    %191 = vector.broadcast %cst_83 : f32 to vector<8x128xf32>
    %192 = arith.addf %190, %191 : vector<8x128xf32>
    %193 = vector.extract_strided_slice %171 {offsets = [0, 256], sizes = [8, 128], strides = [1, 1]} : vector<8x512xf32> to vector<8x128xf32>
    %194 = math.tanh %193 : vector<8x128xf32>
    %195 = vector.extract_strided_slice %171 {offsets = [0, 384], sizes = [8, 128], strides = [1, 1]} : vector<8x512xf32> to vector<8x128xf32>
    %cst_84 = arith.constant 5.000000e-01 : f32
    %196 = vector.broadcast %cst_84 : f32 to vector<8x128xf32>
    %197 = arith.mulf %196, %195 : vector<8x128xf32>
    %198 = math.tanh %197 : vector<8x128xf32>
    %cst_85 = arith.constant 5.000000e-01 : f32
    %199 = vector.broadcast %cst_85 : f32 to vector<8x128xf32>
    %200 = arith.mulf %199, %198 : vector<8x128xf32>
    %cst_86 = arith.constant 5.000000e-01 : f32
    %201 = vector.broadcast %cst_86 : f32 to vector<8x128xf32>
    %202 = arith.addf %200, %201 : vector<8x128xf32>
    %203 = vector.extract_strided_slice %176 {offsets = [0, 0], sizes = [8, 128], strides = [1, 1]} : vector<8x512xf32> to vector<8x128xf32>
    %cst_87 = arith.constant 5.000000e-01 : f32
    %204 = vector.broadcast %cst_87 : f32 to vector<8x128xf32>
    %205 = arith.mulf %204, %203 : vector<8x128xf32>
    %206 = math.tanh %205 : vector<8x128xf32>
    %cst_88 = arith.constant 5.000000e-01 : f32
    %207 = vector.broadcast %cst_88 : f32 to vector<8x128xf32>
    %208 = arith.mulf %207, %206 : vector<8x128xf32>
    %cst_89 = arith.constant 5.000000e-01 : f32
    %209 = vector.broadcast %cst_89 : f32 to vector<8x128xf32>
    %210 = arith.addf %208, %209 : vector<8x128xf32>
    %211 = vector.extract_strided_slice %176 {offsets = [0, 128], sizes = [8, 128], strides = [1, 1]} : vector<8x512xf32> to vector<8x128xf32>
    %cst_90 = arith.constant 5.000000e-01 : f32
    %212 = vector.broadcast %cst_90 : f32 to vector<8x128xf32>
    %213 = arith.mulf %212, %211 : vector<8x128xf32>
    %214 = math.tanh %213 : vector<8x128xf32>
    %cst_91 = arith.constant 5.000000e-01 : f32
    %215 = vector.broadcast %cst_91 : f32 to vector<8x128xf32>
    %216 = arith.mulf %215, %214 : vector<8x128xf32>
    %cst_92 = arith.constant 5.000000e-01 : f32
    %217 = vector.broadcast %cst_92 : f32 to vector<8x128xf32>
    %218 = arith.addf %216, %217 : vector<8x128xf32>
    %219 = vector.extract_strided_slice %176 {offsets = [0, 256], sizes = [8, 128], strides = [1, 1]} : vector<8x512xf32> to vector<8x128xf32>
    %220 = math.tanh %219 : vector<8x128xf32>
    %221 = vector.extract_strided_slice %176 {offsets = [0, 384], sizes = [8, 128], strides = [1, 1]} : vector<8x512xf32> to vector<8x128xf32>
    %cst_93 = arith.constant 5.000000e-01 : f32
    %222 = vector.broadcast %cst_93 : f32 to vector<8x128xf32>
    %223 = arith.mulf %222, %221 : vector<8x128xf32>
    %224 = math.tanh %223 : vector<8x128xf32>
    %cst_94 = arith.constant 5.000000e-01 : f32
    %225 = vector.broadcast %cst_94 : f32 to vector<8x128xf32>
    %226 = arith.mulf %225, %224 : vector<8x128xf32>
    %cst_95 = arith.constant 5.000000e-01 : f32
    %227 = vector.broadcast %cst_95 : f32 to vector<8x128xf32>
    %228 = arith.addf %226, %227 : vector<8x128xf32>
    %229 = arith.mulf %192, %157 : vector<8x128xf32>
    %230 = arith.mulf %184, %194 : vector<8x128xf32>
    %231 = arith.addf %229, %230 : vector<8x128xf32>
    %232 = arith.mulf %218, %160 : vector<8x128xf32>
    %233 = arith.mulf %210, %220 : vector<8x128xf32>
    %234 = arith.addf %232, %233 : vector<8x128xf32>
    %235 = math.tanh %231 : vector<8x128xf32>
    %236 = arith.mulf %202, %235 : vector<8x128xf32>
    %237 = math.tanh %234 : vector<8x128xf32>
    %238 = arith.mulf %228, %237 : vector<8x128xf32>
    %c16_96 = arith.constant 16 : index
    %c0_97 = arith.constant 0 : index
    %239 = vector.load %arg17[%c16_96, %c0_97] : memref<64x256xf32, #tpu.memory_space<vmem>>, vector<8x128xf32>
    tpu.vector_store %arg17[%c16_96, %c0_97], %236 {strides = array<i32>} : memref<64x256xf32, #tpu.memory_space<vmem>>, vector<8x128xf32>,
    %c40_98 = arith.constant 40 : index
    %c128_99 = arith.constant 128 : index
    %240 = vector.load %arg17[%c40_98, %c128_99] : memref<64x256xf32, #tpu.memory_space<vmem>>, vector<8x128xf32>
    tpu.vector_store %arg17[%c40_98, %c128_99], %238 {strides = array<i32>} : memref<64x256xf32, #tpu.memory_space<vmem>>, vector<8x128xf32>,
    %c24 = arith.constant 24 : index
    %c0_100 = arith.constant 0 : index
    %241 = vector.load %arg16[%c24, %c0_100] : memref<64x1024xf32, #tpu.memory_space<vmem>>, vector<8x512xf32>
    %242 = arith.truncf %236 : vector<8x128xf32> to vector<8x128xbf16>
    %c0_101 = arith.constant 0 : index
    %c0_102 = arith.constant 0 : index
    %243 = vector.load %arg2[%c0_101, %c0_102] : memref<128x512xbf16, #tpu.memory_space<vmem>>, vector<128x512xbf16>
    %cst_103 = arith.constant dense<0.000000e+00> : vector<8x512xf32>
    %244 = tpu.matmul %242, %243, %cst_103 {dimension_numbers = #tpu.dot_dimension_numbers<[1], [0], [0], [1], [0, 0, 1, 1], [], []>} : vector<8x128xbf16>, vector<128x512xbf16>, vector<8x512xf32> -> vector<8x512xf32>
    %245 = arith.addf %241, %244 : vector<8x512xf32>
    %c32 = arith.constant 32 : index
    %c512_104 = arith.constant 512 : index
    %246 = vector.load %arg16[%c32, %c512_104] : memref<64x1024xf32, #tpu.memory_space<vmem>>, vector<8x512xf32>
    %247 = arith.truncf %238 : vector<8x128xf32> to vector<8x128xbf16>
    %c0_105 = arith.constant 0 : index
    %c0_106 = arith.constant 0 : index
    %248 = vector.load %arg3[%c0_105, %c0_106] : memref<128x512xbf16, #tpu.memory_space<vmem>>, vector<128x512xbf16>
    %cst_107 = arith.constant dense<0.000000e+00> : vector<8x512xf32>
    %249 = tpu.matmul %247, %248, %cst_107 {dimension_numbers = #tpu.dot_dimension_numbers<[1], [0], [0], [1], [0, 0, 1, 1], [], []>} : vector<8x128xbf16>, vector<128x512xbf16>, vector<8x512xf32> -> vector<8x512xf32>
    %250 = arith.addf %246, %249 : vector<8x512xf32>
    %251 = vector.extract_strided_slice %245 {offsets = [0, 0], sizes = [8, 128], strides = [1, 1]} : vector<8x512xf32> to vector<8x128xf32>
    %cst_108 = arith.constant 5.000000e-01 : f32
    %252 = vector.broadcast %cst_108 : f32 to vector<8x128xf32>
    %253 = arith.mulf %252, %251 : vector<8x128xf32>
    %254 = math.tanh %253 : vector<8x128xf32>
    %cst_109 = arith.constant 5.000000e-01 : f32
    %255 = vector.broadcast %cst_109 : f32 to vector<8x128xf32>
    %256 = arith.mulf %255, %254 : vector<8x128xf32>
    %cst_110 = arith.constant 5.000000e-01 : f32
    %257 = vector.broadcast %cst_110 : f32 to vector<8x128xf32>
    %258 = arith.addf %256, %257 : vector<8x128xf32>
    %259 = vector.extract_strided_slice %245 {offsets = [0, 128], sizes = [8, 128], strides = [1, 1]} : vector<8x512xf32> to vector<8x128xf32>
    %cst_111 = arith.constant 5.000000e-01 : f32
    %260 = vector.broadcast %cst_111 : f32 to vector<8x128xf32>
    %261 = arith.mulf %260, %259 : vector<8x128xf32>
    %262 = math.tanh %261 : vector<8x128xf32>
    %cst_112 = arith.constant 5.000000e-01 : f32
    %263 = vector.broadcast %cst_112 : f32 to vector<8x128xf32>
    %264 = arith.mulf %263, %262 : vector<8x128xf32>
    %cst_113 = arith.constant 5.000000e-01 : f32
    %265 = vector.broadcast %cst_113 : f32 to vector<8x128xf32>
    %266 = arith.addf %264, %265 : vector<8x128xf32>
    %267 = vector.extract_strided_slice %245 {offsets = [0, 256], sizes = [8, 128], strides = [1, 1]} : vector<8x512xf32> to vector<8x128xf32>
    %268 = math.tanh %267 : vector<8x128xf32>
    %269 = vector.extract_strided_slice %245 {offsets = [0, 384], sizes = [8, 128], strides = [1, 1]} : vector<8x512xf32> to vector<8x128xf32>
    %cst_114 = arith.constant 5.000000e-01 : f32
    %270 = vector.broadcast %cst_114 : f32 to vector<8x128xf32>
    %271 = arith.mulf %270, %269 : vector<8x128xf32>
    %272 = math.tanh %271 : vector<8x128xf32>
    %cst_115 = arith.constant 5.000000e-01 : f32
    %273 = vector.broadcast %cst_115 : f32 to vector<8x128xf32>
    %274 = arith.mulf %273, %272 : vector<8x128xf32>
    %cst_116 = arith.constant 5.000000e-01 : f32
    %275 = vector.broadcast %cst_116 : f32 to vector<8x128xf32>
    %276 = arith.addf %274, %275 : vector<8x128xf32>
    %277 = vector.extract_strided_slice %250 {offsets = [0, 0], sizes = [8, 128], strides = [1, 1]} : vector<8x512xf32> to vector<8x128xf32>
    %cst_117 = arith.constant 5.000000e-01 : f32
    %278 = vector.broadcast %cst_117 : f32 to vector<8x128xf32>
    %279 = arith.mulf %278, %277 : vector<8x128xf32>
    %280 = math.tanh %279 : vector<8x128xf32>
    %cst_118 = arith.constant 5.000000e-01 : f32
    %281 = vector.broadcast %cst_118 : f32 to vector<8x128xf32>
    %282 = arith.mulf %281, %280 : vector<8x128xf32>
    %cst_119 = arith.constant 5.000000e-01 : f32
    %283 = vector.broadcast %cst_119 : f32 to vector<8x128xf32>
    %284 = arith.addf %282, %283 : vector<8x128xf32>
    %285 = vector.extract_strided_slice %250 {offsets = [0, 128], sizes = [8, 128], strides = [1, 1]} : vector<8x512xf32> to vector<8x128xf32>
    %cst_120 = arith.constant 5.000000e-01 : f32
    %286 = vector.broadcast %cst_120 : f32 to vector<8x128xf32>
    %287 = arith.mulf %286, %285 : vector<8x128xf32>
    %288 = math.tanh %287 : vector<8x128xf32>
    %cst_121 = arith.constant 5.000000e-01 : f32
    %289 = vector.broadcast %cst_121 : f32 to vector<8x128xf32>
    %290 = arith.mulf %289, %288 : vector<8x128xf32>
    %cst_122 = arith.constant 5.000000e-01 : f32
    %291 = vector.broadcast %cst_122 : f32 to vector<8x128xf32>
    %292 = arith.addf %290, %291 : vector<8x128xf32>
    %293 = vector.extract_strided_slice %250 {offsets = [0, 256], sizes = [8, 128], strides = [1, 1]} : vector<8x512xf32> to vector<8x128xf32>
    %294 = math.tanh %293 : vector<8x128xf32>
    %295 = vector.extract_strided_slice %250 {offsets = [0, 384], sizes = [8, 128], strides = [1, 1]} : vector<8x512xf32> to vector<8x128xf32>
    %cst_123 = arith.constant 5.000000e-01 : f32
    %296 = vector.broadcast %cst_123 : f32 to vector<8x128xf32>
    %297 = arith.mulf %296, %295 : vector<8x128xf32>
    %298 = math.tanh %297 : vector<8x128xf32>
    %cst_124 = arith.constant 5.000000e-01 : f32
    %299 = vector.broadcast %cst_124 : f32 to vector<8x128xf32>
    %300 = arith.mulf %299, %298 : vector<8x128xf32>
    %cst_125 = arith.constant 5.000000e-01 : f32
    %301 = vector.broadcast %cst_125 : f32 to vector<8x128xf32>
    %302 = arith.addf %300, %301 : vector<8x128xf32>
    %303 = arith.mulf %266, %231 : vector<8x128xf32>
    %304 = arith.mulf %258, %268 : vector<8x128xf32>
    %305 = arith.addf %303, %304 : vector<8x128xf32>
    %306 = arith.mulf %292, %234 : vector<8x128xf32>
    %307 = arith.mulf %284, %294 : vector<8x128xf32>
    %308 = arith.addf %306, %307 : vector<8x128xf32>
    %309 = math.tanh %305 : vector<8x128xf32>
    %310 = arith.mulf %276, %309 : vector<8x128xf32>
    %311 = math.tanh %308 : vector<8x128xf32>
    %312 = arith.mulf %302, %311 : vector<8x128xf32>
    %c24_126 = arith.constant 24 : index
    %c0_127 = arith.constant 0 : index
    %313 = vector.load %arg17[%c24_126, %c0_127] : memref<64x256xf32, #tpu.memory_space<vmem>>, vector<8x128xf32>
    tpu.vector_store %arg17[%c24_126, %c0_127], %310 {strides = array<i32>} : memref<64x256xf32, #tpu.memory_space<vmem>>, vector<8x128xf32>,
    %c32_128 = arith.constant 32 : index
    %c128_129 = arith.constant 128 : index
    %314 = vector.load %arg17[%c32_128, %c128_129] : memref<64x256xf32, #tpu.memory_space<vmem>>, vector<8x128xf32>
    tpu.vector_store %arg17[%c32_128, %c128_129], %312 {strides = array<i32>} : memref<64x256xf32, #tpu.memory_space<vmem>>, vector<8x128xf32>,
    %c32_130 = arith.constant 32 : index
    %c0_131 = arith.constant 0 : index
    %315 = vector.load %arg16[%c32_130, %c0_131] : memref<64x1024xf32, #tpu.memory_space<vmem>>, vector<8x512xf32>
    %316 = arith.truncf %310 : vector<8x128xf32> to vector<8x128xbf16>
    %c0_132 = arith.constant 0 : index
    %c0_133 = arith.constant 0 : index
    %317 = vector.load %arg2[%c0_132, %c0_133] : memref<128x512xbf16, #tpu.memory_space<vmem>>, vector<128x512xbf16>
    %cst_134 = arith.constant dense<0.000000e+00> : vector<8x512xf32>
    %318 = tpu.matmul %316, %317, %cst_134 {dimension_numbers = #tpu.dot_dimension_numbers<[1], [0], [0], [1], [0, 0, 1, 1], [], []>} : vector<8x128xbf16>, vector<128x512xbf16>, vector<8x512xf32> -> vector<8x512xf32>
    %319 = arith.addf %315, %318 : vector<8x512xf32>
    %c24_135 = arith.constant 24 : index
    %c512_136 = arith.constant 512 : index
    %320 = vector.load %arg16[%c24_135, %c512_136] : memref<64x1024xf32, #tpu.memory_space<vmem>>, vector<8x512xf32>
    %321 = arith.truncf %312 : vector<8x128xf32> to vector<8x128xbf16>
    %c0_137 = arith.constant 0 : index
    %c0_138 = arith.constant 0 : index
    %322 = vector.load %arg3[%c0_137, %c0_138] : memref<128x512xbf16, #tpu.memory_space<vmem>>, vector<128x512xbf16>
    %cst_139 = arith.constant dense<0.000000e+00> : vector<8x512xf32>
    %323 = tpu.matmul %321, %322, %cst_139 {dimension_numbers = #tpu.dot_dimension_numbers<[1], [0], [0], [1], [0, 0, 1, 1], [], []>} : vector<8x128xbf16>, vector<128x512xbf16>, vector<8x512xf32> -> vector<8x512xf32>
    %324 = arith.addf %320, %323 : vector<8x512xf32>
    %325 = vector.extract_strided_slice %319 {offsets = [0, 0], sizes = [8, 128], strides = [1, 1]} : vector<8x512xf32> to vector<8x128xf32>
    %cst_140 = arith.constant 5.000000e-01 : f32
    %326 = vector.broadcast %cst_140 : f32 to vector<8x128xf32>
    %327 = arith.mulf %326, %325 : vector<8x128xf32>
    %328 = math.tanh %327 : vector<8x128xf32>
    %cst_141 = arith.constant 5.000000e-01 : f32
    %329 = vector.broadcast %cst_141 : f32 to vector<8x128xf32>
    %330 = arith.mulf %329, %328 : vector<8x128xf32>
    %cst_142 = arith.constant 5.000000e-01 : f32
    %331 = vector.broadcast %cst_142 : f32 to vector<8x128xf32>
    %332 = arith.addf %330, %331 : vector<8x128xf32>
    %333 = vector.extract_strided_slice %319 {offsets = [0, 128], sizes = [8, 128], strides = [1, 1]} : vector<8x512xf32> to vector<8x128xf32>
    %cst_143 = arith.constant 5.000000e-01 : f32
    %334 = vector.broadcast %cst_143 : f32 to vector<8x128xf32>
    %335 = arith.mulf %334, %333 : vector<8x128xf32>
    %336 = math.tanh %335 : vector<8x128xf32>
    %cst_144 = arith.constant 5.000000e-01 : f32
    %337 = vector.broadcast %cst_144 : f32 to vector<8x128xf32>
    %338 = arith.mulf %337, %336 : vector<8x128xf32>
    %cst_145 = arith.constant 5.000000e-01 : f32
    %339 = vector.broadcast %cst_145 : f32 to vector<8x128xf32>
    %340 = arith.addf %338, %339 : vector<8x128xf32>
    %341 = vector.extract_strided_slice %319 {offsets = [0, 256], sizes = [8, 128], strides = [1, 1]} : vector<8x512xf32> to vector<8x128xf32>
    %342 = math.tanh %341 : vector<8x128xf32>
    %343 = vector.extract_strided_slice %319 {offsets = [0, 384], sizes = [8, 128], strides = [1, 1]} : vector<8x512xf32> to vector<8x128xf32>
    %cst_146 = arith.constant 5.000000e-01 : f32
    %344 = vector.broadcast %cst_146 : f32 to vector<8x128xf32>
    %345 = arith.mulf %344, %343 : vector<8x128xf32>
    %346 = math.tanh %345 : vector<8x128xf32>
    %cst_147 = arith.constant 5.000000e-01 : f32
    %347 = vector.broadcast %cst_147 : f32 to vector<8x128xf32>
    %348 = arith.mulf %347, %346 : vector<8x128xf32>
    %cst_148 = arith.constant 5.000000e-01 : f32
    %349 = vector.broadcast %cst_148 : f32 to vector<8x128xf32>
    %350 = arith.addf %348, %349 : vector<8x128xf32>
    %351 = vector.extract_strided_slice %324 {offsets = [0, 0], sizes = [8, 128], strides = [1, 1]} : vector<8x512xf32> to vector<8x128xf32>
    %cst_149 = arith.constant 5.000000e-01 : f32
    %352 = vector.broadcast %cst_149 : f32 to vector<8x128xf32>
    %353 = arith.mulf %352, %351 : vector<8x128xf32>
    %354 = math.tanh %353 : vector<8x128xf32>
    %cst_150 = arith.constant 5.000000e-01 : f32
    %355 = vector.broadcast %cst_150 : f32 to vector<8x128xf32>
    %356 = arith.mulf %355, %354 : vector<8x128xf32>
    %cst_151 = arith.constant 5.000000e-01 : f32
    %357 = vector.broadcast %cst_151 : f32 to vector<8x128xf32>
    %358 = arith.addf %356, %357 : vector<8x128xf32>
    %359 = vector.extract_strided_slice %324 {offsets = [0, 128], sizes = [8, 128], strides = [1, 1]} : vector<8x512xf32> to vector<8x128xf32>
    %cst_152 = arith.constant 5.000000e-01 : f32
    %360 = vector.broadcast %cst_152 : f32 to vector<8x128xf32>
    %361 = arith.mulf %360, %359 : vector<8x128xf32>
    %362 = math.tanh %361 : vector<8x128xf32>
    %cst_153 = arith.constant 5.000000e-01 : f32
    %363 = vector.broadcast %cst_153 : f32 to vector<8x128xf32>
    %364 = arith.mulf %363, %362 : vector<8x128xf32>
    %cst_154 = arith.constant 5.000000e-01 : f32
    %365 = vector.broadcast %cst_154 : f32 to vector<8x128xf32>
    %366 = arith.addf %364, %365 : vector<8x128xf32>
    %367 = vector.extract_strided_slice %324 {offsets = [0, 256], sizes = [8, 128], strides = [1, 1]} : vector<8x512xf32> to vector<8x128xf32>
    %368 = math.tanh %367 : vector<8x128xf32>
    %369 = vector.extract_strided_slice %324 {offsets = [0, 384], sizes = [8, 128], strides = [1, 1]} : vector<8x512xf32> to vector<8x128xf32>
    %cst_155 = arith.constant 5.000000e-01 : f32
    %370 = vector.broadcast %cst_155 : f32 to vector<8x128xf32>
    %371 = arith.mulf %370, %369 : vector<8x128xf32>
    %372 = math.tanh %371 : vector<8x128xf32>
    %cst_156 = arith.constant 5.000000e-01 : f32
    %373 = vector.broadcast %cst_156 : f32 to vector<8x128xf32>
    %374 = arith.mulf %373, %372 : vector<8x128xf32>
    %cst_157 = arith.constant 5.000000e-01 : f32
    %375 = vector.broadcast %cst_157 : f32 to vector<8x128xf32>
    %376 = arith.addf %374, %375 : vector<8x128xf32>
    %377 = arith.mulf %340, %305 : vector<8x128xf32>
    %378 = arith.mulf %332, %342 : vector<8x128xf32>
    %379 = arith.addf %377, %378 : vector<8x128xf32>
    %380 = arith.mulf %366, %308 : vector<8x128xf32>
    %381 = arith.mulf %358, %368 : vector<8x128xf32>
    %382 = arith.addf %380, %381 : vector<8x128xf32>
    %383 = math.tanh %379 : vector<8x128xf32>
    %384 = arith.mulf %350, %383 : vector<8x128xf32>
    %385 = math.tanh %382 : vector<8x128xf32>
    %386 = arith.mulf %376, %385 : vector<8x128xf32>
    %c32_158 = arith.constant 32 : index
    %c0_159 = arith.constant 0 : index
    %387 = vector.load %arg17[%c32_158, %c0_159] : memref<64x256xf32, #tpu.memory_space<vmem>>, vector<8x128xf32>
    tpu.vector_store %arg17[%c32_158, %c0_159], %384 {strides = array<i32>} : memref<64x256xf32, #tpu.memory_space<vmem>>, vector<8x128xf32>,
    %c24_160 = arith.constant 24 : index
    %c128_161 = arith.constant 128 : index
    %388 = vector.load %arg17[%c24_160, %c128_161] : memref<64x256xf32, #tpu.memory_space<vmem>>, vector<8x128xf32>
    tpu.vector_store %arg17[%c24_160, %c128_161], %386 {strides = array<i32>} : memref<64x256xf32, #tpu.memory_space<vmem>>, vector<8x128xf32>,
    %c40_162 = arith.constant 40 : index
    %c0_163 = arith.constant 0 : index
    %389 = vector.load %arg16[%c40_162, %c0_163] : memref<64x1024xf32, #tpu.memory_space<vmem>>, vector<8x512xf32>
    %390 = arith.truncf %384 : vector<8x128xf32> to vector<8x128xbf16>
    %c0_164 = arith.constant 0 : index
    %c0_165 = arith.constant 0 : index
    %391 = vector.load %arg2[%c0_164, %c0_165] : memref<128x512xbf16, #tpu.memory_space<vmem>>, vector<128x512xbf16>
    %cst_166 = arith.constant dense<0.000000e+00> : vector<8x512xf32>
    %392 = tpu.matmul %390, %391, %cst_166 {dimension_numbers = #tpu.dot_dimension_numbers<[1], [0], [0], [1], [0, 0, 1, 1], [], []>} : vector<8x128xbf16>, vector<128x512xbf16>, vector<8x512xf32> -> vector<8x512xf32>
    %393 = arith.addf %389, %392 : vector<8x512xf32>
    %c16_167 = arith.constant 16 : index
    %c512_168 = arith.constant 512 : index
    %394 = vector.load %arg16[%c16_167, %c512_168] : memref<64x1024xf32, #tpu.memory_space<vmem>>, vector<8x512xf32>
    %395 = arith.truncf %386 : vector<8x128xf32> to vector<8x128xbf16>
    %c0_169 = arith.constant 0 : index
    %c0_170 = arith.constant 0 : index
    %396 = vector.load %arg3[%c0_169, %c0_170] : memref<128x512xbf16, #tpu.memory_space<vmem>>, vector<128x512xbf16>
    %cst_171 = arith.constant dense<0.000000e+00> : vector<8x512xf32>
    %397 = tpu.matmul %395, %396, %cst_171 {dimension_numbers = #tpu.dot_dimension_numbers<[1], [0], [0], [1], [0, 0, 1, 1], [], []>} : vector<8x128xbf16>, vector<128x512xbf16>, vector<8x512xf32> -> vector<8x512xf32>
    %398 = arith.addf %394, %397 : vector<8x512xf32>
    %399 = vector.extract_strided_slice %393 {offsets = [0, 0], sizes = [8, 128], strides = [1, 1]} : vector<8x512xf32> to vector<8x128xf32>
    %cst_172 = arith.constant 5.000000e-01 : f32
    %400 = vector.broadcast %cst_172 : f32 to vector<8x128xf32>
    %401 = arith.mulf %400, %399 : vector<8x128xf32>
    %402 = math.tanh %401 : vector<8x128xf32>
    %cst_173 = arith.constant 5.000000e-01 : f32
    %403 = vector.broadcast %cst_173 : f32 to vector<8x128xf32>
    %404 = arith.mulf %403, %402 : vector<8x128xf32>
    %cst_174 = arith.constant 5.000000e-01 : f32
    %405 = vector.broadcast %cst_174 : f32 to vector<8x128xf32>
    %406 = arith.addf %404, %405 : vector<8x128xf32>
    %407 = vector.extract_strided_slice %393 {offsets = [0, 128], sizes = [8, 128], strides = [1, 1]} : vector<8x512xf32> to vector<8x128xf32>
    %cst_175 = arith.constant 5.000000e-01 : f32
    %408 = vector.broadcast %cst_175 : f32 to vector<8x128xf32>
    %409 = arith.mulf %408, %407 : vector<8x128xf32>
    %410 = math.tanh %409 : vector<8x128xf32>
    %cst_176 = arith.constant 5.000000e-01 : f32
    %411 = vector.broadcast %cst_176 : f32 to vector<8x128xf32>
    %412 = arith.mulf %411, %410 : vector<8x128xf32>
    %cst_177 = arith.constant 5.000000e-01 : f32
    %413 = vector.broadcast %cst_177 : f32 to vector<8x128xf32>
    %414 = arith.addf %412, %413 : vector<8x128xf32>
    %415 = vector.extract_strided_slice %393 {offsets = [0, 256], sizes = [8, 128], strides = [1, 1]} : vector<8x512xf32> to vector<8x128xf32>
    %416 = math.tanh %415 : vector<8x128xf32>
    %417 = vector.extract_strided_slice %393 {offsets = [0, 384], sizes = [8, 128], strides = [1, 1]} : vector<8x512xf32> to vector<8x128xf32>
    %cst_178 = arith.constant 5.000000e-01 : f32
    %418 = vector.broadcast %cst_178 : f32 to vector<8x128xf32>
    %419 = arith.mulf %418, %417 : vector<8x128xf32>
    %420 = math.tanh %419 : vector<8x128xf32>
    %cst_179 = arith.constant 5.000000e-01 : f32
    %421 = vector.broadcast %cst_179 : f32 to vector<8x128xf32>
    %422 = arith.mulf %421, %420 : vector<8x128xf32>
    %cst_180 = arith.constant 5.000000e-01 : f32
    %423 = vector.broadcast %cst_180 : f32 to vector<8x128xf32>
    %424 = arith.addf %422, %423 : vector<8x128xf32>
    %425 = vector.extract_strided_slice %398 {offsets = [0, 0], sizes = [8, 128], strides = [1, 1]} : vector<8x512xf32> to vector<8x128xf32>
    %cst_181 = arith.constant 5.000000e-01 : f32
    %426 = vector.broadcast %cst_181 : f32 to vector<8x128xf32>
    %427 = arith.mulf %426, %425 : vector<8x128xf32>
    %428 = math.tanh %427 : vector<8x128xf32>
    %cst_182 = arith.constant 5.000000e-01 : f32
    %429 = vector.broadcast %cst_182 : f32 to vector<8x128xf32>
    %430 = arith.mulf %429, %428 : vector<8x128xf32>
    %cst_183 = arith.constant 5.000000e-01 : f32
    %431 = vector.broadcast %cst_183 : f32 to vector<8x128xf32>
    %432 = arith.addf %430, %431 : vector<8x128xf32>
    %433 = vector.extract_strided_slice %398 {offsets = [0, 128], sizes = [8, 128], strides = [1, 1]} : vector<8x512xf32> to vector<8x128xf32>
    %cst_184 = arith.constant 5.000000e-01 : f32
    %434 = vector.broadcast %cst_184 : f32 to vector<8x128xf32>
    %435 = arith.mulf %434, %433 : vector<8x128xf32>
    %436 = math.tanh %435 : vector<8x128xf32>
    %cst_185 = arith.constant 5.000000e-01 : f32
    %437 = vector.broadcast %cst_185 : f32 to vector<8x128xf32>
    %438 = arith.mulf %437, %436 : vector<8x128xf32>
    %cst_186 = arith.constant 5.000000e-01 : f32
    %439 = vector.broadcast %cst_186 : f32 to vector<8x128xf32>
    %440 = arith.addf %438, %439 : vector<8x128xf32>
    %441 = vector.extract_strided_slice %398 {offsets = [0, 256], sizes = [8, 128], strides = [1, 1]} : vector<8x512xf32> to vector<8x128xf32>
    %442 = math.tanh %441 : vector<8x128xf32>
    %443 = vector.extract_strided_slice %398 {offsets = [0, 384], sizes = [8, 128], strides = [1, 1]} : vector<8x512xf32> to vector<8x128xf32>
    %cst_187 = arith.constant 5.000000e-01 : f32
    %444 = vector.broadcast %cst_187 : f32 to vector<8x128xf32>
    %445 = arith.mulf %444, %443 : vector<8x128xf32>
    %446 = math.tanh %445 : vector<8x128xf32>
    %cst_188 = arith.constant 5.000000e-01 : f32
    %447 = vector.broadcast %cst_188 : f32 to vector<8x128xf32>
    %448 = arith.mulf %447, %446 : vector<8x128xf32>
    %cst_189 = arith.constant 5.000000e-01 : f32
    %449 = vector.broadcast %cst_189 : f32 to vector<8x128xf32>
    %450 = arith.addf %448, %449 : vector<8x128xf32>
    %451 = arith.mulf %414, %379 : vector<8x128xf32>
    %452 = arith.mulf %406, %416 : vector<8x128xf32>
    %453 = arith.addf %451, %452 : vector<8x128xf32>
    %454 = arith.mulf %440, %382 : vector<8x128xf32>
    %455 = arith.mulf %432, %442 : vector<8x128xf32>
    %456 = arith.addf %454, %455 : vector<8x128xf32>
    %457 = math.tanh %453 : vector<8x128xf32>
    %458 = arith.mulf %424, %457 : vector<8x128xf32>
    %459 = math.tanh %456 : vector<8x128xf32>
    %460 = arith.mulf %450, %459 : vector<8x128xf32>
    %c40_190 = arith.constant 40 : index
    %c0_191 = arith.constant 0 : index
    %461 = vector.load %arg17[%c40_190, %c0_191] : memref<64x256xf32, #tpu.memory_space<vmem>>, vector<8x128xf32>
    tpu.vector_store %arg17[%c40_190, %c0_191], %458 {strides = array<i32>} : memref<64x256xf32, #tpu.memory_space<vmem>>, vector<8x128xf32>,
    %c16_192 = arith.constant 16 : index
    %c128_193 = arith.constant 128 : index
    %462 = vector.load %arg17[%c16_192, %c128_193] : memref<64x256xf32, #tpu.memory_space<vmem>>, vector<8x128xf32>
    tpu.vector_store %arg17[%c16_192, %c128_193], %460 {strides = array<i32>} : memref<64x256xf32, #tpu.memory_space<vmem>>, vector<8x128xf32>,
    %c48_194 = arith.constant 48 : index
    %c0_195 = arith.constant 0 : index
    %463 = vector.load %arg16[%c48_194, %c0_195] : memref<64x1024xf32, #tpu.memory_space<vmem>>, vector<8x512xf32>
    %464 = arith.truncf %458 : vector<8x128xf32> to vector<8x128xbf16>
    %c0_196 = arith.constant 0 : index
    %c0_197 = arith.constant 0 : index
    %465 = vector.load %arg2[%c0_196, %c0_197] : memref<128x512xbf16, #tpu.memory_space<vmem>>, vector<128x512xbf16>
    %cst_198 = arith.constant dense<0.000000e+00> : vector<8x512xf32>
    %466 = tpu.matmul %464, %465, %cst_198 {dimension_numbers = #tpu.dot_dimension_numbers<[1], [0], [0], [1], [0, 0, 1, 1], [], []>} : vector<8x128xbf16>, vector<128x512xbf16>, vector<8x512xf32> -> vector<8x512xf32>
    %467 = arith.addf %463, %466 : vector<8x512xf32>
    %c8_199 = arith.constant 8 : index
    %c512_200 = arith.constant 512 : index
    %468 = vector.load %arg16[%c8_199, %c512_200] : memref<64x1024xf32, #tpu.memory_space<vmem>>, vector<8x512xf32>
    %469 = arith.truncf %460 : vector<8x128xf32> to vector<8x128xbf16>
    %c0_201 = arith.constant 0 : index
    %c0_202 = arith.constant 0 : index
    %470 = vector.load %arg3[%c0_201, %c0_202] : memref<128x512xbf16, #tpu.memory_space<vmem>>, vector<128x512xbf16>
    %cst_203 = arith.constant dense<0.000000e+00> : vector<8x512xf32>
    %471 = tpu.matmul %469, %470, %cst_203 {dimension_numbers = #tpu.dot_dimension_numbers<[1], [0], [0], [1], [0, 0, 1, 1], [], []>} : vector<8x128xbf16>, vector<128x512xbf16>, vector<8x512xf32> -> vector<8x512xf32>
    %472 = arith.addf %468, %471 : vector<8x512xf32>
    %473 = vector.extract_strided_slice %467 {offsets = [0, 0], sizes = [8, 128], strides = [1, 1]} : vector<8x512xf32> to vector<8x128xf32>
    %cst_204 = arith.constant 5.000000e-01 : f32
    %474 = vector.broadcast %cst_204 : f32 to vector<8x128xf32>
    %475 = arith.mulf %474, %473 : vector<8x128xf32>
    %476 = math.tanh %475 : vector<8x128xf32>
    %cst_205 = arith.constant 5.000000e-01 : f32
    %477 = vector.broadcast %cst_205 : f32 to vector<8x128xf32>
    %478 = arith.mulf %477, %476 : vector<8x128xf32>
    %cst_206 = arith.constant 5.000000e-01 : f32
    %479 = vector.broadcast %cst_206 : f32 to vector<8x128xf32>
    %480 = arith.addf %478, %479 : vector<8x128xf32>
    %481 = vector.extract_strided_slice %467 {offsets = [0, 128], sizes = [8, 128], strides = [1, 1]} : vector<8x512xf32> to vector<8x128xf32>
    %cst_207 = arith.constant 5.000000e-01 : f32
    %482 = vector.broadcast %cst_207 : f32 to vector<8x128xf32>
    %483 = arith.mulf %482, %481 : vector<8x128xf32>
    %484 = math.tanh %483 : vector<8x128xf32>
    %cst_208 = arith.constant 5.000000e-01 : f32
    %485 = vector.broadcast %cst_208 : f32 to vector<8x128xf32>
    %486 = arith.mulf %485, %484 : vector<8x128xf32>
    %cst_209 = arith.constant 5.000000e-01 : f32
    %487 = vector.broadcast %cst_209 : f32 to vector<8x128xf32>
    %488 = arith.addf %486, %487 : vector<8x128xf32>
    %489 = vector.extract_strided_slice %467 {offsets = [0, 256], sizes = [8, 128], strides = [1, 1]} : vector<8x512xf32> to vector<8x128xf32>
    %490 = math.tanh %489 : vector<8x128xf32>
    %491 = vector.extract_strided_slice %467 {offsets = [0, 384], sizes = [8, 128], strides = [1, 1]} : vector<8x512xf32> to vector<8x128xf32>
    %cst_210 = arith.constant 5.000000e-01 : f32
    %492 = vector.broadcast %cst_210 : f32 to vector<8x128xf32>
    %493 = arith.mulf %492, %491 : vector<8x128xf32>
    %494 = math.tanh %493 : vector<8x128xf32>
    %cst_211 = arith.constant 5.000000e-01 : f32
    %495 = vector.broadcast %cst_211 : f32 to vector<8x128xf32>
    %496 = arith.mulf %495, %494 : vector<8x128xf32>
    %cst_212 = arith.constant 5.000000e-01 : f32
    %497 = vector.broadcast %cst_212 : f32 to vector<8x128xf32>
    %498 = arith.addf %496, %497 : vector<8x128xf32>
    %499 = vector.extract_strided_slice %472 {offsets = [0, 0], sizes = [8, 128], strides = [1, 1]} : vector<8x512xf32> to vector<8x128xf32>
    %cst_213 = arith.constant 5.000000e-01 : f32
    %500 = vector.broadcast %cst_213 : f32 to vector<8x128xf32>
    %501 = arith.mulf %500, %499 : vector<8x128xf32>
    %502 = math.tanh %501 : vector<8x128xf32>
    %cst_214 = arith.constant 5.000000e-01 : f32
    %503 = vector.broadcast %cst_214 : f32 to vector<8x128xf32>
    %504 = arith.mulf %503, %502 : vector<8x128xf32>
    %cst_215 = arith.constant 5.000000e-01 : f32
    %505 = vector.broadcast %cst_215 : f32 to vector<8x128xf32>
    %506 = arith.addf %504, %505 : vector<8x128xf32>
    %507 = vector.extract_strided_slice %472 {offsets = [0, 128], sizes = [8, 128], strides = [1, 1]} : vector<8x512xf32> to vector<8x128xf32>
    %cst_216 = arith.constant 5.000000e-01 : f32
    %508 = vector.broadcast %cst_216 : f32 to vector<8x128xf32>
    %509 = arith.mulf %508, %507 : vector<8x128xf32>
    %510 = math.tanh %509 : vector<8x128xf32>
    %cst_217 = arith.constant 5.000000e-01 : f32
    %511 = vector.broadcast %cst_217 : f32 to vector<8x128xf32>
    %512 = arith.mulf %511, %510 : vector<8x128xf32>
    %cst_218 = arith.constant 5.000000e-01 : f32
    %513 = vector.broadcast %cst_218 : f32 to vector<8x128xf32>
    %514 = arith.addf %512, %513 : vector<8x128xf32>
    %515 = vector.extract_strided_slice %472 {offsets = [0, 256], sizes = [8, 128], strides = [1, 1]} : vector<8x512xf32> to vector<8x128xf32>
    %516 = math.tanh %515 : vector<8x128xf32>
    %517 = vector.extract_strided_slice %472 {offsets = [0, 384], sizes = [8, 128], strides = [1, 1]} : vector<8x512xf32> to vector<8x128xf32>
    %cst_219 = arith.constant 5.000000e-01 : f32
    %518 = vector.broadcast %cst_219 : f32 to vector<8x128xf32>
    %519 = arith.mulf %518, %517 : vector<8x128xf32>
    %520 = math.tanh %519 : vector<8x128xf32>
    %cst_220 = arith.constant 5.000000e-01 : f32
    %521 = vector.broadcast %cst_220 : f32 to vector<8x128xf32>
    %522 = arith.mulf %521, %520 : vector<8x128xf32>
    %cst_221 = arith.constant 5.000000e-01 : f32
    %523 = vector.broadcast %cst_221 : f32 to vector<8x128xf32>
    %524 = arith.addf %522, %523 : vector<8x128xf32>
    %525 = arith.mulf %488, %453 : vector<8x128xf32>
    %526 = arith.mulf %480, %490 : vector<8x128xf32>
    %527 = arith.addf %525, %526 : vector<8x128xf32>
    %528 = arith.mulf %514, %456 : vector<8x128xf32>
    %529 = arith.mulf %506, %516 : vector<8x128xf32>
    %530 = arith.addf %528, %529 : vector<8x128xf32>
    %531 = math.tanh %527 : vector<8x128xf32>
    %532 = arith.mulf %498, %531 : vector<8x128xf32>
    %533 = math.tanh %530 : vector<8x128xf32>
    %534 = arith.mulf %524, %533 : vector<8x128xf32>
    %c48_222 = arith.constant 48 : index
    %c0_223 = arith.constant 0 : index
    %535 = vector.load %arg17[%c48_222, %c0_223] : memref<64x256xf32, #tpu.memory_space<vmem>>, vector<8x128xf32>
    tpu.vector_store %arg17[%c48_222, %c0_223], %532 {strides = array<i32>} : memref<64x256xf32, #tpu.memory_space<vmem>>, vector<8x128xf32>,
    %c8_224 = arith.constant 8 : index
    %c128_225 = arith.constant 128 : index
    %536 = vector.load %arg17[%c8_224, %c128_225] : memref<64x256xf32, #tpu.memory_space<vmem>>, vector<8x128xf32>
    tpu.vector_store %arg17[%c8_224, %c128_225], %534 {strides = array<i32>} : memref<64x256xf32, #tpu.memory_space<vmem>>, vector<8x128xf32>,
    %c56_226 = arith.constant 56 : index
    %c0_227 = arith.constant 0 : index
    %537 = vector.load %arg16[%c56_226, %c0_227] : memref<64x1024xf32, #tpu.memory_space<vmem>>, vector<8x512xf32>
    %538 = arith.truncf %532 : vector<8x128xf32> to vector<8x128xbf16>
    %c0_228 = arith.constant 0 : index
    %c0_229 = arith.constant 0 : index
    %539 = vector.load %arg2[%c0_228, %c0_229] : memref<128x512xbf16, #tpu.memory_space<vmem>>, vector<128x512xbf16>
    %cst_230 = arith.constant dense<0.000000e+00> : vector<8x512xf32>
    %540 = tpu.matmul %538, %539, %cst_230 {dimension_numbers = #tpu.dot_dimension_numbers<[1], [0], [0], [1], [0, 0, 1, 1], [], []>} : vector<8x128xbf16>, vector<128x512xbf16>, vector<8x512xf32> -> vector<8x512xf32>
    %541 = arith.addf %537, %540 : vector<8x512xf32>
    %c0_231 = arith.constant 0 : index
    %c512_232 = arith.constant 512 : index
    %542 = vector.load %arg16[%c0_231, %c512_232] : memref<64x1024xf32, #tpu.memory_space<vmem>>, vector<8x512xf32>
    %543 = arith.truncf %534 : vector<8x128xf32> to vector<8x128xbf16>
    %c0_233 = arith.constant 0 : index
    %c0_234 = arith.constant 0 : index
    %544 = vector.load %arg3[%c0_233, %c0_234] : memref<128x512xbf16, #tpu.memory_space<vmem>>, vector<128x512xbf16>
    %cst_235 = arith.constant dense<0.000000e+00> : vector<8x512xf32>
    %545 = tpu.matmul %543, %544, %cst_235 {dimension_numbers = #tpu.dot_dimension_numbers<[1], [0], [0], [1], [0, 0, 1, 1], [], []>} : vector<8x128xbf16>, vector<128x512xbf16>, vector<8x512xf32> -> vector<8x512xf32>
    %546 = arith.addf %542, %545 : vector<8x512xf32>
    %547 = vector.extract_strided_slice %541 {offsets = [0, 0], sizes = [8, 128], strides = [1, 1]} : vector<8x512xf32> to vector<8x128xf32>
    %cst_236 = arith.constant 5.000000e-01 : f32
    %548 = vector.broadcast %cst_236 : f32 to vector<8x128xf32>
    %549 = arith.mulf %548, %547 : vector<8x128xf32>
    %550 = math.tanh %549 : vector<8x128xf32>
    %cst_237 = arith.constant 5.000000e-01 : f32
    %551 = vector.broadcast %cst_237 : f32 to vector<8x128xf32>
    %552 = arith.mulf %551, %550 : vector<8x128xf32>
    %cst_238 = arith.constant 5.000000e-01 : f32
    %553 = vector.broadcast %cst_238 : f32 to vector<8x128xf32>
    %554 = arith.addf %552, %553 : vector<8x128xf32>
    %555 = vector.extract_strided_slice %541 {offsets = [0, 128], sizes = [8, 128], strides = [1, 1]} : vector<8x512xf32> to vector<8x128xf32>
    %cst_239 = arith.constant 5.000000e-01 : f32
    %556 = vector.broadcast %cst_239 : f32 to vector<8x128xf32>
    %557 = arith.mulf %556, %555 : vector<8x128xf32>
    %558 = math.tanh %557 : vector<8x128xf32>
    %cst_240 = arith.constant 5.000000e-01 : f32
    %559 = vector.broadcast %cst_240 : f32 to vector<8x128xf32>
    %560 = arith.mulf %559, %558 : vector<8x128xf32>
    %cst_241 = arith.constant 5.000000e-01 : f32
    %561 = vector.broadcast %cst_241 : f32 to vector<8x128xf32>
    %562 = arith.addf %560, %561 : vector<8x128xf32>
    %563 = vector.extract_strided_slice %541 {offsets = [0, 256], sizes = [8, 128], strides = [1, 1]} : vector<8x512xf32> to vector<8x128xf32>
    %564 = math.tanh %563 : vector<8x128xf32>
    %565 = vector.extract_strided_slice %541 {offsets = [0, 384], sizes = [8, 128], strides = [1, 1]} : vector<8x512xf32> to vector<8x128xf32>
    %cst_242 = arith.constant 5.000000e-01 : f32
    %566 = vector.broadcast %cst_242 : f32 to vector<8x128xf32>
    %567 = arith.mulf %566, %565 : vector<8x128xf32>
    %568 = math.tanh %567 : vector<8x128xf32>
    %cst_243 = arith.constant 5.000000e-01 : f32
    %569 = vector.broadcast %cst_243 : f32 to vector<8x128xf32>
    %570 = arith.mulf %569, %568 : vector<8x128xf32>
    %cst_244 = arith.constant 5.000000e-01 : f32
    %571 = vector.broadcast %cst_244 : f32 to vector<8x128xf32>
    %572 = arith.addf %570, %571 : vector<8x128xf32>
    %573 = vector.extract_strided_slice %546 {offsets = [0, 0], sizes = [8, 128], strides = [1, 1]} : vector<8x512xf32> to vector<8x128xf32>
    %cst_245 = arith.constant 5.000000e-01 : f32
    %574 = vector.broadcast %cst_245 : f32 to vector<8x128xf32>
    %575 = arith.mulf %574, %573 : vector<8x128xf32>
    %576 = math.tanh %575 : vector<8x128xf32>
    %cst_246 = arith.constant 5.000000e-01 : f32
    %577 = vector.broadcast %cst_246 : f32 to vector<8x128xf32>
    %578 = arith.mulf %577, %576 : vector<8x128xf32>
    %cst_247 = arith.constant 5.000000e-01 : f32
    %579 = vector.broadcast %cst_247 : f32 to vector<8x128xf32>
    %580 = arith.addf %578, %579 : vector<8x128xf32>
    %581 = vector.extract_strided_slice %546 {offsets = [0, 128], sizes = [8, 128], strides = [1, 1]} : vector<8x512xf32> to vector<8x128xf32>
    %cst_248 = arith.constant 5.000000e-01 : f32
    %582 = vector.broadcast %cst_248 : f32 to vector<8x128xf32>
    %583 = arith.mulf %582, %581 : vector<8x128xf32>
    %584 = math.tanh %583 : vector<8x128xf32>
    %cst_249 = arith.constant 5.000000e-01 : f32
    %585 = vector.broadcast %cst_249 : f32 to vector<8x128xf32>
    %586 = arith.mulf %585, %584 : vector<8x128xf32>
    %cst_250 = arith.constant 5.000000e-01 : f32
    %587 = vector.broadcast %cst_250 : f32 to vector<8x128xf32>
    %588 = arith.addf %586, %587 : vector<8x128xf32>
    %589 = vector.extract_strided_slice %546 {offsets = [0, 256], sizes = [8, 128], strides = [1, 1]} : vector<8x512xf32> to vector<8x128xf32>
    %590 = math.tanh %589 : vector<8x128xf32>
    %591 = vector.extract_strided_slice %546 {offsets = [0, 384], sizes = [8, 128], strides = [1, 1]} : vector<8x512xf32> to vector<8x128xf32>
    %cst_251 = arith.constant 5.000000e-01 : f32
    %592 = vector.broadcast %cst_251 : f32 to vector<8x128xf32>
    %593 = arith.mulf %592, %591 : vector<8x128xf32>
    %594 = math.tanh %593 : vector<8x128xf32>
    %cst_252 = arith.constant 5.000000e-01 : f32
    %595 = vector.broadcast %cst_252 : f32 to vector<8x128xf32>
    %596 = arith.mulf %595, %594 : vector<8x128xf32>
    %cst_253 = arith.constant 5.000000e-01 : f32
    %597 = vector.broadcast %cst_253 : f32 to vector<8x128xf32>
    %598 = arith.addf %596, %597 : vector<8x128xf32>
    %599 = arith.mulf %562, %527 : vector<8x128xf32>
    %600 = arith.mulf %554, %564 : vector<8x128xf32>
    %601 = arith.addf %599, %600 : vector<8x128xf32>
    %602 = arith.mulf %588, %530 : vector<8x128xf32>
    %603 = arith.mulf %580, %590 : vector<8x128xf32>
    %604 = arith.addf %602, %603 : vector<8x128xf32>
    %605 = math.tanh %601 : vector<8x128xf32>
    %606 = arith.mulf %572, %605 : vector<8x128xf32>
    %607 = math.tanh %604 : vector<8x128xf32>
    %608 = arith.mulf %598, %607 : vector<8x128xf32>
    %c56_254 = arith.constant 56 : index
    %c0_255 = arith.constant 0 : index
    %609 = vector.load %arg17[%c56_254, %c0_255] : memref<64x256xf32, #tpu.memory_space<vmem>>, vector<8x128xf32>
    tpu.vector_store %arg17[%c56_254, %c0_255], %606 {strides = array<i32>} : memref<64x256xf32, #tpu.memory_space<vmem>>, vector<8x128xf32>,
    %c0_256 = arith.constant 0 : index
    %c128_257 = arith.constant 128 : index
    %610 = vector.load %arg17[%c0_256, %c128_257] : memref<64x256xf32, #tpu.memory_space<vmem>>, vector<8x128xf32>
    tpu.vector_store %arg17[%c0_256, %c128_257], %608 {strides = array<i32>} : memref<64x256xf32, #tpu.memory_space<vmem>>, vector<8x128xf32>,
    %c0_i32_258 = arith.constant 0 : i32
    %611 = tpu.memref_slice %arg18[%c0_i32_258] : memref<4x!tpu.dma_semaphore, #tpu.memory_space<semaphore_mem>> -> memref<1x!tpu.dma_semaphore, #tpu.memory_space<semaphore_mem>>
    %612 = tpu.memref_squeeze %611 : memref<1x!tpu.dma_semaphore, #tpu.memory_space<semaphore_mem>> -> memref<!tpu.dma_semaphore, #tpu.memory_space<semaphore_mem>>
    tpu.wait_dma2 semaphore(%612 : memref<!tpu.dma_semaphore, #tpu.memory_space<semaphore_mem>>) src(%arg5 : memref<256x1024xbf16, #tpu.memory_space<any>>) dst(%arg12 : memref<256x1024xbf16, #tpu.memory_space<vmem>>)
    %c0_259 = arith.constant 0 : index
    %c0_260 = arith.constant 0 : index
    %613 = vector.load %arg17[%c0_259, %c0_260] : memref<64x256xf32, #tpu.memory_space<vmem>>, vector<64x256xf32>
    %614 = arith.truncf %613 : vector<64x256xf32> to vector<64x256xbf16>
    %c0_261 = arith.constant 0 : index
    %c0_262 = arith.constant 0 : index
    %615 = vector.load %arg12[%c0_261, %c0_262] : memref<256x1024xbf16, #tpu.memory_space<vmem>>, vector<256x1024xbf16>
    %cst_263 = arith.constant dense<0.000000e+00> : vector<64x1024xf32>
    %616 = tpu.matmul %614, %615, %cst_263 {dimension_numbers = #tpu.dot_dimension_numbers<[1], [0], [0], [1], [0, 0, 1, 1], [], []>} : vector<64x256xbf16>, vector<256x1024xbf16>, vector<64x1024xf32> -> vector<64x1024xf32>
    %c0_264 = arith.constant 0 : index
    %c0_265 = arith.constant 0 : index
    %617 = vector.load %arg9[%c0_264, %c0_265] : memref<1x1024xf32, #tpu.memory_space<vmem>>, vector<1x1024xf32>
    %618 = vector.broadcast %617 : vector<1x1024xf32> to vector<64x1024xf32>
    %619 = arith.addf %616, %618 : vector<64x1024xf32>
    %c0_266 = arith.constant 0 : index
    %c0_267 = arith.constant 0 : index
    %620 = vector.load %arg16[%c0_266, %c0_267] : memref<64x1024xf32, #tpu.memory_space<vmem>>, vector<64x1024xf32>
    tpu.vector_store %arg16[%c0_266, %c0_267], %619 {strides = array<i32>} : memref<64x1024xf32, #tpu.memory_space<vmem>>, vector<64x1024xf32>,
    %c1_i32_268 = arith.constant 1 : i32
    %621 = tpu.memref_slice %arg18[%c1_i32_268] : memref<4x!tpu.dma_semaphore, #tpu.memory_space<semaphore_mem>> -> memref<1x!tpu.dma_semaphore, #tpu.memory_space<semaphore_mem>>
    %622 = tpu.memref_squeeze %621 : memref<1x!tpu.dma_semaphore, #tpu.memory_space<semaphore_mem>> -> memref<!tpu.dma_semaphore, #tpu.memory_space<semaphore_mem>>
    tpu.wait_dma2 semaphore(%622 : memref<!tpu.dma_semaphore, #tpu.memory_space<semaphore_mem>>) src(%arg6 : memref<128x512xbf16, #tpu.memory_space<any>>) dst(%arg13 : memref<128x512xbf16, #tpu.memory_space<vmem>>)
    %c2_i32_269 = arith.constant 2 : i32
    %623 = tpu.memref_slice %arg18[%c2_i32_269] : memref<4x!tpu.dma_semaphore, #tpu.memory_space<semaphore_mem>> -> memref<1x!tpu.dma_semaphore, #tpu.memory_space<semaphore_mem>>
    %624 = tpu.memref_squeeze %623 : memref<1x!tpu.dma_semaphore, #tpu.memory_space<semaphore_mem>> -> memref<!tpu.dma_semaphore, #tpu.memory_space<semaphore_mem>>
    tpu.wait_dma2 semaphore(%624 : memref<!tpu.dma_semaphore, #tpu.memory_space<semaphore_mem>>) src(%arg7 : memref<128x512xbf16, #tpu.memory_space<any>>) dst(%arg14 : memref<128x512xbf16, #tpu.memory_space<vmem>>)
    %cst_270 = arith.constant 0.000000e+00 : f32
    %625 = vector.broadcast %cst_270 : f32 to vector<8x128xf32>
    %cst_271 = arith.constant 0.000000e+00 : f32
    %626 = vector.broadcast %cst_271 : f32 to vector<8x128xf32>
    %cst_272 = arith.constant 0.000000e+00 : f32
    %627 = vector.broadcast %cst_272 : f32 to vector<8x128xf32>
    %cst_273 = arith.constant 0.000000e+00 : f32
    %628 = vector.broadcast %cst_273 : f32 to vector<8x128xf32>
    %c0_274 = arith.constant 0 : index
    %c0_275 = arith.constant 0 : index
    %629 = vector.load %arg16[%c0_274, %c0_275] : memref<64x1024xf32, #tpu.memory_space<vmem>>, vector<8x512xf32>
    %630 = arith.truncf %625 : vector<8x128xf32> to vector<8x128xbf16>
    %c0_276 = arith.constant 0 : index
    %c0_277 = arith.constant 0 : index
    %631 = vector.load %arg13[%c0_276, %c0_277] : memref<128x512xbf16, #tpu.memory_space<vmem>>, vector<128x512xbf16>
    %cst_278 = arith.constant dense<0.000000e+00> : vector<8x512xf32>
    %632 = tpu.matmul %630, %631, %cst_278 {dimension_numbers = #tpu.dot_dimension_numbers<[1], [0], [0], [1], [0, 0, 1, 1], [], []>} : vector<8x128xbf16>, vector<128x512xbf16>, vector<8x512xf32> -> vector<8x512xf32>
    %633 = arith.addf %629, %632 : vector<8x512xf32>
    %c56_279 = arith.constant 56 : index
    %c512_280 = arith.constant 512 : index
    %634 = vector.load %arg16[%c56_279, %c512_280] : memref<64x1024xf32, #tpu.memory_space<vmem>>, vector<8x512xf32>
    %635 = arith.truncf %626 : vector<8x128xf32> to vector<8x128xbf16>
    %c0_281 = arith.constant 0 : index
    %c0_282 = arith.constant 0 : index
    %636 = vector.load %arg14[%c0_281, %c0_282] : memref<128x512xbf16, #tpu.memory_space<vmem>>, vector<128x512xbf16>
    %cst_283 = arith.constant dense<0.000000e+00> : vector<8x512xf32>
    %637 = tpu.matmul %635, %636, %cst_283 {dimension_numbers = #tpu.dot_dimension_numbers<[1], [0], [0], [1], [0, 0, 1, 1], [], []>} : vector<8x128xbf16>, vector<128x512xbf16>, vector<8x512xf32> -> vector<8x512xf32>
    %638 = arith.addf %634, %637 : vector<8x512xf32>
    %639 = vector.extract_strided_slice %633 {offsets = [0, 0], sizes = [8, 128], strides = [1, 1]} : vector<8x512xf32> to vector<8x128xf32>
    %cst_284 = arith.constant 5.000000e-01 : f32
    %640 = vector.broadcast %cst_284 : f32 to vector<8x128xf32>
    %641 = arith.mulf %640, %639 : vector<8x128xf32>
    %642 = math.tanh %641 : vector<8x128xf32>
    %cst_285 = arith.constant 5.000000e-01 : f32
    %643 = vector.broadcast %cst_285 : f32 to vector<8x128xf32>
    %644 = arith.mulf %643, %642 : vector<8x128xf32>
    %cst_286 = arith.constant 5.000000e-01 : f32
    %645 = vector.broadcast %cst_286 : f32 to vector<8x128xf32>
    %646 = arith.addf %644, %645 : vector<8x128xf32>
    %647 = vector.extract_strided_slice %633 {offsets = [0, 128], sizes = [8, 128], strides = [1, 1]} : vector<8x512xf32> to vector<8x128xf32>
    %cst_287 = arith.constant 5.000000e-01 : f32
    %648 = vector.broadcast %cst_287 : f32 to vector<8x128xf32>
    %649 = arith.mulf %648, %647 : vector<8x128xf32>
    %650 = math.tanh %649 : vector<8x128xf32>
    %cst_288 = arith.constant 5.000000e-01 : f32
    %651 = vector.broadcast %cst_288 : f32 to vector<8x128xf32>
    %652 = arith.mulf %651, %650 : vector<8x128xf32>
    %cst_289 = arith.constant 5.000000e-01 : f32
    %653 = vector.broadcast %cst_289 : f32 to vector<8x128xf32>
    %654 = arith.addf %652, %653 : vector<8x128xf32>
    %655 = vector.extract_strided_slice %633 {offsets = [0, 256], sizes = [8, 128], strides = [1, 1]} : vector<8x512xf32> to vector<8x128xf32>
    %656 = math.tanh %655 : vector<8x128xf32>
    %657 = vector.extract_strided_slice %633 {offsets = [0, 384], sizes = [8, 128], strides = [1, 1]} : vector<8x512xf32> to vector<8x128xf32>
    %cst_290 = arith.constant 5.000000e-01 : f32
    %658 = vector.broadcast %cst_290 : f32 to vector<8x128xf32>
    %659 = arith.mulf %658, %657 : vector<8x128xf32>
    %660 = math.tanh %659 : vector<8x128xf32>
    %cst_291 = arith.constant 5.000000e-01 : f32
    %661 = vector.broadcast %cst_291 : f32 to vector<8x128xf32>
    %662 = arith.mulf %661, %660 : vector<8x128xf32>
    %cst_292 = arith.constant 5.000000e-01 : f32
    %663 = vector.broadcast %cst_292 : f32 to vector<8x128xf32>
    %664 = arith.addf %662, %663 : vector<8x128xf32>
    %665 = vector.extract_strided_slice %638 {offsets = [0, 0], sizes = [8, 128], strides = [1, 1]} : vector<8x512xf32> to vector<8x128xf32>
    %cst_293 = arith.constant 5.000000e-01 : f32
    %666 = vector.broadcast %cst_293 : f32 to vector<8x128xf32>
    %667 = arith.mulf %666, %665 : vector<8x128xf32>
    %668 = math.tanh %667 : vector<8x128xf32>
    %cst_294 = arith.constant 5.000000e-01 : f32
    %669 = vector.broadcast %cst_294 : f32 to vector<8x128xf32>
    %670 = arith.mulf %669, %668 : vector<8x128xf32>
    %cst_295 = arith.constant 5.000000e-01 : f32
    %671 = vector.broadcast %cst_295 : f32 to vector<8x128xf32>
    %672 = arith.addf %670, %671 : vector<8x128xf32>
    %673 = vector.extract_strided_slice %638 {offsets = [0, 128], sizes = [8, 128], strides = [1, 1]} : vector<8x512xf32> to vector<8x128xf32>
    %cst_296 = arith.constant 5.000000e-01 : f32
    %674 = vector.broadcast %cst_296 : f32 to vector<8x128xf32>
    %675 = arith.mulf %674, %673 : vector<8x128xf32>
    %676 = math.tanh %675 : vector<8x128xf32>
    %cst_297 = arith.constant 5.000000e-01 : f32
    %677 = vector.broadcast %cst_297 : f32 to vector<8x128xf32>
    %678 = arith.mulf %677, %676 : vector<8x128xf32>
    %cst_298 = arith.constant 5.000000e-01 : f32
    %679 = vector.broadcast %cst_298 : f32 to vector<8x128xf32>
    %680 = arith.addf %678, %679 : vector<8x128xf32>
    %681 = vector.extract_strided_slice %638 {offsets = [0, 256], sizes = [8, 128], strides = [1, 1]} : vector<8x512xf32> to vector<8x128xf32>
    %682 = math.tanh %681 : vector<8x128xf32>
    %683 = vector.extract_strided_slice %638 {offsets = [0, 384], sizes = [8, 128], strides = [1, 1]} : vector<8x512xf32> to vector<8x128xf32>
    %cst_299 = arith.constant 5.000000e-01 : f32
    %684 = vector.broadcast %cst_299 : f32 to vector<8x128xf32>
    %685 = arith.mulf %684, %683 : vector<8x128xf32>
    %686 = math.tanh %685 : vector<8x128xf32>
    %cst_300 = arith.constant 5.000000e-01 : f32
    %687 = vector.broadcast %cst_300 : f32 to vector<8x128xf32>
    %688 = arith.mulf %687, %686 : vector<8x128xf32>
    %cst_301 = arith.constant 5.000000e-01 : f32
    %689 = vector.broadcast %cst_301 : f32 to vector<8x128xf32>
    %690 = arith.addf %688, %689 : vector<8x128xf32>
    %691 = arith.mulf %654, %627 : vector<8x128xf32>
    %692 = arith.mulf %646, %656 : vector<8x128xf32>
    %693 = arith.addf %691, %692 : vector<8x128xf32>
    %694 = arith.mulf %680, %628 : vector<8x128xf32>
    %695 = arith.mulf %672, %682 : vector<8x128xf32>
    %696 = arith.addf %694, %695 : vector<8x128xf32>
    %697 = math.tanh %693 : vector<8x128xf32>
    %698 = arith.mulf %664, %697 : vector<8x128xf32>
    %699 = math.tanh %696 : vector<8x128xf32>
    %700 = arith.mulf %690, %699 : vector<8x128xf32>
    %c8_302 = arith.constant 8 : index
    %c0_303 = arith.constant 0 : index
    %701 = vector.load %arg16[%c8_302, %c0_303] : memref<64x1024xf32, #tpu.memory_space<vmem>>, vector<8x512xf32>
    %702 = arith.truncf %698 : vector<8x128xf32> to vector<8x128xbf16>
    %c0_304 = arith.constant 0 : index
    %c0_305 = arith.constant 0 : index
    %703 = vector.load %arg13[%c0_304, %c0_305] : memref<128x512xbf16, #tpu.memory_space<vmem>>, vector<128x512xbf16>
    %cst_306 = arith.constant dense<0.000000e+00> : vector<8x512xf32>
    %704 = tpu.matmul %702, %703, %cst_306 {dimension_numbers = #tpu.dot_dimension_numbers<[1], [0], [0], [1], [0, 0, 1, 1], [], []>} : vector<8x128xbf16>, vector<128x512xbf16>, vector<8x512xf32> -> vector<8x512xf32>
    %705 = arith.addf %701, %704 : vector<8x512xf32>
    %706 = vector.extract_strided_slice %705 {offsets = [0, 0], sizes = [8, 128], strides = [1, 1]} : vector<8x512xf32> to vector<8x128xf32>
    %cst_307 = arith.constant 5.000000e-01 : f32
    %707 = vector.broadcast %cst_307 : f32 to vector<8x128xf32>
    %708 = arith.mulf %707, %706 : vector<8x128xf32>
    %709 = math.tanh %708 : vector<8x128xf32>
    %cst_308 = arith.constant 5.000000e-01 : f32
    %710 = vector.broadcast %cst_308 : f32 to vector<8x128xf32>
    %711 = arith.mulf %710, %709 : vector<8x128xf32>
    %cst_309 = arith.constant 5.000000e-01 : f32
    %712 = vector.broadcast %cst_309 : f32 to vector<8x128xf32>
    %713 = arith.addf %711, %712 : vector<8x128xf32>
    %714 = vector.extract_strided_slice %705 {offsets = [0, 128], sizes = [8, 128], strides = [1, 1]} : vector<8x512xf32> to vector<8x128xf32>
    %cst_310 = arith.constant 5.000000e-01 : f32
    %715 = vector.broadcast %cst_310 : f32 to vector<8x128xf32>
    %716 = arith.mulf %715, %714 : vector<8x128xf32>
    %717 = math.tanh %716 : vector<8x128xf32>
    %cst_311 = arith.constant 5.000000e-01 : f32
    %718 = vector.broadcast %cst_311 : f32 to vector<8x128xf32>
    %719 = arith.mulf %718, %717 : vector<8x128xf32>
    %cst_312 = arith.constant 5.000000e-01 : f32
    %720 = vector.broadcast %cst_312 : f32 to vector<8x128xf32>
    %721 = arith.addf %719, %720 : vector<8x128xf32>
    %722 = vector.extract_strided_slice %705 {offsets = [0, 256], sizes = [8, 128], strides = [1, 1]} : vector<8x512xf32> to vector<8x128xf32>
    %723 = math.tanh %722 : vector<8x128xf32>
    %724 = vector.extract_strided_slice %705 {offsets = [0, 384], sizes = [8, 128], strides = [1, 1]} : vector<8x512xf32> to vector<8x128xf32>
    %cst_313 = arith.constant 5.000000e-01 : f32
    %725 = vector.broadcast %cst_313 : f32 to vector<8x128xf32>
    %726 = arith.mulf %725, %724 : vector<8x128xf32>
    %727 = math.tanh %726 : vector<8x128xf32>
    %cst_314 = arith.constant 5.000000e-01 : f32
    %728 = vector.broadcast %cst_314 : f32 to vector<8x128xf32>
    %729 = arith.mulf %728, %727 : vector<8x128xf32>
    %cst_315 = arith.constant 5.000000e-01 : f32
    %730 = vector.broadcast %cst_315 : f32 to vector<8x128xf32>
    %731 = arith.addf %729, %730 : vector<8x128xf32>
    %732 = arith.mulf %721, %693 : vector<8x128xf32>
    %733 = arith.mulf %713, %723 : vector<8x128xf32>
    %734 = arith.addf %732, %733 : vector<8x128xf32>
    %735 = math.tanh %734 : vector<8x128xf32>
    %736 = arith.mulf %731, %735 : vector<8x128xf32>
    %c16_316 = arith.constant 16 : index
    %c0_317 = arith.constant 0 : index
    %737 = vector.load %arg16[%c16_316, %c0_317] : memref<64x1024xf32, #tpu.memory_space<vmem>>, vector<8x512xf32>
    %738 = arith.truncf %736 : vector<8x128xf32> to vector<8x128xbf16>
    %c0_318 = arith.constant 0 : index
    %c0_319 = arith.constant 0 : index
    %739 = vector.load %arg13[%c0_318, %c0_319] : memref<128x512xbf16, #tpu.memory_space<vmem>>, vector<128x512xbf16>
    %cst_320 = arith.constant dense<0.000000e+00> : vector<8x512xf32>
    %740 = tpu.matmul %738, %739, %cst_320 {dimension_numbers = #tpu.dot_dimension_numbers<[1], [0], [0], [1], [0, 0, 1, 1], [], []>} : vector<8x128xbf16>, vector<128x512xbf16>, vector<8x512xf32> -> vector<8x512xf32>
    %741 = arith.addf %737, %740 : vector<8x512xf32>
    %742 = vector.extract_strided_slice %741 {offsets = [0, 0], sizes = [8, 128], strides = [1, 1]} : vector<8x512xf32> to vector<8x128xf32>
    %cst_321 = arith.constant 5.000000e-01 : f32
    %743 = vector.broadcast %cst_321 : f32 to vector<8x128xf32>
    %744 = arith.mulf %743, %742 : vector<8x128xf32>
    %745 = math.tanh %744 : vector<8x128xf32>
    %cst_322 = arith.constant 5.000000e-01 : f32
    %746 = vector.broadcast %cst_322 : f32 to vector<8x128xf32>
    %747 = arith.mulf %746, %745 : vector<8x128xf32>
    %cst_323 = arith.constant 5.000000e-01 : f32
    %748 = vector.broadcast %cst_323 : f32 to vector<8x128xf32>
    %749 = arith.addf %747, %748 : vector<8x128xf32>
    %750 = vector.extract_strided_slice %741 {offsets = [0, 128], sizes = [8, 128], strides = [1, 1]} : vector<8x512xf32> to vector<8x128xf32>
    %cst_324 = arith.constant 5.000000e-01 : f32
    %751 = vector.broadcast %cst_324 : f32 to vector<8x128xf32>
    %752 = arith.mulf %751, %750 : vector<8x128xf32>
    %753 = math.tanh %752 : vector<8x128xf32>
    %cst_325 = arith.constant 5.000000e-01 : f32
    %754 = vector.broadcast %cst_325 : f32 to vector<8x128xf32>
    %755 = arith.mulf %754, %753 : vector<8x128xf32>
    %cst_326 = arith.constant 5.000000e-01 : f32
    %756 = vector.broadcast %cst_326 : f32 to vector<8x128xf32>
    %757 = arith.addf %755, %756 : vector<8x128xf32>
    %758 = vector.extract_strided_slice %741 {offsets = [0, 256], sizes = [8, 128], strides = [1, 1]} : vector<8x512xf32> to vector<8x128xf32>
    %759 = math.tanh %758 : vector<8x128xf32>
    %760 = vector.extract_strided_slice %741 {offsets = [0, 384], sizes = [8, 128], strides = [1, 1]} : vector<8x512xf32> to vector<8x128xf32>
    %cst_327 = arith.constant 5.000000e-01 : f32
    %761 = vector.broadcast %cst_327 : f32 to vector<8x128xf32>
    %762 = arith.mulf %761, %760 : vector<8x128xf32>
    %763 = math.tanh %762 : vector<8x128xf32>
    %cst_328 = arith.constant 5.000000e-01 : f32
    %764 = vector.broadcast %cst_328 : f32 to vector<8x128xf32>
    %765 = arith.mulf %764, %763 : vector<8x128xf32>
    %cst_329 = arith.constant 5.000000e-01 : f32
    %766 = vector.broadcast %cst_329 : f32 to vector<8x128xf32>
    %767 = arith.addf %765, %766 : vector<8x128xf32>
    %768 = arith.mulf %757, %734 : vector<8x128xf32>
    %769 = arith.mulf %749, %759 : vector<8x128xf32>
    %770 = arith.addf %768, %769 : vector<8x128xf32>
    %771 = math.tanh %770 : vector<8x128xf32>
    %772 = arith.mulf %767, %771 : vector<8x128xf32>
    %c24_330 = arith.constant 24 : index
    %c0_331 = arith.constant 0 : index
    %773 = vector.load %arg16[%c24_330, %c0_331] : memref<64x1024xf32, #tpu.memory_space<vmem>>, vector<8x512xf32>
    %774 = arith.truncf %772 : vector<8x128xf32> to vector<8x128xbf16>
    %c0_332 = arith.constant 0 : index
    %c0_333 = arith.constant 0 : index
    %775 = vector.load %arg13[%c0_332, %c0_333] : memref<128x512xbf16, #tpu.memory_space<vmem>>, vector<128x512xbf16>
    %cst_334 = arith.constant dense<0.000000e+00> : vector<8x512xf32>
    %776 = tpu.matmul %774, %775, %cst_334 {dimension_numbers = #tpu.dot_dimension_numbers<[1], [0], [0], [1], [0, 0, 1, 1], [], []>} : vector<8x128xbf16>, vector<128x512xbf16>, vector<8x512xf32> -> vector<8x512xf32>
    %777 = arith.addf %773, %776 : vector<8x512xf32>
    %778 = vector.extract_strided_slice %777 {offsets = [0, 0], sizes = [8, 128], strides = [1, 1]} : vector<8x512xf32> to vector<8x128xf32>
    %cst_335 = arith.constant 5.000000e-01 : f32
    %779 = vector.broadcast %cst_335 : f32 to vector<8x128xf32>
    %780 = arith.mulf %779, %778 : vector<8x128xf32>
    %781 = math.tanh %780 : vector<8x128xf32>
    %cst_336 = arith.constant 5.000000e-01 : f32
    %782 = vector.broadcast %cst_336 : f32 to vector<8x128xf32>
    %783 = arith.mulf %782, %781 : vector<8x128xf32>
    %cst_337 = arith.constant 5.000000e-01 : f32
    %784 = vector.broadcast %cst_337 : f32 to vector<8x128xf32>
    %785 = arith.addf %783, %784 : vector<8x128xf32>
    %786 = vector.extract_strided_slice %777 {offsets = [0, 128], sizes = [8, 128], strides = [1, 1]} : vector<8x512xf32> to vector<8x128xf32>
    %cst_338 = arith.constant 5.000000e-01 : f32
    %787 = vector.broadcast %cst_338 : f32 to vector<8x128xf32>
    %788 = arith.mulf %787, %786 : vector<8x128xf32>
    %789 = math.tanh %788 : vector<8x128xf32>
    %cst_339 = arith.constant 5.000000e-01 : f32
    %790 = vector.broadcast %cst_339 : f32 to vector<8x128xf32>
    %791 = arith.mulf %790, %789 : vector<8x128xf32>
    %cst_340 = arith.constant 5.000000e-01 : f32
    %792 = vector.broadcast %cst_340 : f32 to vector<8x128xf32>
    %793 = arith.addf %791, %792 : vector<8x128xf32>
    %794 = vector.extract_strided_slice %777 {offsets = [0, 256], sizes = [8, 128], strides = [1, 1]} : vector<8x512xf32> to vector<8x128xf32>
    %795 = math.tanh %794 : vector<8x128xf32>
    %796 = vector.extract_strided_slice %777 {offsets = [0, 384], sizes = [8, 128], strides = [1, 1]} : vector<8x512xf32> to vector<8x128xf32>
    %cst_341 = arith.constant 5.000000e-01 : f32
    %797 = vector.broadcast %cst_341 : f32 to vector<8x128xf32>
    %798 = arith.mulf %797, %796 : vector<8x128xf32>
    %799 = math.tanh %798 : vector<8x128xf32>
    %cst_342 = arith.constant 5.000000e-01 : f32
    %800 = vector.broadcast %cst_342 : f32 to vector<8x128xf32>
    %801 = arith.mulf %800, %799 : vector<8x128xf32>
    %cst_343 = arith.constant 5.000000e-01 : f32
    %802 = vector.broadcast %cst_343 : f32 to vector<8x128xf32>
    %803 = arith.addf %801, %802 : vector<8x128xf32>
    %804 = arith.mulf %793, %770 : vector<8x128xf32>
    %805 = arith.mulf %785, %795 : vector<8x128xf32>
    %806 = arith.addf %804, %805 : vector<8x128xf32>
    %807 = math.tanh %806 : vector<8x128xf32>
    %808 = arith.mulf %803, %807 : vector<8x128xf32>
    %c32_344 = arith.constant 32 : index
    %c0_345 = arith.constant 0 : index
    %809 = vector.load %arg16[%c32_344, %c0_345] : memref<64x1024xf32, #tpu.memory_space<vmem>>, vector<8x512xf32>
    %810 = arith.truncf %808 : vector<8x128xf32> to vector<8x128xbf16>
    %c0_346 = arith.constant 0 : index
    %c0_347 = arith.constant 0 : index
    %811 = vector.load %arg13[%c0_346, %c0_347] : memref<128x512xbf16, #tpu.memory_space<vmem>>, vector<128x512xbf16>
    %cst_348 = arith.constant dense<0.000000e+00> : vector<8x512xf32>
    %812 = tpu.matmul %810, %811, %cst_348 {dimension_numbers = #tpu.dot_dimension_numbers<[1], [0], [0], [1], [0, 0, 1, 1], [], []>} : vector<8x128xbf16>, vector<128x512xbf16>, vector<8x512xf32> -> vector<8x512xf32>
    %813 = arith.addf %809, %812 : vector<8x512xf32>
    %814 = vector.extract_strided_slice %813 {offsets = [0, 0], sizes = [8, 128], strides = [1, 1]} : vector<8x512xf32> to vector<8x128xf32>
    %cst_349 = arith.constant 5.000000e-01 : f32
    %815 = vector.broadcast %cst_349 : f32 to vector<8x128xf32>
    %816 = arith.mulf %815, %814 : vector<8x128xf32>
    %817 = math.tanh %816 : vector<8x128xf32>
    %cst_350 = arith.constant 5.000000e-01 : f32
    %818 = vector.broadcast %cst_350 : f32 to vector<8x128xf32>
    %819 = arith.mulf %818, %817 : vector<8x128xf32>
    %cst_351 = arith.constant 5.000000e-01 : f32
    %820 = vector.broadcast %cst_351 : f32 to vector<8x128xf32>
    %821 = arith.addf %819, %820 : vector<8x128xf32>
    %822 = vector.extract_strided_slice %813 {offsets = [0, 128], sizes = [8, 128], strides = [1, 1]} : vector<8x512xf32> to vector<8x128xf32>
    %cst_352 = arith.constant 5.000000e-01 : f32
    %823 = vector.broadcast %cst_352 : f32 to vector<8x128xf32>
    %824 = arith.mulf %823, %822 : vector<8x128xf32>
    %825 = math.tanh %824 : vector<8x128xf32>
    %cst_353 = arith.constant 5.000000e-01 : f32
    %826 = vector.broadcast %cst_353 : f32 to vector<8x128xf32>
    %827 = arith.mulf %826, %825 : vector<8x128xf32>
    %cst_354 = arith.constant 5.000000e-01 : f32
    %828 = vector.broadcast %cst_354 : f32 to vector<8x128xf32>
    %829 = arith.addf %827, %828 : vector<8x128xf32>
    %830 = vector.extract_strided_slice %813 {offsets = [0, 256], sizes = [8, 128], strides = [1, 1]} : vector<8x512xf32> to vector<8x128xf32>
    %831 = math.tanh %830 : vector<8x128xf32>
    %832 = vector.extract_strided_slice %813 {offsets = [0, 384], sizes = [8, 128], strides = [1, 1]} : vector<8x512xf32> to vector<8x128xf32>
    %cst_355 = arith.constant 5.000000e-01 : f32
    %833 = vector.broadcast %cst_355 : f32 to vector<8x128xf32>
    %834 = arith.mulf %833, %832 : vector<8x128xf32>
    %835 = math.tanh %834 : vector<8x128xf32>
    %cst_356 = arith.constant 5.000000e-01 : f32
    %836 = vector.broadcast %cst_356 : f32 to vector<8x128xf32>
    %837 = arith.mulf %836, %835 : vector<8x128xf32>
    %cst_357 = arith.constant 5.000000e-01 : f32
    %838 = vector.broadcast %cst_357 : f32 to vector<8x128xf32>
    %839 = arith.addf %837, %838 : vector<8x128xf32>
    %840 = arith.mulf %829, %806 : vector<8x128xf32>
    %841 = arith.mulf %821, %831 : vector<8x128xf32>
    %842 = arith.addf %840, %841 : vector<8x128xf32>
    %843 = math.tanh %842 : vector<8x128xf32>
    %844 = arith.mulf %839, %843 : vector<8x128xf32>
    %c40_358 = arith.constant 40 : index
    %c0_359 = arith.constant 0 : index
    %845 = vector.load %arg16[%c40_358, %c0_359] : memref<64x1024xf32, #tpu.memory_space<vmem>>, vector<8x512xf32>
    %846 = arith.truncf %844 : vector<8x128xf32> to vector<8x128xbf16>
    %c0_360 = arith.constant 0 : index
    %c0_361 = arith.constant 0 : index
    %847 = vector.load %arg13[%c0_360, %c0_361] : memref<128x512xbf16, #tpu.memory_space<vmem>>, vector<128x512xbf16>
    %cst_362 = arith.constant dense<0.000000e+00> : vector<8x512xf32>
    %848 = tpu.matmul %846, %847, %cst_362 {dimension_numbers = #tpu.dot_dimension_numbers<[1], [0], [0], [1], [0, 0, 1, 1], [], []>} : vector<8x128xbf16>, vector<128x512xbf16>, vector<8x512xf32> -> vector<8x512xf32>
    %849 = arith.addf %845, %848 : vector<8x512xf32>
    %850 = vector.extract_strided_slice %849 {offsets = [0, 0], sizes = [8, 128], strides = [1, 1]} : vector<8x512xf32> to vector<8x128xf32>
    %cst_363 = arith.constant 5.000000e-01 : f32
    %851 = vector.broadcast %cst_363 : f32 to vector<8x128xf32>
    %852 = arith.mulf %851, %850 : vector<8x128xf32>
    %853 = math.tanh %852 : vector<8x128xf32>
    %cst_364 = arith.constant 5.000000e-01 : f32
    %854 = vector.broadcast %cst_364 : f32 to vector<8x128xf32>
    %855 = arith.mulf %854, %853 : vector<8x128xf32>
    %cst_365 = arith.constant 5.000000e-01 : f32
    %856 = vector.broadcast %cst_365 : f32 to vector<8x128xf32>
    %857 = arith.addf %855, %856 : vector<8x128xf32>
    %858 = vector.extract_strided_slice %849 {offsets = [0, 128], sizes = [8, 128], strides = [1, 1]} : vector<8x512xf32> to vector<8x128xf32>
    %cst_366 = arith.constant 5.000000e-01 : f32
    %859 = vector.broadcast %cst_366 : f32 to vector<8x128xf32>
    %860 = arith.mulf %859, %858 : vector<8x128xf32>
    %861 = math.tanh %860 : vector<8x128xf32>
    %cst_367 = arith.constant 5.000000e-01 : f32
    %862 = vector.broadcast %cst_367 : f32 to vector<8x128xf32>
    %863 = arith.mulf %862, %861 : vector<8x128xf32>
    %cst_368 = arith.constant 5.000000e-01 : f32
    %864 = vector.broadcast %cst_368 : f32 to vector<8x128xf32>
    %865 = arith.addf %863, %864 : vector<8x128xf32>
    %866 = vector.extract_strided_slice %849 {offsets = [0, 256], sizes = [8, 128], strides = [1, 1]} : vector<8x512xf32> to vector<8x128xf32>
    %867 = math.tanh %866 : vector<8x128xf32>
    %868 = vector.extract_strided_slice %849 {offsets = [0, 384], sizes = [8, 128], strides = [1, 1]} : vector<8x512xf32> to vector<8x128xf32>
    %cst_369 = arith.constant 5.000000e-01 : f32
    %869 = vector.broadcast %cst_369 : f32 to vector<8x128xf32>
    %870 = arith.mulf %869, %868 : vector<8x128xf32>
    %871 = math.tanh %870 : vector<8x128xf32>
    %cst_370 = arith.constant 5.000000e-01 : f32
    %872 = vector.broadcast %cst_370 : f32 to vector<8x128xf32>
    %873 = arith.mulf %872, %871 : vector<8x128xf32>
    %cst_371 = arith.constant 5.000000e-01 : f32
    %874 = vector.broadcast %cst_371 : f32 to vector<8x128xf32>
    %875 = arith.addf %873, %874 : vector<8x128xf32>
    %876 = arith.mulf %865, %842 : vector<8x128xf32>
    %877 = arith.mulf %857, %867 : vector<8x128xf32>
    %878 = arith.addf %876, %877 : vector<8x128xf32>
    %879 = math.tanh %878 : vector<8x128xf32>
    %880 = arith.mulf %875, %879 : vector<8x128xf32>
    %c48_372 = arith.constant 48 : index
    %c0_373 = arith.constant 0 : index
    %881 = vector.load %arg16[%c48_372, %c0_373] : memref<64x1024xf32, #tpu.memory_space<vmem>>, vector<8x512xf32>
    %882 = arith.truncf %880 : vector<8x128xf32> to vector<8x128xbf16>
    %c0_374 = arith.constant 0 : index
    %c0_375 = arith.constant 0 : index
    %883 = vector.load %arg13[%c0_374, %c0_375] : memref<128x512xbf16, #tpu.memory_space<vmem>>, vector<128x512xbf16>
    %cst_376 = arith.constant dense<0.000000e+00> : vector<8x512xf32>
    %884 = tpu.matmul %882, %883, %cst_376 {dimension_numbers = #tpu.dot_dimension_numbers<[1], [0], [0], [1], [0, 0, 1, 1], [], []>} : vector<8x128xbf16>, vector<128x512xbf16>, vector<8x512xf32> -> vector<8x512xf32>
    %885 = arith.addf %881, %884 : vector<8x512xf32>
    %886 = vector.extract_strided_slice %885 {offsets = [0, 0], sizes = [8, 128], strides = [1, 1]} : vector<8x512xf32> to vector<8x128xf32>
    %cst_377 = arith.constant 5.000000e-01 : f32
    %887 = vector.broadcast %cst_377 : f32 to vector<8x128xf32>
    %888 = arith.mulf %887, %886 : vector<8x128xf32>
    %889 = math.tanh %888 : vector<8x128xf32>
    %cst_378 = arith.constant 5.000000e-01 : f32
    %890 = vector.broadcast %cst_378 : f32 to vector<8x128xf32>
    %891 = arith.mulf %890, %889 : vector<8x128xf32>
    %cst_379 = arith.constant 5.000000e-01 : f32
    %892 = vector.broadcast %cst_379 : f32 to vector<8x128xf32>
    %893 = arith.addf %891, %892 : vector<8x128xf32>
    %894 = vector.extract_strided_slice %885 {offsets = [0, 128], sizes = [8, 128], strides = [1, 1]} : vector<8x512xf32> to vector<8x128xf32>
    %cst_380 = arith.constant 5.000000e-01 : f32
    %895 = vector.broadcast %cst_380 : f32 to vector<8x128xf32>
    %896 = arith.mulf %895, %894 : vector<8x128xf32>
    %897 = math.tanh %896 : vector<8x128xf32>
    %cst_381 = arith.constant 5.000000e-01 : f32
    %898 = vector.broadcast %cst_381 : f32 to vector<8x128xf32>
    %899 = arith.mulf %898, %897 : vector<8x128xf32>
    %cst_382 = arith.constant 5.000000e-01 : f32
    %900 = vector.broadcast %cst_382 : f32 to vector<8x128xf32>
    %901 = arith.addf %899, %900 : vector<8x128xf32>
    %902 = vector.extract_strided_slice %885 {offsets = [0, 256], sizes = [8, 128], strides = [1, 1]} : vector<8x512xf32> to vector<8x128xf32>
    %903 = math.tanh %902 : vector<8x128xf32>
    %904 = vector.extract_strided_slice %885 {offsets = [0, 384], sizes = [8, 128], strides = [1, 1]} : vector<8x512xf32> to vector<8x128xf32>
    %cst_383 = arith.constant 5.000000e-01 : f32
    %905 = vector.broadcast %cst_383 : f32 to vector<8x128xf32>
    %906 = arith.mulf %905, %904 : vector<8x128xf32>
    %907 = math.tanh %906 : vector<8x128xf32>
    %cst_384 = arith.constant 5.000000e-01 : f32
    %908 = vector.broadcast %cst_384 : f32 to vector<8x128xf32>
    %909 = arith.mulf %908, %907 : vector<8x128xf32>
    %cst_385 = arith.constant 5.000000e-01 : f32
    %910 = vector.broadcast %cst_385 : f32 to vector<8x128xf32>
    %911 = arith.addf %909, %910 : vector<8x128xf32>
    %912 = arith.mulf %901, %878 : vector<8x128xf32>
    %913 = arith.mulf %893, %903 : vector<8x128xf32>
    %914 = arith.addf %912, %913 : vector<8x128xf32>
    %915 = math.tanh %914 : vector<8x128xf32>
    %916 = arith.mulf %911, %915 : vector<8x128xf32>
    %c56_386 = arith.constant 56 : index
    %c0_387 = arith.constant 0 : index
    %917 = vector.load %arg16[%c56_386, %c0_387] : memref<64x1024xf32, #tpu.memory_space<vmem>>, vector<8x512xf32>
    %918 = arith.truncf %916 : vector<8x128xf32> to vector<8x128xbf16>
    %c0_388 = arith.constant 0 : index
    %c0_389 = arith.constant 0 : index
    %919 = vector.load %arg13[%c0_388, %c0_389] : memref<128x512xbf16, #tpu.memory_space<vmem>>, vector<128x512xbf16>
    %cst_390 = arith.constant dense<0.000000e+00> : vector<8x512xf32>
    %920 = tpu.matmul %918, %919, %cst_390 {dimension_numbers = #tpu.dot_dimension_numbers<[1], [0], [0], [1], [0, 0, 1, 1], [], []>} : vector<8x128xbf16>, vector<128x512xbf16>, vector<8x512xf32> -> vector<8x512xf32>
    %921 = arith.addf %917, %920 : vector<8x512xf32>
    %922 = vector.extract_strided_slice %921 {offsets = [0, 0], sizes = [8, 128], strides = [1, 1]} : vector<8x512xf32> to vector<8x128xf32>
    %cst_391 = arith.constant 5.000000e-01 : f32
    %923 = vector.broadcast %cst_391 : f32 to vector<8x128xf32>
    %924 = arith.mulf %923, %922 : vector<8x128xf32>
    %925 = math.tanh %924 : vector<8x128xf32>
    %cst_392 = arith.constant 5.000000e-01 : f32
    %926 = vector.broadcast %cst_392 : f32 to vector<8x128xf32>
    %927 = arith.mulf %926, %925 : vector<8x128xf32>
    %cst_393 = arith.constant 5.000000e-01 : f32
    %928 = vector.broadcast %cst_393 : f32 to vector<8x128xf32>
    %929 = arith.addf %927, %928 : vector<8x128xf32>
    %930 = vector.extract_strided_slice %921 {offsets = [0, 128], sizes = [8, 128], strides = [1, 1]} : vector<8x512xf32> to vector<8x128xf32>
    %cst_394 = arith.constant 5.000000e-01 : f32
    %931 = vector.broadcast %cst_394 : f32 to vector<8x128xf32>
    %932 = arith.mulf %931, %930 : vector<8x128xf32>
    %933 = math.tanh %932 : vector<8x128xf32>
    %cst_395 = arith.constant 5.000000e-01 : f32
    %934 = vector.broadcast %cst_395 : f32 to vector<8x128xf32>
    %935 = arith.mulf %934, %933 : vector<8x128xf32>
    %cst_396 = arith.constant 5.000000e-01 : f32
    %936 = vector.broadcast %cst_396 : f32 to vector<8x128xf32>
    %937 = arith.addf %935, %936 : vector<8x128xf32>
    %938 = vector.extract_strided_slice %921 {offsets = [0, 256], sizes = [8, 128], strides = [1, 1]} : vector<8x512xf32> to vector<8x128xf32>
    %939 = math.tanh %938 : vector<8x128xf32>
    %940 = vector.extract_strided_slice %921 {offsets = [0, 384], sizes = [8, 128], strides = [1, 1]} : vector<8x512xf32> to vector<8x128xf32>
    %cst_397 = arith.constant 5.000000e-01 : f32
    %941 = vector.broadcast %cst_397 : f32 to vector<8x128xf32>
    %942 = arith.mulf %941, %940 : vector<8x128xf32>
    %943 = math.tanh %942 : vector<8x128xf32>
    %cst_398 = arith.constant 5.000000e-01 : f32
    %944 = vector.broadcast %cst_398 : f32 to vector<8x128xf32>
    %945 = arith.mulf %944, %943 : vector<8x128xf32>
    %cst_399 = arith.constant 5.000000e-01 : f32
    %946 = vector.broadcast %cst_399 : f32 to vector<8x128xf32>
    %947 = arith.addf %945, %946 : vector<8x128xf32>
    %948 = arith.mulf %937, %914 : vector<8x128xf32>
    %949 = arith.mulf %929, %939 : vector<8x128xf32>
    %950 = arith.addf %948, %949 : vector<8x128xf32>
    %951 = math.tanh %950 : vector<8x128xf32>
    %952 = arith.mulf %947, %951 : vector<8x128xf32>
    %c3_i32_400 = arith.constant 3 : i32
    %953 = tpu.memref_slice %arg18[%c3_i32_400] : memref<4x!tpu.dma_semaphore, #tpu.memory_space<semaphore_mem>> -> memref<1x!tpu.dma_semaphore, #tpu.memory_space<semaphore_mem>>
    %954 = tpu.memref_squeeze %953 : memref<1x!tpu.dma_semaphore, #tpu.memory_space<semaphore_mem>> -> memref<!tpu.dma_semaphore, #tpu.memory_space<semaphore_mem>>
    tpu.wait_dma2 semaphore(%954 : memref<!tpu.dma_semaphore, #tpu.memory_space<semaphore_mem>>) src(%arg8 : memref<256x128xbf16, #tpu.memory_space<any>>) dst(%arg15 : memref<256x128xbf16, #tpu.memory_space<vmem>>)
    %955 = tpu.concatenate %952, %700 in 1 : vector<8x128xf32>, vector<8x128xf32> -> vector<8x256xf32>
    %956 = arith.truncf %955 : vector<8x256xf32> to vector<8x256xbf16>
    %c0_401 = arith.constant 0 : index
    %c0_402 = arith.constant 0 : index
    %957 = vector.load %arg15[%c0_401, %c0_402] : memref<256x128xbf16, #tpu.memory_space<vmem>>, vector<256x128xbf16>
    %cst_403 = arith.constant dense<0.000000e+00> : vector<8x128xf32>
    %958 = tpu.matmul %956, %957, %cst_403 {dimension_numbers = #tpu.dot_dimension_numbers<[1], [0], [0], [1], [0, 0, 1, 1], [], []>} : vector<8x256xbf16>, vector<256x128xbf16>, vector<8x128xf32> -> vector<8x128xf32>
    %c0_404 = arith.constant 0 : index
    %c0_405 = arith.constant 0 : index
    %959 = vector.load %arg10[%c0_404, %c0_405] : memref<1x128xf32, #tpu.memory_space<vmem>>, vector<1x128xf32>
    %960 = vector.broadcast %959 : vector<1x128xf32> to vector<8x128xf32>
    %961 = arith.addf %958, %960 : vector<8x128xf32>
    %c0_406 = arith.constant 0 : index
    %c0_407 = arith.constant 0 : index
    %962 = vector.load %arg11[%c0_406, %c0_407] : memref<8x128xf32, #tpu.memory_space<vmem>>, vector<8x128xf32>
    tpu.vector_store %arg11[%c0_406, %c0_407], %961 {strides = array<i32>} : memref<8x128xf32, #tpu.memory_space<vmem>>, vector<8x128xf32>,
    return
  }
}

</mosaic_0001>

<bundles_post_ra>
// kernel: lstm_model_forward.1
= control target key start
LH: loop header
LB: loop body
LE: loop exit
PB: predicated region body
PF: predicated region fallthrough
CT: control target
= control target key end

     0   :  { %16 = vsyncpa [#allocation10], 0  ;;  %s13397_s0 = inlined_call_operand.vmem [shape: bf16[64,128], index: 0, kind: input, shape index: {}]   ;;  %s13398_s1 = inlined_call_operand.hbm [shape: bf16[128,1024], index: 1, kind: input, shape index: {}]   ;;  %s13399_s2 = inlined_call_operand.hbm [shape: bf16[128,512], index: 2, kind: input, shape index: {}]   ;;  %s13400_s3 = inlined_call_operand.hbm [shape: bf16[128,512], index: 3, kind: input, shape index: {}]   ;;  %s13401_s4 = inlined_call_operand.vmem [shape: f32[1,1024], index: 4, kind: input, shape index: {}]   ;;  %s13402_s5 = inlined_call_operand.hbm [shape: bf16[256,1024], index: 5, kind: input, shape index: {}]   ;;  %s13403_s6 = inlined_call_operand.hbm [shape: bf16[128,512], index: 6, kind: input, shape index: {}]   ;;  %s13404_s7 = inlined_call_operand.hbm [shape: bf16[128,512], index: 7, kind: input, shape index: {}]   ;;  %s13405_s8 = inlined_call_operand.hbm [shape: bf16[256,128], index: 8, kind: input, shape index: {}]   ;;  %s13406_s9 = inlined_call_operand.vmem [shape: f32[1,1024], index: 9, kind: input, shape index: {}]   ;;  %s13407_s10 = inlined_call_operand.vmem [shape: f32[1,128], index: 10, kind: input, shape index: {}]   ;;  %s13408_s11 = inlined_call_operand.vmem [shape: f32[8,128], index: 11, kind: output, shape index: {}]  }
   0x1   :  { %17 = vsyncpa [#allocation12], 0  ;;  %s37_s19 = sshll.u32 %s13399_s2, 4  ;;  %s12238_s20 = smov [#allocation11]   ;;  %s38_s19 = int_to_ptr.hbm [resolvable:$true] %s37_s19 }
   0x2   :  { %s39_s21 = sshll.u32 %s12238_s20, 4  ;;  %s24_s24 = sshll.u32 %s13398_s1, 4  ;;  %s40_s21 = int_to_ptr.vmem [resolvable:$true] %s39_s21  ;;  %s25_s24 = int_to_ptr.hbm [resolvable:$true] %s24_s24 }
   0x3   :  { %s12239_s25 = smov 256   ;;  %s12240_s26 = smov 16  }
   0x4   :  { %45 = dma.hbm_to_vmem [thread:$0]  %s38_s19, 4096, %s40_s21, [#allocation12], %s12239_s25, %s12239_s25, %s12240_s26  }
   0x5   :  { %s12241_s27 = smov [#allocation9]   ;;  %s12242_s29 = smov 512  }
   0x6   :  { %s26_s28 = sshll.u32 %s12241_s27, 4  ;;  %s12243_s30 = smov 32   ;;  %s27_s28 = int_to_ptr.vmem [resolvable:$true] %s26_s28 }
   0x7   :  { %32 = dma.hbm_to_vmem [thread:$0]  %s25_s24, 8192, %s27_s28, [#allocation10], %s12242_s29, %s12242_s29, %s12243_s30  }
   0x8   :  { %s50_s13 = sshll.u32 %s13400_s3, 4  ;;  %s12244_s14 = smov [#allocation13]   ;;  %s51_s13 = int_to_ptr.hbm [resolvable:$true] %s50_s13 }
   0x9   :  { %s52_s15 = sshll.u32 %s12244_s14, 4  ;;  %s53_s15 = int_to_ptr.vmem [resolvable:$true] %s52_s15 }
   0xa   :  { %58 = dma.hbm_to_vmem [thread:$0]  %s51_s13, 4096, %s53_s15, [#allocation12], %s12239_s25, %s12239_s25, %s12240_s26  }
   0xb   :  { %12226 = dma.done.wait [#allocation10], 8192  }
   0xc   :  { %12227 = vsyncadd [#allocation10], 4294959104 }
   0xd   :  { %12228 = dma.done.wait [#allocation12], 8192  }
   0xe   :  { %12229 = vsyncadd [#allocation12], 4294959104  ;;  %v8093_v0 = vld [vmem:[#allocation9 + $0x1c0] sm:$0xf]  ;;  %v11067_v2 = vld [vmem:[#allocation9 + $0x1c4] sm:$0xf] }
   0xf   :  { %v11071_v1 = vld [vmem:[#allocation9 + $0x1dc] sm:$0xf0]  ;;  %v8095_v4 = vld [vmem:[#allocation9 + $0x1e0] sm:$0xf0]  ;;  %v8101_v5 = vld [vmem:[#allocation9 + $0x1c8] sm:$0xf] }
  0x10   :  { %v8094_v3 = vor.u32 %v11071_v1, %v8093_v0  ;;  %v11072_v6 = vld [vmem:[#allocation9 + $0x1e4] sm:$0xf0]  ;;  %v8098_v7 = vor.u32 %v11067_v2, %v8095_v4  ;;  %v11068_v9 = vld [vmem:[#allocation9 + $0x1cc] sm:$0xf]  ;;  %v8061_v11 = vld [vmem:[#allocation9 + $0x180] sm:$0xf] }
  0x11   :  { %v8102_v8 = vor.u32 %v11072_v6, %v8101_v5  ;;  %v8103_v10 = vld [vmem:[#allocation9 + $0x1e8] sm:$0xf0]  ;;  %v11063_v13 = vld [vmem:[#allocation9 + $0x19c] sm:$0xf0]  ;;  %v11059_v14 = vld [vmem:[#allocation9 + $0x184] sm:$0xf] }
  0x12   :  { %567 = vmatpush.bf16.msra.mxu0 %v8094_v3  ;;  %v8106_v12 = vor.u32 %v11068_v9, %v8103_v10  ;;  %v8063_v15 = vld [vmem:[#allocation9 + $0x1a0] sm:$0xf0]  ;;  %596 = vmatpush.bf16.msra.mxu1 %v8098_v7  ;;  %v8062_v16 = vor.u32 %v11063_v13, %v8061_v11  ;;  %v8069_v18 = vld [vmem:[#allocation9 + $0x188] sm:$0xf]  ;;  %v11060_v20 = vld [vmem:[#allocation9 + $0x18c] sm:$0xf] }
  0x13   :  { %625 = vmatpush.bf16.msra.mxu2 %v8102_v8  ;;  %v8066_v17 = vor.u32 %v11059_v14, %v8063_v15  ;;  %v11064_v19 = vld [vmem:[#allocation9 + $0x1a4] sm:$0xf0]  ;;  %v8071_v22 = vld [vmem:[#allocation9 + $0x1a8] sm:$0xf0]  ;;  %v8029_v23 = vld [vmem:[#allocation9 + $0x140] sm:$0xf] }
  0x14   :  { %654 = vmatpush.bf16.msra.mxu3 %v8106_v12  ;;  %v8070_v21 = vor.u32 %v11064_v19, %v8069_v18  ;;  %v11055_v24 = vld [vmem:[#allocation9 + $0x15c] sm:$0xf0]  ;;  %v8074_v25 = vor.u32 %v11060_v20, %v8071_v22  ;;  %v11051_v26 = vld [vmem:[#allocation9 + $0x144] sm:$0xf]  ;;  %v8037_v28 = vld [vmem:[#allocation9 + $0x148] sm:$0xf] }
  0x15   :  { %v8031_v27 = vld [vmem:[#allocation9 + $0x160] sm:$0xf0]  ;;  %v8030_v29 = vor.u32 %v11055_v24, %v8029_v23  ;;  %v11056_v30 = vld [vmem:[#allocation9 + $0x164] sm:$0xf0]  ;;  %v11052_v31 = vld [vmem:[#allocation9 + $0x14c] sm:$0xf] }
  0x16   :  { %568 = vmatpush.bf16.msra.mxu0 %v8062_v16  ;;  %v8039_v32 = vld [vmem:[#allocation9 + $0x168] sm:$0xf0]  ;;  %597 = vmatpush.bf16.msra.mxu1 %v8066_v17  ;;  %v8034_v33 = vor.u32 %v11051_v26, %v8031_v27  ;;  %v8038_v34 = vor.u32 %v11056_v30, %v8037_v28  ;;  %v7997_v35 = vld [vmem:[#allocation9 + $0x100] sm:$0xf]  ;;  %v11043_v37 = vld [vmem:[#allocation9 + $0x104] sm:$0xf] }
  0x17   :  { %626 = vmatpush.bf16.msra.mxu2 %v8070_v21  ;;  %v11047_v36 = vld [vmem:[#allocation9 + $0x11c] sm:$0xf0]  ;;  %v8042_v38 = vor.u32 %v11052_v31, %v8039_v32  ;;  %v7999_v39 = vld [vmem:[#allocation9 + $0x120] sm:$0xf0]  ;;  %v8005_v40 = vld [vmem:[#allocation9 + $0x108] sm:$0xf] }
  0x18   :  { %655 = vmatpush.bf16.msra.mxu3 %v8074_v25  ;;  %v11048_v41 = vld [vmem:[#allocation9 + $0x124] sm:$0xf0]  ;;  %v11044_v42 = vld [vmem:[#allocation9 + $0x10c] sm:$0xf]  ;;  %v7998_v44 = vor.u32 %v11047_v36, %v7997_v35  ;;  %v8002_v45 = vor.u32 %v11043_v37, %v7999_v39  ;;  %v7965_v47 = vld [vmem:[#allocation9 + $0xc0] sm:$0xf] }
  0x19   :  { %v8007_v43 = vld [vmem:[#allocation9 + $0x128] sm:$0xf0]  ;;  %v8006_v46 = vor.u32 %v11048_v41, %v8005_v40  ;;  %v11039_v48 = vld [vmem:[#allocation9 + $0xdc] sm:$0xf0]  ;;  %v11035_v49 = vld [vmem:[#allocation9 + $0xc4] sm:$0xf] }
  0x1a   :  { %569 = vmatpush.bf16.msra.mxu0 %v8030_v29  ;;  %598 = vmatpush.bf16.msra.mxu1 %v8034_v33  ;;  %v8010_v50 = vor.u32 %v11044_v42, %v8007_v43  ;;  %v7967_v51 = vld [vmem:[#allocation9 + $0xe0] sm:$0xf0]  ;;  %v7973_v52 = vld [vmem:[#allocation9 + $0xc8] sm:$0xf]  ;;  %v11036_v54 = vld [vmem:[#allocation9 + $0xcc] sm:$0xf]  ;;  %v7966_v56 = vor.u32 %v11039_v48, %v7965_v47 }
  0x1b   :  { %627 = vmatpush.bf16.msra.mxu2 %v8038_v34  ;;  %v11040_v53 = vld [vmem:[#allocation9 + $0xe4] sm:$0xf0]  ;;  %v7975_v55 = vld [vmem:[#allocation9 + $0xe8] sm:$0xf0]  ;;  %v7970_v57 = vor.u32 %v11035_v49, %v7967_v51  ;;  %v7933_v59 = vld [vmem:[#allocation9 + $0x80] sm:$0xf] }
  0x1c   :  { %656 = vmatpush.bf16.msra.mxu3 %v8042_v38  ;;  %v7974_v58 = vor.u32 %v11040_v53, %v7973_v52  ;;  %v11031_v60 = vld [vmem:[#allocation9 + $0x9c] sm:$0xf0]  ;;  %v11027_v61 = vld [vmem:[#allocation9 + $0x84] sm:$0xf]  ;;  %v7978_v62 = vor.u32 %v11036_v54, %v7975_v55  ;;  %v7941_v0 = vld [vmem:[#allocation9 + $0x88] sm:$0xf] }
  0x1d   :  { %v7935_v63 = vld [vmem:[#allocation9 + $0xa0] sm:$0xf0]  ;;  %v11032_v1 = vld [vmem:[#allocation9 + $0xa4] sm:$0xf0]  ;;  %v11028_v2 = vld [vmem:[#allocation9 + $0x8c] sm:$0xf]  ;;  %v7934_v4 = vor.u32 %v11031_v60, %v7933_v59 }
  0x1e   :  { %570 = vmatpush.bf16.msra.mxu0 %v7998_v44  ;;  %599 = vmatpush.bf16.msra.mxu1 %v8002_v45  ;;  %v7943_v3 = vld [vmem:[#allocation9 + $0xa8] sm:$0xf0]  ;;  %v7938_v5 = vor.u32 %v11027_v61, %v7935_v63  ;;  %v7942_v6 = vor.u32 %v11032_v1, %v7941_v0  ;;  %v7901_v7 = vld [vmem:[#allocation9 + $0x40] sm:$0xf]  ;;  %v11019_v9 = vld [vmem:[#allocation9 + $0x44] sm:$0xf] }
  0x1f   :  { %628 = vmatpush.bf16.msra.mxu2 %v8006_v46  ;;  %v11023_v8 = vld [vmem:[#allocation9 + $0x5c] sm:$0xf0]  ;;  %v7946_v10 = vor.u32 %v11028_v2, %v7943_v3  ;;  %v7903_v11 = vld [vmem:[#allocation9 + $0x60] sm:$0xf0]  ;;  %v7909_v12 = vld [vmem:[#allocation9 + $0x48] sm:$0xf] }
  0x20   :  { %657 = vmatpush.bf16.msra.mxu3 %v8010_v50  ;;  %v11024_v13 = vld [vmem:[#allocation9 + $0x64] sm:$0xf0]  ;;  %v11020_v14 = vld [vmem:[#allocation9 + $0x4c] sm:$0xf]  ;;  %v7902_v16 = vor.u32 %v11023_v8, %v7901_v7  ;;  %v7869_v17 = vld [vmem:[#allocation9] sm:$0xf]  ;;  %v7906_v18 = vor.u32 %v11019_v9, %v7903_v11 }
  0x21   :  { %v7911_v15 = vld [vmem:[#allocation9 + $0x68] sm:$0xf0]  ;;  %v7910_v19 = vor.u32 %v11024_v13, %v7909_v12  ;;  %v11015_v20 = vld [vmem:[#allocation9 + $0x1c] sm:$0xf0]  ;;  %v11011_v21 = vld [vmem:[#allocation9 + $0x4] sm:$0xf] }
  0x22   :  { %571 = vmatpush.bf16.msra.mxu0 %v7966_v56  ;;  %600 = vmatpush.bf16.msra.mxu1 %v7970_v57  ;;  %v7871_v22 = vld [vmem:[#allocation9 + $0x20] sm:$0xf0]  ;;  %v7914_v23 = vor.u32 %v11020_v14, %v7911_v15  ;;  %v7877_v24 = vld [vmem:[#allocation9 + $0x8] sm:$0xf]  ;;  %v11012_v26 = vld [vmem:[#allocation9 + $0xc] sm:$0xf]  ;;  %v7870_v30 = vor.u32 %v11015_v20, %v7869_v17 }
  0x23   :  { %629 = vmatpush.bf16.msra.mxu2 %v7974_v58  ;;  %v11016_v25 = vld [vmem:[#allocation9 + $0x24] sm:$0xf0]  ;;  %v7879_v27 = vld [vmem:[#allocation9 + $0x28] sm:$0xf0]  ;;  %v8109_v28 = vld [vmem:[#allocation9 + $0x1d0] sm:$0xf]  ;;  %v7874_v33 = vor.u32 %v11011_v21, %v7871_v22 }
  0x24   :  { %658 = vmatpush.bf16.msra.mxu3 %v7978_v62  ;;  %v11073_v29 = vld [vmem:[#allocation9 + $0x1ec] sm:$0xf0]  ;;  %v11069_v31 = vld [vmem:[#allocation9 + $0x1d4] sm:$0xf]  ;;  %v7878_v34 = vor.u32 %v11016_v25, %v7877_v24  ;;  %v12322_v35 = vld [vmem:[%s13397_s0] sm:$0xff]  ;;  %v7882_v36 = vor.u32 %v11012_v26, %v7879_v27  ;;  %s85_s24 = sshll.u32 %s13402_s5, 4  ;;  %s86_s24 = int_to_ptr.hbm [resolvable:$true] %s85_s24 }
  0x25   :  { %v8111_v32 = vld [vmem:[#allocation9 + $0x1f0] sm:$0xf0]  ;;  %v8110_v37 = vor.u32 %v11073_v29, %v8109_v28  ;;  %v8117_v38 = vld [vmem:[#allocation9 + $0x1d8] sm:$0xf]  ;;  %v11070_v40 = vld [vmem:[#allocation9 + $0x1dc] sm:$0xf] }
  0x26   :  { %572 = vmatpush.bf16.msra.mxu0 %v7934_v4  ;;  %601 = vmatpush.bf16.msra.mxu1 %v7938_v5  ;;  %v11074_v39 = vld [vmem:[#allocation9 + $0x1f4] sm:$0xf0]  ;;  %v8114_v41 = vor.u32 %v11069_v31, %v8111_v32  ;;  %v8119_v42 = vld [vmem:[#allocation9 + $0x1f8] sm:$0xf0]  ;;  %v8077_v43 = vld [vmem:[#allocation9 + $0x190] sm:$0xf] }
  0x27   :  { %630 = vmatpush.bf16.msra.mxu2 %v7942_v6  ;;  %v11065_v44 = vld [vmem:[#allocation9 + $0x1ac] sm:$0xf0]  ;;  %v11061_v45 = vld [vmem:[#allocation9 + $0x194] sm:$0xf]  ;;  %v8118_v47 = vor.u32 %v11074_v39, %v8117_v38  ;;  %v8122_v48 = vor.u32 %v11070_v40, %v8119_v42  ;;  %v8085_v50 = vld [vmem:[#allocation9 + $0x198] sm:$0xf] }
  0x28   :  { %659 = vmatpush.bf16.msra.mxu3 %v7946_v10  ;;  %v8079_v46 = vld [vmem:[#allocation9 + $0x1b0] sm:$0xf0]  ;;  %v8078_v49 = vor.u32 %v11065_v44, %v8077_v43  ;;  %v11066_v51 = vld [vmem:[#allocation9 + $0x1b4] sm:$0xf0]  ;;  %v11062_v52 = vld [vmem:[#allocation9 + $0x19c] sm:$0xf] }
  0x29   :  { %v8082_v53 = vor.u32 %v11061_v45, %v8079_v46  ;;  %v8087_v54 = vld [vmem:[#allocation9 + $0x1b8] sm:$0xf0]  ;;  %v8045_v55 = vld [vmem:[#allocation9 + $0x150] sm:$0xf]  ;;  %v11053_v57 = vld [vmem:[#allocation9 + $0x154] sm:$0xf]  ;;  %v8086_v59 = vor.u32 %v11066_v51, %v8085_v50 }
  0x2a   :  { %573 = vmatpush.bf16.msra.mxu0 %v7902_v16  ;;  %602 = vmatpush.bf16.msra.mxu1 %v7906_v18  ;;  %v11057_v56 = vld [vmem:[#allocation9 + $0x16c] sm:$0xf0]  ;;  %v8047_v58 = vld [vmem:[#allocation9 + $0x170] sm:$0xf0]  ;;  %v8090_v60 = vor.u32 %v11062_v52, %v8087_v54  ;;  %v8053_v62 = vld [vmem:[#allocation9 + $0x158] sm:$0xf] }
  0x2b   :  { %631 = vmatpush.bf16.msra.mxu2 %v7910_v19  ;;  %v8046_v61 = vor.u32 %v11057_v56, %v8045_v55  ;;  %v11058_v63 = vld [vmem:[#allocation9 + $0x174] sm:$0xf0]  ;;  %v11054_v0 = vld [vmem:[#allocation9 + $0x15c] sm:$0xf]  ;;  %v8050_v1 = vor.u32 %v11053_v57, %v8047_v58  ;;  %v8013_v3 = vld [vmem:[#allocation9 + $0x110] sm:$0xf] }
  0x2c   :  { %660 = vmatpush.bf16.msra.mxu3 %v7914_v23  ;;  %v8055_v2 = vld [vmem:[#allocation9 + $0x178] sm:$0xf0]  ;;  %v11049_v4 = vld [vmem:[#allocation9 + $0x12c] sm:$0xf0]  ;;  %v11045_v5 = vld [vmem:[#allocation9 + $0x114] sm:$0xf]  ;;  %v8054_v7 = vor.u32 %v11058_v63, %v8053_v62 }
  0x2d   :  { %v8015_v6 = vld [vmem:[#allocation9 + $0x130] sm:$0xf0]  ;;  %v8058_v8 = vor.u32 %v11054_v0, %v8055_v2  ;;  %v8014_v9 = vor.u32 %v11049_v4, %v8013_v3  ;;  %v8021_v10 = vld [vmem:[#allocation9 + $0x118] sm:$0xf]  ;;  %v11046_v12 = vld [vmem:[#allocation9 + $0x11c] sm:$0xf] }
  0x2e   :  { %574 = vmatpush.bf16.msra.mxu0 %v7870_v30  ;;  %603 = vmatpush.bf16.msra.mxu1 %v7874_v33  ;;  %v11050_v11 = vld [vmem:[#allocation9 + $0x134] sm:$0xf0]  ;;  %v8018_v13 = vor.u32 %v11045_v5, %v8015_v6  ;;  %v8023_v14 = vld [vmem:[#allocation9 + $0x138] sm:$0xf0]  ;;  %v7981_v15 = vld [vmem:[#allocation9 + $0xd0] sm:$0xf] }
  0x2f   :  { %632 = vmatpush.bf16.msra.mxu2 %v7878_v34  ;;  %v11041_v16 = vld [vmem:[#allocation9 + $0xec] sm:$0xf0]  ;;  %v11037_v17 = vld [vmem:[#allocation9 + $0xd4] sm:$0xf]  ;;  %v12331_v19 = vld [vmem:[%s13397_s0 + $0x8] sm:$0xff]  ;;  %v8022_v20 = vor.u32 %v11050_v11, %v8021_v10  ;;  %v8026_v21 = vor.u32 %v11046_v12, %v8023_v14  ;;  %s12246_s25 = smov [#allocation2]  }
  0x30   :  { %661 = vmatpush.bf16.msra.mxu3 %v7882_v36  ;;  %v7983_v18 = vld [vmem:[#allocation9 + $0xf0] sm:$0xf0]  ;;  %v7982_v22 = vor.u32 %v11041_v16, %v7981_v15  ;;  %v7989_v23 = vld [vmem:[#allocation9 + $0xd8] sm:$0xf]  ;;  %v11038_v25 = vld [vmem:[#allocation9 + $0xdc] sm:$0xf] }
  0x31   :  { %575 = vmatmul.bf16.vlgmr.msra.gmra.mxu0 %v12322_v35  ;;  %604 = vmatmul.bf16.vlgmr.msra.gmra.mxu1 %v12322_v35  ;;  %v11042_v24 = vld [vmem:[#allocation9 + $0xf4] sm:$0xf0]  ;;  %v7986_v26 = vor.u32 %v11037_v17, %v7983_v18  ;;  %v7991_v27 = vld [vmem:[#allocation9 + $0xf8] sm:$0xf0]  ;;  %v7949_v28 = vld [vmem:[#allocation9 + $0x90] sm:$0xf] }
  0x32   :  { %683 = vmatpush.bf16.msrb.mxu0 %v8110_v37  ;;  %712 = vmatpush.bf16.msrb.mxu1 %v8114_v41  ;;  %v11033_v29 = vld [vmem:[#allocation9 + $0xac] sm:$0xf0]  ;;  %v11029_v30 = vld [vmem:[#allocation9 + $0x94] sm:$0xf]  ;;  %v7990_v32 = vor.u32 %v11042_v24, %v7989_v23  ;;  %v7994_v33 = vor.u32 %v11038_v25, %v7991_v27  ;;  %v7957_v36 = vld [vmem:[#allocation9 + $0x98] sm:$0xf] }
  0x33   :  { %633 = vmatmul.bf16.vlgmr.msra.gmra.mxu2 %v12322_v35  ;;  %662 = vmatmul.bf16.vlgmr.msra.gmra.mxu3 %v12322_v35  ;;  %v7951_v31 = vld [vmem:[#allocation9 + $0xb0] sm:$0xf0]  ;;  %v7950_v34 = vor.u32 %v11033_v29, %v7949_v28  ;;  %v11034_v37 = vld [vmem:[#allocation9 + $0xb4] sm:$0xf0]  ;;  %v11030_v39 = vld [vmem:[#allocation9 + $0x9c] sm:$0xf] }
  0x34   :  { %741 = vmatpush.bf16.msrb.mxu2 %v8118_v47  ;;  %770 = vmatpush.bf16.msrb.mxu3 %v8122_v48  ;;  %v7954_v38 = vor.u32 %v11029_v30, %v7951_v31  ;;  %v7959_v40 = vld [vmem:[#allocation9 + $0xb8] sm:$0xf0]  ;;  %v7958_v41 = vor.u32 %v11034_v37, %v7957_v36  ;;  %v7917_v42 = vld [vmem:[#allocation9 + $0x50] sm:$0xf]  ;;  %v11021_v44 = vld [vmem:[#allocation9 + $0x54] sm:$0xf] }
  0x35   :  { %v11025_v43 = vld [vmem:[#allocation9 + $0x6c] sm:$0xf0]  ;;  %v7962_v45 = vor.u32 %v11030_v39, %v7959_v40  ;;  %v7919_v47 = vld [vmem:[#allocation9 + $0x70] sm:$0xf0]  ;;  %v7925_v48 = vld [vmem:[#allocation9 + $0x58] sm:$0xf] }
  0x36   :  { %684 = vmatpush.bf16.msrb.mxu0 %v8078_v49  ;;  %713 = vmatpush.bf16.msrb.mxu1 %v8082_v53  ;;  %v7918_v46 = vor.u32 %v11025_v43, %v7917_v42  ;;  %v11026_v49 = vld [vmem:[#allocation9 + $0x74] sm:$0xf0]  ;;  %v7922_v50 = vor.u32 %v11021_v44, %v7919_v47  ;;  %v11022_v51 = vld [vmem:[#allocation9 + $0x5c] sm:$0xf]  ;;  %v7885_v53 = vld [vmem:[#allocation9 + $0x10] sm:$0xf] }
  0x37   :  { %v7927_v52 = vld [vmem:[#allocation9 + $0x78] sm:$0xf0]  ;;  %v11017_v54 = vld [vmem:[#allocation9 + $0x2c] sm:$0xf0]  ;;  %v11013_v55 = vld [vmem:[#allocation9 + $0x14] sm:$0xf]  ;;  %v7926_v57 = vor.u32 %v11026_v49, %v7925_v48 }
  0x38   :  { %742 = vmatpush.bf16.msrb.mxu2 %v8086_v59  ;;  %771 = vmatpush.bf16.msrb.mxu3 %v8090_v60  ;;  %v7887_v56 = vld [vmem:[#allocation9 + $0x30] sm:$0xf0]  ;;  %v7930_v58 = vor.u32 %v11022_v51, %v7927_v52  ;;  %v7886_v59 = vor.u32 %v11017_v54, %v7885_v53  ;;  %v7893_v60 = vld [vmem:[#allocation9 + $0x18] sm:$0xf]  ;;  %v11014_v63 = vld [vmem:[#allocation9 + $0x1c] sm:$0xf] }
  0x39   :  { %v7890_v62 = vor.u32 %v11013_v55, %v7887_v56  ;;  %v7895_v0 = vld [vmem:[#allocation9 + $0x38] sm:$0xf0]  ;;  %v12340_v3 = vld [vmem:[%s13397_s0 + $0x10] sm:$0xff]  ;;  %v8237_v4 = vld [vmem:[#allocation11 + $0xe0] sm:$0xf]  ;;  %s87_s26 = sshll.u32 %s12246_s25, 4  ;;  %s88_s26 = int_to_ptr.vmem [resolvable:$true] %s87_s26 }
  0x3a   :  { %685 = vmatpush.bf16.msrb.mxu0 %v8046_v61  ;;  %714 = vmatpush.bf16.msrb.mxu1 %v8050_v1  ;;  %v11018_v61 = vld [vmem:[#allocation9 + $0x34] sm:$0xf0]  ;;  %v7898_v2 = vor.u32 %v11014_v63, %v7895_v0  ;;  %v11105_v5 = vld [vmem:[#allocation11 + $0xec] sm:$0xf0]  ;;  %v11103_v6 = vld [vmem:[#allocation11 + $0xe4] sm:$0xf] }
  0x3b   :  { %v7894_v1 = vor.u32 %v11018_v61, %v7893_v60  ;;  %v11106_v10 = vld [vmem:[#allocation11 + $0xf4] sm:$0xf0]  ;;  %v8247_v14 = vld [vmem:[#allocation11 + $0xf8] sm:$0xf0]  ;;  %v8221_v15 = vld [vmem:[#allocation11 + $0xc0] sm:$0xf] }
  0x3c   :  { %743 = vmatpush.bf16.msrb.mxu2 %v8054_v7  ;;  %772 = vmatpush.bf16.msrb.mxu3 %v8058_v8  ;;  %v8238_v7 = vor.u32 %v11105_v5, %v8237_v4  ;;  %v8239_v8 = vld [vmem:[#allocation11 + $0xf0] sm:$0xf0]  ;;  %v11101_v17 = vld [vmem:[#allocation11 + $0xcc] sm:$0xf0]  ;;  %v11099_v18 = vld [vmem:[#allocation11 + $0xc4] sm:$0xf] }
  0x3d   :  { %v8242_v11 = vor.u32 %v11103_v6, %v8239_v8  ;;  %v8229_v23 = vld [vmem:[#allocation11 + $0xc8] sm:$0xf]  ;;  %v11102_v24 = vld [vmem:[#allocation11 + $0xd4] sm:$0xf0]  ;;  %v11100_v25 = vld [vmem:[#allocation11 + $0xcc] sm:$0xf] }
  0x3e   :  { %686 = vmatpush.bf16.msrb.mxu0 %v8014_v9  ;;  %715 = vmatpush.bf16.msrb.mxu1 %v8018_v13  ;;  %v8245_v9 = vld [vmem:[#allocation11 + $0xe8] sm:$0xf]  ;;  %v11104_v13 = vld [vmem:[#allocation11 + $0xec] sm:$0xf]  ;;  %v8231_v27 = vld [vmem:[#allocation11 + $0xd8] sm:$0xf0] }
  0x3f   :  { %v8246_v12 = vor.u32 %v11106_v10, %v8245_v9  ;;  %v8250_v16 = vor.u32 %v11104_v13, %v8247_v14  ;;  %v8234_v28 = vor.u32 %v11100_v25, %v8231_v27  ;;  %v12349_v29 = vld [vmem:[%s13397_s0 + $0x18] sm:$0xff]  ;;  %v8205_v30 = vld [vmem:[#allocation11 + $0xa0] sm:$0xf]  ;;  %v11097_v31 = vld [vmem:[#allocation11 + $0xac] sm:$0xf0]  ;;  %s99_s29 = sshll.u32 %s13403_s6, 4  ;;  %s100_s29 = int_to_ptr.hbm [resolvable:$true] %s99_s29 }
  0x40   :  { %744 = vmatpush.bf16.msrb.mxu2 %v8022_v20  ;;  %773 = vmatpush.bf16.msrb.mxu3 %v8026_v21  ;;  %v8223_v20 = vld [vmem:[#allocation11 + $0xd0] sm:$0xf0]  ;;  %v8222_v21 = vor.u32 %v11101_v17, %v8221_v15  ;;  %v8213_v36 = vld [vmem:[#allocation11 + $0xa8] sm:$0xf]  ;;  %v11098_v37 = vld [vmem:[#allocation11 + $0xb4] sm:$0xf0] }
  0x41   :  { %580 = vmatmul.bf16.gmra.mxu0 %v12331_v19  ;;  %609 = vmatmul.bf16.gmra.mxu1 %v12331_v19  ;;  %v8214_v39 = vor.u32 %v11098_v37, %v8213_v36  ;;  %v11096_v40 = vld [vmem:[#allocation11 + $0xac] sm:$0xf]  ;;  %v8189_v42 = vld [vmem:[#allocation11 + $0x80] sm:$0xf]  ;;  %v11093_v44 = vld [vmem:[#allocation11 + $0x8c] sm:$0xf0] }
  0x42   :  { %687 = vmatpush.bf16.msrb.mxu0 %v7982_v22  ;;  %716 = vmatpush.bf16.msrb.mxu1 %v7986_v26  ;;  %v8226_v22 = vor.u32 %v11099_v18, %v8223_v20  ;;  %v8230_v26 = vor.u32 %v11102_v24, %v8229_v23  ;;  %v8190_v47 = vor.u32 %v11093_v44, %v8189_v42  ;;  %v8197_v49 = vld [vmem:[#allocation11 + $0x88] sm:$0xf]  ;;  %v11092_v51 = vld [vmem:[#allocation11 + $0x8c] sm:$0xf]  ;;  %v8199_v53 = vld [vmem:[#allocation11 + $0x98] sm:$0xf0] }
  0x43   :  { %638 = vmatmul.bf16.gmra.mxu2 %v12331_v19  ;;  %667 = vmatmul.bf16.gmra.mxu3 %v12331_v19  ;;  %v8202_v54 = vor.u32 %v11092_v51, %v8199_v53  ;;  %v8173_v55 = vld [vmem:[#allocation11 + $0x60] sm:$0xf]  ;;  %v11089_v56 = vld [vmem:[#allocation11 + $0x6c] sm:$0xf0]  ;;  %v8181_v60 = vld [vmem:[#allocation11 + $0x68] sm:$0xf] }
  0x44   :  { %745 = vmatpush.bf16.msrb.mxu2 %v7990_v32  ;;  %774 = vmatpush.bf16.msrb.mxu3 %v7994_v33  ;;  %v11095_v32 = vld [vmem:[#allocation11 + $0xa4] sm:$0xf]  ;;  %v8206_v33 = vor.u32 %v11097_v31, %v8205_v30  ;;  %v11090_v61 = vld [vmem:[#allocation11 + $0x74] sm:$0xf0]  ;;  %v11088_v0 = vld [vmem:[#allocation11 + $0x6c] sm:$0xf] }
  0x45   :  { %v8182_v63 = vor.u32 %v11090_v61, %v8181_v60  ;;  %v11085_v5 = vld [vmem:[#allocation11 + $0x4c] sm:$0xf0]  ;;  %v11083_v6 = vld [vmem:[#allocation11 + $0x44] sm:$0xf]  ;;  %v8165_v9 = vld [vmem:[#allocation11 + $0x48] sm:$0xf] }
  0x46   :  { %688 = vmatpush.bf16.msrb.mxu0 %v7950_v34  ;;  %717 = vmatpush.bf16.msrb.mxu1 %v7954_v38  ;;  %v8207_v34 = vld [vmem:[#allocation11 + $0xb0] sm:$0xf0]  ;;  %v11086_v10 = vld [vmem:[#allocation11 + $0x54] sm:$0xf0]  ;;  %v8167_v13 = vld [vmem:[#allocation11 + $0x58] sm:$0xf0] }
  0x47   :  { %v8210_v38 = vor.u32 %v11095_v32, %v8207_v34  ;;  %v8141_v14 = vld [vmem:[#allocation11 + $0x20] sm:$0xf]  ;;  %v11081_v15 = vld [vmem:[#allocation11 + $0x2c] sm:$0xf0]  ;;  %v11079_v17 = vld [vmem:[#allocation11 + $0x24] sm:$0xf] }
  0x48   :  { %746 = vmatpush.bf16.msrb.mxu2 %v7958_v41  ;;  %775 = vmatpush.bf16.msrb.mxu3 %v7962_v45  ;;  %v8215_v41 = vld [vmem:[#allocation11 + $0xb8] sm:$0xf0]  ;;  %v11091_v45 = vld [vmem:[#allocation11 + $0x84] sm:$0xf]  ;;  %v8143_v18 = vld [vmem:[#allocation11 + $0x30] sm:$0xf0] }
  0x49   :  { %v8218_v43 = vor.u32 %v11096_v40, %v8215_v41  ;;  %v8149_v20 = vld [vmem:[#allocation11 + $0x28] sm:$0xf]  ;;  %v11080_v23 = vld [vmem:[#allocation11 + $0x2c] sm:$0xf]  ;;  %v8151_v24 = vld [vmem:[#allocation11 + $0x38] sm:$0xf0]  ;;  %v8146_v25 = vor.u32 %v11079_v17, %v8143_v18 }
  0x4a   :  { %689 = vmatpush.bf16.msrb.mxu0 %v7918_v46  ;;  %718 = vmatpush.bf16.msrb.mxu1 %v7922_v50  ;;  %v8191_v46 = vld [vmem:[#allocation11 + $0x90] sm:$0xf0]  ;;  %v11094_v50 = vld [vmem:[#allocation11 + $0x94] sm:$0xf0]  ;;  %v8154_v27 = vor.u32 %v11080_v23, %v8151_v24  ;;  %v11077_v30 = vld [vmem:[#allocation11 + $0xc] sm:$0xf0] }
  0x4b   :  { %v8194_v48 = vor.u32 %v11091_v45, %v8191_v46  ;;  %v8198_v52 = vor.u32 %v11094_v50, %v8197_v49  ;;  %v11075_v31 = vld [vmem:[#allocation11 + $0x4] sm:$0xf]  ;;  %v8133_v34 = vld [vmem:[#allocation11 + $0x8] sm:$0xf]  ;;  %v11078_v36 = vld [vmem:[#allocation11 + $0x14] sm:$0xf0] }
  0x4c   :  { %747 = vmatpush.bf16.msrb.mxu2 %v7926_v57  ;;  %776 = vmatpush.bf16.msrb.mxu3 %v7930_v58  ;;  %v11087_v57 = vld [vmem:[#allocation11 + $0x64] sm:$0xf]  ;;  %v8174_v58 = vor.u32 %v11089_v56, %v8173_v55  ;;  %v8135_v40 = vld [vmem:[#allocation11 + $0x18] sm:$0xf0]  ;;  %v8365_v41 = vld [vmem:[#allocation13 + $0xe0] sm:$0xf] }
  0x4d   :  { %v11135_v44 = vld [vmem:[#allocation13 + $0xe4] sm:$0xf]  ;;  %v8367_v45 = vld [vmem:[#allocation13 + $0xf0] sm:$0xf0]  ;;  %v11138_v49 = vld [vmem:[#allocation13 + $0xf4] sm:$0xf0] }
  0x4e   :  { %690 = vmatpush.bf16.msrb.mxu0 %v7886_v59  ;;  %719 = vmatpush.bf16.msrb.mxu1 %v7890_v62  ;;  %v8175_v59 = vld [vmem:[#allocation11 + $0x70] sm:$0xf0]  ;;  %v11136_v50 = vld [vmem:[#allocation13 + $0xec] sm:$0xf]  ;;  %v8349_v53 = vld [vmem:[#allocation13 + $0xc0] sm:$0xf] }
  0x4f   :  { %v8178_v62 = vor.u32 %v11087_v57, %v8175_v59  ;;  %v11131_v56 = vld [vmem:[#allocation13 + $0xc4] sm:$0xf]  ;;  %v8351_v57 = vld [vmem:[#allocation13 + $0xd0] sm:$0xf0]  ;;  %v11134_v60 = vld [vmem:[#allocation13 + $0xd4] sm:$0xf0] }
  0x50   :  { %748 = vmatpush.bf16.msrb.mxu2 %v7894_v1  ;;  %777 = vmatpush.bf16.msrb.mxu3 %v7898_v2  ;;  %v8183_v1 = vld [vmem:[#allocation11 + $0x78] sm:$0xf0]  ;;  %v8157_v2 = vld [vmem:[#allocation11 + $0x40] sm:$0xf]  ;;  %v8354_v59 = vor.u32 %v11131_v56, %v8351_v57  ;;  %v11132_v61 = vld [vmem:[#allocation13 + $0xcc] sm:$0xf] }
  0x51   :  { %585 = vmatmul.bf16.gmra.mxu0 %v12340_v3  ;;  %614 = vmatmul.bf16.gmra.mxu1 %v12340_v3  ;;  %v8186_v4 = vor.u32 %v11088_v0, %v8183_v1  ;;  %v8333_v1 = vld [vmem:[#allocation13 + $0xa0] sm:$0xf]  ;;  %v8325_v17 = vld [vmem:[#allocation13 + $0x88] sm:$0xf]  ;;  %v11126_v18 = vld [vmem:[#allocation13 + $0x94] sm:$0xf0] }
  0x52   :  { %1059 = vmatpush.bf16.msra.mxu0 %v8238_v7  ;;  %1072 = vmatpush.bf16.msra.mxu1 %v8242_v11  ;;  %v8159_v7 = vld [vmem:[#allocation11 + $0x50] sm:$0xf0]  ;;  %v11084_v11 = vld [vmem:[#allocation11 + $0x4c] sm:$0xf]  ;;  %v8326_v24 = vor.u32 %v11126_v18, %v8325_v17  ;;  %v8279_v57 = vld [vmem:[#allocation13 + $0x38] sm:$0xf0] }
  0x53   :  { %643 = vmatmul.bf16.gmra.mxu2 %v12340_v3  ;;  %672 = vmatmul.bf16.gmra.mxu3 %v12340_v3  ;;  %v8162_v8 = vor.u32 %v11083_v6, %v8159_v7  ;;  %v8341_v6 = vld [vmem:[#allocation13 + $0xa8] sm:$0xf]  ;;  %v11130_v7 = vld [vmem:[#allocation13 + $0xb4] sm:$0xf0]  ;;  %v11112_v56 = vld [vmem:[#allocation13 + $0x2c] sm:$0xf] }
  0x54   :  { %1085 = vmatpush.bf16.msra.mxu2 %v8246_v12  ;;  %1098 = vmatpush.bf16.msra.mxu3 %v8250_v16  ;;  %v8166_v12 = vor.u32 %v11086_v10, %v8165_v9  ;;  %v8170_v16 = vor.u32 %v11084_v11, %v8167_v13  ;;  %v11128_v9 = vld [vmem:[#allocation13 + $0xac] sm:$0xf]  ;;  %v8343_v10 = vld [vmem:[#allocation13 + $0xb8] sm:$0xf0]  ;;  %v8342_v11 = vor.u32 %v11130_v7, %v8341_v6  ;;  %v8317_v13 = vld [vmem:[#allocation13 + $0x80] sm:$0xf] }
  0x55   :  { %v11108_v6 = vld [vmem:[#allocation13 + $0xc] sm:$0xf]  ;;  %v8263_v7 = vld [vmem:[#allocation13 + $0x18] sm:$0xf0]  ;;  %90 = dma.hbm_to_vmem [thread:$0]  %s86_s24, 16384, %s88_s26, [#allocation8] }
  0x56   :  { %1060 = vmatpush.bf16.msra.mxu0 %v8222_v21  ;;  %1073 = vmatpush.bf16.msra.mxu1 %v8226_v22  ;;  %v8142_v21 = vor.u32 %v11081_v15, %v8141_v14  ;;  %v11082_v22 = vld [vmem:[#allocation11 + $0x34] sm:$0xf0]  ;;  %v11125_v14 = vld [vmem:[#allocation13 + $0x8c] sm:$0xf0]  ;;  %v11123_v15 = vld [vmem:[#allocation13 + $0x84] sm:$0xf] }
  0x57   :  { %s12247_s30 = smov [#allocation3]   ;;  %s113_s14 = sshll.u32 %s13404_s7, 4  ;;  %s114_s14 = int_to_ptr.hbm [resolvable:$true] %s113_s14 }
  0x58   :  { %1086 = vmatpush.bf16.msra.mxu2 %v8230_v26  ;;  %1099 = vmatpush.bf16.msra.mxu3 %v8234_v28  ;;  %v8150_v26 = vor.u32 %v11082_v22, %v8149_v20  ;;  %v8125_v28 = vld [vmem:[#allocation11] sm:$0xf]  ;;  %v8318_v20 = vor.u32 %v11125_v14, %v8317_v13  ;;  %v8327_v22 = vld [vmem:[#allocation13 + $0x98] sm:$0xf0]  ;;  %s101_s12 = sshll.u32 %s12247_s30, 4  ;;  %s12248_s5 = smov [#allocation4]   ;;  %s102_s12 = int_to_ptr.vmem [resolvable:$true] %s101_s12 }
  0x59   :  { %v8126_v32 = vor.u32 %v11077_v30, %v8125_v28  ;;  %v11119_v28 = vld [vmem:[#allocation13 + $0x64] sm:$0xf]  ;;  %v8303_v30 = vld [vmem:[#allocation13 + $0x70] sm:$0xf0]  ;;  %104 = dma.hbm_to_vmem [thread:$0]  %s100_s29, 4096, %s102_s12, [#allocation8 + $0x1] }
  0x5a   :  { %1061 = vmatpush.bf16.msra.mxu0 %v8206_v33  ;;  %1074 = vmatpush.bf16.msra.mxu1 %v8210_v38  ;;  %v8127_v33 = vld [vmem:[#allocation11 + $0x10] sm:$0xf0]  ;;  %v8134_v38 = vor.u32 %v11078_v36, %v8133_v34  ;;  %v11120_v34 = vld [vmem:[#allocation13 + $0x6c] sm:$0xf]  ;;  %v8311_v36 = vld [vmem:[#allocation13 + $0x78] sm:$0xf0] }
  0x5b   :  { %v8130_v37 = vor.u32 %v11075_v31, %v8127_v33  ;;  %v8309_v31 = vld [vmem:[#allocation13 + $0x68] sm:$0xf]  ;;  %s115_s15 = sshll.u32 %s12248_s5, 4  ;;  %s127_s16 = sshll.u32 %s13405_s8, 4  ;;  %s116_s15 = int_to_ptr.vmem [resolvable:$true] %s115_s15  ;;  %s128_s16 = int_to_ptr.hbm [resolvable:$true] %s127_s16 }
  0x5c   :  { %1087 = vmatpush.bf16.msra.mxu2 %v8214_v39  ;;  %1100 = vmatpush.bf16.msra.mxu3 %v8218_v43  ;;  %v11076_v39 = vld [vmem:[#allocation11 + $0xc] sm:$0xf]  ;;  %v11137_v43 = vld [vmem:[#allocation13 + $0xec] sm:$0xf0]  ;;  %118 = dma.hbm_to_vmem [thread:$0]  %s114_s14, 4096, %s116_s15, [#allocation8 + $0x2] }
  0x5d   :  { %v8138_v42 = vor.u32 %v11076_v39, %v8135_v40  ;;  %v8366_v46 = vor.u32 %v11137_v43, %v8365_v41  ;;  %v8314_v39 = vor.u32 %v11120_v34, %v8311_v36  ;;  %v8285_v40 = vld [vmem:[#allocation13 + $0x40] sm:$0xf]  ;;  %v11117_v41 = vld [vmem:[#allocation13 + $0x4c] sm:$0xf0]  ;;  %v8287_v43 = vld [vmem:[#allocation13 + $0x50] sm:$0xf0] }
  0x5e   :  { %1062 = vmatpush.bf16.msra.mxu0 %v8190_v47  ;;  %1075 = vmatpush.bf16.msra.mxu1 %v8194_v48  ;;  %v8370_v47 = vor.u32 %v11135_v44, %v8367_v45  ;;  %v8373_v48 = vld [vmem:[#allocation13 + $0xe8] sm:$0xf]  ;;  %v8286_v45 = vor.u32 %v11117_v41, %v8285_v40  ;;  %s12249_s6 = smov [#allocation5]  }
  0x5f   :  { %v8374_v51 = vor.u32 %v11138_v49, %v8373_v48  ;;  %v8293_v44 = vld [vmem:[#allocation13 + $0x48] sm:$0xf]  ;;  %s129_s17 = sshll.u32 %s12249_s6, 4  ;;  %s130_s17 = int_to_ptr.vmem [resolvable:$true] %s129_s17 }
  0x60   :  { %1088 = vmatpush.bf16.msra.mxu2 %v8198_v52  ;;  %1101 = vmatpush.bf16.msra.mxu3 %v8202_v54  ;;  %v8375_v52 = vld [vmem:[#allocation13 + $0xf8] sm:$0xf0]  ;;  %v11133_v54 = vld [vmem:[#allocation13 + $0xcc] sm:$0xf0]  ;;  %132 = dma.hbm_to_vmem [thread:$0]  %s128_s16, 2048, %s130_s17, [#allocation8 + $0x3] }
  0x61   :  { %590 = vmatmul.bf16.gmra.mxu0 %v12349_v29  ;;  %619 = vmatmul.bf16.gmra.mxu1 %v12349_v29  ;;  %v8350_v55 = vor.u32 %v11133_v54, %v8349_v53  ;;  %v8271_v54 = vld [vmem:[#allocation13 + $0x30] sm:$0xf0] }
  0x62   :  { %1063 = vmatpush.bf16.msra.mxu0 %v8174_v58  ;;  %1076 = vmatpush.bf16.msra.mxu1 %v8178_v62  ;;  %v8357_v58 = vld [vmem:[#allocation13 + $0xc8] sm:$0xf]  ;;  %v8359_v62 = vld [vmem:[#allocation13 + $0xd8] sm:$0xf0] }
  0x63   :  { %648 = vmatmul.bf16.gmra.mxu2 %v12349_v29  ;;  %677 = vmatmul.bf16.gmra.mxu3 %v12349_v29  ;;  %v8362_v0 = vor.u32 %v11132_v61, %v8359_v62  ;;  %v8282_v61 = vor.u32 %v11112_v56, %v8279_v57  ;;  %v8253_v62 = vld [vmem:[#allocation13] sm:$0xf] }
  0x64   :  { %1089 = vmatpush.bf16.msra.mxu2 %v8182_v63  ;;  %1102 = vmatpush.bf16.msra.mxu3 %v8186_v4  ;;  %v8358_v63 = vor.u32 %v11134_v60, %v8357_v58  ;;  %v11127_v4 = vld [vmem:[#allocation13 + $0xa4] sm:$0xf] }
  0x66   :  { %1077 = vmatpush.bf16.msra.mxu1 %v8162_v8 }
  0x68   :  { %1090 = vmatpush.bf16.msra.mxu2 %v8166_v12  ;;  %1103 = vmatpush.bf16.msra.mxu3 %v8170_v16  ;;  %v8346_v12 = vor.u32 %v11128_v9, %v8343_v10  ;;  %v8319_v16 = vld [vmem:[#allocation13 + $0x90] sm:$0xf0]  ;;  %v8266_v9 = vor.u32 %v11108_v6, %v8263_v7 }
  0x69   :  { %v8322_v23 = vor.u32 %v11123_v15, %v8319_v16  ;;  %v205_v16 = vld [vmem:[%s13401_s4] sm:$0xff] }
  0x6a   :  { %1078 = vmatpush.bf16.msra.mxu1 %v8146_v25  ;;  %v12390_v17 = vperm.slane %v205_v16, 0 }
  0x6c   :  { %1091 = vmatpush.bf16.msra.mxu2 %v8150_v26  ;;  %1104 = vmatpush.bf16.msra.mxu3 %v8154_v27  ;;  %v8301_v26 = vld [vmem:[#allocation13 + $0x60] sm:$0xf]  ;;  %v11121_v27 = vld [vmem:[#allocation13 + $0x6c] sm:$0xf0] }
  0x6d   :  { %v8302_v33 = vor.u32 %v11121_v27, %v8301_v26  ;;  %v12408_v26 = vperm.slane %v205_v16, 2  ;;  %v12410_v27 = vperm.slane %v205_v16, 3 }
  0x6e   :  { %1079 = vmatpush.bf16.msra.mxu1 %v8130_v37  ;;  %v8306_v37 = vor.u32 %v11119_v28, %v8303_v30 }
  0x70   :  { %1092 = vmatpush.bf16.msra.mxu2 %v8134_v38  ;;  %1105 = vmatpush.bf16.msra.mxu3 %v8138_v42  ;;  %v11115_v42 = vld [vmem:[#allocation13 + $0x44] sm:$0xf] }
  0x71   :  { %691 = vmatmul.bf16.vlgmr.msrb.gmra.mxu0 %v12322_v35  ;;  %720 = vmatmul.bf16.vlgmr.msrb.gmra.mxu1 %v12322_v35  ;;  %v8290_v48 = vor.u32 %v11115_v42, %v8287_v43 }
  0x72   :  { %1324 = vmatpush.bf16.msrb.mxu1 %v8370_v47  ;;  %v11116_v47 = vld [vmem:[#allocation13 + $0x4c] sm:$0xf] }
  0x73   :  { %749 = vmatmul.bf16.vlgmr.msrb.gmra.mxu2 %v12322_v35  ;;  %778 = vmatmul.bf16.vlgmr.msrb.gmra.mxu3 %v12322_v35  ;;  %v8158_v35 = vor.u32 %v11085_v5, %v8157_v2  ;;  %v11129_v2 = vld [vmem:[#allocation13 + $0xac] sm:$0xf0]  ;;  %v8335_v5 = vld [vmem:[#allocation13 + $0xb0] sm:$0xf0] }
  0x74   :  { %1337 = vmatpush.bf16.msrb.mxu2 %v8374_v51  ;;  %v8338_v8 = vor.u32 %v11127_v4, %v8335_v5  ;;  %v11113_v51 = vld [vmem:[#allocation13 + $0x2c] sm:$0xf0]  ;;  %v11110_v4 = vld [vmem:[#allocation13 + $0x14] sm:$0xf0] }
  0x75   :  { %1064 = vmatpush.bf16.msra.mxu0 %v8158_v35  ;;  %v8334_v35 = vor.u32 %v11129_v2, %v8333_v1  ;;  %v8255_v1 = vld [vmem:[#allocation13 + $0x10] sm:$0xf0]  ;;  %v8261_v2 = vld [vmem:[#allocation13 + $0x8] sm:$0xf] }
  0x76   :  { %1325 = vmatpush.bf16.msrb.mxu1 %v8354_v59 }
  0x78   :  { %1338 = vmatpush.bf16.msrb.mxu2 %v8358_v63  ;;  %v11109_v63 = vld [vmem:[#allocation13 + $0xc] sm:$0xf0] }
  0x79   :  { %1065 = vmatpush.bf16.msra.mxu0 %v8142_v21  ;;  %v11124_v21 = vld [vmem:[#allocation13 + $0x8c] sm:$0xf]  ;;  %v8254_v5 = vor.u32 %v11109_v63, %v8253_v62 }
  0x7a   :  { %1326 = vmatpush.bf16.msrb.mxu1 %v8338_v8  ;;  %v8330_v25 = vor.u32 %v11124_v21, %v8327_v22  ;;  %v8262_v8 = vor.u32 %v11110_v4, %v8261_v2  ;;  %v12476_v2 = vperm.slane %v205_v16, 6  ;;  %v12478_v4 = vperm.slane %v205_v16, 7 }
  0x7c   :  { %1339 = vmatpush.bf16.msrb.mxu2 %v8342_v11 }
  0x7d   :  { %1066 = vmatpush.bf16.msra.mxu0 %v8126_v32  ;;  %v11122_v32 = vld [vmem:[#allocation13 + $0x74] sm:$0xf0] }
  0x7e   :  { %1327 = vmatpush.bf16.msrb.mxu1 %v8322_v23  ;;  %v8310_v38 = vor.u32 %v11122_v32, %v8309_v31 }
  0x80   :  { %1340 = vmatpush.bf16.msrb.mxu2 %v8326_v24 }
  0x81   :  { %696 = vmatmul.bf16.gmra.mxu0 %v12331_v19  ;;  %725 = vmatmul.bf16.gmra.mxu1 %v12331_v19 }
  0x82   :  { %1311 = vmatpush.bf16.msrb.mxu0 %v8366_v46  ;;  %v11118_v46 = vld [vmem:[#allocation13 + $0x54] sm:$0xf0]  ;;  %1328 = vmatpush.bf16.msrb.mxu1 %v8306_v37 }
  0x83   :  { %754 = vmatmul.bf16.gmra.mxu2 %v12331_v19  ;;  %783 = vmatmul.bf16.gmra.mxu3 %v12331_v19  ;;  %v8378_v19 = vor.u32 %v11136_v50, %v8375_v52  ;;  %v8294_v49 = vor.u32 %v11118_v46, %v8293_v44  ;;  %v8269_v50 = vld [vmem:[#allocation13 + $0x20] sm:$0xf]  ;;  %v11111_v52 = vld [vmem:[#allocation13 + $0x24] sm:$0xf] }
  0x84   :  { %1341 = vmatpush.bf16.msrb.mxu2 %v8310_v38  ;;  %v8270_v58 = vor.u32 %v11113_v51, %v8269_v50  ;;  %v8274_v59 = vor.u32 %v11111_v52, %v8271_v54 }
  0x85   :  { %1350 = vmatpush.bf16.msrb.mxu3 %v8378_v19  ;;  %v8277_v19 = vld [vmem:[#allocation13 + $0x28] sm:$0xf] }
  0x86   :  { %1312 = vmatpush.bf16.msrb.mxu0 %v8350_v55  ;;  %v11114_v55 = vld [vmem:[#allocation13 + $0x34] sm:$0xf0]  ;;  %1329 = vmatpush.bf16.msrb.mxu1 %v8290_v48 }
  0x87   :  { %v8278_v60 = vor.u32 %v11114_v55, %v8277_v19 }
  0x88   :  { %1342 = vmatpush.bf16.msrb.mxu2 %v8294_v49 }
  0x89   :  { %1351 = vmatpush.bf16.msrb.mxu3 %v8362_v0  ;;  %v11107_v0 = vld [vmem:[#allocation13 + $0x4] sm:$0xf] }
  0x8a   :  { %1313 = vmatpush.bf16.msrb.mxu0 %v8334_v35  ;;  %1330 = vmatpush.bf16.msrb.mxu1 %v8274_v59  ;;  %v8258_v35 = vor.u32 %v11107_v0, %v8255_v1  ;;  %v12464_v59 = vperm.slane %v205_v16, 5 }
  0x8c   :  { %1343 = vmatpush.bf16.msrb.mxu2 %v8278_v60 }
  0x8d   :  { %1352 = vmatpush.bf16.msrb.mxu3 %v8346_v12  ;;  %v13409_v12 = vmov 0  }
  0x8e   :  { %1314 = vmatpush.bf16.msrb.mxu0 %v8318_v20  ;;  %1331 = vmatpush.bf16.msrb.mxu1 %v8258_v35  ;;  %v12394_v20 = vperm.slane %v205_v16, 1 }
  0x90   :  { %1344 = vmatpush.bf16.msrb.mxu2 %v8262_v8 }
  0x91   :  { %701 = vmatmul.bf16.gmra.mxu0 %v12340_v3  ;;  %730 = vmatmul.bf16.gmra.mxu1 %v12340_v3 }
  0x92   :  { %1353 = vmatpush.bf16.msrb.mxu3 %v8330_v25  ;;  %1315 = vmatpush.bf16.msrb.mxu0 %v8302_v33 }
  0x93   :  { %759 = vmatmul.bf16.gmra.mxu2 %v12340_v3  ;;  %788 = vmatmul.bf16.gmra.mxu3 %v12340_v3  ;;  %v8295_v3 = vld [vmem:[#allocation13 + $0x58] sm:$0xf0] }
  0x94   :  { %v8298_v53 = vor.u32 %v11116_v47, %v8295_v3 }
  0x96   :  { %1354 = vmatpush.bf16.msrb.mxu3 %v8314_v39  ;;  %1316 = vmatpush.bf16.msrb.mxu0 %v8286_v45 }
  0x9a   :  { %1355 = vmatpush.bf16.msrb.mxu3 %v8298_v53  ;;  %1317 = vmatpush.bf16.msrb.mxu0 %v8270_v58  ;;  %v12462_v58 = vperm.slane %v205_v16, 4 }
  0x9e   :  { %1356 = vmatpush.bf16.msrb.mxu3 %v8282_v61  ;;  %1318 = vmatpush.bf16.msrb.mxu0 %v8254_v5 }
  0xa1   :  { %706 = vmatmul.bf16.gmra.mxu0 %v12349_v29  ;;  %735 = vmatmul.bf16.gmra.mxu1 %v12349_v29 }
  0xa2   :  { %1357 = vmatpush.bf16.msrb.mxu3 %v8266_v9 }
  0xa3   :  { %764 = vmatmul.bf16.gmra.mxu2 %v12349_v29  ;;  %793 = vmatmul.bf16.gmra.mxu3 %v12349_v29 }
  0xae   :  { %v12371_v10 = vpop.f32.mrf.mxu0  ;;  %v12373_v11 = vpop.f32.mrf.mxu1 }
  0xb1   :  { %1067 = vmatmul.bf16.vlgmr.msra.gmra.mxu0 %v13409_v12  ;;  %1080 = vmatmul.bf16.vlgmr.msra.gmra.mxu1 %v13409_v12 }
  0xb3   :  { %1093 = vmatmul.bf16.vlgmr.msra.gmra.mxu2 %v13409_v12  ;;  %1106 = vmatmul.bf16.vlgmr.msra.gmra.mxu3 %v13409_v12 }
  0xb6   :  { %v12379_v13 = vpop.f32.mrf.mxu2  ;;  %v12381_v29 = vpop.f32.mrf.mxu3 }
  0xb7   :  { %v12383_v14 = vpop.f32.mrf.mxu0  ;;  %v12385_v15 = vpop.f32.mrf.mxu1 }
  0xbe   :  { %v12392_v18 = vpop.f32.mrf.mxu2  ;;  %v12396_v21 = vpop.f32.mrf.mxu3 }
  0xbf   :  { %v581_v22 = vpop.f32.mrf.mxu0  ;;  %v610_v24 = vpop.f32.mrf.mxu1 }
  0xc0   :  { %v12399_v23 = vadd.f32 %v581_v22, %v12390_v17  ;;  %v12402_v25 = vadd.f32 %v610_v24, %v12394_v20 }
  0xc1   :  { %1319 = vmatmul.bf16.vlgmr.msrb.gmra.mxu0 %v13409_v12  ;;  %1332 = vmatmul.bf16.vlgmr.msrb.gmra.mxu1 %v13409_v12 }
  0xc3   :  { %1345 = vmatmul.bf16.vlgmr.msrb.gmra.mxu2 %v13409_v12  ;;  %1358 = vmatmul.bf16.vlgmr.msrb.gmra.mxu3 %v13409_v12 }
  0xc6   :  { %v639_v28 = vpop.f32.mrf.mxu2  ;;  %v668_v31 = vpop.f32.mrf.mxu3 }
  0xc7   :  { %v12413_v30 = vadd.f32 %v639_v28, %v12408_v26  ;;  %v12415_v32 = vpop.f32.mrf.mxu0  ;;  %v12418_v33 = vadd.f32 %v668_v31, %v12410_v27  ;;  %v12420_v34 = vpop.f32.mrf.mxu1 }
  0xce   :  { %v12422_v36 = vpop.f32.mrf.mxu2  ;;  %v12424_v37 = vpop.f32.mrf.mxu3 }
  0xcf   :  { %v586_v38 = vpop.f32.mrf.mxu0  ;;  %v615_v40 = vpop.f32.mrf.mxu1 }
  0xd0   :  { %v12427_v39 = vadd.f32 %v586_v38, %v12390_v17  ;;  %v12430_v41 = vadd.f32 %v615_v40, %v12394_v20  ;;  %v8493_v40 = vld [vmem:[#allocation11 + $0xe0] sm:$0xf] }
  0xd2   :  { %13411 = vst [vmem:[#allocation30_spill] sm:$0xff] %v12427_v39 }
  0xd3   :  { %13412 = vst [vmem:[#allocation31_spill] sm:$0xff] %v12430_v41  ;;  %v11181_v41 = vld [vmem:[#allocation13 + $0x4c] sm:$0xf0] }
  0xd6   :  { %v644_v42 = vpop.f32.mrf.mxu2  ;;  %v673_v44 = vpop.f32.mrf.mxu3 }
  0xd7   :  { %v12433_v43 = vadd.f32 %v644_v42, %v12408_v26  ;;  %v12435_v45 = vpop.f32.mrf.mxu0  ;;  %v12438_v46 = vadd.f32 %v673_v44, %v12410_v27  ;;  %v12440_v47 = vpop.f32.mrf.mxu1  ;;  %v11169_v42 = vld [vmem:[#allocation11 + $0xec] sm:$0xf0]  ;;  %v11167_v44 = vld [vmem:[#allocation11 + $0xe4] sm:$0xf] }
  0xd8   :  { %13414 = vst [vmem:[#allocation33_spill] sm:$0xff] %v12435_v45  ;;  %v11191_v45 = vld [vmem:[#allocation13 + $0xa4] sm:$0xf] }
  0xd9   :  { %13413 = vst [vmem:[#allocation32_spill] sm:$0xff] %v12433_v43  ;;  %v8541_v43 = vld [vmem:[#allocation13 + $0x40] sm:$0xf] }
  0xda   :  { %13415 = vst [vmem:[#allocation34_spill] sm:$0xff] %v12438_v46 }
  0xdb   :  { %13416 = vst [vmem:[#allocation35_spill] sm:$0xff] %v12440_v47  ;;  %v8607_v47 = vld [vmem:[#allocation13 + $0xd0] sm:$0xf0] }
  0xde   :  { %v12442_v3 = vpop.f32.mrf.mxu2  ;;  %v12444_v48 = vpop.f32.mrf.mxu3 }
  0xdf   :  { %13417 = vst [vmem:[#allocation36_spill] sm:$0xff] %v12442_v3  ;;  %v591_v49 = vpop.f32.mrf.mxu0  ;;  %v620_v51 = vpop.f32.mrf.mxu1  ;;  %v11197_v3 = vld [vmem:[#allocation13 + $0xcc] sm:$0xf0] }
  0xe0   :  { %13418 = vst [vmem:[#allocation37_spill] sm:$0xff] %v12444_v48  ;;  %v12447_v50 = vadd.f32 %v591_v49, %v12390_v17  ;;  %v12450_v52 = vadd.f32 %v620_v51, %v12394_v20  ;;  %v8494_v49 = vor.u32 %v11169_v42, %v8493_v40  ;;  %v8495_v51 = vld [vmem:[#allocation11 + $0xf0] sm:$0xf0]  ;;  %v11166_v40 = vld [vmem:[#allocation11 + $0xd4] sm:$0xf0] }
  0xe1   :  { %v8605_v48 = vld [vmem:[#allocation13 + $0xc0] sm:$0xf] }
  0xe2   :  { %13419 = vst [vmem:[#allocation38_spill] sm:$0xff] %v12447_v50  ;;  %1602 = vmatpush.bf16.msra.mxu0 %v8494_v49  ;;  %v8407_v50 = vld [vmem:[#allocation11 + $0x38] sm:$0xf0] }
  0xe3   :  { %13420 = vst [vmem:[#allocation39_spill] sm:$0xff] %v12450_v52  ;;  %v8405_v52 = vld [vmem:[#allocation11 + $0x28] sm:$0xf] }
  0xe6   :  { %v649_v53 = vpop.f32.mrf.mxu2  ;;  %v678_v19 = vpop.f32.mrf.mxu3 }
  0xe7   :  { %v12453_v54 = vadd.f32 %v649_v53, %v12408_v26  ;;  %v12455_v55 = vpop.f32.mrf.mxu0  ;;  %v12458_v56 = vadd.f32 %v678_v19, %v12410_v27  ;;  %v12460_v57 = vpop.f32.mrf.mxu1  ;;  %v8501_v53 = vld [vmem:[#allocation11 + $0xe8] sm:$0xf]  ;;  %v11170_v19 = vld [vmem:[#allocation11 + $0xf4] sm:$0xf0] }
  0xe8   :  { %13422 = vst [vmem:[#allocation41_spill] sm:$0xff] %v12455_v55  ;;  %v8471_v55 = vld [vmem:[#allocation11 + $0xb8] sm:$0xf0] }
  0xe9   :  { %13421 = vst [vmem:[#allocation40_spill] sm:$0xff] %v12453_v54  ;;  %v8399_v54 = vld [vmem:[#allocation11 + $0x30] sm:$0xf0] }
  0xea   :  { %13423 = vst [vmem:[#allocation42_spill] sm:$0xff] %v12458_v56  ;;  %v8415_v56 = vld [vmem:[#allocation11 + $0x50] sm:$0xf0] }
  0xeb   :  { %13424 = vst [vmem:[#allocation43_spill] sm:$0xff] %v12460_v57  ;;  %v8469_v57 = vld [vmem:[#allocation11 + $0xa8] sm:$0xf] }
  0xee   :  { %v12466_v60 = vpop.f32.mrf.mxu2  ;;  %v12468_v61 = vpop.f32.mrf.mxu3 }
  0xef   :  { %13425 = vst [vmem:[#allocation44_spill] sm:$0xff] %v12466_v60  ;;  %v692_v62 = vpop.f32.mrf.mxu0  ;;  %v721_v0 = vpop.f32.mrf.mxu1  ;;  %v8463_v60 = vld [vmem:[#allocation11 + $0xb0] sm:$0xf0] }
  0xf0   :  { %13426 = vst [vmem:[#allocation45_spill] sm:$0xff] %v12468_v61  ;;  %v12471_v63 = vadd.f32 %v692_v62, %v12462_v58  ;;  %v12474_v1 = vadd.f32 %v721_v0, %v12464_v59  ;;  %v8498_v62 = vor.u32 %v11167_v44, %v8495_v51  ;;  %v8502_v0 = vor.u32 %v11170_v19, %v8501_v53  ;;  %v8485_v61 = vld [vmem:[#allocation11 + $0xc8] sm:$0xf]  ;;  %v11164_v19 = vld [vmem:[#allocation11 + $0xcc] sm:$0xf] }
  0xf1   :  { %v8486_v49 = vor.u32 %v11166_v40, %v8485_v61  ;;  %v11160_v40 = vld [vmem:[#allocation11 + $0xac] sm:$0xf] }
  0xf2   :  { %13427 = vst [vmem:[#allocation46_spill] sm:$0xff] %v12471_v63  ;;  %1615 = vmatpush.bf16.msra.mxu1 %v8498_v62  ;;  %1628 = vmatpush.bf16.msra.mxu2 %v8502_v0  ;;  %v8479_v63 = vld [vmem:[#allocation11 + $0xd0] sm:$0xf0]  ;;  %v8487_v62 = vld [vmem:[#allocation11 + $0xd8] sm:$0xf0] }
  0xf3   :  { %13428 = vst [vmem:[#allocation47_spill] sm:$0xff] %v12474_v1 }
  0xf6   :  { %v750_v5 = vpop.f32.mrf.mxu2  ;;  %v779_v7 = vpop.f32.mrf.mxu3  ;;  %1629 = vmatpush.bf16.msra.mxu2 %v8486_v49 }
  0xf7   :  { %v12481_v6 = vadd.f32 %v750_v5, %v12476_v2  ;;  %v12483_v35 = vpop.f32.mrf.mxu0  ;;  %v12486_v8 = vadd.f32 %v779_v7, %v12478_v4  ;;  %v12488_v9 = vpop.f32.mrf.mxu1  ;;  %v11168_v5 = vld [vmem:[#allocation11 + $0xec] sm:$0xf]  ;;  %v8503_v7 = vld [vmem:[#allocation11 + $0xf8] sm:$0xf0] }
  0xf8   :  { %13430 = vst [vmem:[#allocation49_spill] sm:$0xff] %v12483_v35  ;;  %v8506_v12 = vor.u32 %v11168_v5, %v8503_v7  ;;  %v11161_v7 = vld [vmem:[#allocation11 + $0xac] sm:$0xf0]  ;;  %v8439_v35 = vld [vmem:[#allocation11 + $0x78] sm:$0xf0] }
  0xf9   :  { %13429 = vst [vmem:[#allocation48_spill] sm:$0xff] %v12481_v6  ;;  %v11163_v6 = vld [vmem:[#allocation11 + $0xc4] sm:$0xf] }
  0xfa   :  { %13431 = vst [vmem:[#allocation50_spill] sm:$0xff] %v12486_v8  ;;  %v11165_v8 = vld [vmem:[#allocation11 + $0xcc] sm:$0xf0]  ;;  %1641 = vmatpush.bf16.msra.mxu3 %v8506_v12  ;;  %v8482_v53 = vor.u32 %v11163_v6, %v8479_v63  ;;  %v8490_v12 = vor.u32 %v11164_v19, %v8487_v62  ;;  %v11162_v63 = vld [vmem:[#allocation11 + $0xb4] sm:$0xf0] }
  0xfb   :  { %13432 = vst [vmem:[#allocation51_spill] sm:$0xff] %v12488_v9  ;;  %v8470_v6 = vor.u32 %v11162_v63, %v8469_v57  ;;  %v11157_v19 = vld [vmem:[#allocation11 + $0x8c] sm:$0xf0]  ;;  %v11156_v63 = vld [vmem:[#allocation11 + $0x8c] sm:$0xf] }
  0xfc   :  { %1616 = vmatpush.bf16.msra.mxu1 %v8482_v53  ;;  %v11155_v53 = vld [vmem:[#allocation11 + $0x84] sm:$0xf] }
  0xfd   :  { %1630 = vmatpush.bf16.msra.mxu2 %v8470_v6 }
  0xfe   :  { %v12490_v22 = vpop.f32.mrf.mxu2  ;;  %v12492_v24 = vpop.f32.mrf.mxu3  ;;  %1642 = vmatpush.bf16.msra.mxu3 %v8490_v12  ;;  %v8447_v12 = vld [vmem:[#allocation11 + $0x90] sm:$0xf0] }
  0xff   :  { %13433 = vst [vmem:[#allocation52_spill] sm:$0xff] %v12490_v22  ;;  %v697_v28 = vpop.f32.mrf.mxu0  ;;  %v726_v31 = vpop.f32.mrf.mxu1  ;;  %v8450_v57 = vor.u32 %v11155_v53, %v8447_v12  ;;  %v8431_v53 = vld [vmem:[#allocation11 + $0x70] sm:$0xf0]  ;;  %v8437_v12 = vld [vmem:[#allocation11 + $0x68] sm:$0xf] }
 0x100   :  { %13434 = vst [vmem:[#allocation53_spill] sm:$0xff] %v12492_v24  ;;  %v12495_v16 = vadd.f32 %v697_v28, %v12462_v58  ;;  %v12498_v38 = vadd.f32 %v726_v31, %v12464_v59  ;;  %v8477_v28 = vld [vmem:[#allocation11 + $0xc0] sm:$0xf] }
 0x101   :  { %v8478_v1 = vor.u32 %v11165_v8, %v8477_v28  ;;  %v8461_v8 = vld [vmem:[#allocation11 + $0xa0] sm:$0xf]  ;;  %v11159_v28 = vld [vmem:[#allocation11 + $0xa4] sm:$0xf] }
 0x102   :  { %13435 = vst [vmem:[#allocation54_spill] sm:$0xff] %v12495_v16  ;;  %v8466_v61 = vor.u32 %v11159_v28, %v8463_v60 }
 0x103   :  { %13436 = vst [vmem:[#allocation55_spill] sm:$0xff] %v12498_v38  ;;  %1603 = vmatpush.bf16.msra.mxu0 %v8478_v1  ;;  %v8445_v1 = vld [vmem:[#allocation11 + $0x80] sm:$0xf] }
 0x104   :  { %1617 = vmatpush.bf16.msra.mxu1 %v8466_v61  ;;  %v8446_v62 = vor.u32 %v11157_v19, %v8445_v1  ;;  %v11153_v1 = vld [vmem:[#allocation11 + $0x6c] sm:$0xf0]  ;;  %v11151_v19 = vld [vmem:[#allocation11 + $0x64] sm:$0xf] }
 0x106   :  { %v755_v31 = vpop.f32.mrf.mxu2  ;;  %v784_v44 = vpop.f32.mrf.mxu3 }
 0x107   :  { %v12501_v42 = vadd.f32 %v755_v31, %v12476_v2  ;;  %v12503_v51 = vpop.f32.mrf.mxu0  ;;  %v12506_v0 = vadd.f32 %v784_v44, %v12478_v4  ;;  %v12508_v5 = vpop.f32.mrf.mxu1  ;;  %v8462_v31 = vor.u32 %v11161_v7, %v8461_v8  ;;  %v8474_v44 = vor.u32 %v11160_v40, %v8471_v55  ;;  %v8453_v8 = vld [vmem:[#allocation11 + $0x88] sm:$0xf]  ;;  %v11158_v7 = vld [vmem:[#allocation11 + $0x94] sm:$0xf0] }
 0x108   :  { %13438 = vst [vmem:[#allocation57_spill] sm:$0xff] %v12503_v51  ;;  %v8454_v28 = vor.u32 %v11158_v7, %v8453_v8  ;;  %1618 = vmatpush.bf16.msra.mxu1 %v8450_v57  ;;  %v11154_v8 = vld [vmem:[#allocation11 + $0x74] sm:$0xf0]  ;;  %v8434_v7 = vor.u32 %v11151_v19, %v8431_v53  ;;  %v11147_v57 = vld [vmem:[#allocation11 + $0x44] sm:$0xf] }
 0x109   :  { %13437 = vst [vmem:[#allocation56_spill] sm:$0xff] %v12501_v42  ;;  %1604 = vmatpush.bf16.msra.mxu0 %v8462_v31  ;;  %1643 = vmatpush.bf16.msra.mxu3 %v8474_v44  ;;  %v8455_v31 = vld [vmem:[#allocation11 + $0x98] sm:$0xf0]  ;;  %v8429_v44 = vld [vmem:[#allocation11 + $0x60] sm:$0xf]  ;;  %v8438_v9 = vor.u32 %v11154_v8, %v8437_v12  ;;  %v8418_v12 = vor.u32 %v11147_v57, %v8415_v56 }
 0x10a   :  { %13439 = vst [vmem:[#allocation58_spill] sm:$0xff] %v12506_v0  ;;  %v8458_v6 = vor.u32 %v11156_v63, %v8455_v31  ;;  %1631 = vmatpush.bf16.msra.mxu2 %v8454_v28  ;;  %v8430_v22 = vor.u32 %v11153_v1, %v8429_v44  ;;  %v8413_v63 = vld [vmem:[#allocation11 + $0x40] sm:$0xf]  ;;  %v11149_v31 = vld [vmem:[#allocation11 + $0x4c] sm:$0xf0] }
 0x10b   :  { %13440 = vst [vmem:[#allocation59_spill] sm:$0xff] %v12508_v5  ;;  %v11150_v44 = vld [vmem:[#allocation11 + $0x54] sm:$0xf0]  ;;  %v8423_v8 = vld [vmem:[#allocation11 + $0x58] sm:$0xf0] }
 0x10c   :  { %1619 = vmatpush.bf16.msra.mxu1 %v8434_v7  ;;  %v11146_v56 = vld [vmem:[#allocation11 + $0x34] sm:$0xf0]  ;;  %v11201_v42 = vld [vmem:[#allocation13 + $0xec] sm:$0xf0]  ;;  %v11188_v51 = vld [vmem:[#allocation13 + $0x8c] sm:$0xf] }
 0x10d   :  { %1605 = vmatpush.bf16.msra.mxu0 %v8446_v62  ;;  %1644 = vmatpush.bf16.msra.mxu3 %v8458_v6  ;;  %v8421_v6 = vld [vmem:[#allocation11 + $0x48] sm:$0xf] }
 0x10e   :  { %v12510_v49 = vpop.f32.mrf.mxu2  ;;  %v12512_v24 = vpop.f32.mrf.mxu3  ;;  %1632 = vmatpush.bf16.msra.mxu2 %v8438_v9 }
 0x10f   :  { %13441 = vst [vmem:[#allocation60_spill] sm:$0xff] %v12510_v49  ;;  %v702_v60 = vpop.f32.mrf.mxu0  ;;  %v731_v61 = vpop.f32.mrf.mxu1  ;;  %v11190_v49 = vld [vmem:[#allocation13 + $0x94] sm:$0xf0] }
 0x110   :  { %13442 = vst [vmem:[#allocation61_spill] sm:$0xff] %v12512_v24  ;;  %v12515_v55 = vadd.f32 %v702_v60, %v12462_v58  ;;  %v12518_v40 = vadd.f32 %v731_v61, %v12464_v59  ;;  %v11152_v60 = vld [vmem:[#allocation11 + $0x6c] sm:$0xf]  ;;  %v8414_v61 = vor.u32 %v11149_v31, %v8413_v63  ;;  %1620 = vmatpush.bf16.msra.mxu1 %v8418_v12  ;;  %v11145_v63 = vld [vmem:[#allocation11 + $0x2c] sm:$0xf0] }
 0x111   :  { %1606 = vmatpush.bf16.msra.mxu0 %v8430_v22  ;;  %v8442_v62 = vor.u32 %v11152_v60, %v8439_v35  ;;  %v8422_v22 = vor.u32 %v11150_v44, %v8421_v6  ;;  %v11148_v35 = vld [vmem:[#allocation11 + $0x4c] sm:$0xf]  ;;  %v11143_v31 = vld [vmem:[#allocation11 + $0x24] sm:$0xf]  ;;  %v8406_v6 = vor.u32 %v11146_v56, %v8405_v52  ;;  %v11189_v24 = vld [vmem:[#allocation13 + $0x8c] sm:$0xf0] }
 0x112   :  { %v8426_v60 = vor.u32 %v11148_v35, %v8423_v8  ;;  %v8402_v57 = vor.u32 %v11143_v31, %v8399_v54  ;;  %v11144_v44 = vld [vmem:[#allocation11 + $0x2c] sm:$0xf]  ;;  %v11141_v35 = vld [vmem:[#allocation11 + $0xc] sm:$0xf0]  ;;  %v11139_v12 = vld [vmem:[#allocation11 + $0x4] sm:$0xf] }
 0x113   :  { %1645 = vmatpush.bf16.msra.mxu3 %v8442_v62  ;;  %1633 = vmatpush.bf16.msra.mxu2 %v8422_v22  ;;  %v8397_v62 = vld [vmem:[#allocation11 + $0x20] sm:$0xf]  ;;  %v11140_v56 = vld [vmem:[#allocation11 + $0xc] sm:$0xf] }
 0x114   :  { %1621 = vmatpush.bf16.msra.mxu1 %v8402_v57 }
 0x115   :  { %1607 = vmatpush.bf16.msra.mxu0 %v8414_v61  ;;  %v8381_v61 = vld [vmem:[#allocation11] sm:$0xf] }
 0x116   :  { %v760_v28 = vpop.f32.mrf.mxu2  ;;  %v789_v19 = vpop.f32.mrf.mxu3  ;;  %v8382_v8 = vor.u32 %v11141_v35, %v8381_v61  ;;  %v8623_v61 = vld [vmem:[#allocation13 + $0xf0] sm:$0xf0] }
 0x117   :  { %v12521_v1 = vadd.f32 %v760_v28, %v12476_v2  ;;  %v12523_v53 = vpop.f32.mrf.mxu0  ;;  %v12526_v9 = vadd.f32 %v789_v19, %v12478_v4  ;;  %v12528_v7 = vpop.f32.mrf.mxu1  ;;  %1646 = vmatpush.bf16.msra.mxu3 %v8426_v60  ;;  %v8398_v28 = vor.u32 %v11145_v63, %v8397_v62  ;;  %v8410_v19 = vor.u32 %v11144_v44, %v8407_v50  ;;  %v8383_v60 = vld [vmem:[#allocation11 + $0x10] sm:$0xf0]  ;;  %v8389_v62 = vld [vmem:[#allocation11 + $0x8] sm:$0xf]  ;;  %v11142_v63 = vld [vmem:[#allocation11 + $0x14] sm:$0xf0] }
 0x118   :  { %1634 = vmatpush.bf16.msra.mxu2 %v8406_v6  ;;  %v8386_v52 = vor.u32 %v11139_v12, %v8383_v60  ;;  %v8390_v31 = vor.u32 %v11142_v63, %v8389_v62  ;;  %v8621_v50 = vld [vmem:[#allocation13 + $0xe0] sm:$0xf]  ;;  %v8629_v60 = vld [vmem:[#allocation13 + $0xe8] sm:$0xf]  ;;  %v11202_v62 = vld [vmem:[#allocation13 + $0xf4] sm:$0xf0] }
 0x119   :  { %1608 = vmatpush.bf16.msra.mxu0 %v8398_v28  ;;  %v8391_v28 = vld [vmem:[#allocation11 + $0x18] sm:$0xf0]  ;;  %v8622_v38 = vor.u32 %v11201_v42, %v8621_v50  ;;  %v11200_v63 = vld [vmem:[#allocation13 + $0xec] sm:$0xf]  ;;  %v8630_v16 = vor.u32 %v11202_v62, %v8629_v60  ;;  %v8589_v60 = vld [vmem:[#allocation13 + $0xa0] sm:$0xf] }
 0x11a   :  { %v8394_v44 = vor.u32 %v11140_v56, %v8391_v28  ;;  %1622 = vmatpush.bf16.msra.mxu1 %v8386_v52  ;;  %v8606_v56 = vor.u32 %v11197_v3, %v8605_v48  ;;  %v11195_v28 = vld [vmem:[#allocation13 + $0xc4] sm:$0xf]  ;;  %v11196_v42 = vld [vmem:[#allocation13 + $0xcc] sm:$0xf]  ;;  %v8615_v50 = vld [vmem:[#allocation13 + $0xd8] sm:$0xf0] }
 0x11b   :  { %1647 = vmatpush.bf16.msra.mxu3 %v8410_v19  ;;  %v11199_v19 = vld [vmem:[#allocation13 + $0xe4] sm:$0xf]  ;;  %v8610_v52 = vor.u32 %v11195_v28, %v8607_v47  ;;  %v11193_v62 = vld [vmem:[#allocation13 + $0xac] sm:$0xf0]  ;;  %v8591_v47 = vld [vmem:[#allocation13 + $0xb0] sm:$0xf0] }
 0x11c   :  { %1635 = vmatpush.bf16.msra.mxu2 %v8390_v31  ;;  %v8626_v12 = vor.u32 %v11199_v19, %v8623_v61  ;;  %v11198_v31 = vld [vmem:[#allocation13 + $0xd4] sm:$0xf0]  ;;  %v8618_v61 = vor.u32 %v11196_v42, %v8615_v50  ;;  %v8590_v48 = vor.u32 %v11193_v62, %v8589_v60  ;;  %v8594_v28 = vor.u32 %v11191_v45, %v8591_v47  ;;  %v8599_v42 = vld [vmem:[#allocation13 + $0xb8] sm:$0xf0]  ;;  %v8575_v60 = vld [vmem:[#allocation13 + $0x90] sm:$0xf0] }
 0x11d   :  { %1609 = vmatpush.bf16.msra.mxu0 %v8382_v8  ;;  %v8581_v62 = vld [vmem:[#allocation13 + $0x88] sm:$0xf] }
 0x11e   :  { %v12530_v22 = vpop.f32.mrf.mxu2  ;;  %v12532_v0 = vpop.f32.mrf.mxu3  ;;  %1868 = vmatpush.bf16.msrb.mxu1 %v8626_v12  ;;  %v8582_v5 = vor.u32 %v11190_v49, %v8581_v62  ;;  %v8567_v62 = vld [vmem:[#allocation13 + $0x78] sm:$0xf0] }
 0x11f   :  { %v707_v54 = vpop.f32.mrf.mxu0  ;;  %v736_v6 = vpop.f32.mrf.mxu1  ;;  %1648 = vmatpush.bf16.msra.mxu3 %v8394_v44 }
 0x120   :  { %v12535_v57 = vadd.f32 %v707_v54, %v12462_v58  ;;  %v12538_v35 = vadd.f32 %v736_v6, %v12464_v59  ;;  %v8631_v54 = vld [vmem:[#allocation13 + $0xf8] sm:$0xf0]  ;;  %v8613_v6 = vld [vmem:[#allocation13 + $0xc8] sm:$0xf]  ;;  %1881 = vmatpush.bf16.msrb.mxu2 %v8630_v16 }
 0x121   :  { %1855 = vmatpush.bf16.msrb.mxu0 %v8622_v38  ;;  %v8634_v8 = vor.u32 %v11200_v63, %v8631_v54  ;;  %v8614_v19 = vor.u32 %v11198_v31, %v8613_v6  ;;  %v8597_v16 = vld [vmem:[#allocation13 + $0xa8] sm:$0xf]  ;;  %v11194_v63 = vld [vmem:[#allocation13 + $0xb4] sm:$0xf0]  ;;  %v11192_v31 = vld [vmem:[#allocation13 + $0xac] sm:$0xf] }
 0x122   :  { %1869 = vmatpush.bf16.msrb.mxu1 %v8610_v52  ;;  %v8598_v6 = vor.u32 %v11194_v63, %v8597_v16  ;;  %v8602_v50 = vor.u32 %v11192_v31, %v8599_v42  ;;  %v8557_v16 = vld [vmem:[#allocation13 + $0x60] sm:$0xf]  ;;  %v11185_v63 = vld [vmem:[#allocation13 + $0x6c] sm:$0xf0]  ;;  %v8559_v31 = vld [vmem:[#allocation13 + $0x70] sm:$0xf0] }
 0x123   :  { %1894 = vmatpush.bf16.msrb.mxu3 %v8634_v8  ;;  %v8558_v49 = vor.u32 %v11185_v63, %v8557_v16  ;;  %v8565_v42 = vld [vmem:[#allocation13 + $0x68] sm:$0xf]  ;;  %v8543_v16 = vld [vmem:[#allocation13 + $0x50] sm:$0xf0]  ;;  %v11182_v63 = vld [vmem:[#allocation13 + $0x54] sm:$0xf0] }
 0x124   :  { %1882 = vmatpush.bf16.msrb.mxu2 %v8614_v19  ;;  %v8583_v19 = vld [vmem:[#allocation13 + $0x98] sm:$0xf0] }
 0x125   :  { %1856 = vmatpush.bf16.msrb.mxu0 %v8606_v56  ;;  %v11187_v56 = vld [vmem:[#allocation13 + $0x84] sm:$0xf]  ;;  %v8586_v45 = vor.u32 %v11188_v51, %v8583_v19  ;;  %v11186_v51 = vld [vmem:[#allocation13 + $0x74] sm:$0xf0] }
 0x126   :  { %v765_v44 = vpop.f32.mrf.mxu2  ;;  %v794_v12 = vpop.f32.mrf.mxu3  ;;  %1870 = vmatpush.bf16.msrb.mxu1 %v8594_v28 }
 0x127   :  { %v12541_v38 = vadd.f32 %v765_v44, %v12476_v2  ;;  %v12543_v3 = vpop.f32.mrf.mxu0  ;;  %v12546_v54 = vadd.f32 %v794_v12, %v12478_v4  ;;  %v12548_v8 = vpop.f32.mrf.mxu1  ;;  %1895 = vmatpush.bf16.msrb.mxu3 %v8618_v61  ;;  %v8573_v44 = vld [vmem:[#allocation13 + $0x80] sm:$0xf]  ;;  %v8578_v12 = vor.u32 %v11187_v56, %v8575_v60  ;;  %v577_v61 = vadd.f32 %v12371_v10, %v12390_v17  ;;  %v11184_v60 = vld [vmem:[#allocation13 + $0x6c] sm:$0xf] }
 0x128   :  { %v8574_v52 = vor.u32 %v11189_v24, %v8573_v44  ;;  %1883 = vmatpush.bf16.msrb.mxu2 %v8598_v6  ;;  %v606_v24 = vadd.f32 %v12373_v11, %v12394_v20  ;;  %v8566_v56 = vor.u32 %v11186_v51, %v8565_v42  ;;  %v8570_v46 = vor.u32 %v11184_v60, %v8567_v62  ;;  %v11177_v42 = vld [vmem:[#allocation13 + $0x2c] sm:$0xf0]  ;;  %v11175_v51 = vld [vmem:[#allocation13 + $0x24] sm:$0xf]  ;;  %v8527_v60 = vld [vmem:[#allocation13 + $0x30] sm:$0xf0] }
 0x129   :  { %1857 = vmatpush.bf16.msrb.mxu0 %v8590_v48  ;;  %v11183_v48 = vld [vmem:[#allocation13 + $0x64] sm:$0xf] }
 0x12a   :  { %1871 = vmatpush.bf16.msrb.mxu1 %v8578_v12  ;;  %v8562_v10 = vor.u32 %v11183_v48, %v8559_v31  ;;  %v11179_v12 = vld [vmem:[#allocation13 + $0x44] sm:$0xf]  ;;  %v11180_v48 = vld [vmem:[#allocation13 + $0x4c] sm:$0xf] }
 0x12b   :  { %1896 = vmatpush.bf16.msrb.mxu3 %v8602_v50 }
 0x12c   :  { %1884 = vmatpush.bf16.msrb.mxu2 %v8582_v5  ;;  %v8549_v5 = vld [vmem:[#allocation13 + $0x48] sm:$0xf] }
 0x12d   :  { %1858 = vmatpush.bf16.msrb.mxu0 %v8574_v52  ;;  %v8542_v52 = vor.u32 %v11181_v41, %v8541_v43  ;;  %v8525_v43 = vld [vmem:[#allocation13 + $0x20] sm:$0xf] }
 0x12e   :  { %v12552_v47 = vpop.f32.mrf.mxu2  ;;  %v12556_v28 = vpop.f32.mrf.mxu3  ;;  %1872 = vmatpush.bf16.msrb.mxu1 %v8562_v10 }
 0x12f   :  { %v1068_v6 = vpop.f32.mrf.mxu0  ;;  %v1081_v44 = vpop.f32.mrf.mxu1  ;;  %1897 = vmatpush.bf16.msrb.mxu3 %v8586_v45  ;;  %v8550_v45 = vor.u32 %v11182_v63, %v8549_v5 }
 0x130   :  { %v1111_v50 = vadd.f32 %v1068_v6, %v577_v61  ;;  %v1112_v19 = vadd.f32 %v1081_v44, %v606_v24  ;;  %1885 = vmatpush.bf16.msrb.mxu2 %v8566_v56  ;;  %v8546_v61 = vor.u32 %v11179_v12, %v8543_v16  ;;  %v635_v24 = vadd.f32 %v12379_v13, %v12408_v26  ;;  %v8551_v6 = vld [vmem:[#allocation13 + $0x58] sm:$0xf0]  ;;  %v8533_v13 = vld [vmem:[#allocation13 + $0x28] sm:$0xf] }
 0x131   :  { %1859 = vmatpush.bf16.msrb.mxu0 %v8558_v49  ;;  %v664_v49 = vadd.f32 %v12381_v29, %v12410_v27  ;;  %v8554_v41 = vor.u32 %v11180_v48, %v8551_v6  ;;  %v8526_v56 = vor.u32 %v11177_v42, %v8525_v43  ;;  %v11176_v29 = vld [vmem:[#allocation13 + $0x2c] sm:$0xf]  ;;  %v8535_v12 = vld [vmem:[#allocation13 + $0x38] sm:$0xf0]  ;;  %v8509_v48 = vld [vmem:[#allocation13] sm:$0xf] }
 0x132   :  { %v1367_v11 = vmul.f32 0.5, %v1111_v50  ;;  %v1371_v39 = vmul.f32 0.5, %v1112_v19  ;;  %1873 = vmatpush.bf16.msrb.mxu1 %v8546_v61  ;;  %v8530_v19 = vor.u32 %v11175_v51, %v8527_v60  ;;  %v8538_v16 = vor.u32 %v11176_v29, %v8535_v12  ;;  %v8517_v42 = vld [vmem:[#allocation13 + $0x8] sm:$0xf]  ;;  %v11174_v51 = vld [vmem:[#allocation13 + $0x14] sm:$0xf0] }
 0x133   :  { %1898 = vmatpush.bf16.msrb.mxu3 %v8570_v46  ;;  %v710_v60 = vadd.f32 %v12543_v3, %v12462_v58 }
 0x134   :  { %11807 = vtanh.f32 %v1367_v11  ;;  %1886 = vmatpush.bf16.msrb.mxu2 %v8550_v45 }
 0x135   :  { %11809 = vtanh.f32 %v1371_v39  ;;  %1860 = vmatpush.bf16.msrb.mxu0 %v8542_v52  ;;  %v11178_v39 = vld [vmem:[#allocation13 + $0x34] sm:$0xf0] }
 0x136   :  { %v1094_v31 = vpop.f32.mrf.mxu2  ;;  %v1107_v44 = vpop.f32.mrf.mxu3  ;;  %v8534_v11 = vor.u32 %v11178_v39, %v8533_v13  ;;  %1874 = vmatpush.bf16.msrb.mxu1 %v8530_v19 }
 0x137   :  { %v1113_v50 = vadd.f32 %v1094_v31, %v635_v24  ;;  %v1070_v10 = vpop.f32.mrf.mxu0  ;;  %v1114_v46 = vadd.f32 %v1107_v44, %v664_v49  ;;  %v1083_v62 = vpop.f32.mrf.mxu1  ;;  %1899 = vmatpush.bf16.msrb.mxu3 %v8554_v41  ;;  %v11173_v24 = vld [vmem:[#allocation13 + $0xc] sm:$0xf0]  ;;  %v11171_v31 = vld [vmem:[#allocation13 + $0x4] sm:$0xf]  ;;  %v8511_v49 = vld [vmem:[#allocation13 + $0x10] sm:$0xf0]  ;;  %v8518_v41 = vor.u32 %v11174_v51, %v8517_v42 }
 0x138   :  { %v8510_v6 = vor.u32 %v11173_v24, %v8509_v48  ;;  %1887 = vmatpush.bf16.msrb.mxu2 %v8534_v11  ;;  %v8514_v45 = vor.u32 %v11171_v31, %v8511_v49  ;;  %v11172_v44 = vld [vmem:[#allocation13 + $0xc] sm:$0xf]  ;;  %v8519_v10 = vld [vmem:[#allocation13 + $0x18] sm:$0xf0]  ;;  %v739_v62 = vadd.f32 %v12548_v8, %v12464_v59  ;;  %v768_v8 = vadd.f32 %v12552_v47, %v12476_v2  ;;  %v8751_v47 = vld [vmem:[#allocation11 + $0xf0] sm:$0xf0] }
 0x139   :  { %11811 = vtanh.f32 %v1113_v50  ;;  %v1376_v63 = vmul.f32 0.5, %v1114_v46  ;;  %1861 = vmatpush.bf16.msrb.mxu0 %v8526_v56  ;;  %v8522_v39 = vor.u32 %v11172_v44, %v8519_v10  ;;  %v11233_v44 = vld [vmem:[#allocation11 + $0xec] sm:$0xf0]  ;;  %v11231_v10 = vld [vmem:[#allocation11 + $0xe4] sm:$0xf] }
 0x13a   :  { %v11808_v5 = vpop.eup %11807  ;;  %1875 = vmatpush.bf16.msrb.mxu1 %v8514_v45 }
 0x13b   :  { %v11810_v52 = vpop.eup %11809  ;;  %v1369_v61 = vmul.f32 0.5, %v11808_v5  ;;  %11813 = vtanh.f32 %v1376_v63  ;;  %1900 = vmatpush.bf16.msrb.mxu3 %v8538_v16 }
 0x13c   :  { %v1373_v43 = vmul.f32 0.5, %v11810_v52  ;;  %1888 = vmatpush.bf16.msrb.mxu2 %v8518_v41 }
 0x13d   :  { %v1370_v50 = vadd.f32 0.5, %v1369_v61  ;;  %1862 = vmatpush.bf16.msrb.mxu0 %v8510_v6  ;;  %v797_v6 = vadd.f32 %v12556_v28, %v12478_v4  ;;  %v11234_v28 = vld [vmem:[#allocation11 + $0xf4] sm:$0xf0] }
 0x13e   :  { %v1374_v13 = vadd.f32 0.5, %v1373_v43  ;;  %v1096_v56 = vpop.f32.mrf.mxu2  ;;  %v1109_v19 = vpop.f32.mrf.mxu3 }
 0x13f   :  { %v11812_v46 = vpop.eup %11811  ;;  %v1320_v11 = vpop.f32.mrf.mxu0  ;;  %1901 = vmatpush.bf16.msrb.mxu3 %v8522_v39  ;;  %v8757_v56 = vld [vmem:[#allocation11 + $0xe8] sm:$0xf]  ;;  %v8759_v19 = vld [vmem:[#allocation11 + $0xf8] sm:$0xf0] }
 0x140   :  { %v1393_v29 = vmul.f32 0.0, %v1374_v13  ;;  %v1394_v12 = vmul.f32 %v11812_v46, %v1370_v50  ;;  %v1363_v16 = vadd.f32 %v1320_v11, %v710_v60  ;;  %v1333_v5 = vpop.f32.mrf.mxu1  ;;  %v8749_v50 = vld [vmem:[#allocation11 + $0xe0] sm:$0xf] }
 0x141   :  { %v1364_v63 = vadd.f32 %v1333_v5, %v739_v62  ;;  %v11814_v48 = vpop.eup %11813  ;;  %v11232_v62 = vld [vmem:[#allocation11 + $0xec] sm:$0xf]  ;;  %v11229_v5 = vld [vmem:[#allocation11 + $0xcc] sm:$0xf0] }
 0x142   :  { %v12566_v3 = vadd.f32 %v1394_v12, %v1393_v29  ;;  %v1380_v24 = vmul.f32 0.5, %v1363_v16  ;;  %v1378_v61 = vmul.f32 0.5, %v11814_v48  ;;  %v8750_v12 = vor.u32 %v11233_v44, %v8749_v50  ;;  %v8733_v16 = vld [vmem:[#allocation11 + $0xc0] sm:$0xf]  ;;  %v11228_v50 = vld [vmem:[#allocation11 + $0xcc] sm:$0xf] }
 0x143   :  { %v1384_v52 = vmul.f32 0.5, %v1364_v63  ;;  %v8743_v44 = vld [vmem:[#allocation11 + $0xd8] sm:$0xf0] }
 0x144   :  { %11815 = vtanh.f32 %v12566_v3  ;;  %v1379_v41 = vadd.f32 0.5, %v1378_v61 }
 0x145   :  { %11817 = vtanh.f32 %v1380_v24  ;;  %v8754_v24 = vor.u32 %v11231_v10, %v8751_v47  ;;  %v8734_v10 = vor.u32 %v11229_v5, %v8733_v16  ;;  %v8701_v5 = vld [vmem:[#allocation11 + $0x80] sm:$0xf] }
 0x146   :  { %11819 = vtanh.f32 %v1384_v52  ;;  %v1346_v31 = vpop.f32.mrf.mxu2  ;;  %v1359_v43 = vpop.f32.mrf.mxu3  ;;  %v11227_v52 = vld [vmem:[#allocation11 + $0xc4] sm:$0xf] }
 0x147   :  { %v1365_v49 = vadd.f32 %v1346_v31, %v768_v8  ;;  %v1322_v45 = vpop.f32.mrf.mxu0  ;;  %v1366_v42 = vadd.f32 %v1359_v43, %v797_v6  ;;  %v8735_v8 = vld [vmem:[#allocation11 + $0xd0] sm:$0xf0]  ;;  %v8758_v31 = vor.u32 %v11234_v28, %v8757_v56  ;;  %v8741_v43 = vld [vmem:[#allocation11 + $0xc8] sm:$0xf]  ;;  %v11225_v56 = vld [vmem:[#allocation11 + $0xac] sm:$0xf0] }
 0x148   :  { %v1335_v51 = vpop.f32.mrf.mxu1  ;;  %v11230_v45 = vld [vmem:[#allocation11 + $0xd4] sm:$0xf0]  ;;  %v8738_v47 = vor.u32 %v11227_v52, %v8735_v8  ;;  %v11219_v52 = vld [vmem:[#allocation11 + $0x84] sm:$0xf] }
 0x149   :  { %11821 = vtanh.f32 %v1365_v49  ;;  %v1389_v13 = vmul.f32 0.5, %v1366_v42  ;;  %v8762_v49 = vor.u32 %v11232_v62, %v8759_v19  ;;  %v8742_v28 = vor.u32 %v11230_v45, %v8741_v43  ;;  %v11223_v19 = vld [vmem:[#allocation11 + $0xa4] sm:$0xf]  ;;  %v8703_v43 = vld [vmem:[#allocation11 + $0x90] sm:$0xf0] }
 0x14a   :  { %v11816_v60 = vpop.eup %11815  ;;  %v8746_v62 = vor.u32 %v11228_v50, %v8743_v44  ;;  %v8709_v45 = vld [vmem:[#allocation11 + $0x88] sm:$0xf]  ;;  %v8711_v50 = vld [vmem:[#allocation11 + $0x98] sm:$0xf0] }
 0x14b   :  { %v11818_v39 = vpop.eup %11817  ;;  %v12573_v46 = vmul.f32 %v11816_v60, %v1379_v41  ;;  %11823 = vtanh.f32 %v1389_v13 }
 0x14c   :  { %v11820_v11 = vpop.eup %11819  ;;  %v1382_v29 = vmul.f32 0.5, %v11818_v39  ;;  %v8717_v39 = vld [vmem:[#allocation11 + $0xa0] sm:$0xf] }
 0x14d   :  { %v1409_v63 = vpack.c.bf16 %v12573_v46, %v12573_v46  ;;  %v1386_v48 = vmul.f32 0.5, %v11820_v11  ;;  %v8719_v11 = vld [vmem:[#allocation11 + $0xb0] sm:$0xf0] }
 0x14e   :  { %v1383_v61 = vadd.f32 0.5, %v1382_v29  ;;  %v1348_v6 = vpop.f32.mrf.mxu2  ;;  %v1361_v41 = vpop.f32.mrf.mxu3  ;;  %v8725_v29 = vld [vmem:[#allocation11 + $0xa8] sm:$0xf]  ;;  %v8722_v16 = vor.u32 %v11223_v19, %v8719_v11  ;;  %v11217_v19 = vld [vmem:[#allocation11 + $0x6c] sm:$0xf0] }
 0x14f   :  { %v11822_v42 = vpop.eup %11821  ;;  %v1387_v51 = vadd.f32 0.5, %v1386_v48  ;;  %1610 = vmatmul.bf16.vlgmr.msra.gmra.mxu0 %v1409_v63  ;;  %1623 = vmatmul.bf16.vlgmr.msra.gmra.mxu1 %v1409_v63  ;;  %v11220_v41 = vld [vmem:[#allocation11 + $0x8c] sm:$0xf]  ;;  %v11215_v11 = vld [vmem:[#allocation11 + $0x64] sm:$0xf] }
 0x150   :  { %v1397_v60 = vmul.f32 %v11822_v42, %v1383_v61  ;;  %1636 = vmatmul.bf16.vlgmr.msra.gmra.mxu2 %v1409_v63  ;;  %1649 = vmatmul.bf16.vlgmr.msra.gmra.mxu3 %v1409_v63  ;;  %v11226_v61 = vld [vmem:[#allocation11 + $0xb4] sm:$0xf0]  ;;  %v11224_v42 = vld [vmem:[#allocation11 + $0xac] sm:$0xf]  ;;  %v8727_v63 = vld [vmem:[#allocation11 + $0xb8] sm:$0xf0] }
 0x151   :  { %v1396_v13 = vmul.f32 0.0, %v1387_v51  ;;  %2146 = vmatpush.bf16.msra.mxu0 %v8750_v12  ;;  %2159 = vmatpush.bf16.msra.mxu1 %v8754_v24  ;;  %v11824_v48 = vpop.eup %11823  ;;  %v8718_v12 = vor.u32 %v11225_v56, %v8717_v39  ;;  %v11221_v24 = vld [vmem:[#allocation11 + $0x8c] sm:$0xf0]  ;;  %v11222_v51 = vld [vmem:[#allocation11 + $0x94] sm:$0xf0] }
 0x152   :  { %2172 = vmatpush.bf16.msra.mxu2 %v8758_v31  ;;  %2185 = vmatpush.bf16.msra.mxu3 %v8762_v49  ;;  %v1391_v8 = vmul.f32 0.5, %v11824_v48  ;;  %v8726_v31 = vor.u32 %v11226_v61, %v8725_v29  ;;  %v8730_v49 = vor.u32 %v11224_v42, %v8727_v63  ;;  %v8702_v44 = vor.u32 %v11221_v24, %v8701_v5  ;;  %v8687_v48 = vld [vmem:[#allocation11 + $0x70] sm:$0xf0]  ;;  %v8693_v61 = vld [vmem:[#allocation11 + $0x68] sm:$0xf] }
 0x153   :  { %v12577_v6 = vadd.f32 %v1397_v60, %v1396_v13  ;;  %v8706_v60 = vor.u32 %v11219_v52, %v8703_v43  ;;  %v11218_v42 = vld [vmem:[#allocation11 + $0x74] sm:$0xf0]  ;;  %v8690_v63 = vor.u32 %v11215_v11, %v8687_v48  ;;  %v8695_v5 = vld [vmem:[#allocation11 + $0x78] sm:$0xf0]  ;;  %v8669_v52 = vld [vmem:[#allocation11 + $0x40] sm:$0xf] }
 0x154   :  { %v1392_v13 = vadd.f32 0.5, %v1391_v8  ;;  %v11213_v8 = vld [vmem:[#allocation11 + $0x4c] sm:$0xf0]  ;;  %v8671_v43 = vld [vmem:[#allocation11 + $0x50] sm:$0xf0] }
 0x155   :  { %11825 = vtanh.f32 %v12577_v6  ;;  %2147 = vmatpush.bf16.msra.mxu0 %v8734_v10  ;;  %2160 = vmatpush.bf16.msra.mxu1 %v8738_v47  ;;  %v8710_v10 = vor.u32 %v11222_v51, %v8709_v45  ;;  %v8714_v47 = vor.u32 %v11220_v41, %v8711_v50  ;;  %v8677_v45 = vld [vmem:[#allocation11 + $0x48] sm:$0xf]  ;;  %v11214_v51 = vld [vmem:[#allocation11 + $0x54] sm:$0xf0] }
 0x156   :  { %2173 = vmatpush.bf16.msra.mxu2 %v8742_v28  ;;  %2186 = vmatpush.bf16.msra.mxu3 %v8746_v62  ;;  %v8685_v62 = vld [vmem:[#allocation11 + $0x60] sm:$0xf]  ;;  %v8678_v50 = vor.u32 %v11214_v51, %v8677_v45  ;;  %v11210_v11 = vld [vmem:[#allocation11 + $0x34] sm:$0xf0]  ;;  %v11204_v45 = vld [vmem:[#allocation11 + $0xc] sm:$0xf] }
 0x157   :  { %v8686_v29 = vor.u32 %v11217_v19, %v8685_v62  ;;  %v8655_v62 = vld [vmem:[#allocation11 + $0x30] sm:$0xf0]  ;;  %v8661_v19 = vld [vmem:[#allocation11 + $0x28] sm:$0xf]  ;;  %v8647_v51 = vld [vmem:[#allocation11 + $0x18] sm:$0xf0] }
 0x158   :  { %v8662_v48 = vor.u32 %v11210_v11, %v8661_v19  ;;  %v8887_v11 = vld [vmem:[#allocation13 + $0xf8] sm:$0xf0] }
 0x159   :  { %2148 = vmatpush.bf16.msra.mxu0 %v8718_v12  ;;  %2161 = vmatpush.bf16.msra.mxu1 %v8722_v16  ;;  %v8694_v12 = vor.u32 %v11218_v42, %v8693_v61  ;;  %v11216_v16 = vld [vmem:[#allocation11 + $0x6c] sm:$0xf]  ;;  %v8663_v42 = vld [vmem:[#allocation11 + $0x38] sm:$0xf0] }
 0x15a   :  { %2174 = vmatpush.bf16.msra.mxu2 %v8726_v31  ;;  %2187 = vmatpush.bf16.msra.mxu3 %v8730_v49  ;;  %v8698_v24 = vor.u32 %v11216_v16, %v8695_v5  ;;  %v11211_v31 = vld [vmem:[#allocation11 + $0x44] sm:$0xf]  ;;  %v8670_v49 = vor.u32 %v11213_v8, %v8669_v52  ;;  %v11208_v61 = vld [vmem:[#allocation11 + $0x2c] sm:$0xf]  ;;  %v11205_v16 = vld [vmem:[#allocation11 + $0xc] sm:$0xf0] }
 0x15b   :  { %v11826_v39 = vpop.eup %11825  ;;  %v8674_v41 = vor.u32 %v11211_v31, %v8671_v43  ;;  %v11203_v5 = vld [vmem:[#allocation11 + $0x4] sm:$0xf]  ;;  %v8639_v52 = vld [vmem:[#allocation11 + $0x10] sm:$0xf0]  ;;  %v8645_v8 = vld [vmem:[#allocation11 + $0x8] sm:$0xf] }
 0x15c   :  { %v12580_v56 = vmul.f32 %v11826_v39, %v1392_v13  ;;  %v11207_v39 = vld [vmem:[#allocation11 + $0x24] sm:$0xf]  ;;  %v11206_v31 = vld [vmem:[#allocation11 + $0x14] sm:$0xf0] }
 0x15d   :  { %2149 = vmatpush.bf16.msra.mxu0 %v8702_v44  ;;  %2162 = vmatpush.bf16.msra.mxu1 %v8706_v60  ;;  %v11212_v44 = vld [vmem:[#allocation11 + $0x4c] sm:$0xf]  ;;  %v8679_v60 = vld [vmem:[#allocation11 + $0x58] sm:$0xf0]  ;;  %v8646_v43 = vor.u32 %v11206_v31, %v8645_v8 }
 0x15e   :  { %v1662_v28 = vpack.c.bf16 %v12580_v56, %v12580_v56  ;;  %2175 = vmatpush.bf16.msra.mxu2 %v8710_v10  ;;  %2188 = vmatpush.bf16.msra.mxu3 %v8714_v47  ;;  %v8682_v13 = vor.u32 %v11212_v44, %v8679_v60  ;;  %v8653_v10 = vld [vmem:[#allocation11 + $0x20] sm:$0xf]  ;;  %v11209_v47 = vld [vmem:[#allocation11 + $0x2c] sm:$0xf0]  ;;  %v11263_v60 = vld [vmem:[#allocation13 + $0xe4] sm:$0xf] }
 0x15f   :  { %v11265_v44 = vld [vmem:[#allocation13 + $0xec] sm:$0xf0]  ;;  %v8871_v8 = vld [vmem:[#allocation13 + $0xd8] sm:$0xf0] }
 0x160   :  { %1863 = vmatmul.bf16.vlgmr.msrb.gmra.mxu0 %v1662_v28  ;;  %1876 = vmatmul.bf16.vlgmr.msrb.gmra.mxu1 %v1662_v28 }
 0x161   :  { %1889 = vmatmul.bf16.vlgmr.msrb.gmra.mxu2 %v1662_v28  ;;  %1902 = vmatmul.bf16.vlgmr.msrb.gmra.mxu3 %v1662_v28  ;;  %v8654_v28 = vor.u32 %v11209_v47, %v8653_v10 }
 0x162   :  { %2150 = vmatpush.bf16.msra.mxu0 %v8686_v29  ;;  %2163 = vmatpush.bf16.msra.mxu1 %v8690_v63  ;;  %v8658_v29 = vor.u32 %v11207_v39, %v8655_v62  ;;  %v8666_v63 = vor.u32 %v11208_v61, %v8663_v42  ;;  %v8885_v39 = vld [vmem:[#allocation13 + $0xe8] sm:$0xf]  ;;  %v11264_v62 = vld [vmem:[#allocation13 + $0xec] sm:$0xf] }
 0x163   :  { %2176 = vmatpush.bf16.msra.mxu2 %v8694_v12  ;;  %2189 = vmatpush.bf16.msra.mxu3 %v8698_v24  ;;  %v8637_v12 = vld [vmem:[#allocation11] sm:$0xf]  ;;  %v8890_v61 = vor.u32 %v11264_v62, %v8887_v11  ;;  %v11251_v11 = vld [vmem:[#allocation13 + $0x84] sm:$0xf] }
 0x164   :  { %v8638_v24 = vor.u32 %v11205_v16, %v8637_v12  ;;  %v8863_v12 = vld [vmem:[#allocation13 + $0xd0] sm:$0xf0]  ;;  %v8869_v16 = vld [vmem:[#allocation13 + $0xc8] sm:$0xf]  ;;  %v8829_v62 = vld [vmem:[#allocation13 + $0x80] sm:$0xf] }
 0x166   :  { %2151 = vmatpush.bf16.msra.mxu0 %v8670_v49  ;;  %2164 = vmatpush.bf16.msra.mxu1 %v8674_v41  ;;  %v8642_v49 = vor.u32 %v11203_v5, %v8639_v52  ;;  %v8877_v41 = vld [vmem:[#allocation13 + $0xe0] sm:$0xf]  ;;  %v11260_v52 = vld [vmem:[#allocation13 + $0xcc] sm:$0xf] }
 0x167   :  { %2177 = vmatpush.bf16.msra.mxu2 %v8678_v50  ;;  %2190 = vmatpush.bf16.msra.mxu3 %v8682_v13  ;;  %v8650_v50 = vor.u32 %v11204_v45, %v8647_v51  ;;  %v8879_v13 = vld [vmem:[#allocation13 + $0xf0] sm:$0xf0]  ;;  %v8878_v10 = vor.u32 %v11265_v44, %v8877_v41  ;;  %v11257_v45 = vld [vmem:[#allocation13 + $0xac] sm:$0xf0]  ;;  %v11255_v51 = vld [vmem:[#allocation13 + $0xa4] sm:$0xf] }
 0x168   :  { %v8882_v47 = vor.u32 %v11263_v60, %v8879_v13  ;;  %v8853_v44 = vld [vmem:[#allocation13 + $0xa8] sm:$0xf]  ;;  %v11258_v60 = vld [vmem:[#allocation13 + $0xb4] sm:$0xf0] }
 0x16a   :  { %2152 = vmatpush.bf16.msra.mxu0 %v8654_v28  ;;  %2165 = vmatpush.bf16.msra.mxu1 %v8658_v29  ;;  %v11266_v28 = vld [vmem:[#allocation13 + $0xf4] sm:$0xf0]  ;;  %v8861_v29 = vld [vmem:[#allocation13 + $0xc0] sm:$0xf] }
 0x16b   :  { %2178 = vmatpush.bf16.msra.mxu2 %v8662_v48  ;;  %2191 = vmatpush.bf16.msra.mxu3 %v8666_v63  ;;  %v8886_v19 = vor.u32 %v11266_v28, %v8885_v39  ;;  %v11261_v48 = vld [vmem:[#allocation13 + $0xcc] sm:$0xf0]  ;;  %v11259_v63 = vld [vmem:[#allocation13 + $0xc4] sm:$0xf]  ;;  %v8855_v39 = vld [vmem:[#allocation13 + $0xb8] sm:$0xf0] }
 0x16c   :  { %v8862_v42 = vor.u32 %v11261_v48, %v8861_v29  ;;  %v8866_v5 = vor.u32 %v11259_v63, %v8863_v12  ;;  %v8831_v48 = vld [vmem:[#allocation13 + $0x90] sm:$0xf0] }
 0x16d   :  { %v8834_v63 = vor.u32 %v11251_v11, %v8831_v48  ;;  %v8797_v11 = vld [vmem:[#allocation13 + $0x40] sm:$0xf]  ;;  %v11245_v48 = vld [vmem:[#allocation13 + $0x4c] sm:$0xf0] }
 0x16e   :  { %2153 = vmatpush.bf16.msra.mxu0 %v8638_v24  ;;  %2166 = vmatpush.bf16.msra.mxu1 %v8642_v49  ;;  %v11262_v24 = vld [vmem:[#allocation13 + $0xd4] sm:$0xf0]  ;;  %v8874_v49 = vor.u32 %v11260_v52, %v8871_v8  ;;  %v579_v52 = vadd.f32 %v12383_v14, %v12390_v17  ;;  %v608_v8 = vadd.f32 %v12385_v15, %v12394_v20  ;;  %v11248_v14 = vld [vmem:[#allocation13 + $0x6c] sm:$0xf] }
 0x16f   :  { %2179 = vmatpush.bf16.msra.mxu2 %v8646_v43  ;;  %2192 = vmatpush.bf16.msra.mxu3 %v8650_v50  ;;  %v8870_v31 = vor.u32 %v11262_v24, %v8869_v16  ;;  %v8845_v43 = vld [vmem:[#allocation13 + $0xa0] sm:$0xf]  ;;  %v8847_v50 = vld [vmem:[#allocation13 + $0xb0] sm:$0xf0]  ;;  %v11252_v16 = vld [vmem:[#allocation13 + $0x8c] sm:$0xf] }
 0x170   :  { %v8846_v41 = vor.u32 %v11257_v45, %v8845_v43  ;;  %v8850_v13 = vor.u32 %v11255_v51, %v8847_v50  ;;  %v11247_v43 = vld [vmem:[#allocation13 + $0x64] sm:$0xf]  ;;  %v8815_v50 = vld [vmem:[#allocation13 + $0x70] sm:$0xf0] }
 0x172   :  { %2399 = vmatpush.bf16.msrb.mxu0 %v8878_v10  ;;  %2412 = vmatpush.bf16.msrb.mxu1 %v8882_v47  ;;  %v8854_v10 = vor.u32 %v11258_v60, %v8853_v44  ;;  %v11256_v47 = vld [vmem:[#allocation13 + $0xac] sm:$0xf]  ;;  %v8821_v44 = vld [vmem:[#allocation13 + $0x68] sm:$0xf]  ;;  %v11250_v60 = vld [vmem:[#allocation13 + $0x74] sm:$0xf0] }
 0x173   :  { %2425 = vmatpush.bf16.msrb.mxu2 %v8886_v19  ;;  %2438 = vmatpush.bf16.msrb.mxu3 %v8890_v61  ;;  %v8858_v28 = vor.u32 %v11256_v47, %v8855_v39  ;;  %v11253_v19 = vld [vmem:[#allocation13 + $0x8c] sm:$0xf0]  ;;  %v8837_v61 = vld [vmem:[#allocation13 + $0x88] sm:$0xf]  ;;  %v8818_v47 = vor.u32 %v11247_v43, %v8815_v50  ;;  %v8822_v39 = vor.u32 %v11250_v60, %v8821_v44  ;;  %v11239_v50 = vld [vmem:[#allocation13 + $0x24] sm:$0xf] }
 0x174   :  { %v8830_v29 = vor.u32 %v11253_v19, %v8829_v62 }
 0x176   :  { %2400 = vmatpush.bf16.msrb.mxu0 %v8862_v42  ;;  %2413 = vmatpush.bf16.msrb.mxu1 %v8866_v5  ;;  %v11254_v42 = vld [vmem:[#allocation13 + $0x94] sm:$0xf0]  ;;  %v8839_v5 = vld [vmem:[#allocation13 + $0x98] sm:$0xf0] }
 0x177   :  { %2426 = vmatpush.bf16.msrb.mxu2 %v8870_v31  ;;  %2439 = vmatpush.bf16.msrb.mxu3 %v8874_v49  ;;  %v8838_v12 = vor.u32 %v11254_v42, %v8837_v61  ;;  %v8842_v24 = vor.u32 %v11252_v16, %v8839_v5  ;;  %v8813_v31 = vld [vmem:[#allocation13 + $0x60] sm:$0xf]  ;;  %v11249_v49 = vld [vmem:[#allocation13 + $0x6c] sm:$0xf0]  ;;  %v11243_v61 = vld [vmem:[#allocation13 + $0x44] sm:$0xf]  ;;  %v637_v16 = vadd.f32 %v12392_v18, %v12408_v26 }
 0x178   :  { %v8799_v42 = vld [vmem:[#allocation13 + $0x50] sm:$0xf0]  ;;  %v11246_v5 = vld [vmem:[#allocation13 + $0x54] sm:$0xf0] }
 0x17a   :  { %2401 = vmatpush.bf16.msrb.mxu0 %v8846_v41  ;;  %2414 = vmatpush.bf16.msrb.mxu1 %v8850_v13  ;;  %v8814_v41 = vor.u32 %v11249_v49, %v8813_v31 }
 0x17b   :  { %2427 = vmatpush.bf16.msrb.mxu2 %v8854_v10  ;;  %2440 = vmatpush.bf16.msrb.mxu3 %v8858_v28  ;;  %v8823_v28 = vld [vmem:[#allocation13 + $0x78] sm:$0xf0] }
 0x17c   :  { %v8826_v15 = vor.u32 %v11248_v14, %v8823_v28  ;;  %v11242_v14 = vld [vmem:[#allocation13 + $0x34] sm:$0xf0] }
 0x17e   :  { %2402 = vmatpush.bf16.msrb.mxu0 %v8830_v29  ;;  %2415 = vmatpush.bf16.msrb.mxu1 %v8834_v63  ;;  %v8798_v29 = vor.u32 %v11245_v48, %v8797_v11  ;;  %v8805_v63 = vld [vmem:[#allocation13 + $0x48] sm:$0xf] }
 0x17f   :  { %2428 = vmatpush.bf16.msrb.mxu2 %v8838_v12  ;;  %2441 = vmatpush.bf16.msrb.mxu3 %v8842_v24  ;;  %v8802_v12 = vor.u32 %v11243_v61, %v8799_v42  ;;  %v8807_v24 = vld [vmem:[#allocation13 + $0x58] sm:$0xf0]  ;;  %v8806_v31 = vor.u32 %v11246_v5, %v8805_v63  ;;  %v8765_v61 = vld [vmem:[#allocation13] sm:$0xf]  ;;  %v11237_v42 = vld [vmem:[#allocation13 + $0xc] sm:$0xf0] }
 0x180   :  { %v11235_v63 = vld [vmem:[#allocation13 + $0x4] sm:$0xf]  ;;  %v8767_v5 = vld [vmem:[#allocation13 + $0x10] sm:$0xf0] }
 0x182   :  { %2403 = vmatpush.bf16.msrb.mxu0 %v8814_v41  ;;  %2416 = vmatpush.bf16.msrb.mxu1 %v8818_v47  ;;  %v11241_v41 = vld [vmem:[#allocation13 + $0x2c] sm:$0xf0]  ;;  %v8783_v47 = vld [vmem:[#allocation13 + $0x30] sm:$0xf0] }
 0x183   :  { %2429 = vmatpush.bf16.msrb.mxu2 %v8822_v39  ;;  %2442 = vmatpush.bf16.msrb.mxu3 %v8826_v15  ;;  %v8789_v39 = vld [vmem:[#allocation13 + $0x28] sm:$0xf]  ;;  %v11240_v15 = vld [vmem:[#allocation13 + $0x2c] sm:$0xf] }
 0x184   :  { %v8790_v28 = vor.u32 %v11242_v14, %v8789_v39 }
 0x186   :  { %2404 = vmatpush.bf16.msrb.mxu0 %v8798_v29  ;;  %2417 = vmatpush.bf16.msrb.mxu1 %v8802_v12  ;;  %v8766_v12 = vor.u32 %v11237_v42, %v8765_v61 }
 0x187   :  { %2430 = vmatpush.bf16.msrb.mxu2 %v8806_v31  ;;  %v11238_v31 = vld [vmem:[#allocation13 + $0x14] sm:$0xf0] }
 0x18b   :  { %2431 = vmatpush.bf16.msrb.mxu2 %v8790_v28 }
 0x1cc   :  { %v1611_v45 = vpop.f32.mrf.mxu0  ;;  %v1624_v51 = vpop.f32.mrf.mxu1 }
 0x1cd   :  { %v1654_v13 = vadd.f32 %v1611_v45, %v579_v52  ;;  %v1655_v10 = vadd.f32 %v1624_v51, %v608_v8  ;;  %v11244_v52 = vld [vmem:[#allocation13 + $0x4c] sm:$0xf]  ;;  %v666_v8 = vadd.f32 %v12396_v21, %v12410_v27  ;;  %v8781_v51 = vld [vmem:[#allocation13 + $0x20] sm:$0xf]  ;;  %v8786_v21 = vor.u32 %v11239_v50, %v8783_v47 }
 0x1ce   :  { %v8810_v49 = vor.u32 %v11244_v52, %v8807_v24  ;;  %v8773_v52 = vld [vmem:[#allocation13 + $0x8] sm:$0xf] }
 0x1cf   :  { %v1911_v62 = vmul.f32 0.5, %v1654_v13  ;;  %v1915_v19 = vmul.f32 0.5, %v1655_v10  ;;  %v8782_v10 = vor.u32 %v11241_v41, %v8781_v51  ;;  %2418 = vmatpush.bf16.msrb.mxu1 %v8786_v21  ;;  %v8775_v51 = vld [vmem:[#allocation13 + $0x18] sm:$0xf0] }
 0x1d0   :  { %2443 = vmatpush.bf16.msrb.mxu3 %v8810_v49  ;;  %v8774_v49 = vor.u32 %v11238_v31, %v8773_v52 }
 0x1d1   :  { %11827 = vtanh.f32 %v1911_v62  ;;  %v8791_v62 = vld [vmem:[#allocation13 + $0x38] sm:$0xf0]  ;;  %2405 = vmatpush.bf16.msrb.mxu0 %v8782_v10 }
 0x1d2   :  { %11829 = vtanh.f32 %v1915_v19  ;;  %v8794_v11 = vor.u32 %v11240_v15, %v8791_v62  ;;  %2432 = vmatpush.bf16.msrb.mxu2 %v8774_v49  ;;  %v11296_v49 = vld [vmem:[#allocation11 + $0xec] sm:$0xf] }
 0x1d3   :  { %v1637_v43 = vpop.f32.mrf.mxu2  ;;  %v1650_v45 = vpop.f32.mrf.mxu3 }
 0x1d4   :  { %v1656_v44 = vadd.f32 %v1637_v43, %v637_v16  ;;  %v1657_v18 = vadd.f32 %v1650_v45, %v666_v8  ;;  %v1613_v60 = vpop.f32.mrf.mxu0  ;;  %v1626_v13 = vpop.f32.mrf.mxu1  ;;  %v8770_v8 = vor.u32 %v11235_v63, %v8767_v5  ;;  %v11236_v43 = vld [vmem:[#allocation13 + $0xc] sm:$0xf]  ;;  %2444 = vmatpush.bf16.msrb.mxu3 %v8794_v11 }
 0x1d5   :  { %2406 = vmatpush.bf16.msrb.mxu0 %v8766_v12  ;;  %v11295_v12 = vld [vmem:[#allocation11 + $0xe4] sm:$0xf] }
 0x1d6   :  { %11831 = vtanh.f32 %v1656_v44  ;;  %v1920_v19 = vmul.f32 0.5, %v1657_v18  ;;  %v8778_v18 = vor.u32 %v11236_v43, %v8775_v51  ;;  %2419 = vmatpush.bf16.msrb.mxu1 %v8770_v8  ;;  %v9013_v8 = vld [vmem:[#allocation11 + $0xe8] sm:$0xf]  ;;  %v9015_v51 = vld [vmem:[#allocation11 + $0xf8] sm:$0xf0] }
 0x1d7   :  { %v11828_v48 = vpop.eup %11827 }
 0x1d8   :  { %v11830_v16 = vpop.eup %11829  ;;  %v1913_v29 = vmul.f32 0.5, %v11828_v48  ;;  %11833 = vtanh.f32 %v1920_v19  ;;  %2445 = vmatpush.bf16.msrb.mxu3 %v8778_v18 }
 0x1d9   :  { %v1917_v24 = vmul.f32 0.5, %v11830_v16 }
 0x1da   :  { %v1914_v45 = vadd.f32 0.5, %v1913_v29  ;;  %v11297_v29 = vld [vmem:[#allocation11 + $0xec] sm:$0xf0] }
 0x1db   :  { %v1918_v41 = vadd.f32 0.5, %v1917_v24  ;;  %v1639_v50 = vpop.f32.mrf.mxu2  ;;  %v1652_v44 = vpop.f32.mrf.mxu3  ;;  %v9007_v24 = vld [vmem:[#allocation11 + $0xf0] sm:$0xf0] }
 0x1dc   :  { %v11832_v60 = vpop.eup %11831  ;;  %v8989_v50 = vld [vmem:[#allocation11 + $0xc0] sm:$0xf]  ;;  %v11293_v44 = vld [vmem:[#allocation11 + $0xcc] sm:$0xf0] }
 0x1dd   :  { %v1937_v13 = vmul.f32 %v1918_v41, %v12566_v3  ;;  %v1938_v10 = vmul.f32 %v11832_v60, %v1914_v45  ;;  %v1864_v47 = vpop.f32.mrf.mxu0  ;;  %v1877_v39 = vpop.f32.mrf.mxu1  ;;  %v11298_v45 = vld [vmem:[#allocation11 + $0xf4] sm:$0xf0] }
 0x1de   :  { %v1907_v14 = vadd.f32 %v1864_v47, %v12535_v57  ;;  %v1908_v21 = vadd.f32 %v1877_v39, %v12538_v35  ;;  %v11834_v28 = vpop.eup %11833  ;;  %v9005_v35 = vld [vmem:[#allocation11 + $0xe0] sm:$0xf]  ;;  %v8991_v47 = vld [vmem:[#allocation11 + $0xd0] sm:$0xf0] }
 0x1df   :  { %v12595_v15 = vadd.f32 %v1938_v10, %v1937_v13  ;;  %v1922_v11 = vmul.f32 0.5, %v11834_v28  ;;  %v9010_v13 = vor.u32 %v11295_v12, %v9007_v24  ;;  %v11291_v10 = vld [vmem:[#allocation11 + $0xc4] sm:$0xf]  ;;  %v8997_v28 = vld [vmem:[#allocation11 + $0xc8] sm:$0xf] }
 0x1e0   :  { %v1924_v62 = vmul.f32 0.5, %v1907_v14  ;;  %v1928_v19 = vmul.f32 0.5, %v1908_v21  ;;  %v9014_v14 = vor.u32 %v11298_v45, %v9013_v8  ;;  %v9018_v21 = vor.u32 %v11296_v49, %v9015_v51  ;;  %v11289_v12 = vld [vmem:[#allocation11 + $0xac] sm:$0xf0]  ;;  %v11287_v24 = vld [vmem:[#allocation11 + $0xa4] sm:$0xf] }
 0x1e1   :  { %11835 = vtanh.f32 %v12595_v15  ;;  %v1923_v16 = vadd.f32 0.5, %v1922_v11  ;;  %v8975_v8 = vld [vmem:[#allocation11 + $0xb0] sm:$0xf0]  ;;  %v11290_v51 = vld [vmem:[#allocation11 + $0xb4] sm:$0xf0] }
 0x1e2   :  { %11837 = vtanh.f32 %v1924_v62  ;;  %v11294_v62 = vld [vmem:[#allocation11 + $0xd4] sm:$0xf0] }
 0x1e3   :  { %11839 = vtanh.f32 %v1928_v19 }
 0x1e4   :  { %v1890_v3 = vpop.f32.mrf.mxu2  ;;  %v1903_v48 = vpop.f32.mrf.mxu3 }
 0x1e5   :  { %v1909_v61 = vadd.f32 %v1890_v3, %v12541_v38  ;;  %v1910_v42 = vadd.f32 %v1903_v48, %v12546_v54  ;;  %v1866_v57 = vpop.f32.mrf.mxu0  ;;  %v1879_v63 = vpop.f32.mrf.mxu1  ;;  %v9006_v54 = vor.u32 %v11297_v29, %v9005_v35  ;;  %v11292_v48 = vld [vmem:[#allocation11 + $0xcc] sm:$0xf]  ;;  %v8973_v29 = vld [vmem:[#allocation11 + $0xa0] sm:$0xf] }
 0x1e6   :  { %v8990_v57 = vor.u32 %v11293_v44, %v8989_v50  ;;  %v8957_v50 = vld [vmem:[#allocation11 + $0x80] sm:$0xf]  ;;  %v11285_v44 = vld [vmem:[#allocation11 + $0x8c] sm:$0xf0] }
 0x1e7   :  { %v11836_v5 = vpop.eup %11835  ;;  %11841 = vtanh.f32 %v1909_v61  ;;  %v1933_v52 = vmul.f32 0.5, %v1910_v42  ;;  %v8999_v61 = vld [vmem:[#allocation11 + $0xd8] sm:$0xf0] }
 0x1e8   :  { %v11838_v31 = vpop.eup %11837  ;;  %v12600_v43 = vmul.f32 %v11836_v5, %v1923_v16  ;;  %v8994_v16 = vor.u32 %v11291_v10, %v8991_v47  ;;  %v8998_v5 = vor.u32 %v11294_v62, %v8997_v28  ;;  %v8959_v47 = vld [vmem:[#allocation11 + $0x90] sm:$0xf0]  ;;  %v8967_v28 = vld [vmem:[#allocation11 + $0x98] sm:$0xf0]  ;;  %v8958_v62 = vor.u32 %v11285_v44, %v8957_v50  ;;  %v8933_v44 = vld [vmem:[#allocation11 + $0x48] sm:$0xf] }
 0x1e9   :  { %v11840_v38 = vpop.eup %11839  ;;  %v1926_v41 = vmul.f32 0.5, %v11838_v31  ;;  %11843 = vtanh.f32 %v1933_v52  ;;  %v9002_v52 = vor.u32 %v11292_v48, %v8999_v61  ;;  %v8981_v31 = vld [vmem:[#allocation11 + $0xa8] sm:$0xf]  ;;  %v8927_v50 = vld [vmem:[#allocation11 + $0x50] sm:$0xf0] }
 0x1ea   :  { %v1953_v18 = vpack.c.bf16 %v12600_v43, %v12600_v43  ;;  %v1930_v60 = vmul.f32 0.5, %v11840_v38  ;;  %v11288_v38 = vld [vmem:[#allocation11 + $0xac] sm:$0xf] }
 0x1eb   :  { %v1927_v39 = vadd.f32 0.5, %v1926_v41  ;;  %v8983_v41 = vld [vmem:[#allocation11 + $0xb8] sm:$0xf0] }
 0x1ec   :  { %v1931_v19 = vadd.f32 0.5, %v1930_v60  ;;  %v1892_v11 = vpop.f32.mrf.mxu2  ;;  %v1905_v3 = vpop.f32.mrf.mxu3  ;;  %2154 = vmatmul.bf16.vlgmr.msra.gmra.mxu0 %v1953_v18  ;;  %2167 = vmatmul.bf16.vlgmr.msra.gmra.mxu1 %v1953_v18  ;;  %v8986_v10 = vor.u32 %v11288_v38, %v8983_v41  ;;  %v8925_v38 = vld [vmem:[#allocation11 + $0x40] sm:$0xf]  ;;  %v11277_v41 = vld [vmem:[#allocation11 + $0x4c] sm:$0xf0] }
 0x1ed   :  { %v11842_v42 = vpop.eup %11841  ;;  %2180 = vmatmul.bf16.vlgmr.msra.gmra.mxu2 %v1953_v18  ;;  %2193 = vmatmul.bf16.vlgmr.msra.gmra.mxu3 %v1953_v18  ;;  %v11283_v18 = vld [vmem:[#allocation11 + $0x84] sm:$0xf] }
 0x1ee   :  { %v1940_v63 = vmul.f32 %v1931_v19, %v12577_v6  ;;  %v1941_v35 = vmul.f32 %v11842_v42, %v1927_v39  ;;  %2690 = vmatpush.bf16.msra.mxu0 %v9006_v54  ;;  %2703 = vmatpush.bf16.msra.mxu1 %v9010_v13  ;;  %v8974_v6 = vor.u32 %v11289_v12, %v8973_v29  ;;  %v8965_v39 = vld [vmem:[#allocation11 + $0x88] sm:$0xf]  ;;  %v8943_v12 = vld [vmem:[#allocation11 + $0x70] sm:$0xf0] }
 0x1ef   :  { %2716 = vmatpush.bf16.msra.mxu2 %v9014_v14  ;;  %2729 = vmatpush.bf16.msra.mxu3 %v9018_v21  ;;  %v11844_v45 = vpop.eup %11843  ;;  %v8978_v54 = vor.u32 %v11287_v24, %v8975_v8  ;;  %v8982_v13 = vor.u32 %v11290_v51, %v8981_v31  ;;  %v11286_v14 = vld [vmem:[#allocation11 + $0x94] sm:$0xf0]  ;;  %v11284_v21 = vld [vmem:[#allocation11 + $0x8c] sm:$0xf]  ;;  %v8962_v19 = vor.u32 %v11283_v18, %v8959_v47  ;;  %v8935_v47 = vld [vmem:[#allocation11 + $0x58] sm:$0xf0] }
 0x1f0   :  { %v12605_v49 = vadd.f32 %v1941_v35, %v1940_v63  ;;  %v1935_v60 = vmul.f32 0.5, %v11844_v45  ;;  %v8966_v3 = vor.u32 %v11286_v14, %v8965_v39  ;;  %v8970_v48 = vor.u32 %v11284_v21, %v8967_v28  ;;  %v8941_v63 = vld [vmem:[#allocation11 + $0x60] sm:$0xf]  ;;  %v11281_v35 = vld [vmem:[#allocation11 + $0x6c] sm:$0xf0] }
 0x1f1   :  { %v8942_v29 = vor.u32 %v11281_v35, %v8941_v63  ;;  %v11280_v31 = vld [vmem:[#allocation11 + $0x6c] sm:$0xf]  ;;  %v8951_v45 = vld [vmem:[#allocation11 + $0x78] sm:$0xf0]  ;;  %v11278_v18 = vld [vmem:[#allocation11 + $0x54] sm:$0xf0] }
 0x1f2   :  { %11845 = vtanh.f32 %v12605_v49  ;;  %2691 = vmatpush.bf16.msra.mxu0 %v8990_v57  ;;  %2704 = vmatpush.bf16.msra.mxu1 %v8994_v16  ;;  %v1936_v11 = vadd.f32 0.5, %v1935_v60  ;;  %v11279_v16 = vld [vmem:[#allocation11 + $0x64] sm:$0xf]  ;;  %v8954_v51 = vor.u32 %v11280_v31, %v8951_v45  ;;  %v8909_v14 = vld [vmem:[#allocation11 + $0x20] sm:$0xf] }
 0x1f3   :  { %2717 = vmatpush.bf16.msra.mxu2 %v8998_v5  ;;  %2730 = vmatpush.bf16.msra.mxu3 %v9002_v52  ;;  %v8949_v5 = vld [vmem:[#allocation11 + $0x68] sm:$0xf]  ;;  %v11282_v52 = vld [vmem:[#allocation11 + $0x74] sm:$0xf0]  ;;  %v8946_v24 = vor.u32 %v11279_v16, %v8943_v12  ;;  %v11273_v21 = vld [vmem:[#allocation11 + $0x2c] sm:$0xf0] }
 0x1f4   :  { %v8950_v8 = vor.u32 %v11282_v52, %v8949_v5  ;;  %v11271_v28 = vld [vmem:[#allocation11 + $0x24] sm:$0xf]  ;;  %v8919_v63 = vld [vmem:[#allocation11 + $0x38] sm:$0xf0]  ;;  %v8893_v16 = vld [vmem:[#allocation11] sm:$0xf] }
 0x1f5   :  { %v11267_v12 = vld [vmem:[#allocation11 + $0x4] sm:$0xf]  ;;  %v8895_v52 = vld [vmem:[#allocation11 + $0x10] sm:$0xf0] }
 0x1f6   :  { %2692 = vmatpush.bf16.msra.mxu0 %v8974_v6  ;;  %2705 = vmatpush.bf16.msra.mxu1 %v8978_v54  ;;  %v11275_v6 = vld [vmem:[#allocation11 + $0x44] sm:$0xf]  ;;  %v8926_v54 = vor.u32 %v11277_v41, %v8925_v38  ;;  %v8898_v31 = vor.u32 %v11267_v12, %v8895_v52  ;;  %v8903_v38 = vld [vmem:[#allocation11 + $0x18] sm:$0xf0]  ;;  %v9133_v41 = vld [vmem:[#allocation13 + $0xe0] sm:$0xf] }
 0x1f7   :  { %2718 = vmatpush.bf16.msra.mxu2 %v8982_v13  ;;  %2731 = vmatpush.bf16.msra.mxu3 %v8986_v10  ;;  %v8930_v60 = vor.u32 %v11275_v6, %v8927_v50  ;;  %v8934_v13 = vor.u32 %v11278_v18, %v8933_v44  ;;  %v11276_v10 = vld [vmem:[#allocation11 + $0x4c] sm:$0xf]  ;;  %v11327_v50 = vld [vmem:[#allocation13 + $0xe4] sm:$0xf]  ;;  %v9135_v44 = vld [vmem:[#allocation13 + $0xf0] sm:$0xf0] }
 0x1f8   :  { %v11846_v61 = vpop.eup %11845  ;;  %v8938_v39 = vor.u32 %v11276_v10, %v8935_v47  ;;  %v11330_v10 = vld [vmem:[#allocation13 + $0xf4] sm:$0xf0]  ;;  %v11328_v47 = vld [vmem:[#allocation13 + $0xec] sm:$0xf]  ;;  %v9101_v12 = vld [vmem:[#allocation13 + $0xa0] sm:$0xf] }
 0x1f9   :  { %v12608_v42 = vmul.f32 %v11846_v61, %v1936_v11  ;;  %v8917_v11 = vld [vmem:[#allocation11 + $0x28] sm:$0xf]  ;;  %v11319_v52 = vld [vmem:[#allocation13 + $0xa4] sm:$0xf] }
 0x1fa   :  { %2693 = vmatpush.bf16.msra.mxu0 %v8958_v62  ;;  %2706 = vmatpush.bf16.msra.mxu1 %v8962_v19  ;;  %v8910_v62 = vor.u32 %v11273_v21, %v8909_v14  ;;  %v8911_v19 = vld [vmem:[#allocation11 + $0x30] sm:$0xf0]  ;;  %v9143_v14 = vld [vmem:[#allocation13 + $0xf8] sm:$0xf0]  ;;  %v9117_v21 = vld [vmem:[#allocation13 + $0xc0] sm:$0xf] }
 0x1fb   :  { %v2206_v57 = vpack.c.bf16 %v12608_v42, %v12608_v42  ;;  %2719 = vmatpush.bf16.msra.mxu2 %v8966_v3  ;;  %2732 = vmatpush.bf16.msra.mxu3 %v8970_v48  ;;  %v11274_v3 = vld [vmem:[#allocation11 + $0x34] sm:$0xf0]  ;;  %v8914_v48 = vor.u32 %v11271_v28, %v8911_v19  ;;  %v11325_v28 = vld [vmem:[#allocation13 + $0xcc] sm:$0xf0] }
 0x1fc   :  { %v8918_v61 = vor.u32 %v11274_v3, %v8917_v11  ;;  %v9118_v19 = vor.u32 %v11325_v28, %v9117_v21  ;;  %v11323_v11 = vld [vmem:[#allocation13 + $0xc4] sm:$0xf]  ;;  %v9119_v3 = vld [vmem:[#allocation13 + $0xd0] sm:$0xf0]  ;;  %v11316_v21 = vld [vmem:[#allocation13 + $0x8c] sm:$0xf] }
 0x1fd   :  { %2407 = vmatmul.bf16.vlgmr.msrb.gmra.mxu0 %v2206_v57  ;;  %2420 = vmatmul.bf16.vlgmr.msrb.gmra.mxu1 %v2206_v57  ;;  %v9095_v28 = vld [vmem:[#allocation13 + $0x98] sm:$0xf0] }
 0x1fe   :  { %2433 = vmatmul.bf16.vlgmr.msrb.gmra.mxu2 %v2206_v57  ;;  %2446 = vmatmul.bf16.vlgmr.msrb.gmra.mxu3 %v2206_v57  ;;  %v11272_v57 = vld [vmem:[#allocation11 + $0x2c] sm:$0xf] }
 0x1ff   :  { %2694 = vmatpush.bf16.msra.mxu0 %v8942_v29  ;;  %2707 = vmatpush.bf16.msra.mxu1 %v8946_v24  ;;  %v8922_v35 = vor.u32 %v11272_v57, %v8919_v63  ;;  %v11269_v29 = vld [vmem:[#allocation11 + $0xc] sm:$0xf0]  ;;  %v8901_v24 = vld [vmem:[#allocation11 + $0x8] sm:$0xf]  ;;  %v11326_v57 = vld [vmem:[#allocation13 + $0xd4] sm:$0xf0] }
 0x200   :  { %2720 = vmatpush.bf16.msra.mxu2 %v8950_v8  ;;  %2733 = vmatpush.bf16.msra.mxu3 %v8954_v51  ;;  %v8894_v5 = vor.u32 %v11269_v29, %v8893_v16  ;;  %v11270_v8 = vld [vmem:[#allocation11 + $0x14] sm:$0xf0]  ;;  %v11268_v51 = vld [vmem:[#allocation11 + $0xc] sm:$0xf] }
 0x201   :  { %v8902_v45 = vor.u32 %v11270_v8, %v8901_v24  ;;  %v8906_v6 = vor.u32 %v11268_v51, %v8903_v38  ;;  %v11324_v63 = vld [vmem:[#allocation13 + $0xcc] sm:$0xf]  ;;  %v9103_v8 = vld [vmem:[#allocation13 + $0xb0] sm:$0xf0] }
 0x202   :  { %v9106_v51 = vor.u32 %v11319_v52, %v9103_v8  ;;  %v9079_v8 = vld [vmem:[#allocation13 + $0x78] sm:$0xf0] }
 0x203   :  { %2695 = vmatpush.bf16.msra.mxu0 %v8926_v54  ;;  %2708 = vmatpush.bf16.msra.mxu1 %v8930_v60  ;;  %v11329_v54 = vld [vmem:[#allocation13 + $0xec] sm:$0xf0]  ;;  %v9138_v60 = vor.u32 %v11327_v50, %v9135_v44  ;;  %v9085_v50 = vld [vmem:[#allocation13 + $0x80] sm:$0xf] }
 0x204   :  { %2721 = vmatpush.bf16.msra.mxu2 %v8934_v13  ;;  %2734 = vmatpush.bf16.msra.mxu3 %v8938_v39  ;;  %v9134_v18 = vor.u32 %v11329_v54, %v9133_v41  ;;  %v9141_v13 = vld [vmem:[#allocation13 + $0xe8] sm:$0xf]  ;;  %v11320_v41 = vld [vmem:[#allocation13 + $0xac] sm:$0xf]  ;;  %v11317_v44 = vld [vmem:[#allocation13 + $0x8c] sm:$0xf0] }
 0x205   :  { %v9142_v39 = vor.u32 %v11330_v10, %v9141_v13  ;;  %v9087_v13 = vld [vmem:[#allocation13 + $0x90] sm:$0xf0]  ;;  %v9093_v10 = vld [vmem:[#allocation13 + $0x88] sm:$0xf] }
 0x207   :  { %2696 = vmatpush.bf16.msra.mxu0 %v8910_v62  ;;  %2709 = vmatpush.bf16.msra.mxu1 %v8914_v48  ;;  %v9146_v62 = vor.u32 %v11328_v47, %v9143_v14  ;;  %v9125_v48 = vld [vmem:[#allocation13 + $0xc8] sm:$0xf]  ;;  %v11318_v47 = vld [vmem:[#allocation13 + $0x94] sm:$0xf0] }
 0x208   :  { %2722 = vmatpush.bf16.msra.mxu2 %v8918_v61  ;;  %2735 = vmatpush.bf16.msra.mxu3 %v8922_v35  ;;  %v9122_v61 = vor.u32 %v11323_v11, %v9119_v3  ;;  %v9127_v35 = vld [vmem:[#allocation13 + $0xd8] sm:$0xf0]  ;;  %v9126_v16 = vor.u32 %v11326_v57, %v9125_v48  ;;  %v9094_v14 = vor.u32 %v11318_v47, %v9093_v10  ;;  %v11313_v11 = vld [vmem:[#allocation13 + $0x6c] sm:$0xf0]  ;;  %v11311_v3 = vld [vmem:[#allocation13 + $0x64] sm:$0xf] }
 0x209   :  { %v9130_v29 = vor.u32 %v11324_v63, %v9127_v35  ;;  %v9071_v63 = vld [vmem:[#allocation13 + $0x70] sm:$0xf0]  ;;  %v9077_v35 = vld [vmem:[#allocation13 + $0x68] sm:$0xf] }
 0x20b   :  { %2697 = vmatpush.bf16.msra.mxu0 %v8894_v5  ;;  %2710 = vmatpush.bf16.msra.mxu1 %v8898_v31  ;;  %v11321_v5 = vld [vmem:[#allocation13 + $0xac] sm:$0xf0]  ;;  %v9109_v31 = vld [vmem:[#allocation13 + $0xa8] sm:$0xf] }
 0x20c   :  { %2723 = vmatpush.bf16.msra.mxu2 %v8902_v45  ;;  %2736 = vmatpush.bf16.msra.mxu3 %v8906_v6  ;;  %v9102_v24 = vor.u32 %v11321_v5, %v9101_v12  ;;  %v11322_v45 = vld [vmem:[#allocation13 + $0xb4] sm:$0xf0]  ;;  %v9111_v6 = vld [vmem:[#allocation13 + $0xb8] sm:$0xf0]  ;;  %v9074_v5 = vor.u32 %v11311_v3, %v9071_v63 }
 0x20d   :  { %v9110_v38 = vor.u32 %v11322_v45, %v9109_v31  ;;  %v9114_v54 = vor.u32 %v11320_v41, %v9111_v6  ;;  %v11309_v41 = vld [vmem:[#allocation13 + $0x4c] sm:$0xf0]  ;;  %v11306_v63 = vld [vmem:[#allocation13 + $0x34] sm:$0xf0] }
 0x20f   :  { %2943 = vmatpush.bf16.msrb.mxu0 %v9134_v18  ;;  %2956 = vmatpush.bf16.msrb.mxu1 %v9138_v60  ;;  %v11315_v18 = vld [vmem:[#allocation13 + $0x84] sm:$0xf]  ;;  %v9086_v60 = vor.u32 %v11317_v44, %v9085_v50  ;;  %v9055_v50 = vld [vmem:[#allocation13 + $0x50] sm:$0xf0]  ;;  %v9061_v44 = vld [vmem:[#allocation13 + $0x48] sm:$0xf] }
 0x210   :  { %2969 = vmatpush.bf16.msrb.mxu2 %v9142_v39  ;;  %2982 = vmatpush.bf16.msrb.mxu3 %v9146_v62  ;;  %v9090_v39 = vor.u32 %v11315_v18, %v9087_v13  ;;  %v9098_v62 = vor.u32 %v11316_v21, %v9095_v28  ;;  %v11308_v18 = vld [vmem:[#allocation13 + $0x4c] sm:$0xf]  ;;  %v11305_v21 = vld [vmem:[#allocation13 + $0x2c] sm:$0xf0]  ;;  %v11303_v28 = vld [vmem:[#allocation13 + $0x24] sm:$0xf] }
 0x213   :  { %2944 = vmatpush.bf16.msrb.mxu0 %v9118_v19  ;;  %2957 = vmatpush.bf16.msrb.mxu1 %v9122_v61  ;;  %v9069_v19 = vld [vmem:[#allocation13 + $0x60] sm:$0xf] }
 0x214   :  { %2970 = vmatpush.bf16.msrb.mxu2 %v9126_v16  ;;  %2983 = vmatpush.bf16.msrb.mxu3 %v9130_v29  ;;  %v9070_v57 = vor.u32 %v11313_v11, %v9069_v19  ;;  %v11314_v16 = vld [vmem:[#allocation13 + $0x74] sm:$0xf0] }
 0x215   :  { %v9078_v52 = vor.u32 %v11314_v16, %v9077_v35 }
 0x217   :  { %2945 = vmatpush.bf16.msrb.mxu0 %v9102_v24  ;;  %2958 = vmatpush.bf16.msrb.mxu1 %v9106_v51  ;;  %v11312_v24 = vld [vmem:[#allocation13 + $0x6c] sm:$0xf] }
 0x218   :  { %2971 = vmatpush.bf16.msrb.mxu2 %v9110_v38  ;;  %2984 = vmatpush.bf16.msrb.mxu3 %v9114_v54  ;;  %v9082_v31 = vor.u32 %v11312_v24, %v9079_v8  ;;  %v9053_v38 = vld [vmem:[#allocation13 + $0x40] sm:$0xf]  ;;  %v11307_v54 = vld [vmem:[#allocation13 + $0x44] sm:$0xf] }
 0x219   :  { %v9054_v6 = vor.u32 %v11309_v41, %v9053_v38  ;;  %v9021_v24 = vld [vmem:[#allocation13] sm:$0xf]  ;;  %v11299_v8 = vld [vmem:[#allocation13 + $0x4] sm:$0xf]  ;;  %v9023_v38 = vld [vmem:[#allocation13 + $0x10] sm:$0xf0] }
 0x21a   :  { %v9029_v41 = vld [vmem:[#allocation13 + $0x8] sm:$0xf] }
 0x21b   :  { %2946 = vmatpush.bf16.msrb.mxu0 %v9086_v60  ;;  %2959 = vmatpush.bf16.msrb.mxu1 %v9090_v39  ;;  %v9063_v60 = vld [vmem:[#allocation13 + $0x58] sm:$0xf0] }
 0x21c   :  { %2972 = vmatpush.bf16.msrb.mxu2 %v9094_v14  ;;  %2985 = vmatpush.bf16.msrb.mxu3 %v9098_v62  ;;  %v9066_v10 = vor.u32 %v11308_v18, %v9063_v60  ;;  %v9037_v14 = vld [vmem:[#allocation13 + $0x20] sm:$0xf]  ;;  %v9031_v18 = vld [vmem:[#allocation13 + $0x18] sm:$0xf0] }
 0x21f   :  { %2947 = vmatpush.bf16.msrb.mxu0 %v9070_v57  ;;  %2960 = vmatpush.bf16.msrb.mxu1 %v9074_v5  ;;  %v9045_v57 = vld [vmem:[#allocation13 + $0x28] sm:$0xf] }
 0x220   :  { %2973 = vmatpush.bf16.msrb.mxu2 %v9078_v52  ;;  %2986 = vmatpush.bf16.msrb.mxu3 %v9082_v31  ;;  %v9046_v16 = vor.u32 %v11306_v63, %v9045_v57 }
 0x223   :  { %2948 = vmatpush.bf16.msrb.mxu0 %v9054_v6 }
 0x224   :  { %2987 = vmatpush.bf16.msrb.mxu3 %v9066_v10 }
 0x269   :  { %v2155_v48 = vpop.f32.mrf.mxu0  ;;  %v2168_v61 = vpop.f32.mrf.mxu1 }
 0x26a   :  { %v2198_v29 = vadd.f32 %v2155_v48, %v12399_v23  ;;  %v2199_v12 = vadd.f32 %v2168_v61, %v12402_v25  ;;  %v9058_v23 = vor.u32 %v11307_v54, %v9055_v50  ;;  %v11310_v25 = vld [vmem:[#allocation13 + $0x54] sm:$0xf0]  ;;  %v9038_v48 = vor.u32 %v11305_v21, %v9037_v14  ;;  %v9039_v61 = vld [vmem:[#allocation13 + $0x30] sm:$0xf0] }
 0x26b   :  { %v9062_v13 = vor.u32 %v11310_v25, %v9061_v44  ;;  %v9042_v35 = vor.u32 %v11303_v28, %v9039_v61  ;;  %v9026_v54 = vor.u32 %v11299_v8, %v9023_v38  ;;  %v11302_v50 = vld [vmem:[#allocation13 + $0x14] sm:$0xf0]  ;;  %v11300_v44 = vld [vmem:[#allocation13 + $0xc] sm:$0xf]  ;;  %v705_v14 = vadd.f32 %v12523_v53, %v12462_v58  ;;  %v11361_v8 = vld [vmem:[#allocation11 + $0xec] sm:$0xf0] }
 0x26c   :  { %v2455_v45 = vmul.f32 0.5, %v2198_v29  ;;  %v2459_v51 = vmul.f32 0.5, %v2199_v12  ;;  %2961 = vmatpush.bf16.msrb.mxu1 %v9058_v23  ;;  %v11304_v29 = vld [vmem:[#allocation13 + $0x2c] sm:$0xf]  ;;  %v9047_v12 = vld [vmem:[#allocation13 + $0x38] sm:$0xf0]  ;;  %2949 = vmatpush.bf16.msrb.mxu0 %v9038_v48  ;;  %v9030_v25 = vor.u32 %v11302_v50, %v9029_v41  ;;  %v734_v21 = vadd.f32 %v12528_v7, %v12464_v59 }
 0x26d   :  { %2974 = vmatpush.bf16.msrb.mxu2 %v9062_v13  ;;  %v9050_v52 = vor.u32 %v11304_v29, %v9047_v12  ;;  %v763_v7 = vadd.f32 %v12530_v22, %v12476_v2  ;;  %v9263_v38 = vld [vmem:[#allocation11 + $0xf0] sm:$0xf0]  ;;  %v9269_v41 = vld [vmem:[#allocation11 + $0xe8] sm:$0xf]  ;;  %v9271_v50 = vld [vmem:[#allocation11 + $0xf8] sm:$0xf0] }
 0x26e   :  { %11847 = vtanh.f32 %v2455_v45 }
 0x26f   :  { %11849 = vtanh.f32 %v2459_v51  ;;  %2988 = vmatpush.bf16.msrb.mxu3 %v9050_v52 }
 0x270   :  { %v2181_v47 = vpop.f32.mrf.mxu2  ;;  %v2194_v39 = vpop.f32.mrf.mxu3  ;;  %2962 = vmatpush.bf16.msrb.mxu1 %v9042_v35 }
 0x271   :  { %v2200_v62 = vadd.f32 %v2181_v47, %v12413_v30  ;;  %v2201_v19 = vadd.f32 %v2194_v39, %v12418_v33  ;;  %v2157_v11 = vpop.f32.mrf.mxu0  ;;  %v2170_v3 = vpop.f32.mrf.mxu1  ;;  %v11301_v33 = vld [vmem:[#allocation13 + $0xc] sm:$0xf0]  ;;  %2975 = vmatpush.bf16.msrb.mxu2 %v9046_v16  ;;  %v9034_v47 = vor.u32 %v11300_v44, %v9031_v18  ;;  %v9245_v18 = vld [vmem:[#allocation11 + $0xc0] sm:$0xf] }
 0x272   :  { %v9022_v51 = vor.u32 %v11301_v33, %v9021_v24  ;;  %v9261_v24 = vld [vmem:[#allocation11 + $0xe0] sm:$0xf] }
 0x273   :  { %11851 = vtanh.f32 %v2200_v62  ;;  %v2464_v5 = vmul.f32 0.5, %v2201_v19  ;;  %2989 = vmatpush.bf16.msrb.mxu3 %v9034_v47 }
 0x274   :  { %v11848_v30 = vpop.eup %11847  ;;  %2950 = vmatpush.bf16.msrb.mxu0 %v9022_v51  ;;  %2963 = vmatpush.bf16.msrb.mxu1 %v9026_v54  ;;  %v11360_v54 = vld [vmem:[#allocation11 + $0xec] sm:$0xf] }
 0x275   :  { %v11850_v31 = vpop.eup %11849  ;;  %v2457_v45 = vmul.f32 0.5, %v11848_v30  ;;  %11853 = vtanh.f32 %v2464_v5  ;;  %2976 = vmatpush.bf16.msrb.mxu2 %v9030_v25  ;;  %v9262_v25 = vor.u32 %v11361_v8, %v9261_v24  ;;  %v11351_v24 = vld [vmem:[#allocation11 + $0xa4] sm:$0xf]  ;;  %v9237_v8 = vld [vmem:[#allocation11 + $0xa8] sm:$0xf] }
 0x276   :  { %v2461_v6 = vmul.f32 0.5, %v11850_v31  ;;  %v11359_v31 = vld [vmem:[#allocation11 + $0xe4] sm:$0xf] }
 0x277   :  { %v2458_v23 = vadd.f32 0.5, %v2457_v45  ;;  %v9266_v47 = vor.u32 %v11359_v31, %v9263_v38  ;;  %v11352_v38 = vld [vmem:[#allocation11 + $0xac] sm:$0xf] }
 0x278   :  { %v2462_v60 = vadd.f32 0.5, %v2461_v6  ;;  %v2183_v13 = vpop.f32.mrf.mxu2  ;;  %v2196_v10 = vpop.f32.mrf.mxu3 }
 0x279   :  { %v11852_v39 = vpop.eup %11851 }
 0x27a   :  { %v2481_v28 = vmul.f32 %v2462_v60, %v12595_v15  ;;  %v2482_v62 = vmul.f32 %v11852_v39, %v2458_v23  ;;  %v2408_v19 = vpop.f32.mrf.mxu0  ;;  %v2421_v11 = vpop.f32.mrf.mxu1  ;;  %v792_v15 = vadd.f32 %v12532_v0, %v12478_v4  ;;  %v11362_v0 = vld [vmem:[#allocation11 + $0xf4] sm:$0xf0]  ;;  %v11357_v60 = vld [vmem:[#allocation11 + $0xcc] sm:$0xf0]  ;;  %v11355_v39 = vld [vmem:[#allocation11 + $0xc4] sm:$0xf] }
 0x27b   :  { %v2451_v3 = vadd.f32 %v2408_v19, %v705_v14  ;;  %v2452_v48 = vadd.f32 %v2421_v11, %v734_v21  ;;  %v11854_v61 = vpop.eup %11853  ;;  %v9247_v14 = vld [vmem:[#allocation11 + $0xd0] sm:$0xf0]  ;;  %v9253_v19 = vld [vmem:[#allocation11 + $0xc8] sm:$0xf]  ;;  %v11358_v11 = vld [vmem:[#allocation11 + $0xd4] sm:$0xf0] }
 0x27c   :  { %v12621_v57 = vadd.f32 %v2482_v62, %v2481_v28  ;;  %v2466_v53 = vmul.f32 0.5, %v11854_v61  ;;  %v9270_v28 = vor.u32 %v11362_v0, %v9269_v41  ;;  %v9274_v62 = vor.u32 %v11360_v54, %v9271_v50  ;;  %v9239_v41 = vld [vmem:[#allocation11 + $0xb8] sm:$0xf0]  ;;  %v9213_v0 = vld [vmem:[#allocation11 + $0x80] sm:$0xf] }
 0x27d   :  { %v2468_v63 = vmul.f32 0.5, %v2451_v3  ;;  %v2472_v35 = vmul.f32 0.5, %v2452_v48  ;;  %v11349_v54 = vld [vmem:[#allocation11 + $0x8c] sm:$0xf0]  ;;  %v11347_v50 = vld [vmem:[#allocation11 + $0x84] sm:$0xf] }
 0x27e   :  { %11855 = vtanh.f32 %v12621_v57  ;;  %v2467_v33 = vadd.f32 0.5, %v2466_v53 }
 0x27f   :  { %11857 = vtanh.f32 %v2468_v63  ;;  %v11356_v63 = vld [vmem:[#allocation11 + $0xcc] sm:$0xf] }
 0x280   :  { %11859 = vtanh.f32 %v2472_v35  ;;  %v9255_v35 = vld [vmem:[#allocation11 + $0xd8] sm:$0xf0] }
 0x281   :  { %v2434_v16 = vpop.f32.mrf.mxu2  ;;  %v2447_v29 = vpop.f32.mrf.mxu3 }
 0x282   :  { %v2453_v12 = vadd.f32 %v2434_v16, %v763_v7  ;;  %v2454_v5 = vadd.f32 %v2447_v29, %v792_v15  ;;  %v2410_v52 = vpop.f32.mrf.mxu0  ;;  %v2423_v30 = vpop.f32.mrf.mxu1  ;;  %v9246_v7 = vor.u32 %v11357_v60, %v9245_v18  ;;  %v9250_v29 = vor.u32 %v11355_v39, %v9247_v14  ;;  %v9215_v18 = vld [vmem:[#allocation11 + $0x90] sm:$0xf0]  ;;  %v9221_v60 = vld [vmem:[#allocation11 + $0x88] sm:$0xf] }
 0x283   :  { %v9254_v52 = vor.u32 %v11358_v11, %v9253_v19  ;;  %v9258_v30 = vor.u32 %v11356_v63, %v9255_v35  ;;  %v9214_v39 = vor.u32 %v11349_v54, %v9213_v0  ;;  %v9218_v14 = vor.u32 %v11347_v50, %v9215_v18  ;;  %v11343_v63 = vld [vmem:[#allocation11 + $0x64] sm:$0xf]  ;;  %v9191_v0 = vld [vmem:[#allocation11 + $0x58] sm:$0xf0]  ;;  %v9165_v50 = vld [vmem:[#allocation11 + $0x20] sm:$0xf] }
 0x284   :  { %v11856_v45 = vpop.eup %11855  ;;  %11861 = vtanh.f32 %v2453_v12  ;;  %v2477_v51 = vmul.f32 0.5, %v2454_v5  ;;  %v9229_v12 = vld [vmem:[#allocation11 + $0xa0] sm:$0xf]  ;;  %v11353_v5 = vld [vmem:[#allocation11 + $0xac] sm:$0xf0] }
 0x285   :  { %v11858_v22 = vpop.eup %11857  ;;  %v12628_v6 = vmul.f32 %v11856_v45, %v2467_v33  ;;  %v9231_v33 = vld [vmem:[#allocation11 + $0xb0] sm:$0xf0] }
 0x286   :  { %v11860_v44 = vpop.eup %11859  ;;  %v2470_v23 = vmul.f32 0.5, %v11858_v22  ;;  %11863 = vtanh.f32 %v2477_v51  ;;  %v11354_v51 = vld [vmem:[#allocation11 + $0xb4] sm:$0xf0]  ;;  %v9234_v22 = vor.u32 %v11351_v24, %v9231_v33  ;;  %v11341_v24 = vld [vmem:[#allocation11 + $0x4c] sm:$0xf0] }
 0x287   :  { %v2497_v13 = vpack.c.bf16 %v12628_v6, %v12628_v6  ;;  %v2474_v10 = vmul.f32 0.5, %v11860_v44  ;;  %v11339_v33 = vld [vmem:[#allocation11 + $0x44] sm:$0xf]  ;;  %v9167_v18 = vld [vmem:[#allocation11 + $0x30] sm:$0xf0] }
 0x288   :  { %v2471_v21 = vadd.f32 0.5, %v2470_v23  ;;  %v9238_v23 = vor.u32 %v11354_v51, %v9237_v8  ;;  %v9189_v51 = vld [vmem:[#allocation11 + $0x48] sm:$0xf] }
 0x289   :  { %v2475_v3 = vadd.f32 0.5, %v2474_v10  ;;  %v2436_v48 = vpop.f32.mrf.mxu2  ;;  %v2449_v61 = vpop.f32.mrf.mxu3  ;;  %2698 = vmatmul.bf16.vlgmr.msra.gmra.mxu0 %v2497_v13  ;;  %2711 = vmatmul.bf16.vlgmr.msra.gmra.mxu1 %v2497_v13  ;;  %v11348_v10 = vld [vmem:[#allocation11 + $0x8c] sm:$0xf] }
 0x28a   :  { %v11862_v53 = vpop.eup %11861  ;;  %2724 = vmatmul.bf16.vlgmr.msra.gmra.mxu2 %v2497_v13  ;;  %2737 = vmatmul.bf16.vlgmr.msra.gmra.mxu3 %v2497_v13  ;;  %v11350_v13 = vld [vmem:[#allocation11 + $0x94] sm:$0xf0]  ;;  %v9197_v48 = vld [vmem:[#allocation11 + $0x60] sm:$0xf]  ;;  %v11345_v61 = vld [vmem:[#allocation11 + $0x6c] sm:$0xf0] }
 0x28b   :  { %v2484_v15 = vmul.f32 %v2475_v3, %v12605_v49  ;;  %v2485_v16 = vmul.f32 %v11862_v53, %v2471_v21  ;;  %3234 = vmatpush.bf16.msra.mxu0 %v9262_v25  ;;  %3247 = vmatpush.bf16.msra.mxu1 %v9266_v47  ;;  %v9230_v49 = vor.u32 %v11353_v5, %v9229_v12  ;;  %v9223_v47 = vld [vmem:[#allocation11 + $0x98] sm:$0xf0]  ;;  %v9199_v53 = vld [vmem:[#allocation11 + $0x70] sm:$0xf0]  ;;  %v11344_v12 = vld [vmem:[#allocation11 + $0x6c] sm:$0xf] }
 0x28c   :  { %3260 = vmatpush.bf16.msra.mxu2 %v9270_v28  ;;  %3273 = vmatpush.bf16.msra.mxu3 %v9274_v62  ;;  %v11864_v31 = vpop.eup %11863  ;;  %v9242_v25 = vor.u32 %v11352_v38, %v9239_v41  ;;  %v9222_v28 = vor.u32 %v11350_v13, %v9221_v60  ;;  %v9226_v62 = vor.u32 %v11348_v10, %v9223_v47  ;;  %v9207_v5 = vld [vmem:[#allocation11 + $0x78] sm:$0xf0]  ;;  %v11342_v38 = vld [vmem:[#allocation11 + $0x54] sm:$0xf0]  ;;  %v9173_v60 = vld [vmem:[#allocation11 + $0x28] sm:$0xf] }
 0x28d   :  { %v12633_v45 = vadd.f32 %v2485_v16, %v2484_v15  ;;  %v2479_v44 = vmul.f32 0.5, %v11864_v31  ;;  %v9198_v35 = vor.u32 %v11345_v61, %v9197_v48  ;;  %v11346_v15 = vld [vmem:[#allocation11 + $0x74] sm:$0xf0]  ;;  %v9202_v16 = vor.u32 %v11343_v63, %v9199_v53  ;;  %v9183_v31 = vld [vmem:[#allocation11 + $0x50] sm:$0xf0] }
 0x28e   :  { %v9186_v41 = vor.u32 %v11339_v33, %v9183_v31  ;;  %v11338_v13 = vld [vmem:[#allocation11 + $0x34] sm:$0xf0]  ;;  %v9151_v48 = vld [vmem:[#allocation11 + $0x10] sm:$0xf0]  ;;  %v9157_v61 = vld [vmem:[#allocation11 + $0x8] sm:$0xf] }
 0x28f   :  { %11865 = vtanh.f32 %v12633_v45  ;;  %3235 = vmatpush.bf16.msra.mxu0 %v9246_v7  ;;  %3248 = vmatpush.bf16.msra.mxu1 %v9250_v29  ;;  %v2480_v21 = vadd.f32 0.5, %v2479_v44  ;;  %v9205_v7 = vld [vmem:[#allocation11 + $0x68] sm:$0xf]  ;;  %v11337_v44 = vld [vmem:[#allocation11 + $0x2c] sm:$0xf0]  ;;  %v9174_v47 = vor.u32 %v11338_v13, %v9173_v60 }
 0x290   :  { %3261 = vmatpush.bf16.msra.mxu2 %v9254_v52  ;;  %3274 = vmatpush.bf16.msra.mxu3 %v9258_v30  ;;  %v9206_v29 = vor.u32 %v11346_v15, %v9205_v7  ;;  %v9210_v52 = vor.u32 %v11344_v12, %v9207_v5  ;;  %v9181_v30 = vld [vmem:[#allocation11 + $0x40] sm:$0xf]  ;;  %v11334_v63 = vld [vmem:[#allocation11 + $0x14] sm:$0xf0]  ;;  %v11332_v7 = vld [vmem:[#allocation11 + $0xc] sm:$0xf] }
 0x291   :  { %v9182_v8 = vor.u32 %v11341_v24, %v9181_v30  ;;  %v9158_v53 = vor.u32 %v11334_v63, %v9157_v61  ;;  %v9159_v15 = vld [vmem:[#allocation11 + $0x18] sm:$0xf0]  ;;  %v11393_v12 = vld [vmem:[#allocation13 + $0xec] sm:$0xf0]  ;;  %v11391_v5 = vld [vmem:[#allocation13 + $0xe4] sm:$0xf] }
 0x292   :  { %v9397_v33 = vld [vmem:[#allocation13 + $0xe8] sm:$0xf]  ;;  %v11392_v31 = vld [vmem:[#allocation13 + $0xec] sm:$0xf]  ;;  %v9383_v60 = vld [vmem:[#allocation13 + $0xd8] sm:$0xf0] }
 0x293   :  { %3236 = vmatpush.bf16.msra.mxu0 %v9230_v49  ;;  %3249 = vmatpush.bf16.msra.mxu1 %v9234_v22  ;;  %v9190_v49 = vor.u32 %v11342_v38, %v9189_v51  ;;  %v11340_v22 = vld [vmem:[#allocation11 + $0x4c] sm:$0xf]  ;;  %v9399_v38 = vld [vmem:[#allocation13 + $0xf8] sm:$0xf0] }
 0x294   :  { %3262 = vmatpush.bf16.msra.mxu2 %v9238_v23  ;;  %3275 = vmatpush.bf16.msra.mxu3 %v9242_v25  ;;  %v9194_v54 = vor.u32 %v11340_v22, %v9191_v0  ;;  %v11335_v23 = vld [vmem:[#allocation11 + $0x24] sm:$0xf]  ;;  %v9166_v25 = vor.u32 %v11337_v44, %v9165_v50  ;;  %v9402_v22 = vor.u32 %v11392_v31, %v9399_v38  ;;  %v9375_v50 = vld [vmem:[#allocation13 + $0xd0] sm:$0xf0]  ;;  %v9381_v44 = vld [vmem:[#allocation13 + $0xc8] sm:$0xf] }
 0x295   :  { %v11866_v19 = vpop.eup %11865  ;;  %v9170_v10 = vor.u32 %v11335_v23, %v9167_v18  ;;  %v11388_v18 = vld [vmem:[#allocation13 + $0xcc] sm:$0xf]  ;;  %v9367_v63 = vld [vmem:[#allocation13 + $0xb8] sm:$0xf0]  ;;  %v584_v31 = vadd.f32 %v12415_v32, %v12390_v17  ;;  %v9325_v38 = vld [vmem:[#allocation13 + $0x60] sm:$0xf] }
 0x296   :  { %v12636_v11 = vmul.f32 %v11866_v19, %v2480_v21  ;;  %v11331_v19 = vld [vmem:[#allocation11 + $0x4] sm:$0xf]  ;;  %v11384_v61 = vld [vmem:[#allocation13 + $0xac] sm:$0xf] }
 0x297   :  { %3237 = vmatpush.bf16.msra.mxu0 %v9214_v39  ;;  %3250 = vmatpush.bf16.msra.mxu1 %v9218_v14  ;;  %v11336_v39 = vld [vmem:[#allocation11 + $0x2c] sm:$0xf]  ;;  %v9175_v14 = vld [vmem:[#allocation11 + $0x38] sm:$0xf0] }
 0x298   :  { %v2750_v3 = vpack.c.bf16 %v12636_v11, %v12636_v11  ;;  %3263 = vmatpush.bf16.msra.mxu2 %v9222_v28  ;;  %3276 = vmatpush.bf16.msra.mxu3 %v9226_v62  ;;  %v9178_v21 = vor.u32 %v11336_v39, %v9175_v14  ;;  %v9149_v28 = vld [vmem:[#allocation11] sm:$0xf]  ;;  %v11333_v62 = vld [vmem:[#allocation11 + $0xc] sm:$0xf0]  ;;  %v11383_v14 = vld [vmem:[#allocation13 + $0xa4] sm:$0xf] }
 0x299   :  { %v11385_v39 = vld [vmem:[#allocation13 + $0xac] sm:$0xf0]  ;;  %v11376_v32 = vld [vmem:[#allocation13 + $0x6c] sm:$0xf] }
 0x29a   :  { %2951 = vmatmul.bf16.vlgmr.msrb.gmra.mxu0 %v2750_v3  ;;  %2964 = vmatmul.bf16.vlgmr.msrb.gmra.mxu1 %v2750_v3 }
 0x29b   :  { %2977 = vmatmul.bf16.vlgmr.msrb.gmra.mxu2 %v2750_v3  ;;  %2990 = vmatmul.bf16.vlgmr.msrb.gmra.mxu3 %v2750_v3  ;;  %v9150_v3 = vor.u32 %v11333_v62, %v9149_v28  ;;  %v9359_v28 = vld [vmem:[#allocation13 + $0xb0] sm:$0xf0]  ;;  %v9365_v62 = vld [vmem:[#allocation13 + $0xa8] sm:$0xf] }
 0x29c   :  { %3238 = vmatpush.bf16.msra.mxu0 %v9198_v35  ;;  %3251 = vmatpush.bf16.msra.mxu1 %v9202_v16  ;;  %v9154_v35 = vor.u32 %v11331_v19, %v9151_v48  ;;  %v9389_v16 = vld [vmem:[#allocation13 + $0xe0] sm:$0xf]  ;;  %v11386_v19 = vld [vmem:[#allocation13 + $0xb4] sm:$0xf0] }
 0x29d   :  { %3264 = vmatpush.bf16.msra.mxu2 %v9206_v29  ;;  %3277 = vmatpush.bf16.msra.mxu3 %v9210_v52  ;;  %v9162_v29 = vor.u32 %v11332_v7, %v9159_v15  ;;  %v9391_v52 = vld [vmem:[#allocation13 + $0xf0] sm:$0xf0]  ;;  %v9390_v30 = vor.u32 %v11393_v12, %v9389_v16  ;;  %v9366_v48 = vor.u32 %v11386_v19, %v9365_v62  ;;  %v11381_v7 = vld [vmem:[#allocation13 + $0x8c] sm:$0xf0]  ;;  %v11379_v15 = vld [vmem:[#allocation13 + $0x84] sm:$0xf] }
 0x29e   :  { %v9394_v24 = vor.u32 %v11391_v5, %v9391_v52  ;;  %v9349_v12 = vld [vmem:[#allocation13 + $0x88] sm:$0xf]  ;;  %v11382_v5 = vld [vmem:[#allocation13 + $0x94] sm:$0xf0]  ;;  %v11371_v62 = vld [vmem:[#allocation13 + $0x44] sm:$0xf] }
 0x29f   :  { %v9311_v19 = vld [vmem:[#allocation13 + $0x50] sm:$0xf0] }
 0x2a0   :  { %3239 = vmatpush.bf16.msra.mxu0 %v9182_v8  ;;  %3252 = vmatpush.bf16.msra.mxu1 %v9186_v41  ;;  %v11394_v8 = vld [vmem:[#allocation13 + $0xf4] sm:$0xf0]  ;;  %v9373_v41 = vld [vmem:[#allocation13 + $0xc0] sm:$0xf] }
 0x2a1   :  { %3265 = vmatpush.bf16.msra.mxu2 %v9190_v49  ;;  %3278 = vmatpush.bf16.msra.mxu3 %v9194_v54  ;;  %v9398_v51 = vor.u32 %v11394_v8, %v9397_v33  ;;  %v11389_v49 = vld [vmem:[#allocation13 + $0xcc] sm:$0xf0]  ;;  %v11387_v54 = vld [vmem:[#allocation13 + $0xc4] sm:$0xf]  ;;  %v9351_v33 = vld [vmem:[#allocation13 + $0x98] sm:$0xf0] }
 0x2a2   :  { %v9374_v0 = vor.u32 %v11389_v49, %v9373_v41  ;;  %v9378_v23 = vor.u32 %v11387_v54, %v9375_v50  ;;  %v11377_v41 = vld [vmem:[#allocation13 + $0x6c] sm:$0xf0]  ;;  %v11375_v49 = vld [vmem:[#allocation13 + $0x64] sm:$0xf]  ;;  %v9327_v50 = vld [vmem:[#allocation13 + $0x70] sm:$0xf0] }
 0x2a3   :  { %v9326_v54 = vor.u32 %v11377_v41, %v9325_v38  ;;  %v9301_v38 = vld [vmem:[#allocation13 + $0x28] sm:$0xf]  ;;  %v11370_v41 = vld [vmem:[#allocation13 + $0x34] sm:$0xf0] }
 0x2a4   :  { %3240 = vmatpush.bf16.msra.mxu0 %v9166_v25  ;;  %3253 = vmatpush.bf16.msra.mxu1 %v9170_v10  ;;  %v11390_v25 = vld [vmem:[#allocation13 + $0xd4] sm:$0xf0]  ;;  %v9386_v10 = vor.u32 %v11388_v18, %v9383_v60  ;;  %v9330_v60 = vor.u32 %v11375_v49, %v9327_v50  ;;  %v9302_v49 = vor.u32 %v11370_v41, %v9301_v38  ;;  %v11425_v41 = vld [vmem:[#allocation11 + $0xec] sm:$0xf0] }
 0x2a5   :  { %3266 = vmatpush.bf16.msra.mxu2 %v9174_v47  ;;  %3279 = vmatpush.bf16.msra.mxu3 %v9178_v21  ;;  %v9382_v13 = vor.u32 %v11390_v25, %v9381_v44  ;;  %v9357_v47 = vld [vmem:[#allocation13 + $0xa0] sm:$0xf]  ;;  %v9333_v44 = vld [vmem:[#allocation13 + $0x68] sm:$0xf] }
 0x2a6   :  { %v9358_v21 = vor.u32 %v11385_v39, %v9357_v47 }
 0x2a8   :  { %3241 = vmatpush.bf16.msra.mxu0 %v9150_v3  ;;  %3254 = vmatpush.bf16.msra.mxu1 %v9154_v35  ;;  %v9362_v3 = vor.u32 %v11383_v14, %v9359_v28  ;;  %v9370_v35 = vor.u32 %v11384_v61, %v9367_v63  ;;  %v9309_v14 = vld [vmem:[#allocation13 + $0x40] sm:$0xf]  ;;  %v9314_v61 = vor.u32 %v11371_v62, %v9311_v19  ;;  %v11374_v63 = vld [vmem:[#allocation13 + $0x54] sm:$0xf0]  ;;  %v9287_v19 = vld [vmem:[#allocation13 + $0x18] sm:$0xf0] }
 0x2a9   :  { %3267 = vmatpush.bf16.msra.mxu2 %v9158_v53  ;;  %3280 = vmatpush.bf16.msra.mxu3 %v9162_v29  ;;  %v9341_v53 = vld [vmem:[#allocation13 + $0x80] sm:$0xf]  ;;  %v9343_v29 = vld [vmem:[#allocation13 + $0x90] sm:$0xf0] }
 0x2aa   :  { %v9342_v16 = vor.u32 %v11381_v7, %v9341_v53  ;;  %v9346_v52 = vor.u32 %v11379_v15, %v9343_v29  ;;  %v9319_v53 = vld [vmem:[#allocation13 + $0x58] sm:$0xf0]  ;;  %v671_v7 = vadd.f32 %v12424_v37, %v12410_v27 }
 0x2ac   :  { %3487 = vmatpush.bf16.msrb.mxu0 %v9390_v30  ;;  %3500 = vmatpush.bf16.msrb.mxu1 %v9394_v24  ;;  %v9350_v30 = vor.u32 %v11382_v5, %v9349_v12  ;;  %v11380_v24 = vld [vmem:[#allocation13 + $0x8c] sm:$0xf]  ;;  %v9293_v5 = vld [vmem:[#allocation13 + $0x20] sm:$0xf] }
 0x2ad   :  { %3513 = vmatpush.bf16.msrb.mxu2 %v9398_v51  ;;  %3526 = vmatpush.bf16.msrb.mxu3 %v9402_v22  ;;  %v9354_v8 = vor.u32 %v11380_v24, %v9351_v33  ;;  %v613_v51 = vadd.f32 %v12420_v34, %v12394_v20 }
 0x2b0   :  { %3488 = vmatpush.bf16.msrb.mxu0 %v9374_v0  ;;  %3501 = vmatpush.bf16.msrb.mxu1 %v9378_v23  ;;  %v11378_v23 = vld [vmem:[#allocation13 + $0x74] sm:$0xf0] }
 0x2b1   :  { %3514 = vmatpush.bf16.msrb.mxu2 %v9382_v13  ;;  %3527 = vmatpush.bf16.msrb.mxu3 %v9386_v10  ;;  %v9334_v13 = vor.u32 %v11378_v23, %v9333_v44  ;;  %v9335_v10 = vld [vmem:[#allocation13 + $0x78] sm:$0xf0]  ;;  %v9277_v23 = vld [vmem:[#allocation13] sm:$0xf] }
 0x2b2   :  { %v9338_v34 = vor.u32 %v11376_v32, %v9335_v10  ;;  %v9279_v10 = vld [vmem:[#allocation13 + $0x10] sm:$0xf0] }
 0x2b4   :  { %3489 = vmatpush.bf16.msrb.mxu0 %v9358_v21  ;;  %3502 = vmatpush.bf16.msrb.mxu1 %v9362_v3  ;;  %v11373_v21 = vld [vmem:[#allocation13 + $0x4c] sm:$0xf0]  ;;  %v9317_v3 = vld [vmem:[#allocation13 + $0x48] sm:$0xf] }
 0x2b5   :  { %3515 = vmatpush.bf16.msrb.mxu2 %v9366_v48  ;;  %3528 = vmatpush.bf16.msrb.mxu3 %v9370_v35  ;;  %v9310_v28 = vor.u32 %v11373_v21, %v9309_v14  ;;  %v642_v48 = vadd.f32 %v12422_v36, %v12408_v26  ;;  %v11372_v35 = vld [vmem:[#allocation13 + $0x4c] sm:$0xf]  ;;  %v9318_v15 = vor.u32 %v11374_v63, %v9317_v3  ;;  %v11366_v14 = vld [vmem:[#allocation13 + $0x14] sm:$0xf0] }
 0x2b6   :  { %v11364_v21 = vld [vmem:[#allocation13 + $0xc] sm:$0xf] }
 0x2b7   :  { %v9290_v63 = vor.u32 %v11364_v21, %v9287_v19  ;;  %v9509_v19 = vld [vmem:[#allocation11 + $0xc8] sm:$0xf] }
 0x2b8   :  { %3490 = vmatpush.bf16.msrb.mxu0 %v9342_v16  ;;  %3503 = vmatpush.bf16.msrb.mxu1 %v9346_v52  ;;  %v9322_v16 = vor.u32 %v11372_v35, %v9319_v53  ;;  %v11369_v52 = vld [vmem:[#allocation13 + $0x2c] sm:$0xf0] }
 0x2b9   :  { %3516 = vmatpush.bf16.msrb.mxu2 %v9350_v30  ;;  %3529 = vmatpush.bf16.msrb.mxu3 %v9354_v8  ;;  %v11367_v30 = vld [vmem:[#allocation13 + $0x24] sm:$0xf] }
 0x2bc   :  { %3491 = vmatpush.bf16.msrb.mxu0 %v9326_v54  ;;  %3504 = vmatpush.bf16.msrb.mxu1 %v9330_v60 }
 0x2bd   :  { %3517 = vmatpush.bf16.msrb.mxu2 %v9334_v13  ;;  %3530 = vmatpush.bf16.msrb.mxu3 %v9338_v34  ;;  %v9285_v34 = vld [vmem:[#allocation13 + $0x8] sm:$0xf] }
 0x2be   :  { %v9286_v62 = vor.u32 %v11366_v14, %v9285_v34  ;;  %v9503_v14 = vld [vmem:[#allocation11 + $0xd0] sm:$0xf0] }
 0x2c0   :  { %3492 = vmatpush.bf16.msrb.mxu0 %v9310_v28  ;;  %3505 = vmatpush.bf16.msrb.mxu1 %v9314_v61 }
 0x2c1   :  { %3518 = vmatpush.bf16.msrb.mxu2 %v9318_v15  ;;  %3531 = vmatpush.bf16.msrb.mxu3 %v9322_v16 }
 0x2c5   :  { %3519 = vmatpush.bf16.msrb.mxu2 %v9302_v49 }
 0x2c9   :  { %3520 = vmatpush.bf16.msrb.mxu2 %v9286_v62 }
 0x306   :  { %v2699_v22 = vpop.f32.mrf.mxu0  ;;  %v2712_v0 = vpop.f32.mrf.mxu1 }
 0x307   :  { %v2742_v25 = vadd.f32 %v2699_v22, %v584_v31  ;;  %v2743_v18 = vadd.f32 %v2712_v0, %v613_v51  ;;  %v9294_v31 = vor.u32 %v11369_v52, %v9293_v5  ;;  %v9295_v51 = vld [vmem:[#allocation13 + $0x30] sm:$0xf0]  ;;  %v11368_v22 = vld [vmem:[#allocation13 + $0x2c] sm:$0xf]  ;;  %v9303_v0 = vld [vmem:[#allocation13 + $0x38] sm:$0xf0] }
 0x308   :  { %v9298_v37 = vor.u32 %v11367_v30, %v9295_v51  ;;  %v9306_v50 = vor.u32 %v11368_v22, %v9303_v0  ;;  %v9519_v0 = vld [vmem:[#allocation11 + $0xf0] sm:$0xf0] }
 0x309   :  { %v2999_v47 = vmul.f32 0.5, %v2742_v25  ;;  %v3003_v39 = vmul.f32 0.5, %v2743_v18  ;;  %v11365_v25 = vld [vmem:[#allocation13 + $0xc] sm:$0xf0]  ;;  %v11363_v18 = vld [vmem:[#allocation13 + $0x4] sm:$0xf]  ;;  %3493 = vmatpush.bf16.msrb.mxu0 %v9294_v31 }
 0x30a   :  { %3506 = vmatpush.bf16.msrb.mxu1 %v9298_v37  ;;  %v9278_v32 = vor.u32 %v11365_v25, %v9277_v23  ;;  %3532 = vmatpush.bf16.msrb.mxu3 %v9306_v50  ;;  %v11423_v37 = vld [vmem:[#allocation11 + $0xe4] sm:$0xf]  ;;  %v11426_v23 = vld [vmem:[#allocation11 + $0xf4] sm:$0xf0]  ;;  %v11424_v25 = vld [vmem:[#allocation11 + $0xec] sm:$0xf] }
 0x30b   :  { %11867 = vtanh.f32 %v2999_v47 }
 0x30c   :  { %11869 = vtanh.f32 %v3003_v39  ;;  %v9282_v39 = vor.u32 %v11363_v18, %v9279_v10  ;;  %v9527_v18 = vld [vmem:[#allocation11 + $0xf8] sm:$0xf0] }
 0x30d   :  { %v2725_v29 = vpop.f32.mrf.mxu2  ;;  %v2738_v12 = vpop.f32.mrf.mxu3  ;;  %3494 = vmatpush.bf16.msrb.mxu0 %v9278_v32  ;;  %v11421_v32 = vld [vmem:[#allocation11 + $0xcc] sm:$0xf0]  ;;  %v9530_v62 = vor.u32 %v11424_v25, %v9527_v18  ;;  %v9477_v25 = vld [vmem:[#allocation11 + $0x88] sm:$0xf]  ;;  %v11414_v18 = vld [vmem:[#allocation11 + $0x94] sm:$0xf0] }
 0x30e   :  { %v2744_v24 = vadd.f32 %v2725_v29, %v642_v48  ;;  %v2745_v36 = vadd.f32 %v2738_v12, %v671_v7  ;;  %v2701_v33 = vpop.f32.mrf.mxu0  ;;  %v2714_v8 = vpop.f32.mrf.mxu1  ;;  %3507 = vmatpush.bf16.msrb.mxu1 %v9282_v39  ;;  %3533 = vmatpush.bf16.msrb.mxu3 %v9290_v63  ;;  %v11419_v39 = vld [vmem:[#allocation11 + $0xc4] sm:$0xf] }
 0x310   :  { %11871 = vtanh.f32 %v2744_v24  ;;  %v3008_v54 = vmul.f32 0.5, %v2745_v36 }
 0x311   :  { %v11868_v44 = vpop.eup %11867 }
 0x312   :  { %v11870_v60 = vpop.eup %11869  ;;  %v3001_v13 = vmul.f32 0.5, %v11868_v44  ;;  %11873 = vtanh.f32 %v3008_v54  ;;  %v9525_v54 = vld [vmem:[#allocation11 + $0xe8] sm:$0xf] }
 0x313   :  { %v3005_v47 = vmul.f32 0.5, %v11870_v60 }
 0x314   :  { %v3002_v28 = vadd.f32 0.5, %v3001_v13  ;;  %v9501_v13 = vld [vmem:[#allocation11 + $0xc0] sm:$0xf] }
 0x315   :  { %v3006_v3 = vadd.f32 0.5, %v3005_v47  ;;  %v2727_v48 = vpop.f32.mrf.mxu2  ;;  %v2740_v61 = vpop.f32.mrf.mxu3  ;;  %v9522_v47 = vor.u32 %v11423_v37, %v9519_v0  ;;  %v9469_v37 = vld [vmem:[#allocation11 + $0x80] sm:$0xf] }
 0x316   :  { %v11872_v35 = vpop.eup %11871 }
 0x317   :  { %v3025_v53 = vmul.f32 %v3006_v3, %v12621_v57  ;;  %v3026_v7 = vmul.f32 %v11872_v35, %v3002_v28  ;;  %v2952_v15 = vpop.f32.mrf.mxu0  ;;  %v2965_v16 = vpop.f32.mrf.mxu1  ;;  %v9526_v28 = vor.u32 %v11426_v23, %v9525_v54  ;;  %v11422_v3 = vld [vmem:[#allocation11 + $0xd4] sm:$0xf0]  ;;  %v11420_v35 = vld [vmem:[#allocation11 + $0xcc] sm:$0xf]  ;;  %v9471_v23 = vld [vmem:[#allocation11 + $0x90] sm:$0xf0] }
 0x318   :  { %v2995_v29 = vadd.f32 %v2952_v15, %v12515_v55  ;;  %v2996_v12 = vadd.f32 %v2965_v16, %v12518_v40  ;;  %v11874_v5 = vpop.eup %11873  ;;  %v9517_v40 = vld [vmem:[#allocation11 + $0xe0] sm:$0xf]  ;;  %v9502_v15 = vor.u32 %v11421_v32, %v9501_v13 }
 0x319   :  { %v12651_v52 = vadd.f32 %v3026_v7, %v3025_v53  ;;  %v3010_v36 = vmul.f32 0.5, %v11874_v5  ;;  %v9511_v53 = vld [vmem:[#allocation11 + $0xd8] sm:$0xf0]  ;;  %v9485_v5 = vld [vmem:[#allocation11 + $0xa0] sm:$0xf] }
 0x31a   :  { %v3012_v30 = vmul.f32 0.5, %v2995_v29  ;;  %v3016_v24 = vmul.f32 0.5, %v2996_v12  ;;  %v9506_v12 = vor.u32 %v11419_v39, %v9503_v14 }
 0x31b   :  { %11875 = vtanh.f32 %v12651_v52  ;;  %v3011_v38 = vadd.f32 0.5, %v3010_v36  ;;  %v9514_v36 = vor.u32 %v11420_v35, %v9511_v53  ;;  %v11408_v53 = vld [vmem:[#allocation11 + $0x6c] sm:$0xf] }
 0x31c   :  { %11877 = vtanh.f32 %v3012_v30  ;;  %v11417_v30 = vld [vmem:[#allocation11 + $0xac] sm:$0xf0] }
 0x31d   :  { %11879 = vtanh.f32 %v3016_v24  ;;  %v9510_v24 = vor.u32 %v11422_v3, %v9509_v19  ;;  %v9455_v3 = vld [vmem:[#allocation11 + $0x70] sm:$0xf0] }
 0x31e   :  { %v2978_v57 = vpop.f32.mrf.mxu2  ;;  %v2991_v33 = vpop.f32.mrf.mxu3 }
 0x31f   :  { %v2997_v8 = vadd.f32 %v2978_v57, %v12521_v1  ;;  %v2998_v31 = vadd.f32 %v2991_v33, %v12526_v9  ;;  %v2954_v55 = vpop.f32.mrf.mxu0  ;;  %v2967_v51 = vpop.f32.mrf.mxu1  ;;  %v9518_v9 = vor.u32 %v11425_v41, %v9517_v40  ;;  %v11415_v57 = vld [vmem:[#allocation11 + $0xa4] sm:$0xf]  ;;  %v9487_v33 = vld [vmem:[#allocation11 + $0xb0] sm:$0xf0]  ;;  %v11416_v40 = vld [vmem:[#allocation11 + $0xac] sm:$0xf] }
 0x320   :  { %v11418_v51 = vld [vmem:[#allocation11 + $0xb4] sm:$0xf0]  ;;  %v9490_v41 = vor.u32 %v11415_v57, %v9487_v33 }
 0x321   :  { %v11876_v49 = vpop.eup %11875  ;;  %11881 = vtanh.f32 %v2997_v8  ;;  %v3021_v22 = vmul.f32 0.5, %v2998_v31  ;;  %v9493_v8 = vld [vmem:[#allocation11 + $0xa8] sm:$0xf] }
 0x322   :  { %v11878_v50 = vpop.eup %11877  ;;  %v12656_v44 = vmul.f32 %v11876_v49, %v3011_v38  ;;  %v9495_v38 = vld [vmem:[#allocation11 + $0xb8] sm:$0xf0]  ;;  %v11413_v49 = vld [vmem:[#allocation11 + $0x8c] sm:$0xf0]  ;;  %v9494_v54 = vor.u32 %v11418_v51, %v9493_v8  ;;  %v11404_v8 = vld [vmem:[#allocation11 + $0x4c] sm:$0xf] }
 0x323   :  { %v11880_v1 = vpop.eup %11879  ;;  %v3014_v60 = vmul.f32 0.5, %v11878_v50  ;;  %11883 = vtanh.f32 %v3021_v22  ;;  %v11411_v22 = vld [vmem:[#allocation11 + $0x84] sm:$0xf]  ;;  %v9498_v50 = vor.u32 %v11416_v40, %v9495_v38  ;;  %v9421_v40 = vld [vmem:[#allocation11 + $0x20] sm:$0xf] }
 0x324   :  { %v3041_v10 = vpack.c.bf16 %v12656_v44, %v12656_v44  ;;  %v3018_v34 = vmul.f32 0.5, %v11880_v1  ;;  %v11412_v1 = vld [vmem:[#allocation11 + $0x8c] sm:$0xf]  ;;  %v9474_v13 = vor.u32 %v11411_v22, %v9471_v23  ;;  %v11401_v38 = vld [vmem:[#allocation11 + $0x2c] sm:$0xf0] }
 0x325   :  { %v3015_v21 = vadd.f32 0.5, %v3014_v60  ;;  %v9479_v60 = vld [vmem:[#allocation11 + $0x98] sm:$0xf0]  ;;  %v11402_v22 = vld [vmem:[#allocation11 + $0x34] sm:$0xf0] }
 0x326   :  { %v3019_v48 = vadd.f32 0.5, %v3018_v34  ;;  %v2980_v61 = vpop.f32.mrf.mxu2  ;;  %v2993_v63 = vpop.f32.mrf.mxu3  ;;  %3242 = vmatmul.bf16.vlgmr.msra.gmra.mxu0 %v3041_v10  ;;  %3255 = vmatmul.bf16.vlgmr.msra.gmra.mxu1 %v3041_v10  ;;  %v9482_v34 = vor.u32 %v11412_v1, %v9479_v60  ;;  %v9431_v23 = vld [vmem:[#allocation11 + $0x38] sm:$0xf0]  ;;  %v11397_v1 = vld [vmem:[#allocation11 + $0xc] sm:$0xf0] }
 0x327   :  { %v11882_v7 = vpop.eup %11881  ;;  %3268 = vmatmul.bf16.vlgmr.msra.gmra.mxu2 %v3041_v10  ;;  %3281 = vmatmul.bf16.vlgmr.msra.gmra.mxu3 %v3041_v10  ;;  %v9478_v10 = vor.u32 %v11414_v18, %v9477_v25  ;;  %v11410_v61 = vld [vmem:[#allocation11 + $0x74] sm:$0xf0]  ;;  %v9405_v18 = vld [vmem:[#allocation11] sm:$0xf]  ;;  %v11395_v60 = vld [vmem:[#allocation11 + $0x4] sm:$0xf] }
 0x328   :  { %v3028_v16 = vmul.f32 %v3019_v48, %v12633_v45  ;;  %v3029_v29 = vmul.f32 %v11882_v7, %v3015_v21  ;;  %3778 = vmatpush.bf16.msra.mxu0 %v9518_v9  ;;  %3791 = vmatpush.bf16.msra.mxu1 %v9522_v47  ;;  %v9486_v45 = vor.u32 %v11417_v30, %v9485_v5  ;;  %v9453_v21 = vld [vmem:[#allocation11 + $0x60] sm:$0xf]  ;;  %v9461_v48 = vld [vmem:[#allocation11 + $0x68] sm:$0xf]  ;;  %v9463_v7 = vld [vmem:[#allocation11 + $0x78] sm:$0xf0] }
 0x329   :  { %3804 = vmatpush.bf16.msra.mxu2 %v9526_v28  ;;  %3817 = vmatpush.bf16.msra.mxu3 %v9530_v62  ;;  %v11884_v31 = vpop.eup %11883  ;;  %v9470_v9 = vor.u32 %v11413_v49, %v9469_v37  ;;  %v11409_v28 = vld [vmem:[#allocation11 + $0x6c] sm:$0xf0]  ;;  %v11407_v62 = vld [vmem:[#allocation11 + $0x64] sm:$0xf]  ;;  %v9462_v35 = vor.u32 %v11410_v61, %v9461_v48  ;;  %v9439_v30 = vld [vmem:[#allocation11 + $0x50] sm:$0xf0] }
 0x32a   :  { %v12661_v55 = vadd.f32 %v3029_v29, %v3028_v16  ;;  %v3023_v0 = vmul.f32 0.5, %v11884_v31  ;;  %v9454_v19 = vor.u32 %v11409_v28, %v9453_v21  ;;  %v9458_v63 = vor.u32 %v11407_v62, %v9455_v3  ;;  %v9437_v16 = vld [vmem:[#allocation11 + $0x40] sm:$0xf]  ;;  %v11405_v29 = vld [vmem:[#allocation11 + $0x4c] sm:$0xf0] }
 0x32b   :  { %v9438_v5 = vor.u32 %v11405_v29, %v9437_v16  ;;  %v9447_v31 = vld [vmem:[#allocation11 + $0x58] sm:$0xf0]  ;;  %v9423_v37 = vld [vmem:[#allocation11 + $0x30] sm:$0xf0]  ;;  %v9429_v49 = vld [vmem:[#allocation11 + $0x28] sm:$0xf] }
 0x32c   :  { %11885 = vtanh.f32 %v12661_v55  ;;  %3779 = vmatpush.bf16.msra.mxu0 %v9502_v15  ;;  %3792 = vmatpush.bf16.msra.mxu1 %v9506_v12  ;;  %v3024_v32 = vadd.f32 0.5, %v3023_v0  ;;  %v9466_v15 = vor.u32 %v11408_v53, %v9463_v7  ;;  %v11403_v12 = vld [vmem:[#allocation11 + $0x44] sm:$0xf]  ;;  %v9450_v51 = vor.u32 %v11404_v8, %v9447_v31  ;;  %v9415_v21 = vld [vmem:[#allocation11 + $0x18] sm:$0xf0] }
 0x32d   :  { %3805 = vmatpush.bf16.msra.mxu2 %v9510_v24  ;;  %3818 = vmatpush.bf16.msra.mxu3 %v9514_v36  ;;  %v9445_v24 = vld [vmem:[#allocation11 + $0x48] sm:$0xf]  ;;  %v11406_v36 = vld [vmem:[#allocation11 + $0x54] sm:$0xf0]  ;;  %v9442_v57 = vor.u32 %v11403_v12, %v9439_v30  ;;  %v9645_v28 = vld [vmem:[#allocation13 + $0xe0] sm:$0xf] }
 0x32e   :  { %v9446_v33 = vor.u32 %v11406_v36, %v9445_v24  ;;  %v11455_v3 = vld [vmem:[#allocation13 + $0xe4] sm:$0xf]  ;;  %v9647_v48 = vld [vmem:[#allocation13 + $0xf0] sm:$0xf0]  ;;  %v11458_v53 = vld [vmem:[#allocation13 + $0xf4] sm:$0xf0] }
 0x32f   :  { %v11456_v7 = vld [vmem:[#allocation13 + $0xec] sm:$0xf]  ;;  %v9655_v16 = vld [vmem:[#allocation13 + $0xf8] sm:$0xf0]  ;;  %v9629_v29 = vld [vmem:[#allocation13 + $0xc0] sm:$0xf] }
 0x330   :  { %3780 = vmatpush.bf16.msra.mxu0 %v9486_v45  ;;  %3793 = vmatpush.bf16.msra.mxu1 %v9490_v41  ;;  %v11399_v45 = vld [vmem:[#allocation11 + $0x24] sm:$0xf]  ;;  %v9422_v41 = vor.u32 %v11401_v38, %v9421_v40  ;;  %v11453_v12 = vld [vmem:[#allocation13 + $0xcc] sm:$0xf0]  ;;  %v9631_v36 = vld [vmem:[#allocation13 + $0xd0] sm:$0xf0] }
 0x331   :  { %3806 = vmatpush.bf16.msra.mxu2 %v9494_v54  ;;  %3819 = vmatpush.bf16.msra.mxu3 %v9498_v50  ;;  %v9426_v0 = vor.u32 %v11399_v45, %v9423_v37  ;;  %v9430_v54 = vor.u32 %v11402_v22, %v9429_v49  ;;  %v11400_v50 = vld [vmem:[#allocation11 + $0x2c] sm:$0xf]  ;;  %v9630_v30 = vor.u32 %v11453_v12, %v9629_v29  ;;  %v11451_v24 = vld [vmem:[#allocation13 + $0xc4] sm:$0xf]  ;;  %v11454_v8 = vld [vmem:[#allocation13 + $0xd4] sm:$0xf0] }
 0x332   :  { %v11886_v47 = vpop.eup %11885  ;;  %v9434_v25 = vor.u32 %v11400_v50, %v9431_v23  ;;  %v11452_v31 = vld [vmem:[#allocation13 + $0xcc] sm:$0xf]  ;;  %v9613_v45 = vld [vmem:[#allocation13 + $0xa0] sm:$0xf]  ;;  %v11447_v37 = vld [vmem:[#allocation13 + $0xa4] sm:$0xf] }
 0x333   :  { %v12664_v39 = vmul.f32 %v11886_v47, %v3024_v32  ;;  %v9413_v32 = vld [vmem:[#allocation11 + $0x8] sm:$0xf]  ;;  %v9615_v22 = vld [vmem:[#allocation13 + $0xb0] sm:$0xf0]  ;;  %v13443_v29 = vld [vmem:[#allocation30_spill] sm:$0xff] }
 0x334   :  { %3781 = vmatpush.bf16.msra.mxu0 %v9470_v9  ;;  %3794 = vmatpush.bf16.msra.mxu1 %v9474_v13  ;;  %v9406_v9 = vor.u32 %v11397_v1, %v9405_v18  ;;  %v9407_v13 = vld [vmem:[#allocation11 + $0x10] sm:$0xf0]  ;;  %v9618_v50 = vor.u32 %v11447_v37, %v9615_v22  ;;  %v9623_v18 = vld [vmem:[#allocation13 + $0xb8] sm:$0xf0] }
 0x335   :  { %v3294_v14 = vpack.c.bf16 %v12664_v39, %v12664_v39  ;;  %3807 = vmatpush.bf16.msra.mxu2 %v9478_v10  ;;  %3820 = vmatpush.bf16.msra.mxu3 %v9482_v34  ;;  %v11398_v10 = vld [vmem:[#allocation11 + $0x14] sm:$0xf0]  ;;  %v9410_v34 = vor.u32 %v11395_v60, %v9407_v13  ;;  %v9597_v60 = vld [vmem:[#allocation13 + $0x80] sm:$0xf]  ;;  %v11443_v13 = vld [vmem:[#allocation13 + $0x84] sm:$0xf] }
 0x336   :  { %v9414_v47 = vor.u32 %v11398_v10, %v9413_v32  ;;  %v9599_v10 = vld [vmem:[#allocation13 + $0x90] sm:$0xf0] }
 0x337   :  { %3495 = vmatmul.bf16.vlgmr.msrb.gmra.mxu0 %v3294_v14  ;;  %3508 = vmatmul.bf16.vlgmr.msrb.gmra.mxu1 %v3294_v14  ;;  %v9567_v37 = vld [vmem:[#allocation13 + $0x50] sm:$0xf0] }
 0x338   :  { %3521 = vmatmul.bf16.vlgmr.msrb.gmra.mxu2 %v3294_v14  ;;  %3534 = vmatmul.bf16.vlgmr.msrb.gmra.mxu3 %v3294_v14  ;;  %v11396_v14 = vld [vmem:[#allocation11 + $0xc] sm:$0xf] }
 0x339   :  { %3782 = vmatpush.bf16.msra.mxu0 %v9454_v19  ;;  %3795 = vmatpush.bf16.msra.mxu1 %v9458_v63  ;;  %v9418_v62 = vor.u32 %v11396_v14, %v9415_v21  ;;  %v11457_v19 = vld [vmem:[#allocation13 + $0xec] sm:$0xf0]  ;;  %v9650_v63 = vor.u32 %v11455_v3, %v9647_v48  ;;  %v9602_v14 = vor.u32 %v11443_v13, %v9599_v10  ;;  %v9581_v3 = vld [vmem:[#allocation13 + $0x60] sm:$0xf]  ;;  %v11431_v13 = vld [vmem:[#allocation13 + $0x24] sm:$0xf] }
 0x33a   :  { %3808 = vmatpush.bf16.msra.mxu2 %v9462_v35  ;;  %3821 = vmatpush.bf16.msra.mxu3 %v9466_v15  ;;  %v9646_v61 = vor.u32 %v11457_v19, %v9645_v28  ;;  %v9653_v35 = vld [vmem:[#allocation13 + $0xe8] sm:$0xf]  ;;  %v11444_v28 = vld [vmem:[#allocation13 + $0x8c] sm:$0xf]  ;;  %v11441_v48 = vld [vmem:[#allocation13 + $0x6c] sm:$0xf0] }
 0x33b   :  { %v9654_v15 = vor.u32 %v11458_v53, %v9653_v35  ;;  %v9582_v53 = vor.u32 %v11441_v48, %v9581_v3  ;;  %v11434_v3 = vld [vmem:[#allocation13 + $0x34] sm:$0xf0] }
 0x33d   :  { %3783 = vmatpush.bf16.msra.mxu0 %v9438_v5  ;;  %3796 = vmatpush.bf16.msra.mxu1 %v9442_v57  ;;  %v9658_v5 = vor.u32 %v11456_v7, %v9655_v16  ;;  %v9637_v57 = vld [vmem:[#allocation13 + $0xc8] sm:$0xf]  ;;  %v9583_v7 = vld [vmem:[#allocation13 + $0x70] sm:$0xf0]  ;;  %v11442_v16 = vld [vmem:[#allocation13 + $0x74] sm:$0xf0] }
 0x33e   :  { %3809 = vmatpush.bf16.msra.mxu2 %v9446_v33  ;;  %3822 = vmatpush.bf16.msra.mxu3 %v9450_v51  ;;  %v9634_v33 = vor.u32 %v11451_v24, %v9631_v36  ;;  %v9639_v51 = vld [vmem:[#allocation13 + $0xd8] sm:$0xf0]  ;;  %v9638_v40 = vor.u32 %v11454_v8, %v9637_v57  ;;  %v11440_v57 = vld [vmem:[#allocation13 + $0x6c] sm:$0xf] }
 0x33f   :  { %v9642_v38 = vor.u32 %v11452_v31, %v9639_v51 }
 0x341   :  { %3784 = vmatpush.bf16.msra.mxu0 %v9422_v41  ;;  %3797 = vmatpush.bf16.msra.mxu1 %v9426_v0  ;;  %v11449_v41 = vld [vmem:[#allocation13 + $0xac] sm:$0xf0]  ;;  %v9621_v0 = vld [vmem:[#allocation13 + $0xa8] sm:$0xf] }
 0x342   :  { %3810 = vmatpush.bf16.msra.mxu2 %v9430_v54  ;;  %3823 = vmatpush.bf16.msra.mxu3 %v9434_v25  ;;  %v9614_v49 = vor.u32 %v11449_v41, %v9613_v45  ;;  %v11450_v54 = vld [vmem:[#allocation13 + $0xb4] sm:$0xf0]  ;;  %v11448_v25 = vld [vmem:[#allocation13 + $0xac] sm:$0xf]  ;;  %v11435_v41 = vld [vmem:[#allocation13 + $0x44] sm:$0xf] }
 0x343   :  { %v9622_v23 = vor.u32 %v11450_v54, %v9621_v0  ;;  %v9626_v1 = vor.u32 %v11448_v25, %v9623_v18  ;;  %v9570_v22 = vor.u32 %v11435_v41, %v9567_v37  ;;  %v11438_v0 = vld [vmem:[#allocation13 + $0x54] sm:$0xf0]  ;;  %v11436_v54 = vld [vmem:[#allocation13 + $0x4c] sm:$0xf] }
 0x345   :  { %3785 = vmatpush.bf16.msra.mxu0 %v9406_v9  ;;  %3798 = vmatpush.bf16.msra.mxu1 %v9410_v34  ;;  %v11445_v9 = vld [vmem:[#allocation13 + $0x8c] sm:$0xf0]  ;;  %v9605_v34 = vld [vmem:[#allocation13 + $0x88] sm:$0xf] }
 0x346   :  { %3811 = vmatpush.bf16.msra.mxu2 %v9414_v47  ;;  %3824 = vmatpush.bf16.msra.mxu3 %v9418_v62  ;;  %v9598_v32 = vor.u32 %v11445_v9, %v9597_v60  ;;  %v11446_v47 = vld [vmem:[#allocation13 + $0x94] sm:$0xf0]  ;;  %v9607_v62 = vld [vmem:[#allocation13 + $0x98] sm:$0xf0]  ;;  %v9549_v60 = vld [vmem:[#allocation13 + $0x20] sm:$0xf] }
 0x347   :  { %v9606_v21 = vor.u32 %v11446_v47, %v9605_v34  ;;  %v9610_v19 = vor.u32 %v11444_v28, %v9607_v62  ;;  %v11433_v9 = vld [vmem:[#allocation13 + $0x2c] sm:$0xf0]  ;;  %v13446_v34 = vld [vmem:[#allocation34_spill] sm:$0xff]  ;;  %v9551_v62 = vld [vmem:[#allocation13 + $0x30] sm:$0xf0] }
 0x348   :  { %v9550_v28 = vor.u32 %v11433_v9, %v9549_v60  ;;  %v9554_v48 = vor.u32 %v11431_v13, %v9551_v62 }
 0x349   :  { %4031 = vmatpush.bf16.msrb.mxu0 %v9646_v61  ;;  %4044 = vmatpush.bf16.msrb.mxu1 %v9650_v63  ;;  %v11439_v61 = vld [vmem:[#allocation13 + $0x64] sm:$0xf] }
 0x34a   :  { %4057 = vmatpush.bf16.msrb.mxu2 %v9654_v15  ;;  %4070 = vmatpush.bf16.msrb.mxu3 %v9658_v5  ;;  %v9589_v15 = vld [vmem:[#allocation13 + $0x68] sm:$0xf]  ;;  %v9586_v24 = vor.u32 %v11439_v61, %v9583_v7 }
 0x34b   :  { %v13444_v5 = vld [vmem:[#allocation31_spill] sm:$0xff]  ;;  %v9590_v36 = vor.u32 %v11442_v16, %v9589_v15  ;;  %v9533_v16 = vld [vmem:[#allocation13] sm:$0xf] }
 0x34d   :  { %4032 = vmatpush.bf16.msrb.mxu0 %v9630_v30  ;;  %4045 = vmatpush.bf16.msrb.mxu1 %v9634_v33  ;;  %v9591_v33 = vld [vmem:[#allocation13 + $0x78] sm:$0xf0] }
 0x34e   :  { %4058 = vmatpush.bf16.msrb.mxu2 %v9638_v40  ;;  %4071 = vmatpush.bf16.msrb.mxu3 %v9642_v38  ;;  %v9594_v8 = vor.u32 %v11440_v57, %v9591_v33  ;;  %v9565_v40 = vld [vmem:[#allocation13 + $0x40] sm:$0xf]  ;;  %v11437_v38 = vld [vmem:[#allocation13 + $0x4c] sm:$0xf0]  ;;  %v9541_v57 = vld [vmem:[#allocation13 + $0x8] sm:$0xf] }
 0x34f   :  { %v9566_v45 = vor.u32 %v11437_v38, %v9565_v40 }
 0x351   :  { %4033 = vmatpush.bf16.msrb.mxu0 %v9614_v49  ;;  %4046 = vmatpush.bf16.msrb.mxu1 %v9618_v50  ;;  %v9573_v49 = vld [vmem:[#allocation13 + $0x48] sm:$0xf]  ;;  %v9575_v50 = vld [vmem:[#allocation13 + $0x58] sm:$0xf0] }
 0x352   :  { %4059 = vmatpush.bf16.msrb.mxu2 %v9622_v23  ;;  %4072 = vmatpush.bf16.msrb.mxu3 %v9626_v1  ;;  %v9574_v23 = vor.u32 %v11438_v0, %v9573_v49  ;;  %v9578_v25 = vor.u32 %v11436_v54, %v9575_v50  ;;  %v13447_v54 = vld [vmem:[#allocation57_spill] sm:$0xff] }
 0x353   :  { %v700_v50 = vadd.f32 %v13447_v54, %v12462_v58  ;;  %v9759_v54 = vld [vmem:[#allocation11 + $0xd0] sm:$0xf0] }
 0x355   :  { %4034 = vmatpush.bf16.msrb.mxu0 %v9598_v32  ;;  %4047 = vmatpush.bf16.msrb.mxu1 %v9602_v14  ;;  %v13445_v32 = vld [vmem:[#allocation32_spill] sm:$0xff] }
 0x356   :  { %4060 = vmatpush.bf16.msrb.mxu2 %v9606_v21  ;;  %4073 = vmatpush.bf16.msrb.mxu3 %v9610_v19  ;;  %v9557_v19 = vld [vmem:[#allocation13 + $0x28] sm:$0xf] }
 0x357   :  { %v9558_v61 = vor.u32 %v11434_v3, %v9557_v19 }
 0x359   :  { %4035 = vmatpush.bf16.msrb.mxu0 %v9582_v53  ;;  %4048 = vmatpush.bf16.msrb.mxu1 %v9586_v24 }
 0x35a   :  { %4061 = vmatpush.bf16.msrb.mxu2 %v9590_v36  ;;  %4074 = vmatpush.bf16.msrb.mxu3 %v9594_v8  ;;  %v9535_v36 = vld [vmem:[#allocation13 + $0x10] sm:$0xf0] }
 0x35d   :  { %4036 = vmatpush.bf16.msrb.mxu0 %v9566_v45  ;;  %4049 = vmatpush.bf16.msrb.mxu1 %v9570_v22  ;;  %v9543_v45 = vld [vmem:[#allocation13 + $0x18] sm:$0xf0] }
 0x35e   :  { %4062 = vmatpush.bf16.msrb.mxu2 %v9574_v23  ;;  %4075 = vmatpush.bf16.msrb.mxu3 %v9578_v25  ;;  %v13448_v23 = vld [vmem:[#allocation59_spill] sm:$0xff] }
 0x35f   :  { %v729_v25 = vadd.f32 %v13448_v23, %v12464_v59 }
 0x361   :  { %4037 = vmatpush.bf16.msrb.mxu0 %v9550_v28  ;;  %4050 = vmatpush.bf16.msrb.mxu1 %v9554_v48  ;;  %v13449_v28 = vld [vmem:[#allocation60_spill] sm:$0xff] }
 0x362   :  { %4063 = vmatpush.bf16.msrb.mxu2 %v9558_v61  ;;  %v758_v62 = vadd.f32 %v13449_v28, %v12476_v2 }
 0x3a3   :  { %v3243_v63 = vpop.f32.mrf.mxu0  ;;  %v3256_v35 = vpop.f32.mrf.mxu1 }
 0x3a4   :  { %v3286_v12 = vadd.f32 %v3243_v63, %v13443_v29  ;;  %v3287_v30 = vadd.f32 %v3256_v35, %v13444_v5  ;;  %v11432_v63 = vld [vmem:[#allocation13 + $0x2c] sm:$0xf]  ;;  %v9559_v35 = vld [vmem:[#allocation13 + $0x38] sm:$0xf0]  ;;  %v11429_v29 = vld [vmem:[#allocation13 + $0xc] sm:$0xf0] }
 0x3a5   :  { %v9562_v7 = vor.u32 %v11432_v63, %v9559_v35  ;;  %v9534_v24 = vor.u32 %v11429_v29, %v9533_v16  ;;  %v11489_v16 = vld [vmem:[#allocation11 + $0xec] sm:$0xf0]  ;;  %v11487_v29 = vld [vmem:[#allocation11 + $0xe4] sm:$0xf] }
 0x3a6   :  { %v3543_v31 = vmul.f32 0.5, %v3286_v12  ;;  %v3547_v51 = vmul.f32 0.5, %v3287_v30  ;;  %v11427_v12 = vld [vmem:[#allocation13 + $0x4] sm:$0xf] }
 0x3a7   :  { %v9538_v8 = vor.u32 %v11427_v12, %v9535_v36  ;;  %4076 = vmatpush.bf16.msrb.mxu3 %v9562_v7  ;;  %4038 = vmatpush.bf16.msrb.mxu0 %v9534_v24  ;;  %v9773_v7 = vld [vmem:[#allocation11 + $0xe0] sm:$0xf]  ;;  %v9781_v24 = vld [vmem:[#allocation11 + $0xe8] sm:$0xf] }
 0x3a8   :  { %11887 = vtanh.f32 %v3543_v31  ;;  %v11430_v31 = vld [vmem:[#allocation13 + $0x14] sm:$0xf0] }
 0x3a9   :  { %11889 = vtanh.f32 %v3547_v51  ;;  %v11428_v51 = vld [vmem:[#allocation13 + $0xc] sm:$0xf]  ;;  %v9542_v38 = vor.u32 %v11430_v31, %v9541_v57  ;;  %4051 = vmatpush.bf16.msrb.mxu1 %v9538_v8  ;;  %v9783_v31 = vld [vmem:[#allocation11 + $0xf8] sm:$0xf0] }
 0x3aa   :  { %v3269_v18 = vpop.f32.mrf.mxu2  ;;  %v3282_v1 = vpop.f32.mrf.mxu3  ;;  %v9546_v22 = vor.u32 %v11428_v51, %v9543_v45  ;;  %v11488_v8 = vld [vmem:[#allocation11 + $0xec] sm:$0xf]  ;;  %v9757_v45 = vld [vmem:[#allocation11 + $0xc0] sm:$0xf] }
 0x3ab   :  { %v3288_v10 = vadd.f32 %v3269_v18, %v13445_v32  ;;  %v3289_v47 = vadd.f32 %v3282_v1, %v13446_v34  ;;  %v3245_v14 = vpop.f32.mrf.mxu0  ;;  %v3258_v21 = vpop.f32.mrf.mxu1  ;;  %4064 = vmatpush.bf16.msrb.mxu2 %v9542_v38  ;;  %v9774_v38 = vor.u32 %v11489_v16, %v9773_v7  ;;  %v11480_v16 = vld [vmem:[#allocation11 + $0xac] sm:$0xf] }
 0x3ac   :  { %4077 = vmatpush.bf16.msrb.mxu3 %v9546_v22 }
 0x3ad   :  { %11891 = vtanh.f32 %v3288_v10  ;;  %v3552_v53 = vmul.f32 0.5, %v3289_v47 }
 0x3ae   :  { %v11888_v15 = vpop.eup %11887 }
 0x3af   :  { %v11890_v5 = vpop.eup %11889  ;;  %v3545_v30 = vmul.f32 0.5, %v11888_v15  ;;  %11893 = vtanh.f32 %v3552_v53 }
 0x3b0   :  { %v3549_v33 = vmul.f32 0.5, %v11890_v5 }
 0x3b1   :  { %v3546_v40 = vadd.f32 0.5, %v3545_v30  ;;  %v9775_v30 = vld [vmem:[#allocation11 + $0xf0] sm:$0xf0] }
 0x3b2   :  { %v3550_v41 = vadd.f32 0.5, %v3549_v33  ;;  %v3271_v37 = vpop.f32.mrf.mxu2  ;;  %v3284_v49 = vpop.f32.mrf.mxu3  ;;  %v11490_v33 = vld [vmem:[#allocation11 + $0xf4] sm:$0xf0]  ;;  %v9778_v22 = vor.u32 %v11487_v29, %v9775_v30  ;;  %v9751_v29 = vld [vmem:[#allocation11 + $0xb8] sm:$0xf0] }
 0x3b3   :  { %v11892_v0 = vpop.eup %11891  ;;  %v9782_v23 = vor.u32 %v11490_v33, %v9781_v24  ;;  %v11477_v30 = vld [vmem:[#allocation11 + $0x8c] sm:$0xf0]  ;;  %v11475_v24 = vld [vmem:[#allocation11 + $0x84] sm:$0xf] }
 0x3b4   :  { %v3569_v18 = vmul.f32 %v3550_v41, %v12651_v52  ;;  %v3570_v1 = vmul.f32 %v11892_v0, %v3546_v40  ;;  %v3496_v60 = vpop.f32.mrf.mxu0  ;;  %v3509_v9 = vpop.f32.mrf.mxu1  ;;  %v13450_v52 = vld [vmem:[#allocation61_spill] sm:$0xff]  ;;  %v11485_v41 = vld [vmem:[#allocation11 + $0xcc] sm:$0xf0]  ;;  %v11483_v0 = vld [vmem:[#allocation11 + $0xc4] sm:$0xf] }
 0x3b5   :  { %v3539_v13 = vadd.f32 %v3496_v60, %v700_v50  ;;  %v3540_v32 = vadd.f32 %v3509_v9, %v729_v25  ;;  %v11894_v10 = vpop.eup %11893  ;;  %v787_v19 = vadd.f32 %v13450_v52, %v12478_v4  ;;  %v9786_v25 = vor.u32 %v11488_v8, %v9783_v31  ;;  %v9741_v52 = vld [vmem:[#allocation11 + $0xa0] sm:$0xf]  ;;  %v9727_v31 = vld [vmem:[#allocation11 + $0x90] sm:$0xf0] }
 0x3b6   :  { %v12677_v34 = vadd.f32 %v3570_v1, %v3569_v18  ;;  %v3554_v21 = vmul.f32 0.5, %v11894_v10  ;;  %v9765_v18 = vld [vmem:[#allocation11 + $0xc8] sm:$0xf]  ;;  %v11486_v1 = vld [vmem:[#allocation11 + $0xd4] sm:$0xf0]  ;;  %v9754_v8 = vor.u32 %v11480_v16, %v9751_v29 }
 0x3b7   :  { %v3556_v47 = vmul.f32 0.5, %v3539_v13  ;;  %v3560_v14 = vmul.f32 0.5, %v3540_v32  ;;  %v11484_v32 = vld [vmem:[#allocation11 + $0xcc] sm:$0xf]  ;;  %v9767_v10 = vld [vmem:[#allocation11 + $0xd8] sm:$0xf0] }
 0x3b8   :  { %11895 = vtanh.f32 %v12677_v34  ;;  %v3555_v15 = vadd.f32 0.5, %v3554_v21  ;;  %v9703_v16 = vld [vmem:[#allocation11 + $0x58] sm:$0xf0] }
 0x3b9   :  { %11897 = vtanh.f32 %v3556_v47 }
 0x3ba   :  { %11899 = vtanh.f32 %v3560_v14  ;;  %v9758_v14 = vor.u32 %v11485_v41, %v9757_v45  ;;  %v9735_v45 = vld [vmem:[#allocation11 + $0x98] sm:$0xf0] }
 0x3bb   :  { %v3522_v3 = vpop.f32.mrf.mxu2  ;;  %v3535_v48 = vpop.f32.mrf.mxu3 }
 0x3bc   :  { %v3541_v61 = vadd.f32 %v3522_v3, %v758_v62  ;;  %v3542_v63 = vadd.f32 %v3535_v48, %v787_v19  ;;  %v3498_v35 = vpop.f32.mrf.mxu0  ;;  %v3511_v53 = vpop.f32.mrf.mxu1  ;;  %v9762_v62 = vor.u32 %v11483_v0, %v9759_v54  ;;  %v11481_v19 = vld [vmem:[#allocation11 + $0xac] sm:$0xf0]  ;;  %v9766_v3 = vor.u32 %v11486_v1, %v9765_v18  ;;  %v11471_v1 = vld [vmem:[#allocation11 + $0x64] sm:$0xf] }
 0x3bd   :  { %v9770_v48 = vor.u32 %v11484_v32, %v9767_v10  ;;  %v9749_v35 = vld [vmem:[#allocation11 + $0xa8] sm:$0xf]  ;;  %v11473_v18 = vld [vmem:[#allocation11 + $0x6c] sm:$0xf0]  ;;  %v11474_v32 = vld [vmem:[#allocation11 + $0x74] sm:$0xf0] }
 0x3be   :  { %v11896_v12 = vpop.eup %11895  ;;  %11901 = vtanh.f32 %v3541_v61  ;;  %v3565_v5 = vmul.f32 0.5, %v3542_v63  ;;  %v11479_v61 = vld [vmem:[#allocation11 + $0xa4] sm:$0xf]  ;;  %v9743_v63 = vld [vmem:[#allocation11 + $0xb0] sm:$0xf0] }
 0x3bf   :  { %v11898_v36 = vpop.eup %11897  ;;  %v12684_v57 = vmul.f32 %v11896_v12, %v3555_v15  ;;  %v11482_v15 = vld [vmem:[#allocation11 + $0xb4] sm:$0xf0]  ;;  %v9746_v12 = vor.u32 %v11479_v61, %v9743_v63  ;;  %v9701_v61 = vld [vmem:[#allocation11 + $0x48] sm:$0xf] }
 0x3c0   :  { %v11900_v51 = vpop.eup %11899  ;;  %v3558_v40 = vmul.f32 0.5, %v11898_v36  ;;  %11903 = vtanh.f32 %v3565_v5  ;;  %v9725_v5 = vld [vmem:[#allocation11 + $0x80] sm:$0xf]  ;;  %v9750_v33 = vor.u32 %v11482_v15, %v9749_v35  ;;  %v11470_v63 = vld [vmem:[#allocation11 + $0x54] sm:$0xf0] }
 0x3c1   :  { %v3585_v37 = vpack.c.bf16 %v12684_v57, %v12684_v57  ;;  %v3562_v49 = vmul.f32 0.5, %v11900_v51  ;;  %v9733_v51 = vld [vmem:[#allocation11 + $0x88] sm:$0xf]  ;;  %v9726_v41 = vor.u32 %v11477_v30, %v9725_v5  ;;  %v11468_v15 = vld [vmem:[#allocation11 + $0x4c] sm:$0xf] }
 0x3c2   :  { %v3559_v50 = vadd.f32 0.5, %v3558_v40  ;;  %v11478_v40 = vld [vmem:[#allocation11 + $0x94] sm:$0xf0]  ;;  %v9706_v29 = vor.u32 %v11468_v15, %v9703_v16  ;;  %v11463_v5 = vld [vmem:[#allocation11 + $0x24] sm:$0xf] }
 0x3c3   :  { %v3563_v60 = vadd.f32 0.5, %v3562_v49  ;;  %v3524_v9 = vpop.f32.mrf.mxu2  ;;  %v3537_v13 = vpop.f32.mrf.mxu3  ;;  %3786 = vmatmul.bf16.vlgmr.msra.gmra.mxu0 %v3585_v37  ;;  %3799 = vmatmul.bf16.vlgmr.msra.gmra.mxu1 %v3585_v37  ;;  %v9893_v15 = vld [vmem:[#allocation13 + $0xc8] sm:$0xf] }
 0x3c4   :  { %v11902_v47 = vpop.eup %11901  ;;  %3812 = vmatmul.bf16.vlgmr.msra.gmra.mxu2 %v3585_v37  ;;  %3825 = vmatmul.bf16.vlgmr.msra.gmra.mxu3 %v3585_v37  ;;  %v9730_v37 = vor.u32 %v11475_v24, %v9727_v31  ;;  %v9711_v9 = vld [vmem:[#allocation11 + $0x70] sm:$0xf0]  ;;  %v9717_v13 = vld [vmem:[#allocation11 + $0x68] sm:$0xf] }
 0x3c5   :  { %v3572_v21 = vmul.f32 %v3563_v60, %v12661_v55  ;;  %v3573_v28 = vmul.f32 %v11902_v47, %v3559_v50  ;;  %4322 = vmatpush.bf16.msra.mxu0 %v9774_v38  ;;  %4335 = vmatpush.bf16.msra.mxu1 %v9778_v22  ;;  %v9742_v55 = vor.u32 %v11481_v19, %v9741_v52  ;;  %v11476_v38 = vld [vmem:[#allocation11 + $0x8c] sm:$0xf]  ;;  %v11469_v52 = vld [vmem:[#allocation11 + $0x4c] sm:$0xf0]  ;;  %v11467_v19 = vld [vmem:[#allocation11 + $0x44] sm:$0xf] }
 0x3c6   :  { %4348 = vmatpush.bf16.msra.mxu2 %v9782_v23  ;;  %4361 = vmatpush.bf16.msra.mxu3 %v9786_v25  ;;  %v11904_v53 = vpop.eup %11903  ;;  %v9734_v22 = vor.u32 %v11478_v40, %v9733_v51  ;;  %v9738_v0 = vor.u32 %v11476_v38, %v9735_v45  ;;  %v9709_v25 = vld [vmem:[#allocation11 + $0x60] sm:$0xf]  ;;  %v9714_v10 = vor.u32 %v11471_v1, %v9711_v9  ;;  %v9679_v24 = vld [vmem:[#allocation11 + $0x30] sm:$0xf0]  ;;  %v11464_v51 = vld [vmem:[#allocation11 + $0x2c] sm:$0xf] }
 0x3c7   :  { %v12689_v7 = vadd.f32 %v3573_v28, %v3572_v21  ;;  %v3567_v36 = vmul.f32 0.5, %v11904_v53  ;;  %v9710_v60 = vor.u32 %v11473_v18, %v9709_v25  ;;  %v9718_v47 = vor.u32 %v11474_v32, %v9717_v13  ;;  %v9719_v21 = vld [vmem:[#allocation11 + $0x78] sm:$0xf0]  ;;  %v9661_v45 = vld [vmem:[#allocation11] sm:$0xf] }
 0x3c8   :  { %v9702_v53 = vor.u32 %v11470_v63, %v9701_v61  ;;  %v9687_v40 = vld [vmem:[#allocation11 + $0x38] sm:$0xf0]  ;;  %v11460_v18 = vld [vmem:[#allocation11 + $0xc] sm:$0xf]  ;;  %v11521_v13 = vld [vmem:[#allocation13 + $0xec] sm:$0xf0] }
 0x3c9   :  { %11905 = vtanh.f32 %v12689_v7  ;;  %4323 = vmatpush.bf16.msra.mxu0 %v9758_v14  ;;  %4336 = vmatpush.bf16.msra.mxu1 %v9762_v62  ;;  %v3568_v49 = vadd.f32 0.5, %v3567_v36  ;;  %v11472_v14 = vld [vmem:[#allocation11 + $0x6c] sm:$0xf]  ;;  %v9693_v62 = vld [vmem:[#allocation11 + $0x40] sm:$0xf]  ;;  %v9690_v38 = vor.u32 %v11464_v51, %v9687_v40 }
 0x3ca   :  { %4349 = vmatpush.bf16.msra.mxu2 %v9766_v3  ;;  %4362 = vmatpush.bf16.msra.mxu3 %v9770_v48  ;;  %v9722_v28 = vor.u32 %v11472_v14, %v9719_v21  ;;  %v9694_v3 = vor.u32 %v11469_v52, %v9693_v62  ;;  %v9695_v48 = vld [vmem:[#allocation11 + $0x50] sm:$0xf0]  ;;  %v9685_v36 = vld [vmem:[#allocation11 + $0x28] sm:$0xf]  ;;  %v9671_v1 = vld [vmem:[#allocation11 + $0x18] sm:$0xf0] }
 0x3cb   :  { %v9698_v35 = vor.u32 %v11467_v19, %v9695_v48  ;;  %v9674_v9 = vor.u32 %v11460_v18, %v9671_v1  ;;  %v11519_v32 = vld [vmem:[#allocation13 + $0xe4] sm:$0xf]  ;;  %v9909_v21 = vld [vmem:[#allocation13 + $0xe8] sm:$0xf]  ;;  %v11520_v62 = vld [vmem:[#allocation13 + $0xec] sm:$0xf] }
 0x3cc   :  { %v9911_v19 = vld [vmem:[#allocation13 + $0xf8] sm:$0xf0]  ;;  %v11517_v48 = vld [vmem:[#allocation13 + $0xcc] sm:$0xf0]  ;;  %v9877_v51 = vld [vmem:[#allocation13 + $0xa8] sm:$0xf] }
 0x3cd   :  { %4324 = vmatpush.bf16.msra.mxu0 %v9742_v55  ;;  %4337 = vmatpush.bf16.msra.mxu1 %v9746_v12  ;;  %v9677_v55 = vld [vmem:[#allocation11 + $0x20] sm:$0xf]  ;;  %v11465_v12 = vld [vmem:[#allocation11 + $0x2c] sm:$0xf0]  ;;  %v9914_v61 = vor.u32 %v11520_v62, %v9911_v19  ;;  %v11514_v40 = vld [vmem:[#allocation13 + $0xb4] sm:$0xf0] }
 0x3ce   :  { %4350 = vmatpush.bf16.msra.mxu2 %v9750_v33  ;;  %4363 = vmatpush.bf16.msra.mxu3 %v9754_v8  ;;  %v9678_v30 = vor.u32 %v11465_v12, %v9677_v55  ;;  %v11466_v33 = vld [vmem:[#allocation11 + $0x34] sm:$0xf0]  ;;  %v9682_v8 = vor.u32 %v11463_v5, %v9679_v24  ;;  %v11516_v55 = vld [vmem:[#allocation13 + $0xcc] sm:$0xf]  ;;  %v9895_v12 = vld [vmem:[#allocation13 + $0xd8] sm:$0xf0] }
 0x3cf   :  { %v11906_v54 = vpop.eup %11905  ;;  %v9686_v31 = vor.u32 %v11466_v33, %v9685_v36  ;;  %v9869_v24 = vld [vmem:[#allocation13 + $0xa0] sm:$0xf]  ;;  %v11513_v36 = vld [vmem:[#allocation13 + $0xac] sm:$0xf0]  ;;  %v11511_v33 = vld [vmem:[#allocation13 + $0xa4] sm:$0xf] }
 0x3d0   :  { %v12692_v50 = vmul.f32 %v11906_v54, %v3568_v49  ;;  %v11462_v54 = vld [vmem:[#allocation11 + $0x14] sm:$0xf0]  ;;  %v9861_v18 = vld [vmem:[#allocation13 + $0x88] sm:$0xf]  ;;  %v9837_v62 = vld [vmem:[#allocation13 + $0x60] sm:$0xf] }
 0x3d1   :  { %4325 = vmatpush.bf16.msra.mxu0 %v9726_v41  ;;  %4338 = vmatpush.bf16.msra.mxu1 %v9730_v37  ;;  %v11461_v41 = vld [vmem:[#allocation11 + $0xc] sm:$0xf0]  ;;  %v11459_v37 = vld [vmem:[#allocation11 + $0x4] sm:$0xf]  ;;  %v11510_v1 = vld [vmem:[#allocation13 + $0x94] sm:$0xf0] }
 0x3d2   :  { %v3838_v23 = vpack.c.bf16 %v12692_v50, %v12692_v50  ;;  %4351 = vmatpush.bf16.msra.mxu2 %v9734_v22  ;;  %4364 = vmatpush.bf16.msra.mxu3 %v9738_v0  ;;  %v9662_v49 = vor.u32 %v11461_v41, %v9661_v45  ;;  %v9663_v22 = vld [vmem:[#allocation11 + $0x10] sm:$0xf0]  ;;  %v9669_v0 = vld [vmem:[#allocation11 + $0x8] sm:$0xf]  ;;  %v9878_v45 = vor.u32 %v11514_v40, %v9877_v51  ;;  %v11512_v41 = vld [vmem:[#allocation13 + $0xac] sm:$0xf] }
 0x3d3   :  { %v9670_v25 = vor.u32 %v11462_v54, %v9669_v0  ;;  %v11509_v0 = vld [vmem:[#allocation13 + $0x8c] sm:$0xf0]  ;;  %v11507_v54 = vld [vmem:[#allocation13 + $0x84] sm:$0xf]  ;;  %v9823_v40 = vld [vmem:[#allocation13 + $0x50] sm:$0xf0] }
 0x3d4   :  { %4039 = vmatmul.bf16.vlgmr.msrb.gmra.mxu0 %v3838_v23  ;;  %4052 = vmatmul.bf16.vlgmr.msrb.gmra.mxu1 %v3838_v23  ;;  %v11503_v19 = vld [vmem:[#allocation13 + $0x64] sm:$0xf] }
 0x3d5   :  { %4065 = vmatmul.bf16.vlgmr.msrb.gmra.mxu2 %v3838_v23  ;;  %4078 = vmatmul.bf16.vlgmr.msrb.gmra.mxu3 %v3838_v23  ;;  %v9666_v23 = vor.u32 %v11459_v37, %v9663_v22  ;;  %v9879_v37 = vld [vmem:[#allocation13 + $0xb8] sm:$0xf0]  ;;  %v9853_v22 = vld [vmem:[#allocation13 + $0x80] sm:$0xf]  ;;  %v11499_v51 = vld [vmem:[#allocation13 + $0x44] sm:$0xf] }
 0x3d6   :  { %4326 = vmatpush.bf16.msra.mxu0 %v9710_v60  ;;  %4339 = vmatpush.bf16.msra.mxu1 %v9714_v10  ;;  %v9901_v60 = vld [vmem:[#allocation13 + $0xe0] sm:$0xf]  ;;  %v9903_v10 = vld [vmem:[#allocation13 + $0xf0] sm:$0xf0] }
 0x3d7   :  { %4352 = vmatpush.bf16.msra.mxu2 %v9718_v47  ;;  %4365 = vmatpush.bf16.msra.mxu3 %v9722_v28  ;;  %v9902_v47 = vor.u32 %v11521_v13, %v9901_v60  ;;  %v9906_v14 = vor.u32 %v11519_v32, %v9903_v10  ;;  %v11522_v28 = vld [vmem:[#allocation13 + $0xf4] sm:$0xf0]  ;;  %v11508_v13 = vld [vmem:[#allocation13 + $0x8c] sm:$0xf]  ;;  %v9863_v32 = vld [vmem:[#allocation13 + $0x98] sm:$0xf0] }
 0x3d8   :  { %v9910_v52 = vor.u32 %v11522_v28, %v9909_v21  ;;  %v9866_v10 = vor.u32 %v11508_v13, %v9863_v32  ;;  %v13452_v21 = vld [vmem:[#allocation35_spill] sm:$0xff]  ;;  %v11497_v13 = vld [vmem:[#allocation13 + $0x2c] sm:$0xf0]  ;;  %v11495_v32 = vld [vmem:[#allocation13 + $0x24] sm:$0xf] }
 0x3d9   :  { %v618_v28 = vadd.f32 %v13452_v21, %v12394_v20 }
 0x3da   :  { %4327 = vmatpush.bf16.msra.mxu0 %v9694_v3  ;;  %4340 = vmatpush.bf16.msra.mxu1 %v9698_v35  ;;  %v9885_v3 = vld [vmem:[#allocation13 + $0xc0] sm:$0xf]  ;;  %v11515_v35 = vld [vmem:[#allocation13 + $0xc4] sm:$0xf] }
 0x3db   :  { %4353 = vmatpush.bf16.msra.mxu2 %v9702_v53  ;;  %4366 = vmatpush.bf16.msra.mxu3 %v9706_v29  ;;  %v9886_v63 = vor.u32 %v11517_v48, %v9885_v3  ;;  %v9887_v53 = vld [vmem:[#allocation13 + $0xd0] sm:$0xf0]  ;;  %v11518_v29 = vld [vmem:[#allocation13 + $0xd4] sm:$0xf0] }
 0x3dc   :  { %v9890_v16 = vor.u32 %v11515_v35, %v9887_v53  ;;  %v9894_v5 = vor.u32 %v11518_v29, %v9893_v15  ;;  %v9845_v35 = vld [vmem:[#allocation13 + $0x68] sm:$0xf]  ;;  %v11506_v53 = vld [vmem:[#allocation13 + $0x74] sm:$0xf0] }
 0x3de   :  { %4328 = vmatpush.bf16.msra.mxu0 %v9678_v30  ;;  %4341 = vmatpush.bf16.msra.mxu1 %v9682_v8  ;;  %v9898_v30 = vor.u32 %v11516_v55, %v9895_v12  ;;  %v9870_v8 = vor.u32 %v11513_v36, %v9869_v24  ;;  %v9846_v55 = vor.u32 %v11506_v53, %v9845_v35  ;;  %v11504_v12 = vld [vmem:[#allocation13 + $0x6c] sm:$0xf] }
 0x3df   :  { %4354 = vmatpush.bf16.msra.mxu2 %v9686_v31  ;;  %4367 = vmatpush.bf16.msra.mxu3 %v9690_v38  ;;  %v9871_v31 = vld [vmem:[#allocation13 + $0xb0] sm:$0xf0] }
 0x3e0   :  { %v9874_v38 = vor.u32 %v11511_v33, %v9871_v31  ;;  %v9821_v33 = vld [vmem:[#allocation13 + $0x40] sm:$0xf] }
 0x3e2   :  { %4329 = vmatpush.bf16.msra.mxu0 %v9662_v49  ;;  %4342 = vmatpush.bf16.msra.mxu1 %v9666_v23  ;;  %v9882_v49 = vor.u32 %v11512_v41, %v9879_v37  ;;  %v9854_v23 = vor.u32 %v11509_v0, %v9853_v22  ;;  %v9826_v37 = vor.u32 %v11499_v51, %v9823_v40  ;;  %v11500_v22 = vld [vmem:[#allocation13 + $0x4c] sm:$0xf]  ;;  %v9831_v0 = vld [vmem:[#allocation13 + $0x58] sm:$0xf0] }
 0x3e3   :  { %4355 = vmatpush.bf16.msra.mxu2 %v9670_v25  ;;  %4368 = vmatpush.bf16.msra.mxu3 %v9674_v9  ;;  %v9855_v25 = vld [vmem:[#allocation13 + $0x90] sm:$0xf0]  ;;  %v9862_v9 = vor.u32 %v11510_v1, %v9861_v18  ;;  %v9834_v18 = vor.u32 %v11500_v22, %v9831_v0  ;;  %v11492_v51 = vld [vmem:[#allocation13 + $0xc] sm:$0xf] }
 0x3e4   :  { %v9858_v60 = vor.u32 %v11507_v54, %v9855_v25  ;;  %v13454_v54 = vld [vmem:[#allocation37_spill] sm:$0xff] }
 0x3e6   :  { %4575 = vmatpush.bf16.msrb.mxu0 %v9902_v47  ;;  %4588 = vmatpush.bf16.msrb.mxu1 %v9906_v14  ;;  %v13451_v47 = vld [vmem:[#allocation33_spill] sm:$0xff] }
 0x3e7   :  { %4601 = vmatpush.bf16.msrb.mxu2 %v9910_v52  ;;  %4614 = vmatpush.bf16.msrb.mxu3 %v9914_v61  ;;  %v589_v14 = vadd.f32 %v13451_v47, %v12390_v17  ;;  %v11505_v52 = vld [vmem:[#allocation13 + $0x6c] sm:$0xf0] }
 0x3e8   :  { %v9838_v61 = vor.u32 %v11505_v52, %v9837_v62  ;;  %v9807_v62 = vld [vmem:[#allocation13 + $0x30] sm:$0xf0]  ;;  %v9813_v52 = vld [vmem:[#allocation13 + $0x28] sm:$0xf] }
 0x3ea   :  { %4576 = vmatpush.bf16.msrb.mxu0 %v9886_v63  ;;  %4589 = vmatpush.bf16.msrb.mxu1 %v9890_v16  ;;  %v9839_v63 = vld [vmem:[#allocation13 + $0x70] sm:$0xf0] }
 0x3eb   :  { %4602 = vmatpush.bf16.msrb.mxu2 %v9894_v5  ;;  %4615 = vmatpush.bf16.msrb.mxu3 %v9898_v30  ;;  %v9842_v29 = vor.u32 %v11503_v19, %v9839_v63  ;;  %v9847_v5 = vld [vmem:[#allocation13 + $0x78] sm:$0xf0]  ;;  %v11498_v19 = vld [vmem:[#allocation13 + $0x34] sm:$0xf0] }
 0x3ec   :  { %v9850_v30 = vor.u32 %v11504_v12, %v9847_v5  ;;  %v9815_v63 = vld [vmem:[#allocation13 + $0x38] sm:$0xf0] }
 0x3ee   :  { %4577 = vmatpush.bf16.msrb.mxu0 %v9870_v8  ;;  %4590 = vmatpush.bf16.msrb.mxu1 %v9874_v38  ;;  %v11501_v8 = vld [vmem:[#allocation13 + $0x4c] sm:$0xf0]  ;;  %v9829_v38 = vld [vmem:[#allocation13 + $0x48] sm:$0xf] }
 0x3ef   :  { %4603 = vmatpush.bf16.msrb.mxu2 %v9878_v45  ;;  %4616 = vmatpush.bf16.msrb.mxu3 %v9882_v49  ;;  %v9822_v31 = vor.u32 %v11501_v8, %v9821_v33  ;;  %v13453_v45 = vld [vmem:[#allocation36_spill] sm:$0xff]  ;;  %v11502_v49 = vld [vmem:[#allocation13 + $0x54] sm:$0xf0] }
 0x3f0   :  { %v647_v41 = vadd.f32 %v13453_v45, %v12408_v26  ;;  %v9830_v25 = vor.u32 %v11502_v49, %v9829_v38  ;;  %v9799_v45 = vld [vmem:[#allocation13 + $0x18] sm:$0xf0] }
 0x3f1   :  { %v9802_v22 = vor.u32 %v11492_v51, %v9799_v45 }
 0x3f2   :  { %4578 = vmatpush.bf16.msrb.mxu0 %v9854_v23  ;;  %4591 = vmatpush.bf16.msrb.mxu1 %v9858_v60  ;;  %v676_v23 = vadd.f32 %v13454_v54, %v12410_v27 }
 0x3f3   :  { %4604 = vmatpush.bf16.msrb.mxu2 %v9862_v9  ;;  %4617 = vmatpush.bf16.msrb.mxu3 %v9866_v10  ;;  %v9805_v9 = vld [vmem:[#allocation13 + $0x20] sm:$0xf] }
 0x3f6   :  { %4579 = vmatpush.bf16.msrb.mxu0 %v9838_v61  ;;  %4592 = vmatpush.bf16.msrb.mxu1 %v9842_v29  ;;  %v11496_v61 = vld [vmem:[#allocation13 + $0x2c] sm:$0xf]  ;;  %v11493_v29 = vld [vmem:[#allocation13 + $0xc] sm:$0xf0] }
 0x3f7   :  { %4605 = vmatpush.bf16.msrb.mxu2 %v9846_v55  ;;  %4618 = vmatpush.bf16.msrb.mxu3 %v9850_v30  ;;  %v9818_v53 = vor.u32 %v11496_v61, %v9815_v63  ;;  %v11491_v55 = vld [vmem:[#allocation13 + $0x4] sm:$0xf]  ;;  %v10029_v63 = vld [vmem:[#allocation11 + $0xe0] sm:$0xf] }
 0x3fa   :  { %4580 = vmatpush.bf16.msrb.mxu0 %v9822_v31  ;;  %4593 = vmatpush.bf16.msrb.mxu1 %v9826_v37  ;;  %v11494_v31 = vld [vmem:[#allocation13 + $0x14] sm:$0xf0] }
 0x3fb   :  { %4606 = vmatpush.bf16.msrb.mxu2 %v9830_v25  ;;  %4619 = vmatpush.bf16.msrb.mxu3 %v9834_v18 }
 0x3ff   :  { %4620 = vmatpush.bf16.msrb.mxu3 %v9818_v53  ;;  %v11553_v53 = vld [vmem:[#allocation11 + $0xec] sm:$0xf0] }
 0x400   :  { %v10030_v51 = vor.u32 %v11553_v53, %v10029_v63  ;;  %v10005_v63 = vld [vmem:[#allocation11 + $0xa8] sm:$0xf] }
 0x403   :  { %4621 = vmatpush.bf16.msrb.mxu3 %v9802_v22  ;;  %v10015_v22 = vld [vmem:[#allocation11 + $0xd0] sm:$0xf0] }
 0x440   :  { %v3787_v3 = vpop.f32.mrf.mxu0  ;;  %v3800_v48 = vpop.f32.mrf.mxu1 }
 0x441   :  { %v3830_v15 = vadd.f32 %v3787_v3, %v589_v14  ;;  %v3831_v16 = vadd.f32 %v3800_v48, %v618_v28  ;;  %v9806_v28 = vor.u32 %v11497_v13, %v9805_v9  ;;  %v9810_v3 = vor.u32 %v11495_v32, %v9807_v62  ;;  %v13456_v9 = vld [vmem:[#allocation55_spill] sm:$0xff]  ;;  %v13457_v62 = vld [vmem:[#allocation56_spill] sm:$0xff] }
 0x442   :  { %v9814_v48 = vor.u32 %v11498_v19, %v9813_v52  ;;  %v13458_v19 = vld [vmem:[#allocation58_spill] sm:$0xff] }
 0x443   :  { %v4087_v24 = vmul.f32 0.5, %v3830_v15  ;;  %v4091_v36 = vmul.f32 0.5, %v3831_v16  ;;  %v9789_v16 = vld [vmem:[#allocation13] sm:$0xf]  ;;  %4581 = vmatpush.bf16.msrb.mxu0 %v9806_v28  ;;  %4594 = vmatpush.bf16.msrb.mxu1 %v9810_v3 }
 0x444   :  { %v9790_v30 = vor.u32 %v11493_v29, %v9789_v16  ;;  %4607 = vmatpush.bf16.msrb.mxu2 %v9814_v48 }
 0x445   :  { %11907 = vtanh.f32 %v4087_v24  ;;  %v9791_v24 = vld [vmem:[#allocation13 + $0x10] sm:$0xf0] }
 0x446   :  { %11909 = vtanh.f32 %v4091_v36  ;;  %v9797_v36 = vld [vmem:[#allocation13 + $0x8] sm:$0xf]  ;;  %v9794_v8 = vor.u32 %v11491_v55, %v9791_v24  ;;  %v10031_v55 = vld [vmem:[#allocation11 + $0xf0] sm:$0xf0]  ;;  %v11554_v24 = vld [vmem:[#allocation11 + $0xf4] sm:$0xf0] }
 0x447   :  { %v3813_v1 = vpop.f32.mrf.mxu2  ;;  %v3826_v60 = vpop.f32.mrf.mxu3  ;;  %v9798_v38 = vor.u32 %v11494_v31, %v9797_v36  ;;  %4582 = vmatpush.bf16.msrb.mxu0 %v9790_v30  ;;  %v11552_v36 = vld [vmem:[#allocation11 + $0xec] sm:$0xf] }
 0x448   :  { %v3832_v10 = vadd.f32 %v3813_v1, %v647_v41  ;;  %v3833_v47 = vadd.f32 %v3826_v60, %v676_v23  ;;  %v3789_v14 = vpop.f32.mrf.mxu0  ;;  %v3802_v21 = vpop.f32.mrf.mxu1  ;;  %4595 = vmatpush.bf16.msrb.mxu1 %v9794_v8  ;;  %v13455_v1 = vld [vmem:[#allocation54_spill] sm:$0xff] }
 0x449   :  { %4608 = vmatpush.bf16.msrb.mxu2 %v9798_v38  ;;  %v11549_v38 = vld [vmem:[#allocation11 + $0xcc] sm:$0xf0] }
 0x44a   :  { %11911 = vtanh.f32 %v3832_v10  ;;  %v4096_v35 = vmul.f32 0.5, %v3833_v47 }
 0x44b   :  { %v11908_v15 = vpop.eup %11907 }
 0x44c   :  { %v11910_v12 = vpop.eup %11909  ;;  %v4089_v5 = vmul.f32 0.5, %v11908_v15  ;;  %11913 = vtanh.f32 %v4096_v35  ;;  %v11551_v15 = vld [vmem:[#allocation11 + $0xe4] sm:$0xf] }
 0x44d   :  { %v4093_v33 = vmul.f32 0.5, %v11910_v12  ;;  %v10037_v12 = vld [vmem:[#allocation11 + $0xe8] sm:$0xf] }
 0x44e   :  { %v4090_v40 = vadd.f32 0.5, %v4089_v5 }
 0x44f   :  { %v4094_v41 = vadd.f32 0.5, %v4093_v33  ;;  %v3815_v37 = vpop.f32.mrf.mxu2  ;;  %v3828_v49 = vpop.f32.mrf.mxu3  ;;  %v10039_v33 = vld [vmem:[#allocation11 + $0xf8] sm:$0xf0] }
 0x450   :  { %v11912_v0 = vpop.eup %11911  ;;  %v10034_v37 = vor.u32 %v11551_v15, %v10031_v55  ;;  %v11547_v49 = vld [vmem:[#allocation11 + $0xc4] sm:$0xf]  ;;  %v11546_v15 = vld [vmem:[#allocation11 + $0xb4] sm:$0xf0] }
 0x451   :  { %v4113_v54 = vmul.f32 %v4094_v41, %v12677_v34  ;;  %v4114_v23 = vmul.f32 %v11912_v0, %v4090_v40  ;;  %v4040_v25 = vpop.f32.mrf.mxu0  ;;  %v4053_v18 = vpop.f32.mrf.mxu1  ;;  %v10013_v40 = vld [vmem:[#allocation11 + $0xc0] sm:$0xf] }
 0x452   :  { %v4083_v60 = vadd.f32 %v4040_v25, %v13455_v1  ;;  %v4084_v13 = vadd.f32 %v4053_v18, %v13456_v9  ;;  %v11914_v32 = vpop.eup %11913  ;;  %v10021_v25 = vld [vmem:[#allocation11 + $0xc8] sm:$0xf]  ;;  %v11550_v18 = vld [vmem:[#allocation11 + $0xd4] sm:$0xf0] }
 0x453   :  { %v12707_v10 = vadd.f32 %v4114_v23, %v4113_v54  ;;  %v4098_v21 = vmul.f32 0.5, %v11914_v32  ;;  %v10038_v54 = vor.u32 %v11554_v24, %v10037_v12  ;;  %v10042_v23 = vor.u32 %v11552_v36, %v10039_v33  ;;  %v10023_v32 = vld [vmem:[#allocation11 + $0xd8] sm:$0xf0]  ;;  %v9981_v12 = vld [vmem:[#allocation11 + $0x80] sm:$0xf] }
 0x454   :  { %v4100_v47 = vmul.f32 0.5, %v4083_v60  ;;  %v4104_v14 = vmul.f32 0.5, %v4084_v13  ;;  %v11548_v13 = vld [vmem:[#allocation11 + $0xcc] sm:$0xf]  ;;  %v11539_v24 = vld [vmem:[#allocation11 + $0x84] sm:$0xf]  ;;  %v10006_v33 = vor.u32 %v11546_v15, %v10005_v63 }
 0x455   :  { %11915 = vtanh.f32 %v12707_v10  ;;  %v4099_v35 = vadd.f32 0.5, %v4098_v21  ;;  %v9957_v63 = vld [vmem:[#allocation11 + $0x48] sm:$0xf] }
 0x456   :  { %11917 = vtanh.f32 %v4100_v47 }
 0x457   :  { %11919 = vtanh.f32 %v4104_v14  ;;  %v10014_v14 = vor.u32 %v11549_v38, %v10013_v40  ;;  %v11542_v40 = vld [vmem:[#allocation11 + $0x94] sm:$0xf0]  ;;  %v11540_v38 = vld [vmem:[#allocation11 + $0x8c] sm:$0xf] }
 0x458   :  { %v4066_v34 = vpop.f32.mrf.mxu2  ;;  %v4079_v28 = vpop.f32.mrf.mxu3 }
 0x459   :  { %v4085_v52 = vadd.f32 %v4066_v34, %v13457_v62  ;;  %v4086_v3 = vadd.f32 %v4079_v28, %v13458_v19  ;;  %v4042_v48 = vpop.f32.mrf.mxu0  ;;  %v4055_v61 = vpop.f32.mrf.mxu1  ;;  %v10018_v28 = vor.u32 %v11547_v49, %v10015_v22  ;;  %v9997_v62 = vld [vmem:[#allocation11 + $0xa0] sm:$0xf]  ;;  %v10022_v19 = vor.u32 %v11550_v18, %v10021_v25 }
 0x45a   :  { %v11543_v48 = vld [vmem:[#allocation11 + $0xa4] sm:$0xf]  ;;  %v9999_v61 = vld [vmem:[#allocation11 + $0xb0] sm:$0xf0]  ;;  %v9965_v18 = vld [vmem:[#allocation11 + $0x60] sm:$0xf] }
 0x45b   :  { %v11916_v16 = vpop.eup %11915  ;;  %11921 = vtanh.f32 %v4085_v52  ;;  %v4109_v29 = vmul.f32 0.5, %v4086_v3  ;;  %v11545_v52 = vld [vmem:[#allocation11 + $0xac] sm:$0xf0]  ;;  %v10026_v3 = vor.u32 %v11548_v13, %v10023_v32  ;;  %v10002_v55 = vor.u32 %v11543_v48, %v9999_v61  ;;  %v9967_v13 = vld [vmem:[#allocation11 + $0x70] sm:$0xf0] }
 0x45c   :  { %v11918_v5 = vpop.eup %11917  ;;  %v12712_v30 = vmul.f32 %v11916_v16, %v4099_v35  ;;  %v11544_v16 = vld [vmem:[#allocation11 + $0xac] sm:$0xf]  ;;  %v9973_v32 = vld [vmem:[#allocation11 + $0x68] sm:$0xf]  ;;  %v9951_v61 = vld [vmem:[#allocation11 + $0x50] sm:$0xf0] }
 0x45d   :  { %v11920_v8 = vpop.eup %11919  ;;  %v4102_v31 = vmul.f32 0.5, %v11918_v5  ;;  %11923 = vtanh.f32 %v4109_v29  ;;  %v10007_v29 = vld [vmem:[#allocation11 + $0xb8] sm:$0xf0]  ;;  %v11541_v5 = vld [vmem:[#allocation11 + $0x8c] sm:$0xf0] }
 0x45e   :  { %v4129_v45 = vpack.c.bf16 %v12712_v30, %v12712_v30  ;;  %v4106_v41 = vmul.f32 0.5, %v11920_v8  ;;  %v10010_v8 = vor.u32 %v11544_v16, %v10007_v29  ;;  %v11532_v29 = vld [vmem:[#allocation11 + $0x4c] sm:$0xf] }
 0x45f   :  { %v4103_v0 = vadd.f32 0.5, %v4102_v31  ;;  %v9983_v31 = vld [vmem:[#allocation11 + $0x90] sm:$0xf0] }
 0x460   :  { %v4107_v1 = vadd.f32 0.5, %v4106_v41  ;;  %v4068_v60 = vpop.f32.mrf.mxu2  ;;  %v4081_v9 = vpop.f32.mrf.mxu3  ;;  %4330 = vmatmul.bf16.vlgmr.msra.gmra.mxu0 %v4129_v45  ;;  %4343 = vmatmul.bf16.vlgmr.msra.gmra.mxu1 %v4129_v45  ;;  %v9982_v41 = vor.u32 %v11541_v5, %v9981_v12  ;;  %v9933_v12 = vld [vmem:[#allocation11 + $0x20] sm:$0xf]  ;;  %v11529_v5 = vld [vmem:[#allocation11 + $0x2c] sm:$0xf0] }
 0x461   :  { %v11922_v47 = vpop.eup %11921  ;;  %4356 = vmatmul.bf16.vlgmr.msra.gmra.mxu2 %v4129_v45  ;;  %4369 = vmatmul.bf16.vlgmr.msra.gmra.mxu3 %v4129_v45  ;;  %v9991_v45 = vld [vmem:[#allocation11 + $0x98] sm:$0xf0]  ;;  %v11535_v60 = vld [vmem:[#allocation11 + $0x64] sm:$0xf] }
 0x462   :  { %v4116_v21 = vmul.f32 %v4107_v1, %v12689_v7  ;;  %v4117_v34 = vmul.f32 %v11922_v47, %v4103_v0  ;;  %4866 = vmatpush.bf16.msra.mxu0 %v10030_v51  ;;  %4879 = vmatpush.bf16.msra.mxu1 %v10034_v37  ;;  %v9998_v7 = vor.u32 %v11545_v52, %v9997_v62  ;;  %v9989_v51 = vld [vmem:[#allocation11 + $0x88] sm:$0xf]  ;;  %v11537_v1 = vld [vmem:[#allocation11 + $0x6c] sm:$0xf0]  ;;  %v11538_v47 = vld [vmem:[#allocation11 + $0x74] sm:$0xf0] }
 0x463   :  { %4892 = vmatpush.bf16.msra.mxu2 %v10038_v54  ;;  %4905 = vmatpush.bf16.msra.mxu3 %v10042_v23  ;;  %v11924_v35 = vpop.eup %11923  ;;  %v9986_v37 = vor.u32 %v11539_v24, %v9983_v31  ;;  %v9990_v22 = vor.u32 %v11542_v40, %v9989_v51  ;;  %v9994_v0 = vor.u32 %v11540_v38, %v9991_v45  ;;  %v9949_v52 = vld [vmem:[#allocation11 + $0x40] sm:$0xf]  ;;  %v11527_v24 = vld [vmem:[#allocation11 + $0x24] sm:$0xf]  ;;  %v11530_v31 = vld [vmem:[#allocation11 + $0x34] sm:$0xf0] }
 0x464   :  { %v12717_v53 = vadd.f32 %v4117_v34, %v4116_v21  ;;  %v4111_v36 = vmul.f32 0.5, %v11924_v35  ;;  %v9966_v9 = vor.u32 %v11537_v1, %v9965_v18  ;;  %v9974_v21 = vor.u32 %v11538_v47, %v9973_v32  ;;  %v11536_v34 = vld [vmem:[#allocation11 + $0x6c] sm:$0xf]  ;;  %v11534_v35 = vld [vmem:[#allocation11 + $0x54] sm:$0xf0] }
 0x465   :  { %v9958_v16 = vor.u32 %v11534_v35, %v9957_v63  ;;  %v11528_v38 = vld [vmem:[#allocation11 + $0x2c] sm:$0xf]  ;;  %v9943_v45 = vld [vmem:[#allocation11 + $0x38] sm:$0xf0]  ;;  %v11526_v18 = vld [vmem:[#allocation11 + $0x14] sm:$0xf0] }
 0x466   :  { %11925 = vtanh.f32 %v12717_v53  ;;  %4867 = vmatpush.bf16.msra.mxu0 %v10014_v14  ;;  %4880 = vmatpush.bf16.msra.mxu1 %v10018_v28  ;;  %v4112_v49 = vadd.f32 0.5, %v4111_v36  ;;  %v9970_v14 = vor.u32 %v11535_v60, %v9967_v13  ;;  %v9975_v28 = vld [vmem:[#allocation11 + $0x78] sm:$0xf0]  ;;  %v9934_v36 = vor.u32 %v11529_v5, %v9933_v12  ;;  %v10157_v32 = vld [vmem:[#allocation13 + $0xe0] sm:$0xf] }
 0x467   :  { %4893 = vmatpush.bf16.msra.mxu2 %v10022_v19  ;;  %4906 = vmatpush.bf16.msra.mxu3 %v10026_v3  ;;  %v9978_v62 = vor.u32 %v11536_v34, %v9975_v28  ;;  %v11533_v19 = vld [vmem:[#allocation11 + $0x4c] sm:$0xf0]  ;;  %v11531_v3 = vld [vmem:[#allocation11 + $0x44] sm:$0xf]  ;;  %v9927_v13 = vld [vmem:[#allocation11 + $0x18] sm:$0xf0] }
 0x468   :  { %v9950_v48 = vor.u32 %v11533_v19, %v9949_v52  ;;  %v9954_v15 = vor.u32 %v11531_v3, %v9951_v61  ;;  %v10159_v34 = vld [vmem:[#allocation13 + $0xf0] sm:$0xf0]  ;;  %v10165_v52 = vld [vmem:[#allocation13 + $0xe8] sm:$0xf]  ;;  %v11586_v19 = vld [vmem:[#allocation13 + $0xf4] sm:$0xf0] }
 0x469   :  { %v11584_v3 = vld [vmem:[#allocation13 + $0xec] sm:$0xf]  ;;  %v10167_v61 = vld [vmem:[#allocation13 + $0xf8] sm:$0xf0]  ;;  %v10141_v63 = vld [vmem:[#allocation13 + $0xc0] sm:$0xf] }
 0x46a   :  { %4868 = vmatpush.bf16.msra.mxu0 %v9998_v7  ;;  %4881 = vmatpush.bf16.msra.mxu1 %v10002_v55  ;;  %v9959_v7 = vld [vmem:[#allocation11 + $0x58] sm:$0xf0]  ;;  %v11581_v35 = vld [vmem:[#allocation13 + $0xcc] sm:$0xf0]  ;;  %v11582_v5 = vld [vmem:[#allocation13 + $0xd4] sm:$0xf0] }
 0x46b   :  { %4894 = vmatpush.bf16.msra.mxu2 %v10006_v33  ;;  %4907 = vmatpush.bf16.msra.mxu3 %v10010_v8  ;;  %v9962_v55 = vor.u32 %v11532_v29, %v9959_v7  ;;  %v9935_v33 = vld [vmem:[#allocation11 + $0x30] sm:$0xf0]  ;;  %v9941_v8 = vld [vmem:[#allocation11 + $0x28] sm:$0xf]  ;;  %v11579_v29 = vld [vmem:[#allocation13 + $0xc4] sm:$0xf] }
 0x46c   :  { %v11926_v54 = vpop.eup %11925  ;;  %v9938_v51 = vor.u32 %v11527_v24, %v9935_v33  ;;  %v9942_v40 = vor.u32 %v11530_v31, %v9941_v8  ;;  %v10143_v7 = vld [vmem:[#allocation13 + $0xd0] sm:$0xf0]  ;;  %v11580_v24 = vld [vmem:[#allocation13 + $0xcc] sm:$0xf]  ;;  %v10125_v31 = vld [vmem:[#allocation13 + $0xa0] sm:$0xf] }
 0x46d   :  { %v12720_v23 = vmul.f32 %v11926_v54, %v4112_v49  ;;  %v11525_v49 = vld [vmem:[#allocation11 + $0xc] sm:$0xf0]  ;;  %v9919_v54 = vld [vmem:[#allocation11 + $0x10] sm:$0xf0]  ;;  %v10146_v12 = vor.u32 %v11579_v29, %v10143_v7  ;;  %v13459_v29 = vld [vmem:[#allocation38_spill] sm:$0xff] }
 0x46e   :  { %4869 = vmatpush.bf16.msra.mxu0 %v9982_v41  ;;  %4882 = vmatpush.bf16.msra.mxu1 %v9986_v37  ;;  %v9946_v41 = vor.u32 %v11528_v38, %v9943_v45  ;;  %v9917_v37 = vld [vmem:[#allocation11] sm:$0xf]  ;;  %v10127_v45 = vld [vmem:[#allocation13 + $0xb0] sm:$0xf0] }
 0x46f   :  { %v4382_v25 = vpack.c.bf16 %v12720_v23, %v12720_v23  ;;  %4895 = vmatpush.bf16.msra.mxu2 %v9990_v22  ;;  %4908 = vmatpush.bf16.msra.mxu3 %v9994_v0  ;;  %v11523_v22 = vld [vmem:[#allocation11 + $0x4] sm:$0xf]  ;;  %v9918_v0 = vor.u32 %v11525_v49, %v9917_v37  ;;  %v11578_v37 = vld [vmem:[#allocation13 + $0xb4] sm:$0xf0] }
 0x470   :  { %v9922_v1 = vor.u32 %v11523_v22, %v9919_v54  ;;  %v10135_v54 = vld [vmem:[#allocation13 + $0xb8] sm:$0xf0] }
 0x471   :  { %4583 = vmatmul.bf16.vlgmr.msrb.gmra.mxu0 %v4382_v25  ;;  %4596 = vmatmul.bf16.vlgmr.msrb.gmra.mxu1 %v4382_v25 }
 0x472   :  { %4609 = vmatmul.bf16.vlgmr.msrb.gmra.mxu2 %v4382_v25  ;;  %4622 = vmatmul.bf16.vlgmr.msrb.gmra.mxu3 %v4382_v25  ;;  %v9925_v25 = vld [vmem:[#allocation11 + $0x8] sm:$0xf] }
 0x473   :  { %4870 = vmatpush.bf16.msra.mxu0 %v9966_v9  ;;  %4883 = vmatpush.bf16.msra.mxu1 %v9970_v14  ;;  %v9926_v60 = vor.u32 %v11526_v18, %v9925_v25  ;;  %v11524_v9 = vld [vmem:[#allocation11 + $0xc] sm:$0xf]  ;;  %v11585_v14 = vld [vmem:[#allocation13 + $0xec] sm:$0xf0]  ;;  %v10109_v18 = vld [vmem:[#allocation13 + $0x80] sm:$0xf] }
 0x474   :  { %4896 = vmatpush.bf16.msra.mxu2 %v9974_v21  ;;  %4909 = vmatpush.bf16.msra.mxu3 %v9978_v62  ;;  %v9930_v47 = vor.u32 %v11524_v9, %v9927_v13  ;;  %v11583_v21 = vld [vmem:[#allocation13 + $0xe4] sm:$0xf]  ;;  %v10158_v28 = vor.u32 %v11585_v14, %v10157_v32  ;;  %v10111_v13 = vld [vmem:[#allocation13 + $0x90] sm:$0xf0]  ;;  %v10117_v32 = vld [vmem:[#allocation13 + $0x88] sm:$0xf] }
 0x475   :  { %v10162_v62 = vor.u32 %v11583_v21, %v10159_v34  ;;  %v11572_v34 = vld [vmem:[#allocation13 + $0x8c] sm:$0xf] }
 0x477   :  { %4871 = vmatpush.bf16.msra.mxu0 %v9950_v48  ;;  %4884 = vmatpush.bf16.msra.mxu1 %v9954_v15  ;;  %v10166_v48 = vor.u32 %v11586_v19, %v10165_v52  ;;  %v10170_v15 = vor.u32 %v11584_v3, %v10167_v61  ;;  %v10093_v52 = vld [vmem:[#allocation13 + $0x60] sm:$0xf]  ;;  %v11569_v19 = vld [vmem:[#allocation13 + $0x6c] sm:$0xf0]  ;;  %v11567_v3 = vld [vmem:[#allocation13 + $0x64] sm:$0xf] }
 0x478   :  { %4897 = vmatpush.bf16.msra.mxu2 %v9958_v16  ;;  %4910 = vmatpush.bf16.msra.mxu3 %v9962_v55  ;;  %v10142_v16 = vor.u32 %v11581_v35, %v10141_v63  ;;  %v10149_v55 = vld [vmem:[#allocation13 + $0xc8] sm:$0xf]  ;;  %v10094_v63 = vor.u32 %v11569_v19, %v10093_v52  ;;  %v10095_v35 = vld [vmem:[#allocation13 + $0x70] sm:$0xf0] }
 0x479   :  { %v10150_v33 = vor.u32 %v11582_v5, %v10149_v55  ;;  %v13460_v55 = vld [vmem:[#allocation39_spill] sm:$0xff]  ;;  %v10098_v5 = vor.u32 %v11567_v3, %v10095_v35  ;;  %v10063_v3 = vld [vmem:[#allocation13 + $0x30] sm:$0xf0] }
 0x47b   :  { %4872 = vmatpush.bf16.msra.mxu0 %v9934_v36  ;;  %4885 = vmatpush.bf16.msra.mxu1 %v9938_v51  ;;  %v10151_v36 = vld [vmem:[#allocation13 + $0xd8] sm:$0xf0]  ;;  %v11577_v51 = vld [vmem:[#allocation13 + $0xac] sm:$0xf0] }
 0x47c   :  { %4898 = vmatpush.bf16.msra.mxu2 %v9942_v40  ;;  %4911 = vmatpush.bf16.msra.mxu3 %v9946_v41  ;;  %v10154_v8 = vor.u32 %v11580_v24, %v10151_v36  ;;  %v11575_v40 = vld [vmem:[#allocation13 + $0xa4] sm:$0xf]  ;;  %v10126_v38 = vor.u32 %v11577_v51, %v10125_v31  ;;  %v10133_v41 = vld [vmem:[#allocation13 + $0xa8] sm:$0xf]  ;;  %v11568_v36 = vld [vmem:[#allocation13 + $0x6c] sm:$0xf] }
 0x47d   :  { %v10130_v49 = vor.u32 %v11575_v40, %v10127_v45  ;;  %v10134_v22 = vor.u32 %v11578_v37, %v10133_v41  ;;  %v10077_v40 = vld [vmem:[#allocation13 + $0x40] sm:$0xf]  ;;  %v11563_v41 = vld [vmem:[#allocation13 + $0x44] sm:$0xf]  ;;  %v10079_v37 = vld [vmem:[#allocation13 + $0x50] sm:$0xf0] }
 0x47f   :  { %4873 = vmatpush.bf16.msra.mxu0 %v9918_v0  ;;  %4886 = vmatpush.bf16.msra.mxu1 %v9922_v1  ;;  %v11576_v0 = vld [vmem:[#allocation13 + $0xac] sm:$0xf]  ;;  %v11573_v1 = vld [vmem:[#allocation13 + $0x8c] sm:$0xf0] }
 0x480   :  { %4899 = vmatpush.bf16.msra.mxu2 %v9926_v60  ;;  %4912 = vmatpush.bf16.msra.mxu3 %v9930_v47  ;;  %v10138_v25 = vor.u32 %v11576_v0, %v10135_v54  ;;  %v11571_v60 = vld [vmem:[#allocation13 + $0x84] sm:$0xf]  ;;  %v10110_v9 = vor.u32 %v11573_v1, %v10109_v18  ;;  %v11574_v47 = vld [vmem:[#allocation13 + $0x94] sm:$0xf0]  ;;  %v11564_v54 = vld [vmem:[#allocation13 + $0x4c] sm:$0xf] }
 0x481   :  { %v10114_v14 = vor.u32 %v11571_v60, %v10111_v13  ;;  %v10118_v21 = vor.u32 %v11574_v47, %v10117_v32  ;;  %v11566_v0 = vld [vmem:[#allocation13 + $0x54] sm:$0xf0]  ;;  %v10061_v13 = vld [vmem:[#allocation13 + $0x20] sm:$0xf]  ;;  %v11561_v32 = vld [vmem:[#allocation13 + $0x2c] sm:$0xf0] }
 0x482   :  { %v11559_v47 = vld [vmem:[#allocation13 + $0x24] sm:$0xf]  ;;  %v10062_v19 = vor.u32 %v11561_v32, %v10061_v13  ;;  %v13464_v13 = vld [vmem:[#allocation51_spill] sm:$0xff] }
 0x483   :  { %5119 = vmatpush.bf16.msrb.mxu0 %v10158_v28  ;;  %5132 = vmatpush.bf16.msrb.mxu1 %v10162_v62  ;;  %v10119_v28 = vld [vmem:[#allocation13 + $0x98] sm:$0xf0]  ;;  %v724_v32 = vadd.f32 %v13464_v13, %v12464_v59  ;;  %v13465_v59 = vld [vmem:[#allocation52_spill] sm:$0xff]  ;;  %v13468_v13 = vld [vmem:[#allocation43_spill] sm:$0xff] }
 0x484   :  { %5145 = vmatpush.bf16.msrb.mxu2 %v10166_v48  ;;  %5158 = vmatpush.bf16.msrb.mxu3 %v10170_v15  ;;  %v10122_v62 = vor.u32 %v11572_v34, %v10119_v28  ;;  %v10101_v15 = vld [vmem:[#allocation13 + $0x68] sm:$0xf]  ;;  %v13462_v34 = vld [vmem:[#allocation42_spill] sm:$0xff] }
 0x487   :  { %5120 = vmatpush.bf16.msrb.mxu0 %v10142_v16  ;;  %5133 = vmatpush.bf16.msrb.mxu1 %v10146_v12  ;;  %v11570_v16 = vld [vmem:[#allocation13 + $0x74] sm:$0xf0] }
 0x488   :  { %5146 = vmatpush.bf16.msrb.mxu2 %v10150_v33  ;;  %5159 = vmatpush.bf16.msrb.mxu3 %v10154_v8  ;;  %v10102_v24 = vor.u32 %v11570_v16, %v10101_v15  ;;  %v10103_v33 = vld [vmem:[#allocation13 + $0x78] sm:$0xf0]  ;;  %v11560_v15 = vld [vmem:[#allocation13 + $0x2c] sm:$0xf] }
 0x489   :  { %v10106_v8 = vor.u32 %v11568_v36, %v10103_v33  ;;  %v10071_v16 = vld [vmem:[#allocation13 + $0x38] sm:$0xf0] }
 0x48b   :  { %5121 = vmatpush.bf16.msrb.mxu0 %v10126_v38  ;;  %5134 = vmatpush.bf16.msrb.mxu1 %v10130_v49  ;;  %v11565_v38 = vld [vmem:[#allocation13 + $0x4c] sm:$0xf0]  ;;  %v10085_v49 = vld [vmem:[#allocation13 + $0x48] sm:$0xf] }
 0x48c   :  { %5147 = vmatpush.bf16.msrb.mxu2 %v10134_v22  ;;  %5160 = vmatpush.bf16.msrb.mxu3 %v10138_v25  ;;  %v10078_v45 = vor.u32 %v11565_v38, %v10077_v40  ;;  %v10082_v22 = vor.u32 %v11563_v41, %v10079_v37  ;;  %v10087_v25 = vld [vmem:[#allocation13 + $0x58] sm:$0xf0]  ;;  %v10086_v18 = vor.u32 %v11566_v0, %v10085_v49  ;;  %v11556_v41 = vld [vmem:[#allocation13 + $0xc] sm:$0xf] }
 0x48d   :  { %v10090_v1 = vor.u32 %v11564_v54, %v10087_v25 }
 0x48f   :  { %5122 = vmatpush.bf16.msrb.mxu0 %v10110_v9  ;;  %5135 = vmatpush.bf16.msrb.mxu1 %v10114_v14  ;;  %v13461_v14 = vld [vmem:[#allocation40_spill] sm:$0xff] }
 0x490   :  { %5148 = vmatpush.bf16.msrb.mxu2 %v10118_v21  ;;  %5161 = vmatpush.bf16.msrb.mxu3 %v10122_v62 }
 0x493   :  { %5123 = vmatpush.bf16.msrb.mxu0 %v10094_v63  ;;  %5136 = vmatpush.bf16.msrb.mxu1 %v10098_v5  ;;  %v10066_v63 = vor.u32 %v11559_v47, %v10063_v3  ;;  %v11557_v5 = vld [vmem:[#allocation13 + $0xc] sm:$0xf0] }
 0x494   :  { %5149 = vmatpush.bf16.msrb.mxu2 %v10102_v24  ;;  %5162 = vmatpush.bf16.msrb.mxu3 %v10106_v8  ;;  %v11555_v24 = vld [vmem:[#allocation13 + $0x4] sm:$0xf] }
 0x497   :  { %5124 = vmatpush.bf16.msrb.mxu0 %v10078_v45  ;;  %5137 = vmatpush.bf16.msrb.mxu1 %v10082_v22  ;;  %v11558_v45 = vld [vmem:[#allocation13 + $0x14] sm:$0xf0]  ;;  %v10055_v22 = vld [vmem:[#allocation13 + $0x18] sm:$0xf0] }
 0x498   :  { %5150 = vmatpush.bf16.msrb.mxu2 %v10086_v18  ;;  %5163 = vmatpush.bf16.msrb.mxu3 %v10090_v1  ;;  %v10058_v18 = vor.u32 %v11556_v41, %v10055_v22 }
 0x49b   :  { %5125 = vmatpush.bf16.msrb.mxu0 %v10062_v19  ;;  %5138 = vmatpush.bf16.msrb.mxu1 %v10066_v63 }
 0x4dd   :  { %v4331_v48 = vpop.f32.mrf.mxu0  ;;  %v4344_v61 = vpop.f32.mrf.mxu1 }
 0x4de   :  { %v4374_v7 = vadd.f32 %v4331_v48, %v13459_v29  ;;  %v4375_v12 = vadd.f32 %v4344_v61, %v13460_v55  ;;  %v10069_v48 = vld [vmem:[#allocation13 + $0x28] sm:$0xf]  ;;  %v11562_v61 = vld [vmem:[#allocation13 + $0x34] sm:$0xf0] }
 0x4df   :  { %v10070_v35 = vor.u32 %v11562_v61, %v10069_v48  ;;  %v753_v61 = vadd.f32 %v13465_v59, %v12476_v2 }
 0x4e0   :  { %v4631_v31 = vmul.f32 0.5, %v4374_v7  ;;  %v4635_v51 = vmul.f32 0.5, %v4375_v12  ;;  %v10074_v7 = vor.u32 %v11560_v15, %v10071_v16  ;;  %v10045_v12 = vld [vmem:[#allocation13] sm:$0xf] }
 0x4e1   :  { %v10046_v8 = vor.u32 %v11557_v5, %v10045_v12  ;;  %5151 = vmatpush.bf16.msrb.mxu2 %v10070_v35 }
 0x4e2   :  { %11927 = vtanh.f32 %v4631_v31  ;;  %v10047_v31 = vld [vmem:[#allocation13 + $0x10] sm:$0xf0]  ;;  %5164 = vmatpush.bf16.msrb.mxu3 %v10074_v7 }
 0x4e3   :  { %11929 = vtanh.f32 %v4635_v51  ;;  %v10053_v51 = vld [vmem:[#allocation13 + $0x8] sm:$0xf]  ;;  %v10050_v38 = vor.u32 %v11555_v24, %v10047_v31  ;;  %5126 = vmatpush.bf16.msrb.mxu0 %v10046_v8 }
 0x4e4   :  { %v4357_v60 = vpop.f32.mrf.mxu2  ;;  %v4370_v9 = vpop.f32.mrf.mxu3  ;;  %v10054_v49 = vor.u32 %v11558_v45, %v10053_v51 }
 0x4e5   :  { %v4376_v21 = vadd.f32 %v4357_v60, %v13461_v14  ;;  %v4377_v28 = vadd.f32 %v4370_v9, %v13462_v34  ;;  %v4333_v62 = vpop.f32.mrf.mxu0  ;;  %v4346_v52 = vpop.f32.mrf.mxu1  ;;  %v13463_v60 = vld [vmem:[#allocation49_spill] sm:$0xff]  ;;  %5139 = vmatpush.bf16.msrb.mxu1 %v10050_v38 }
 0x4e6   :  { %v695_v9 = vadd.f32 %v13463_v60, %v12462_v58  ;;  %5152 = vmatpush.bf16.msrb.mxu2 %v10054_v49  ;;  %5165 = vmatpush.bf16.msrb.mxu3 %v10058_v18 }
 0x4e7   :  { %11931 = vtanh.f32 %v4376_v21  ;;  %v4640_v29 = vmul.f32 0.5, %v4377_v28 }
 0x4e8   :  { %v11928_v55 = vpop.eup %11927 }
 0x4e9   :  { %v11930_v36 = vpop.eup %11929  ;;  %v4633_v33 = vmul.f32 0.5, %v11928_v55  ;;  %11933 = vtanh.f32 %v4640_v29 }
 0x4ea   :  { %v4637_v40 = vmul.f32 0.5, %v11930_v36 }
 0x4eb   :  { %v4634_v37 = vadd.f32 0.5, %v4633_v33 }
 0x4ec   :  { %v4638_v0 = vadd.f32 0.5, %v4637_v40  ;;  %v4359_v54 = vpop.f32.mrf.mxu2  ;;  %v4372_v25 = vpop.f32.mrf.mxu3 }
 0x4ed   :  { %v11932_v1 = vpop.eup %11931 }
 0x4ee   :  { %v4657_v47 = vmul.f32 %v4638_v0, %v12707_v10  ;;  %v4658_v14 = vmul.f32 %v11932_v1, %v4634_v37  ;;  %v4584_v21 = vpop.f32.mrf.mxu0  ;;  %v4597_v34 = vpop.f32.mrf.mxu1  ;;  %v13466_v10 = vld [vmem:[#allocation53_spill] sm:$0xff] }
 0x4ef   :  { %v4627_v28 = vadd.f32 %v4584_v21, %v695_v9  ;;  %v4628_v62 = vadd.f32 %v4597_v34, %v724_v32  ;;  %v11934_v52 = vpop.eup %11933  ;;  %v782_v63 = vadd.f32 %v13466_v10, %v12478_v4  ;;  %v623_v32 = vadd.f32 %v13468_v13, %v12394_v20 }
 0x4f0   :  { %v12733_v19 = vadd.f32 %v4658_v14, %v4657_v47  ;;  %v4642_v58 = vmul.f32 0.5, %v11934_v52  ;;  %v13469_v52 = vld [vmem:[#allocation44_spill] sm:$0xff] }
 0x4f1   :  { %v4644_v3 = vmul.f32 0.5, %v4627_v28  ;;  %v4648_v48 = vmul.f32 0.5, %v4628_v62 }
 0x4f2   :  { %11935 = vtanh.f32 %v12733_v19  ;;  %v4643_v12 = vadd.f32 0.5, %v4642_v58 }
 0x4f3   :  { %11937 = vtanh.f32 %v4644_v3  ;;  %v652_v3 = vadd.f32 %v13469_v52, %v12408_v26 }
 0x4f4   :  { %11939 = vtanh.f32 %v4648_v48  ;;  %v13470_v48 = vld [vmem:[#allocation45_spill] sm:$0xff] }
 0x4f5   :  { %v4610_v35 = vpop.f32.mrf.mxu2  ;;  %v4623_v15 = vpop.f32.mrf.mxu3  ;;  %v681_v58 = vadd.f32 %v13470_v48, %v12410_v27 }
 0x4f6   :  { %v4629_v16 = vadd.f32 %v4610_v35, %v753_v61  ;;  %v4630_v29 = vadd.f32 %v4623_v15, %v782_v63  ;;  %v4586_v7 = vpop.f32.mrf.mxu0  ;;  %v4599_v55 = vpop.f32.mrf.mxu1 }
 0x4f8   :  { %v11936_v5 = vpop.eup %11935  ;;  %11941 = vtanh.f32 %v4629_v16  ;;  %v4653_v24 = vmul.f32 0.5, %v4630_v29 }
 0x4f9   :  { %v11938_v36 = vpop.eup %11937  ;;  %v12740_v33 = vmul.f32 %v11936_v5, %v4643_v12 }
 0x4fa   :  { %v11940_v8 = vpop.eup %11939  ;;  %v4646_v31 = vmul.f32 0.5, %v11938_v36  ;;  %11943 = vtanh.f32 %v4653_v24 }
 0x4fb   :  { %v4673_v2 = vpack.c.bf16 %v12740_v33, %v12740_v33  ;;  %v4650_v4 = vmul.f32 0.5, %v11940_v8 }
 0x4fc   :  { %v4647_v51 = vadd.f32 0.5, %v4646_v31 }
 0x4fd   :  { %v4651_v40 = vadd.f32 0.5, %v4650_v4  ;;  %v4612_v38 = vpop.f32.mrf.mxu2  ;;  %v4625_v45 = vpop.f32.mrf.mxu3  ;;  %4874 = vmatmul.bf16.vlgmr.msra.gmra.mxu0 %v4673_v2  ;;  %4887 = vmatmul.bf16.vlgmr.msra.gmra.mxu1 %v4673_v2 }
 0x4fe   :  { %v11942_v41 = vpop.eup %11941  ;;  %4900 = vmatmul.bf16.vlgmr.msra.gmra.mxu2 %v4673_v2  ;;  %4913 = vmatmul.bf16.vlgmr.msra.gmra.mxu3 %v4673_v2  ;;  %v13471_v2 = vld [vmem:[#allocation46_spill] sm:$0xff] }
 0x4ff   :  { %v4660_v37 = vmul.f32 %v4651_v40, %v12717_v53  ;;  %v4661_v49 = vmul.f32 %v11942_v41, %v4647_v51  ;;  %v13467_v53 = vld [vmem:[#allocation41_spill] sm:$0xff]  ;;  %v13472_v51 = vld [vmem:[#allocation47_spill] sm:$0xff] }
 0x500   :  { %v11944_v22 = vpop.eup %11943  ;;  %v594_v9 = vadd.f32 %v13467_v53, %v12390_v17 }
 0x501   :  { %v12745_v0 = vadd.f32 %v4661_v49, %v4660_v37  ;;  %v4655_v54 = vmul.f32 0.5, %v11944_v22 }
 0x503   :  { %11945 = vtanh.f32 %v12745_v0  ;;  %v4656_v25 = vadd.f32 0.5, %v4655_v54 }
 0x509   :  { %v11946_v18 = vpop.eup %11945 }
 0x50a   :  { %v12748_v1 = vmul.f32 %v11946_v18, %v4656_v25  ;;  %v13473_v25 = vld [vmem:[#allocation48_spill] sm:$0xff] }
 0x50c   :  { %v4926_v60 = vpack.c.bf16 %v12748_v1, %v12748_v1 }
 0x50e   :  { %5127 = vmatmul.bf16.vlgmr.msrb.gmra.mxu0 %v4926_v60  ;;  %5140 = vmatmul.bf16.vlgmr.msrb.gmra.mxu1 %v4926_v60 }
 0x50f   :  { %5153 = vmatmul.bf16.vlgmr.msrb.gmra.mxu2 %v4926_v60  ;;  %5166 = vmatmul.bf16.vlgmr.msrb.gmra.mxu3 %v4926_v60 }
 0x57a   :  { %v4875_v47 = vpop.f32.mrf.mxu0  ;;  %v4888_v14 = vpop.f32.mrf.mxu1 }
 0x57b   :  { %v4918_v21 = vadd.f32 %v4875_v47, %v594_v9  ;;  %v4919_v34 = vadd.f32 %v4888_v14, %v623_v32 }
 0x57d   :  { %v5175_v28 = vmul.f32 0.5, %v4918_v21  ;;  %v5179_v62 = vmul.f32 0.5, %v4919_v34 }
 0x57f   :  { %11947 = vtanh.f32 %v5175_v28 }
 0x580   :  { %11949 = vtanh.f32 %v5179_v62 }
 0x581   :  { %v4901_v59 = vpop.f32.mrf.mxu2  ;;  %v4914_v61 = vpop.f32.mrf.mxu3 }
 0x582   :  { %v4920_v17 = vadd.f32 %v4901_v59, %v652_v3  ;;  %v4921_v10 = vadd.f32 %v4914_v61, %v681_v58  ;;  %v4877_v63 = vpop.f32.mrf.mxu0  ;;  %v4890_v20 = vpop.f32.mrf.mxu1 }
 0x584   :  { %11951 = vtanh.f32 %v4920_v17  ;;  %v5184_v35 = vmul.f32 0.5, %v4921_v10 }
 0x585   :  { %v11948_v15 = vpop.eup %11947 }
 0x586   :  { %v11950_v16 = vpop.eup %11949  ;;  %v5177_v29 = vmul.f32 0.5, %v11948_v15  ;;  %11953 = vtanh.f32 %v5184_v35 }
 0x587   :  { %v5181_v7 = vmul.f32 0.5, %v11950_v16 }
 0x588   :  { %v5178_v55 = vadd.f32 0.5, %v5177_v29 }
 0x589   :  { %v5182_v12 = vadd.f32 0.5, %v5181_v7  ;;  %v4903_v26 = vpop.f32.mrf.mxu2  ;;  %v4916_v5 = vpop.f32.mrf.mxu3 }
 0x58a   :  { %v11952_v24 = vpop.eup %11951 }
 0x58b   :  { %v5201_v27 = vmul.f32 %v5182_v12, %v12733_v19  ;;  %v5202_v36 = vmul.f32 %v11952_v24, %v5178_v55  ;;  %v5128_v8 = vpop.f32.mrf.mxu0  ;;  %v5141_v31 = vpop.f32.mrf.mxu1  ;;  %v13474_v19 = vld [vmem:[#allocation50_spill] sm:$0xff] }
 0x58c   :  { %v5171_v4 = vadd.f32 %v5128_v8, %v13471_v2  ;;  %v5172_v40 = vadd.f32 %v5141_v31, %v13472_v51  ;;  %v11954_v38 = vpop.eup %11953 }
 0x58d   :  { %v5203_v45 = vadd.f32 %v5202_v36, %v5201_v27  ;;  %v5186_v49 = vmul.f32 0.5, %v11954_v38 }
 0x58e   :  { %v5188_v41 = vmul.f32 0.5, %v5171_v4  ;;  %v5192_v37 = vmul.f32 0.5, %v5172_v40 }
 0x58f   :  { %11955 = vtanh.f32 %v5203_v45  ;;  %v5187_v13 = vadd.f32 0.5, %v5186_v49 }
 0x590   :  { %11957 = vtanh.f32 %v5188_v41 }
 0x591   :  { %11959 = vtanh.f32 %v5192_v37 }
 0x592   :  { %v5154_v22 = vpop.f32.mrf.mxu2  ;;  %v5167_v54 = vpop.f32.mrf.mxu3 }
 0x593   :  { %v5173_v18 = vadd.f32 %v5154_v22, %v13473_v25  ;;  %v5174_v60 = vadd.f32 %v5167_v54, %v13474_v19  ;;  %v5130_v53 = vpop.f32.mrf.mxu0  ;;  %v5143_v9 = vpop.f32.mrf.mxu1 }
 0x595   :  { %v11956_v32 = vpop.eup %11955  ;;  %11961 = vtanh.f32 %v5173_v18  ;;  %v5197_v47 = vmul.f32 0.5, %v5174_v60 }
 0x596   :  { %v11958_v14 = vpop.eup %11957  ;;  %v12777_v21 = vmul.f32 %v11956_v32, %v5187_v13 }
 0x597   :  { %v11960_v34 = vpop.eup %11959  ;;  %v5190_v28 = vmul.f32 0.5, %v11958_v14  ;;  %11963 = vtanh.f32 %v5197_v47 }
 0x598   :  { %v5194_v62 = vmul.f32 0.5, %v11960_v34 }
 0x599   :  { %v5191_v52 = vadd.f32 0.5, %v5190_v28 }
 0x59a   :  { %v5195_v3 = vadd.f32 0.5, %v5194_v62  ;;  %v5156_v48 = vpop.f32.mrf.mxu2  ;;  %v5169_v58 = vpop.f32.mrf.mxu3 }
 0x59b   :  { %v11962_v59 = vpop.eup %11961 }
 0x59c   :  { %v5204_v61 = vmul.f32 %v5195_v3, %v12745_v0  ;;  %v5205_v17 = vmul.f32 %v11962_v59, %v5191_v52 }
 0x59d   :  { %v11964_v10 = vpop.eup %11963 }
 0x59e   :  { %v5206_v63 = vadd.f32 %v5205_v17, %v5204_v61  ;;  %v5199_v20 = vmul.f32 0.5, %v11964_v10 }
 0x5a0   :  { %11965 = vtanh.f32 %v5206_v63  ;;  %v5200_v35 = vadd.f32 0.5, %v5199_v20 }
 0x5a6   :  { %v11966_v15 = vpop.eup %11965 }
 0x5a7   :  { %v12780_v16 = vmul.f32 %v11966_v15, %v5200_v35 }
 0x5a8   :  { %12230 = dma.done.wait [#allocation8], 16384 }
 0x5a9   :  { %12231 = vsyncadd [#allocation8], 4294950912  ;;  %v10397_v29 = vld [vmem:[#allocation2 + $0x1c0] sm:$0xf]  ;;  %v11643_v5 = vld [vmem:[#allocation2 + $0x1c4] sm:$0xf] }
 0x5aa   :  { %v11647_v7 = vld [vmem:[#allocation2 + $0x1dc] sm:$0xf0]  ;;  %v10399_v24 = vld [vmem:[#allocation2 + $0x1e0] sm:$0xf0] }
 0x5ab   :  { %v10653_v55 = vld [vmem:[#allocation2 + $0x3c0] sm:$0xf]  ;;  %v10398_v12 = vor.u32 %v11647_v7, %v10397_v29  ;;  %v10402_v0 = vor.u32 %v11643_v5, %v10399_v24  ;;  %v11707_v36 = vld [vmem:[#allocation2 + $0x3c4] sm:$0xf] }
 0x5ac   :  { %v11711_v26 = vld [vmem:[#allocation2 + $0x3dc] sm:$0xf0]  ;;  %v10655_v8 = vld [vmem:[#allocation2 + $0x3e0] sm:$0xf0] }
 0x5ad   :  { %v10654_v27 = vor.u32 %v11711_v26, %v10653_v55  ;;  %v10365_v31 = vld [vmem:[#allocation2 + $0x180] sm:$0xf]  ;;  %6027 = vmatpush.bf16.msra.mxu0 %v10398_v12  ;;  %v10658_v2 = vor.u32 %v11707_v36, %v10655_v8  ;;  %6085 = vmatpush.bf16.msra.mxu2 %v10402_v0  ;;  %v11635_v41 = vld [vmem:[#allocation2 + $0x184] sm:$0xf] }
 0x5ae   :  { %v11639_v4 = vld [vmem:[#allocation2 + $0x19c] sm:$0xf0]  ;;  %v10367_v37 = vld [vmem:[#allocation2 + $0x1a0] sm:$0xf0] }
 0x5af   :  { %v10621_v51 = vld [vmem:[#allocation2 + $0x380] sm:$0xf]  ;;  %6056 = vmatpush.bf16.msra.mxu1 %v10654_v27  ;;  %v10366_v38 = vor.u32 %v11639_v4, %v10365_v31  ;;  %v11699_v49 = vld [vmem:[#allocation2 + $0x384] sm:$0xf]  ;;  %6114 = vmatpush.bf16.msra.mxu3 %v10658_v2  ;;  %v10370_v22 = vor.u32 %v11635_v41, %v10367_v37 }
 0x5b0   :  { %v11703_v40 = vld [vmem:[#allocation2 + $0x39c] sm:$0xf0]  ;;  %v10623_v54 = vld [vmem:[#allocation2 + $0x3a0] sm:$0xf0] }
 0x5b1   :  { %v10622_v45 = vor.u32 %v11703_v40, %v10621_v51  ;;  %v10333_v25 = vld [vmem:[#allocation2 + $0x140] sm:$0xf]  ;;  %v10626_v19 = vor.u32 %v11699_v49, %v10623_v54  ;;  %v11627_v9 = vld [vmem:[#allocation2 + $0x144] sm:$0xf]  ;;  %6028 = vmatpush.bf16.msra.mxu0 %v10366_v38  ;;  %6086 = vmatpush.bf16.msra.mxu2 %v10370_v22 }
 0x5b2   :  { %v11631_v18 = vld [vmem:[#allocation2 + $0x15c] sm:$0xf0]  ;;  %v10335_v32 = vld [vmem:[#allocation2 + $0x160] sm:$0xf0] }
 0x5b3   :  { %v10589_v60 = vld [vmem:[#allocation2 + $0x340] sm:$0xf]  ;;  %v10334_v13 = vor.u32 %v11631_v18, %v10333_v25  ;;  %v11691_v47 = vld [vmem:[#allocation2 + $0x344] sm:$0xf]  ;;  %6057 = vmatpush.bf16.msra.mxu1 %v10622_v45  ;;  %v10338_v28 = vor.u32 %v11627_v9, %v10335_v32  ;;  %6115 = vmatpush.bf16.msra.mxu3 %v10626_v19 }
 0x5b4   :  { %v11695_v53 = vld [vmem:[#allocation2 + $0x35c] sm:$0xf0]  ;;  %v10591_v14 = vld [vmem:[#allocation2 + $0x360] sm:$0xf0] }
 0x5b5   :  { %v10590_v34 = vor.u32 %v11695_v53, %v10589_v60  ;;  %v10301_v62 = vld [vmem:[#allocation2 + $0x100] sm:$0xf]  ;;  %v10594_v48 = vor.u32 %v11691_v47, %v10591_v14  ;;  %v11619_v59 = vld [vmem:[#allocation2 + $0x104] sm:$0xf]  ;;  %6029 = vmatpush.bf16.msra.mxu0 %v10334_v13  ;;  %6087 = vmatpush.bf16.msra.mxu2 %v10338_v28 }
 0x5b6   :  { %v11623_v52 = vld [vmem:[#allocation2 + $0x11c] sm:$0xf0]  ;;  %v10303_v61 = vld [vmem:[#allocation2 + $0x120] sm:$0xf0] }
 0x5b7   :  { %v10557_v3 = vld [vmem:[#allocation2 + $0x300] sm:$0xf]  ;;  %v11683_v17 = vld [vmem:[#allocation2 + $0x304] sm:$0xf]  ;;  %v10302_v63 = vor.u32 %v11623_v52, %v10301_v62  ;;  %6058 = vmatpush.bf16.msra.mxu1 %v10590_v34  ;;  %v10306_v35 = vor.u32 %v11619_v59, %v10303_v61  ;;  %6116 = vmatpush.bf16.msra.mxu3 %v10594_v48 }
 0x5b8   :  { %v11687_v58 = vld [vmem:[#allocation2 + $0x31c] sm:$0xf0]  ;;  %v10559_v10 = vld [vmem:[#allocation2 + $0x320] sm:$0xf0] }
 0x5b9   :  { %v10558_v20 = vor.u32 %v11687_v58, %v10557_v3  ;;  %v10269_v15 = vld [vmem:[#allocation2 + $0xc0] sm:$0xf]  ;;  %v10562_v55 = vor.u32 %v11683_v17, %v10559_v10  ;;  %v11611_v26 = vld [vmem:[#allocation2 + $0xc4] sm:$0xf]  ;;  %6030 = vmatpush.bf16.msra.mxu0 %v10302_v63  ;;  %6088 = vmatpush.bf16.msra.mxu2 %v10306_v35  ;;  %v11644_v63 = vld [vmem:[#allocation2 + $0x1cc] sm:$0xf] }
 0x5ba   :  { %v11615_v29 = vld [vmem:[#allocation2 + $0xdc] sm:$0xf0]  ;;  %v10271_v5 = vld [vmem:[#allocation2 + $0xe0] sm:$0xf0] }
 0x5bb   :  { %v10525_v7 = vld [vmem:[#allocation2 + $0x2c0] sm:$0xf]  ;;  %v11675_v24 = vld [vmem:[#allocation2 + $0x2c4] sm:$0xf]  ;;  %v10270_v0 = vor.u32 %v11615_v29, %v10269_v15  ;;  %6059 = vmatpush.bf16.msra.mxu1 %v10558_v20  ;;  %v10274_v8 = vor.u32 %v11611_v26, %v10271_v5  ;;  %6117 = vmatpush.bf16.msra.mxu3 %v10562_v55  ;;  %v10407_v20 = vld [vmem:[#allocation2 + $0x1e8] sm:$0xf0] }
 0x5bc   :  { %v11679_v12 = vld [vmem:[#allocation2 + $0x2dc] sm:$0xf0]  ;;  %v10527_v27 = vld [vmem:[#allocation2 + $0x2e0] sm:$0xf0]  ;;  %v11708_v15 = vld [vmem:[#allocation2 + $0x3cc] sm:$0xf]  ;;  %v10410_v26 = vor.u32 %v11644_v63, %v10407_v20 }
 0x5bd   :  { %v10526_v36 = vor.u32 %v11679_v12, %v10525_v7  ;;  %v10237_v31 = vld [vmem:[#allocation2 + $0x80] sm:$0xf]  ;;  %v10530_v51 = vor.u32 %v11675_v24, %v10527_v27  ;;  %v11603_v38 = vld [vmem:[#allocation2 + $0x84] sm:$0xf]  ;;  %6031 = vmatpush.bf16.msra.mxu0 %v10270_v0  ;;  %6089 = vmatpush.bf16.msra.mxu2 %v10274_v8  ;;  %v10663_v29 = vld [vmem:[#allocation2 + $0x3e8] sm:$0xf0]  ;;  %v12784_v0 = vpack.c.bf16 %v12600_v43, %v12573_v46 }
 0x5be   :  { %v11607_v2 = vld [vmem:[#allocation2 + $0x9c] sm:$0xf0]  ;;  %v10239_v45 = vld [vmem:[#allocation2 + $0xa0] sm:$0xf0]  ;;  %v10405_v5 = vld [vmem:[#allocation2 + $0x1c8] sm:$0xf] }
 0x5bf   :  { %v10493_v4 = vld [vmem:[#allocation2 + $0x280] sm:$0xf]  ;;  %v11667_v41 = vld [vmem:[#allocation2 + $0x284] sm:$0xf]  ;;  %v10238_v49 = vor.u32 %v11607_v2, %v10237_v31  ;;  %6060 = vmatpush.bf16.msra.mxu1 %v10526_v36  ;;  %v10242_v54 = vor.u32 %v11603_v38, %v10239_v45  ;;  %6118 = vmatpush.bf16.msra.mxu3 %v10530_v51  ;;  %v11648_v24 = vld [vmem:[#allocation2 + $0x1e4] sm:$0xf0]  ;;  %v10666_v36 = vor.u32 %v11708_v15, %v10663_v29 }
 0x5c0   :  { %v11671_v40 = vld [vmem:[#allocation2 + $0x29c] sm:$0xf0]  ;;  %v10495_v37 = vld [vmem:[#allocation2 + $0x2a0] sm:$0xf0]  ;;  %v10661_v27 = vld [vmem:[#allocation2 + $0x3c8] sm:$0xf]  ;;  %v10406_v38 = vor.u32 %v11648_v24, %v10405_v5  ;;  %v12796_v24 = vpack.c.bf16 %v12656_v44, %v12628_v6 }
 0x5c1   :  { %v10494_v22 = vor.u32 %v11671_v40, %v10493_v4  ;;  %v10205_v25 = vld [vmem:[#allocation2 + $0x40] sm:$0xf]  ;;  %v10498_v60 = vor.u32 %v11667_v41, %v10495_v37  ;;  %v11595_v9 = vld [vmem:[#allocation2 + $0x44] sm:$0xf]  ;;  %6032 = vmatpush.bf16.msra.mxu0 %v10238_v49  ;;  %6090 = vmatpush.bf16.msra.mxu2 %v10242_v54  ;;  %v11712_v8 = vld [vmem:[#allocation2 + $0x3e4] sm:$0xf0]  ;;  %v12788_v4 = vpack.c.bf16 %v12748_v1, %v12780_v16 }
 0x5c2   :  { %v11599_v18 = vld [vmem:[#allocation2 + $0x5c] sm:$0xf0]  ;;  %v10207_v13 = vld [vmem:[#allocation2 + $0x60] sm:$0xf0]  ;;  %v11636_v31 = vld [vmem:[#allocation2 + $0x18c] sm:$0xf]  ;;  %v10662_v45 = vor.u32 %v11712_v8, %v10661_v27 }
 0x5c3   :  { %v10461_v19 = vld [vmem:[#allocation2 + $0x240] sm:$0xf]  ;;  %v11659_v32 = vld [vmem:[#allocation2 + $0x244] sm:$0xf]  ;;  %v10206_v14 = vor.u32 %v11599_v18, %v10205_v25  ;;  %6061 = vmatpush.bf16.msra.mxu1 %v10494_v22  ;;  %v10210_v62 = vor.u32 %v11595_v9, %v10207_v13  ;;  %6119 = vmatpush.bf16.msra.mxu3 %v10498_v60  ;;  %v10375_v2 = vld [vmem:[#allocation2 + $0x1a8] sm:$0xf0] }
 0x5c4   :  { %v11663_v53 = vld [vmem:[#allocation2 + $0x25c] sm:$0xf0]  ;;  %v10463_v47 = vld [vmem:[#allocation2 + $0x260] sm:$0xf0]  ;;  %v11700_v51 = vld [vmem:[#allocation2 + $0x38c] sm:$0xf]  ;;  %v10378_v41 = vor.u32 %v11636_v31, %v10375_v2  ;;  %v12800_v2 = vpack.c.bf16 %v12692_v50, %v12720_v23 }
 0x5c5   :  { %v10173_v34 = vld [vmem:[#allocation2] sm:$0xf]  ;;  %v10462_v28 = vor.u32 %v11663_v53, %v10461_v19  ;;  %v10466_v58 = vor.u32 %v11659_v32, %v10463_v47  ;;  %v11587_v59 = vld [vmem:[#allocation2 + $0x4] sm:$0xf]  ;;  %6033 = vmatpush.bf16.msra.mxu0 %v10206_v14  ;;  %6091 = vmatpush.bf16.msra.mxu2 %v10210_v62  ;;  %v10631_v40 = vld [vmem:[#allocation2 + $0x3a8] sm:$0xf0] }
 0x5c6   :  { %v11591_v52 = vld [vmem:[#allocation2 + $0x1c] sm:$0xf0]  ;;  %v10175_v61 = vld [vmem:[#allocation2 + $0x20] sm:$0xf0]  ;;  %v10373_v46 = vld [vmem:[#allocation2 + $0x188] sm:$0xf]  ;;  %v10634_v49 = vor.u32 %v11700_v51, %v10631_v40 }
 0x5c7   :  { %v10429_v3 = vld [vmem:[#allocation2 + $0x200] sm:$0xf]  ;;  %v11651_v17 = vld [vmem:[#allocation2 + $0x204] sm:$0xf]  ;;  %v10174_v35 = vor.u32 %v11591_v52, %v10173_v34  ;;  %6062 = vmatpush.bf16.msra.mxu1 %v10462_v28  ;;  %v10178_v55 = vor.u32 %v11587_v59, %v10175_v61  ;;  %6120 = vmatpush.bf16.msra.mxu3 %v10466_v58  ;;  %v11640_v43 = vld [vmem:[#allocation2 + $0x1a4] sm:$0xf0] }
 0x5c8   :  { %v11655_v48 = vld [vmem:[#allocation2 + $0x21c] sm:$0xf0]  ;;  %v10431_v10 = vld [vmem:[#allocation2 + $0x220] sm:$0xf0]  ;;  %v10629_v37 = vld [vmem:[#allocation2 + $0x388] sm:$0xf]  ;;  %v10374_v18 = vor.u32 %v11640_v43, %v10373_v46 }
 0x5c9   :  { %v10430_v7 = vor.u32 %v11655_v48, %v10429_v3  ;;  %v10434_v12 = vor.u32 %v11651_v17, %v10431_v10  ;;  %6034 = vmatpush.bf16.msra.mxu0 %v10174_v35  ;;  %6092 = vmatpush.bf16.msra.mxu2 %v10178_v55  ;;  %v11704_v22 = vld [vmem:[#allocation2 + $0x3a4] sm:$0xf0]  ;;  %v11628_v54 = vld [vmem:[#allocation2 + $0x14c] sm:$0xf] }
 0x5ca   :  { %v10343_v1 = vld [vmem:[#allocation2 + $0x168] sm:$0xf0]  ;;  %v10630_v19 = vor.u32 %v11704_v22, %v10629_v37  ;;  %v10341_v53 = vld [vmem:[#allocation2 + $0x148] sm:$0xf] }
 0x5cb   :  { %6063 = vmatpush.bf16.msra.mxu1 %v10430_v7  ;;  %6121 = vmatpush.bf16.msra.mxu3 %v10434_v12  ;;  %v11692_v16 = vld [vmem:[#allocation2 + $0x34c] sm:$0xf]  ;;  %v10346_v60 = vor.u32 %v11628_v54, %v10343_v1  ;;  %v11632_v9 = vld [vmem:[#allocation2 + $0x164] sm:$0xf0] }
 0x5cc   :  { %6035 = vmatmul.bf16.vlgmr.msra.gmra.mxu0 %v12784_v0  ;;  %6093 = vmatmul.bf16.vlgmr.msra.gmra.mxu2 %v12784_v0  ;;  %v10599_v25 = vld [vmem:[#allocation2 + $0x368] sm:$0xf0]  ;;  %v10597_v13 = vld [vmem:[#allocation2 + $0x348] sm:$0xf]  ;;  %v10342_v52 = vor.u32 %v11632_v9, %v10341_v53 }
 0x5cd   :  { %6201 = vmatpush.bf16.msrb.mxu2 %v10410_v26  ;;  %6143 = vmatpush.bf16.msrb.mxu0 %v10406_v38  ;;  %v10602_v32 = vor.u32 %v11692_v16, %v10599_v25  ;;  %v11696_v47 = vld [vmem:[#allocation2 + $0x364] sm:$0xf0]  ;;  %v11620_v14 = vld [vmem:[#allocation2 + $0x10c] sm:$0xf] }
 0x5ce   :  { %6064 = vmatmul.bf16.vlgmr.msra.gmra.mxu1 %v12788_v4  ;;  %6122 = vmatmul.bf16.vlgmr.msra.gmra.mxu3 %v12788_v4  ;;  %v10311_v34 = vld [vmem:[#allocation2 + $0x128] sm:$0xf0]  ;;  %v10598_v3 = vor.u32 %v11696_v47, %v10597_v13  ;;  %v10309_v58 = vld [vmem:[#allocation2 + $0x108] sm:$0xf] }
 0x5cf   :  { %6230 = vmatpush.bf16.msrb.mxu3 %v10666_v36  ;;  %6172 = vmatpush.bf16.msrb.mxu1 %v10662_v45  ;;  %v11684_v28 = vld [vmem:[#allocation2 + $0x30c] sm:$0xf]  ;;  %v10314_v48 = vor.u32 %v11620_v14, %v10311_v34  ;;  %v11624_v59 = vld [vmem:[#allocation2 + $0x124] sm:$0xf0] }
 0x5d0   :  { %v10567_v62 = vld [vmem:[#allocation2 + $0x328] sm:$0xf0]  ;;  %v10565_v61 = vld [vmem:[#allocation2 + $0x308] sm:$0xf]  ;;  %v10310_v29 = vor.u32 %v11624_v59, %v10309_v58 }
 0x5d1   :  { %6202 = vmatpush.bf16.msrb.mxu2 %v10378_v41  ;;  %6144 = vmatpush.bf16.msrb.mxu0 %v10374_v18  ;;  %v10570_v17 = vor.u32 %v11684_v28, %v10567_v62  ;;  %v11688_v10 = vld [vmem:[#allocation2 + $0x324] sm:$0xf0]  ;;  %v11612_v63 = vld [vmem:[#allocation2 + $0xcc] sm:$0xf] }
 0x5d2   :  { %v10279_v20 = vld [vmem:[#allocation2 + $0xe8] sm:$0xf0]  ;;  %v10566_v7 = vor.u32 %v11688_v10, %v10565_v61  ;;  %v10277_v12 = vld [vmem:[#allocation2 + $0xc8] sm:$0xf]  ;;  %v12812_v10 = vpack.c.bf16 %v12636_v11, %v12664_v39  ;;  %v10669_v39 = vld [vmem:[#allocation2 + $0x3d0] sm:$0xf] }
 0x5d3   :  { %6231 = vmatpush.bf16.msrb.mxu3 %v10634_v49  ;;  %6173 = vmatpush.bf16.msrb.mxu1 %v10630_v19  ;;  %v11676_v35 = vld [vmem:[#allocation2 + $0x2cc] sm:$0xf]  ;;  %v10282_v55 = vor.u32 %v11612_v63, %v10279_v20  ;;  %v11616_v26 = vld [vmem:[#allocation2 + $0xe4] sm:$0xf0]  ;;  %v11645_v63 = vld [vmem:[#allocation2 + $0x1d4] sm:$0xf] }
 0x5d4   :  { %v10535_v15 = vld [vmem:[#allocation2 + $0x2e8] sm:$0xf0]  ;;  %v10533_v5 = vld [vmem:[#allocation2 + $0x2c8] sm:$0xf]  ;;  %v10278_v38 = vor.u32 %v11616_v26, %v10277_v12  ;;  %v10415_v20 = vld [vmem:[#allocation2 + $0x1f0] sm:$0xf0] }
 0x5d5   :  { %6203 = vmatpush.bf16.msrb.mxu2 %v10346_v60  ;;  %6145 = vmatpush.bf16.msrb.mxu0 %v10342_v52  ;;  %v10538_v27 = vor.u32 %v11676_v35, %v10535_v15  ;;  %v11680_v36 = vld [vmem:[#allocation2 + $0x2e4] sm:$0xf0]  ;;  %v11604_v8 = vld [vmem:[#allocation2 + $0x8c] sm:$0xf]  ;;  %v11709_v35 = vld [vmem:[#allocation2 + $0x3d4] sm:$0xf] }
 0x5d6   :  { %v10247_v31 = vld [vmem:[#allocation2 + $0xa8] sm:$0xf0]  ;;  %v10534_v45 = vor.u32 %v11680_v36, %v10533_v5  ;;  %v10245_v46 = vld [vmem:[#allocation2 + $0x88] sm:$0xf]  ;;  %v10413_v15 = vld [vmem:[#allocation2 + $0x1d0] sm:$0xf] }
 0x5d7   :  { %6232 = vmatpush.bf16.msrb.mxu3 %v10602_v32  ;;  %6174 = vmatpush.bf16.msrb.mxu1 %v10598_v3  ;;  %v11668_v51 = vld [vmem:[#allocation2 + $0x28c] sm:$0xf]  ;;  %v10250_v41 = vor.u32 %v11604_v8, %v10247_v31  ;;  %v11608_v6 = vld [vmem:[#allocation2 + $0xa4] sm:$0xf0]  ;;  %v11637_v12 = vld [vmem:[#allocation2 + $0x194] sm:$0xf] }
 0x5d8   :  { %v10503_v40 = vld [vmem:[#allocation2 + $0x2a8] sm:$0xf0]  ;;  %v10246_v50 = vor.u32 %v11608_v6, %v10245_v46  ;;  %v10501_v23 = vld [vmem:[#allocation2 + $0x288] sm:$0xf]  ;;  %v10383_v5 = vld [vmem:[#allocation2 + $0x1b0] sm:$0xf0] }
 0x5d9   :  { %6204 = vmatpush.bf16.msrb.mxu2 %v10314_v48  ;;  %6146 = vmatpush.bf16.msrb.mxu0 %v10310_v29  ;;  %v10506_v44 = vor.u32 %v11668_v51, %v10503_v40  ;;  %v11672_v43 = vld [vmem:[#allocation2 + $0x2a4] sm:$0xf0]  ;;  %v11596_v37 = vld [vmem:[#allocation2 + $0x4c] sm:$0xf]  ;;  %v11649_v29 = vld [vmem:[#allocation2 + $0x1ec] sm:$0xf0]  ;;  %v10386_v8 = vor.u32 %v11637_v12, %v10383_v5 }
 0x5da   :  { %v10502_v49 = vor.u32 %v11672_v43, %v10501_v23  ;;  %v10215_v22 = vld [vmem:[#allocation2 + $0x68] sm:$0xf0]  ;;  %v10213_v18 = vld [vmem:[#allocation2 + $0x48] sm:$0xf]  ;;  %v10414_v11 = vor.u32 %v11649_v29, %v10413_v15  ;;  %v10639_v36 = vld [vmem:[#allocation2 + $0x3b0] sm:$0xf0] }
 0x5db   :  { %6233 = vmatpush.bf16.msrb.mxu3 %v10570_v17  ;;  %6175 = vmatpush.bf16.msrb.mxu1 %v10566_v7  ;;  %v11660_v54 = vld [vmem:[#allocation2 + $0x24c] sm:$0xf]  ;;  %v10218_v16 = vor.u32 %v11596_v37, %v10215_v22  ;;  %v11600_v19 = vld [vmem:[#allocation2 + $0x64] sm:$0xf0]  ;;  %v12808_v17 = vpack.c.bf16 %v12712_v30, %v12684_v57  ;;  %v10418_v57 = vor.u32 %v11645_v63, %v10415_v20  ;;  %v10671_v30 = vld [vmem:[#allocation2 + $0x3f0] sm:$0xf0] }
 0x5dc   :  { %6040 = vmatmul.bf16.gmra.mxu0 %v12796_v24  ;;  %6098 = vmatmul.bf16.gmra.mxu2 %v12796_v24  ;;  %v10471_v1 = vld [vmem:[#allocation2 + $0x268] sm:$0xf0]  ;;  %v10469_v60 = vld [vmem:[#allocation2 + $0x248] sm:$0xf]  ;;  %v10214_v32 = vor.u32 %v11600_v19, %v10213_v18  ;;  %v10674_v7 = vor.u32 %v11709_v35, %v10671_v30  ;;  %v10381_v51 = vld [vmem:[#allocation2 + $0x190] sm:$0xf] }
 0x5dd   :  { %6205 = vmatpush.bf16.msrb.mxu2 %v10282_v55  ;;  %6147 = vmatpush.bf16.msrb.mxu0 %v10278_v38  ;;  %v10474_v25 = vor.u32 %v11660_v54, %v10471_v1  ;;  %v11664_v53 = vld [vmem:[#allocation2 + $0x264] sm:$0xf0]  ;;  %v11588_v9 = vld [vmem:[#allocation2 + $0xc] sm:$0xf]  ;;  %v11713_v55 = vld [vmem:[#allocation2 + $0x3ec] sm:$0xf0] }
 0x5de   :  { %6069 = vmatmul.bf16.gmra.mxu1 %v12800_v2  ;;  %6127 = vmatmul.bf16.gmra.mxu3 %v12800_v2  ;;  %v10183_v13 = vld [vmem:[#allocation2 + $0x28] sm:$0xf0]  ;;  %v10470_v34 = vor.u32 %v11664_v53, %v10469_v60  ;;  %v10181_v62 = vld [vmem:[#allocation2 + $0x8] sm:$0xf]  ;;  %v10670_v26 = vor.u32 %v11713_v55, %v10669_v39  ;;  %v11641_v40 = vld [vmem:[#allocation2 + $0x1ac] sm:$0xf0] }
 0x5df   :  { %6234 = vmatpush.bf16.msrb.mxu3 %v10538_v27  ;;  %6176 = vmatpush.bf16.msrb.mxu1 %v10534_v45  ;;  %v11652_v47 = vld [vmem:[#allocation2 + $0x20c] sm:$0xf]  ;;  %v10186_v28 = vor.u32 %v11588_v9, %v10183_v13  ;;  %v11592_v52 = vld [vmem:[#allocation2 + $0x24] sm:$0xf0]  ;;  %v11701_v27 = vld [vmem:[#allocation2 + $0x394] sm:$0xf]  ;;  %v10382_v38 = vor.u32 %v11641_v40, %v10381_v51  ;;  %v12820_v45 = vpack.c.bf16 %v12777_v21, %v12740_v33 }
 0x5e0   :  { %v10439_v14 = vld [vmem:[#allocation2 + $0x228] sm:$0xf0]  ;;  %v10437_v48 = vld [vmem:[#allocation2 + $0x208] sm:$0xf]  ;;  %v10182_v59 = vor.u32 %v11592_v52, %v10181_v62  ;;  %v10642_v31 = vor.u32 %v11701_v27, %v10639_v36  ;;  %v10637_v46 = vld [vmem:[#allocation2 + $0x390] sm:$0xf] }
 0x5e1   :  { %6206 = vmatpush.bf16.msrb.mxu2 %v10250_v41  ;;  %6148 = vmatpush.bf16.msrb.mxu0 %v10246_v50  ;;  %v10442_v3 = vor.u32 %v11652_v47, %v10439_v14  ;;  %v11656_v58 = vld [vmem:[#allocation2 + $0x224] sm:$0xf0]  ;;  %v12824_v41 = vpack.c.bf16 %v12580_v56, %v12608_v42  ;;  %v11705_v6 = vld [vmem:[#allocation2 + $0x3ac] sm:$0xf0]  ;;  %v10351_v23 = vld [vmem:[#allocation2 + $0x170] sm:$0xf0] }
 0x5e2   :  { %v10438_v61 = vor.u32 %v11656_v58, %v10437_v48  ;;  %v10638_v50 = vor.u32 %v11705_v6, %v10637_v46  ;;  %v11693_v43 = vld [vmem:[#allocation2 + $0x354] sm:$0xf]  ;;  %v11633_v56 = vld [vmem:[#allocation2 + $0x16c] sm:$0xf0] }
 0x5e3   :  { %6235 = vmatpush.bf16.msrb.mxu3 %v10506_v44  ;;  %6177 = vmatpush.bf16.msrb.mxu1 %v10502_v49  ;;  %v11629_v44 = vld [vmem:[#allocation2 + $0x154] sm:$0xf]  ;;  %v10349_v49 = vld [vmem:[#allocation2 + $0x150] sm:$0xf] }
 0x5e4   :  { %v10607_v33 = vld [vmem:[#allocation2 + $0x370] sm:$0xf0]  ;;  %v10354_v21 = vor.u32 %v11629_v44, %v10351_v23  ;;  %v10605_v42 = vld [vmem:[#allocation2 + $0x350] sm:$0xf]  ;;  %v10350_v22 = vor.u32 %v11633_v56, %v10349_v49 }
 0x5e5   :  { %6207 = vmatpush.bf16.msrb.mxu2 %v10218_v16  ;;  %6149 = vmatpush.bf16.msrb.mxu0 %v10214_v32  ;;  %v10610_v37 = vor.u32 %v11693_v43, %v10607_v33  ;;  %v11697_v54 = vld [vmem:[#allocation2 + $0x36c] sm:$0xf0]  ;;  %v11621_v1 = vld [vmem:[#allocation2 + $0x114] sm:$0xf] }
 0x5e6   :  { %v10319_v16 = vld [vmem:[#allocation2 + $0x130] sm:$0xf0]  ;;  %v10317_v53 = vld [vmem:[#allocation2 + $0x110] sm:$0xf] }
 0x5e7   :  { %6236 = vmatpush.bf16.msrb.mxu3 %v10474_v25  ;;  %6178 = vmatpush.bf16.msrb.mxu1 %v10470_v34  ;;  %v10606_v25 = vor.u32 %v11697_v54, %v10605_v42  ;;  %v10322_v18 = vor.u32 %v11621_v1, %v10319_v16  ;;  %v11685_v19 = vld [vmem:[#allocation2 + $0x314] sm:$0xf]  ;;  %v11625_v13 = vld [vmem:[#allocation2 + $0x12c] sm:$0xf0] }
 0x5e8   :  { %v10575_v60 = vld [vmem:[#allocation2 + $0x330] sm:$0xf0]  ;;  %v10318_v32 = vor.u32 %v11625_v13, %v10317_v53  ;;  %v10573_v47 = vld [vmem:[#allocation2 + $0x310] sm:$0xf]  ;;  %v10423_v53 = vld [vmem:[#allocation2 + $0x1f8] sm:$0xf0] }
 0x5e9   :  { %6208 = vmatpush.bf16.msrb.mxu2 %v10186_v28  ;;  %6150 = vmatpush.bf16.msrb.mxu0 %v10182_v59  ;;  %v10578_v9 = vor.u32 %v11685_v19, %v10575_v60  ;;  %v11689_v14 = vld [vmem:[#allocation2 + $0x32c] sm:$0xf0]  ;;  %v11613_v34 = vld [vmem:[#allocation2 + $0xd4] sm:$0xf]  ;;  %v11646_v60 = vld [vmem:[#allocation2 + $0x1dc] sm:$0xf] }
 0x5ea   :  { %v10574_v28 = vor.u32 %v11689_v14, %v10573_v47  ;;  %v10287_v62 = vld [vmem:[#allocation2 + $0xf0] sm:$0xf0]  ;;  %v10285_v59 = vld [vmem:[#allocation2 + $0xd0] sm:$0xf]  ;;  %v10426_v13 = vor.u32 %v11646_v60, %v10423_v53  ;;  %v10421_v14 = vld [vmem:[#allocation2 + $0x1d8] sm:$0xf] }
 0x5eb   :  { %6237 = vmatpush.bf16.msrb.mxu3 %v10442_v3  ;;  %6179 = vmatpush.bf16.msrb.mxu1 %v10438_v61  ;;  %v11677_v52 = vld [vmem:[#allocation2 + $0x2d4] sm:$0xf]  ;;  %v10290_v48 = vor.u32 %v11613_v34, %v10287_v62  ;;  %v11617_v61 = vld [vmem:[#allocation2 + $0xec] sm:$0xf0]  ;;  %v11650_v34 = vld [vmem:[#allocation2 + $0x1f4] sm:$0xf0] }
 0x5ec   :  { %6045 = vmatmul.bf16.gmra.mxu0 %v12808_v17  ;;  %6103 = vmatmul.bf16.gmra.mxu2 %v12808_v17  ;;  %v10543_v3 = vld [vmem:[#allocation2 + $0x2f0] sm:$0xf0]  ;;  %v10541_v63 = vld [vmem:[#allocation2 + $0x2d0] sm:$0xf]  ;;  %v10286_v20 = vor.u32 %v11617_v61, %v10285_v59  ;;  %v10422_v62 = vor.u32 %v11650_v34, %v10421_v14  ;;  %v11702_v61 = vld [vmem:[#allocation2 + $0x39c] sm:$0xf] }
 0x5ed   :  { %6317 = vmatpush.bf16.msra.mxu2 %v10418_v57  ;;  %6259 = vmatpush.bf16.msra.mxu0 %v10414_v11  ;;  %v10546_v58 = vor.u32 %v11677_v52, %v10543_v3  ;;  %v11681_v35 = vld [vmem:[#allocation2 + $0x2ec] sm:$0xf0]  ;;  %v11605_v57 = vld [vmem:[#allocation2 + $0x94] sm:$0xf]  ;;  %v11714_v52 = vld [vmem:[#allocation2 + $0x3f4] sm:$0xf0] }
 0x5ee   :  { %6074 = vmatmul.bf16.gmra.mxu1 %v12812_v10  ;;  %6132 = vmatmul.bf16.gmra.mxu3 %v12812_v10  ;;  %v10255_v30 = vld [vmem:[#allocation2 + $0xb0] sm:$0xf0]  ;;  %v10542_v15 = vor.u32 %v11681_v35, %v10541_v63  ;;  %v10253_v39 = vld [vmem:[#allocation2 + $0x90] sm:$0xf]  ;;  %v11638_v3 = vld [vmem:[#allocation2 + $0x19c] sm:$0xf] }
 0x5ef   :  { %6346 = vmatpush.bf16.msra.mxu3 %v10674_v7  ;;  %6288 = vmatpush.bf16.msra.mxu1 %v10670_v26  ;;  %v10258_v29 = vor.u32 %v11605_v57, %v10255_v30  ;;  %v11669_v7 = vld [vmem:[#allocation2 + $0x294] sm:$0xf]  ;;  %v11609_v12 = vld [vmem:[#allocation2 + $0xac] sm:$0xf0]  ;;  %v10647_v63 = vld [vmem:[#allocation2 + $0x3b8] sm:$0xf0] }
 0x5f0   :  { %v10511_v11 = vld [vmem:[#allocation2 + $0x2b0] sm:$0xf0]  ;;  %v10254_v26 = vor.u32 %v11609_v12, %v10253_v39  ;;  %v10509_v5 = vld [vmem:[#allocation2 + $0x290] sm:$0xf]  ;;  %v10389_v35 = vld [vmem:[#allocation2 + $0x198] sm:$0xf] }
 0x5f1   :  { %6318 = vmatpush.bf16.msra.mxu2 %v10386_v8  ;;  %6260 = vmatpush.bf16.msra.mxu0 %v10382_v38  ;;  %v10514_v55 = vor.u32 %v11669_v7, %v10511_v11  ;;  %v11673_v27 = vld [vmem:[#allocation2 + $0x2ac] sm:$0xf0]  ;;  %v11597_v36 = vld [vmem:[#allocation2 + $0x54] sm:$0xf]  ;;  %v11642_v57 = vld [vmem:[#allocation2 + $0x1b4] sm:$0xf0] }
 0x5f2   :  { %v10510_v8 = vor.u32 %v11673_v27, %v10509_v5  ;;  %v11661_v51 = vld [vmem:[#allocation2 + $0x254] sm:$0xf]  ;;  %v10221_v6 = vld [vmem:[#allocation2 + $0x50] sm:$0xf]  ;;  %v10390_v30 = vor.u32 %v11642_v57, %v10389_v35  ;;  %v11630_v7 = vld [vmem:[#allocation2 + $0x15c] sm:$0xf] }
 0x5f3   :  { %6347 = vmatpush.bf16.msra.mxu3 %v10642_v31  ;;  %6289 = vmatpush.bf16.msra.mxu1 %v10638_v50  ;;  %v10223_v31 = vld [vmem:[#allocation2 + $0x70] sm:$0xf0]  ;;  %v11601_v44 = vld [vmem:[#allocation2 + $0x6c] sm:$0xf0]  ;;  %v10359_v39 = vld [vmem:[#allocation2 + $0x178] sm:$0xf0] }
 0x5f4   :  { %v10479_v40 = vld [vmem:[#allocation2 + $0x270] sm:$0xf0]  ;;  %v10226_v38 = vor.u32 %v11597_v36, %v10223_v31  ;;  %v10477_v50 = vld [vmem:[#allocation2 + $0x250] sm:$0xf]  ;;  %v10222_v23 = vor.u32 %v11601_v44, %v10221_v6  ;;  %v10615_v12 = vld [vmem:[#allocation2 + $0x378] sm:$0xf0] }
 0x5f5   :  { %6319 = vmatpush.bf16.msra.mxu2 %v10354_v21  ;;  %6261 = vmatpush.bf16.msra.mxu0 %v10350_v22  ;;  %v10482_v46 = vor.u32 %v11661_v51, %v10479_v40  ;;  %v11665_v43 = vld [vmem:[#allocation2 + $0x26c] sm:$0xf0]  ;;  %v11589_v33 = vld [vmem:[#allocation2 + $0x14] sm:$0xf]  ;;  %v12849_v27 = vld [vmem:[%s13406_s9] sm:$0xff] }
 0x5f6   :  { %v10191_v21 = vld [vmem:[#allocation2 + $0x30] sm:$0xf0]  ;;  %v10189_v54 = vld [vmem:[#allocation2 + $0x10] sm:$0xf]  ;;  %v10357_v36 = vld [vmem:[#allocation2 + $0x158] sm:$0xf] }
 0x5f7   :  { %6348 = vmatpush.bf16.msra.mxu3 %v10610_v37  ;;  %6290 = vmatpush.bf16.msra.mxu1 %v10606_v25  ;;  %v10478_v37 = vor.u32 %v11665_v43, %v10477_v50  ;;  %v10194_v49 = vor.u32 %v11589_v33, %v10191_v21  ;;  %v11653_v56 = vld [vmem:[#allocation2 + $0x214] sm:$0xf]  ;;  %v11593_v1 = vld [vmem:[#allocation2 + $0x2c] sm:$0xf0]  ;;  %v10613_v31 = vld [vmem:[#allocation2 + $0x358] sm:$0xf] }
 0x5f8   :  { %v10447_v42 = vld [vmem:[#allocation2 + $0x230] sm:$0xf0]  ;;  %v10445_v16 = vld [vmem:[#allocation2 + $0x210] sm:$0xf]  ;;  %v10190_v25 = vor.u32 %v11593_v1, %v10189_v54  ;;  %v11698_v40 = vld [vmem:[#allocation2 + $0x374] sm:$0xf0] }
 0x5f9   :  { %6320 = vmatpush.bf16.msra.mxu2 %v10322_v18  ;;  %6262 = vmatpush.bf16.msra.mxu0 %v10318_v32  ;;  %v10450_v22 = vor.u32 %v11653_v56, %v10447_v42  ;;  %v11657_v18 = vld [vmem:[#allocation2 + $0x22c] sm:$0xf0]  ;;  %v10679_v32 = vld [vmem:[#allocation2 + $0x3f8] sm:$0xf0]  ;;  %v12852_v6 = vperm.slane %v12849_v27, 0  ;;  %v10614_v44 = vor.u32 %v11698_v40, %v10613_v31  ;;  %v12861_v54 = vperm.slane %v12849_v27, 1 }
 0x5fa   :  { %v10446_v19 = vor.u32 %v11657_v18, %v10445_v16  ;;  %v10583_v43 = vld [vmem:[#allocation2 + $0x338] sm:$0xf0]  ;;  %v10325_v42 = vld [vmem:[#allocation2 + $0x118] sm:$0xf] }
 0x5fb   :  { %6349 = vmatpush.bf16.msra.mxu3 %v10578_v9  ;;  %6291 = vmatpush.bf16.msra.mxu1 %v10574_v28  ;;  %v11710_v9 = vld [vmem:[#allocation2 + $0x3dc] sm:$0xf]  ;;  %v10677_v28 = vld [vmem:[#allocation2 + $0x3d8] sm:$0xf] }
 0x5fc   :  { %6050 = vmatmul.bf16.gmra.mxu0 %v12820_v45  ;;  %6108 = vmatmul.bf16.gmra.mxu2 %v12820_v45  ;;  %v10682_v47 = vor.u32 %v11710_v9, %v10679_v32  ;;  %v10581_v16 = vld [vmem:[#allocation2 + $0x318] sm:$0xf]  ;;  %v11614_v18 = vld [vmem:[#allocation2 + $0xdc] sm:$0xf] }
 0x5fd   :  { %6321 = vmatpush.bf16.msra.mxu2 %v10290_v48  ;;  %6263 = vmatpush.bf16.msra.mxu0 %v10286_v20  ;;  %v10391_v48 = vld [vmem:[#allocation2 + $0x1b8] sm:$0xf0]  ;;  %v10650_v20 = vor.u32 %v11702_v61, %v10647_v63  ;;  %v10549_v61 = vld [vmem:[#allocation2 + $0x2d8] sm:$0xf] }
 0x5fe   :  { %6079 = vmatmul.bf16.gmra.mxu1 %v12824_v41  ;;  %6137 = vmatmul.bf16.gmra.mxu3 %v12824_v41  ;;  %v10394_v59 = vor.u32 %v11638_v3, %v10391_v48  ;;  %v10295_v60 = vld [vmem:[#allocation2 + $0xf8] sm:$0xf0]  ;;  %v11610_v40 = vld [vmem:[#allocation2 + $0xb4] sm:$0xf0] }
 0x5ff   :  { %6350 = vmatpush.bf16.msra.mxu3 %v10546_v58  ;;  %6292 = vmatpush.bf16.msra.mxu1 %v10542_v15  ;;  %v10678_v58 = vor.u32 %v11714_v52, %v10677_v28  ;;  %v10645_v15 = vld [vmem:[#allocation2 + $0x398] sm:$0xf]  ;;  %v11678_v53 = vld [vmem:[#allocation2 + $0x2dc] sm:$0xf]  ;;  %v10298_v32 = vor.u32 %v11614_v18, %v10295_v60 }
 0x600   :  { %v10551_v9 = vld [vmem:[#allocation2 + $0x2f8] sm:$0xf0] }
 0x601   :  { %6322 = vmatpush.bf16.msra.mxu2 %v10258_v29  ;;  %6264 = vmatpush.bf16.msra.mxu0 %v10254_v26  ;;  %v11706_v29 = vld [vmem:[#allocation2 + $0x3b4] sm:$0xf0]  ;;  %v10362_v26 = vor.u32 %v11630_v7, %v10359_v39  ;;  %v11606_v35 = vld [vmem:[#allocation2 + $0x9c] sm:$0xf] }
 0x602   :  { %v10646_v11 = vor.u32 %v11706_v29, %v10645_v15  ;;  %v10263_v57 = vld [vmem:[#allocation2 + $0xb8] sm:$0xf0] }
 0x603   :  { %6351 = vmatpush.bf16.msra.mxu3 %v10514_v55  ;;  %6293 = vmatpush.bf16.msra.mxu1 %v10510_v8  ;;  %v11694_v55 = vld [vmem:[#allocation2 + $0x35c] sm:$0xf]  ;;  %v11634_v8 = vld [vmem:[#allocation2 + $0x174] sm:$0xf0]  ;;  %v10266_v15 = vor.u32 %v11606_v35, %v10263_v57 }
 0x604   :  { %v10618_v5 = vor.u32 %v11694_v55, %v10615_v12  ;;  %v10358_v51 = vor.u32 %v11634_v8, %v10357_v36  ;;  %v11670_v29 = vld [vmem:[#allocation2 + $0x29c] sm:$0xf]  ;;  %v10453_v35 = vld [vmem:[#allocation2 + $0x218] sm:$0xf] }
 0x605   :  { %6323 = vmatpush.bf16.msra.mxu2 %v10226_v38  ;;  %6265 = vmatpush.bf16.msra.mxu0 %v10222_v23  ;;  %v11622_v38 = vld [vmem:[#allocation2 + $0x11c] sm:$0xf] }
 0x606   :  { %v11686_v23 = vld [vmem:[#allocation2 + $0x31c] sm:$0xf] }
 0x607   :  { %6352 = vmatpush.bf16.msra.mxu3 %v10482_v46  ;;  %6294 = vmatpush.bf16.msra.mxu1 %v10478_v37  ;;  %v10327_v46 = vld [vmem:[#allocation2 + $0x138] sm:$0xf0]  ;;  %v10586_v33 = vor.u32 %v11686_v23, %v10583_v43 }
 0x608   :  { %v10330_v50 = vor.u32 %v11622_v38, %v10327_v46  ;;  %v10519_v7 = vld [vmem:[#allocation2 + $0x2b8] sm:$0xf0]  ;;  %v10517_v46 = vld [vmem:[#allocation2 + $0x298] sm:$0xf] }
 0x609   :  { %6324 = vmatpush.bf16.msra.mxu2 %v10194_v49  ;;  %6266 = vmatpush.bf16.msra.mxu0 %v10190_v25  ;;  %v11690_v25 = vld [vmem:[#allocation2 + $0x334] sm:$0xf0]  ;;  %v10231_v43 = vld [vmem:[#allocation2 + $0x78] sm:$0xf0] }
 0x60b   :  { %6353 = vmatpush.bf16.msra.mxu3 %v10450_v22  ;;  %6295 = vmatpush.bf16.msra.mxu1 %v10446_v19  ;;  %v11626_v22 = vld [vmem:[#allocation2 + $0x134] sm:$0xf0]  ;;  %v10582_v19 = vor.u32 %v11690_v25, %v10581_v16 }
 0x60c   :  { %6151 = vmatmul.bf16.vlgmr.msrb.gmra.mxu0 %v12784_v0  ;;  %6209 = vmatmul.bf16.vlgmr.msrb.gmra.mxu2 %v12784_v0  ;;  %v10326_v1 = vor.u32 %v11626_v22, %v10325_v42 }
 0x60d   :  { %6433 = vmatpush.bf16.msrb.mxu2 %v10426_v13  ;;  %6375 = vmatpush.bf16.msrb.mxu0 %v10422_v62 }
 0x60e   :  { %6180 = vmatmul.bf16.vlgmr.msrb.gmra.mxu1 %v12788_v4  ;;  %6238 = vmatmul.bf16.vlgmr.msrb.gmra.mxu3 %v12788_v4 }
 0x60f   :  { %6462 = vmatpush.bf16.msrb.mxu3 %v10682_v47  ;;  %6404 = vmatpush.bf16.msrb.mxu1 %v10678_v58  ;;  %v10554_v47 = vor.u32 %v11678_v53, %v10551_v9  ;;  %v10293_v58 = vld [vmem:[#allocation2 + $0xd8] sm:$0xf] }
 0x610   :  { %v10229_v53 = vld [vmem:[#allocation2 + $0x58] sm:$0xf] }
 0x611   :  { %6434 = vmatpush.bf16.msrb.mxu2 %v10394_v59  ;;  %6376 = vmatpush.bf16.msrb.mxu0 %v10390_v30  ;;  %v11618_v59 = vld [vmem:[#allocation2 + $0xf4] sm:$0xf0] }
 0x612   :  { %v10294_v63 = vor.u32 %v11618_v59, %v10293_v58  ;;  %v11602_v9 = vld [vmem:[#allocation2 + $0x74] sm:$0xf0]  ;;  %v10455_v58 = vld [vmem:[#allocation2 + $0x238] sm:$0xf0] }
 0x613   :  { %6463 = vmatpush.bf16.msrb.mxu3 %v10650_v20  ;;  %6405 = vmatpush.bf16.msrb.mxu1 %v10646_v11  ;;  %v11682_v20 = vld [vmem:[#allocation2 + $0x2f4] sm:$0xf0]  ;;  %v10522_v11 = vor.u32 %v11670_v29, %v10519_v7 }
 0x614   :  { %v10550_v30 = vor.u32 %v11682_v20, %v10549_v61  ;;  %v11594_v20 = vld [vmem:[#allocation2 + $0x34] sm:$0xf0] }
 0x615   :  { %6435 = vmatpush.bf16.msrb.mxu2 %v10362_v26  ;;  %6377 = vmatpush.bf16.msrb.mxu0 %v10358_v51  ;;  %v10261_v51 = vld [vmem:[#allocation2 + $0x98] sm:$0xf] }
 0x616   :  { %v10262_v38 = vor.u32 %v11610_v40, %v10261_v51  ;;  %v11658_v7 = vld [vmem:[#allocation2 + $0x234] sm:$0xf0] }
 0x617   :  { %6464 = vmatpush.bf16.msrb.mxu3 %v10618_v5  ;;  %6406 = vmatpush.bf16.msrb.mxu1 %v10614_v44  ;;  %v11674_v44 = vld [vmem:[#allocation2 + $0x2b4] sm:$0xf0] }
 0x618   :  { %v10518_v23 = vor.u32 %v11674_v44, %v10517_v46 }
 0x619   :  { %6436 = vmatpush.bf16.msrb.mxu2 %v10330_v50  ;;  %6378 = vmatpush.bf16.msrb.mxu0 %v10326_v1  ;;  %v11598_v50 = vld [vmem:[#allocation2 + $0x5c] sm:$0xf] }
 0x61b   :  { %6465 = vmatpush.bf16.msrb.mxu3 %v10586_v33  ;;  %6407 = vmatpush.bf16.msrb.mxu1 %v10582_v19  ;;  %v11662_v33 = vld [vmem:[#allocation2 + $0x25c] sm:$0xf] }
 0x61c   :  { %6156 = vmatmul.bf16.gmra.mxu0 %v12796_v24  ;;  %6214 = vmatmul.bf16.gmra.mxu2 %v12796_v24 }
 0x61d   :  { %6437 = vmatpush.bf16.msrb.mxu2 %v10298_v32  ;;  %6379 = vmatpush.bf16.msrb.mxu0 %v10294_v63  ;;  %v10230_v32 = vor.u32 %v11602_v9, %v10229_v53  ;;  %v10197_v63 = vld [vmem:[#allocation2 + $0x18] sm:$0xf] }
 0x61e   :  { %6185 = vmatmul.bf16.gmra.mxu1 %v12800_v2  ;;  %6243 = vmatmul.bf16.gmra.mxu3 %v12800_v2  ;;  %v10198_v29 = vor.u32 %v11594_v20, %v10197_v63 }
 0x61f   :  { %6466 = vmatpush.bf16.msrb.mxu3 %v10554_v47  ;;  %6408 = vmatpush.bf16.msrb.mxu1 %v10550_v30  ;;  %v11666_v47 = vld [vmem:[#allocation2 + $0x274] sm:$0xf0] }
 0x621   :  { %6438 = vmatpush.bf16.msrb.mxu2 %v10266_v15  ;;  %6380 = vmatpush.bf16.msrb.mxu0 %v10262_v38 }
 0x623   :  { %6467 = vmatpush.bf16.msrb.mxu3 %v10522_v11  ;;  %6409 = vmatpush.bf16.msrb.mxu1 %v10518_v23 }
 0x625   :  { %6381 = vmatpush.bf16.msrb.mxu0 %v10230_v32 }
 0x629   :  { %6382 = vmatpush.bf16.msrb.mxu0 %v10198_v29 }
 0x62c   :  { %6161 = vmatmul.bf16.gmra.mxu0 %v12808_v17  ;;  %6219 = vmatmul.bf16.gmra.mxu2 %v12808_v17 }
 0x62e   :  { %6190 = vmatmul.bf16.gmra.mxu1 %v12812_v10  ;;  %6248 = vmatmul.bf16.gmra.mxu3 %v12812_v10 }
 0x63c   :  { %6166 = vmatmul.bf16.gmra.mxu0 %v12820_v45  ;;  %6224 = vmatmul.bf16.gmra.mxu2 %v12820_v45 }
 0x63e   :  { %6195 = vmatmul.bf16.gmra.mxu1 %v12824_v41  ;;  %6253 = vmatmul.bf16.gmra.mxu3 %v12824_v41 }
 0x649   :  { %v6036_v21 = vpop.f32.mrf.mxu0 }
 0x64a   :  { %v6037_v37 = vadd.f32 %v6036_v21, %v12852_v6  ;;  %v10487_v21 = vld [vmem:[#allocation2 + $0x278] sm:$0xf0] }
 0x64b   :  { %v6065_v49 = vpop.f32.mrf.mxu1  ;;  %v10490_v42 = vor.u32 %v11662_v33, %v10487_v21 }
 0x64c   :  { %v12855_v56 = vadd.f32 %v6065_v49, %v6037_v37  ;;  %6267 = vmatmul.bf16.vlgmr.msra.gmra.mxu0 %v12784_v0  ;;  %6325 = vmatmul.bf16.vlgmr.msra.gmra.mxu2 %v12784_v0  ;;  %v10234_v49 = vor.u32 %v11598_v50, %v10231_v43 }
 0x64d   :  { %6468 = vmatpush.bf16.msrb.mxu3 %v10490_v42 }
 0x64e   :  { %6296 = vmatmul.bf16.vlgmr.msra.gmra.mxu1 %v12788_v4  ;;  %6354 = vmatmul.bf16.vlgmr.msra.gmra.mxu3 %v12788_v4 }
 0x64f   :  { %v6094_v13 = vpop.f32.mrf.mxu2  ;;  %6439 = vmatpush.bf16.msrb.mxu2 %v10234_v49 }
 0x650   :  { %v6095_v14 = vadd.f32 %v6094_v13, %v12861_v54  ;;  %v10485_v13 = vld [vmem:[#allocation2 + $0x258] sm:$0xf] }
 0x651   :  { %v6123_v34 = vpop.f32.mrf.mxu3  ;;  %v6038_v28 = vpop.f32.mrf.mxu0 }
 0x652   :  { %v6039_v62 = vadd.f32 %v6038_v28, %v12852_v6  ;;  %v12866_v3 = vadd.f32 %v6123_v34, %v6095_v14  ;;  %v11590_v14 = vld [vmem:[#allocation2 + $0x1c] sm:$0xf]  ;;  %v10486_v28 = vor.u32 %v11666_v47, %v10485_v13  ;;  %v12919_v47 = vperm.slane %v12849_v27, 2 }
 0x653   :  { %v6067_v52 = vpop.f32.mrf.mxu1  ;;  %v10199_v34 = vld [vmem:[#allocation2 + $0x38] sm:$0xf0] }
 0x654   :  { %v12868_v48 = vadd.f32 %v6067_v52, %v6039_v62  ;;  %v10202_v62 = vor.u32 %v11590_v14, %v10199_v34  ;;  %v11654_v52 = vld [vmem:[#allocation2 + $0x21c] sm:$0xf]  ;;  %6410 = vmatpush.bf16.msrb.mxu1 %v10486_v28 }
 0x655   :  { %v10458_v59 = vor.u32 %v11654_v52, %v10455_v58 }
 0x656   :  { %13475 = vst [vmem:[#allocation30_spill] sm:$0xff] %v12868_v48  ;;  %6440 = vmatpush.bf16.msrb.mxu2 %v10202_v62 }
 0x657   :  { %v6096_v39 = vpop.f32.mrf.mxu2  ;;  %6469 = vmatpush.bf16.msrb.mxu3 %v10458_v59 }
 0x658   :  { %v6097_v55 = vadd.f32 %v6096_v39, %v12861_v54 }
 0x659   :  { %v6125_v12 = vpop.f32.mrf.mxu3  ;;  %v6041_v26 = vpop.f32.mrf.mxu0 }
 0x65a   :  { %v6042_v5 = vadd.f32 %v6041_v26, %v12852_v6  ;;  %v12872_v8 = vadd.f32 %v6125_v12, %v6097_v55  ;;  %v10454_v55 = vor.u32 %v11658_v7, %v10453_v35 }
 0x65b   :  { %v6070_v36 = vpop.f32.mrf.mxu1 }
 0x65c   :  { %13476 = vst [vmem:[#allocation31_spill] sm:$0xff] %v12872_v8  ;;  %v12874_v31 = vadd.f32 %v6070_v36, %v6042_v5  ;;  %6272 = vmatmul.bf16.gmra.mxu0 %v12796_v24  ;;  %6330 = vmatmul.bf16.gmra.mxu2 %v12796_v24 }
 0x65d   :  { %6411 = vmatpush.bf16.msrb.mxu1 %v10454_v55 }
 0x65e   :  { %13477 = vst [vmem:[#allocation32_spill] sm:$0xff] %v12874_v31  ;;  %6301 = vmatmul.bf16.gmra.mxu1 %v12800_v2  ;;  %6359 = vmatmul.bf16.gmra.mxu3 %v12800_v2 }
 0x65f   :  { %v6099_v37 = vpop.f32.mrf.mxu2 }
 0x660   :  { %v6100_v22 = vadd.f32 %v6099_v37, %v12861_v54 }
 0x661   :  { %v6128_v1 = vpop.f32.mrf.mxu3  ;;  %v6043_v16 = vpop.f32.mrf.mxu0 }
 0x662   :  { %v6044_v25 = vadd.f32 %v6043_v16, %v12852_v6  ;;  %v12882_v19 = vadd.f32 %v6128_v1, %v6100_v22 }
 0x663   :  { %v6072_v18 = vpop.f32.mrf.mxu1 }
 0x664   :  { %13478 = vst [vmem:[#allocation34_spill] sm:$0xff] %v12882_v19  ;;  %v12884_v60 = vadd.f32 %v6072_v18, %v6044_v25 }
 0x666   :  { %13479 = vst [vmem:[#allocation57_spill] sm:$0xff] %v12884_v60 }
 0x667   :  { %v6101_v61 = vpop.f32.mrf.mxu2 }
 0x668   :  { %v6102_v57 = vadd.f32 %v6101_v61, %v12861_v54 }
 0x669   :  { %v6130_v30 = vpop.f32.mrf.mxu3  ;;  %v6046_v15 = vpop.f32.mrf.mxu0 }
 0x66a   :  { %v6047_v11 = vadd.f32 %v6046_v15, %v12852_v6  ;;  %v12888_v12 = vadd.f32 %v6130_v30, %v6102_v57 }
 0x66b   :  { %v6075_v39 = vpop.f32.mrf.mxu1 }
 0x66c   :  { %13480 = vst [vmem:[#allocation59_spill] sm:$0xff] %v12888_v12  ;;  %v12890_v26 = vadd.f32 %v6075_v39, %v6047_v11  ;;  %6277 = vmatmul.bf16.gmra.mxu0 %v12808_v17  ;;  %6335 = vmatmul.bf16.gmra.mxu2 %v12808_v17 }
 0x66e   :  { %13481 = vst [vmem:[#allocation60_spill] sm:$0xff] %v12890_v26  ;;  %6306 = vmatmul.bf16.gmra.mxu1 %v12812_v10  ;;  %6364 = vmatmul.bf16.gmra.mxu3 %v12812_v10 }
 0x66f   :  { %v6104_v5 = vpop.f32.mrf.mxu2 }
 0x670   :  { %v6105_v36 = vadd.f32 %v6104_v5, %v12861_v54 }
 0x671   :  { %v6133_v51 = vpop.f32.mrf.mxu3  ;;  %v6048_v40 = vpop.f32.mrf.mxu0 }
 0x672   :  { %v6049_v38 = vadd.f32 %v6048_v40, %v12852_v6  ;;  %v12898_v44 = vadd.f32 %v6133_v51, %v6105_v36 }
 0x673   :  { %v6077_v46 = vpop.f32.mrf.mxu1 }
 0x674   :  { %13482 = vst [vmem:[#allocation61_spill] sm:$0xff] %v12898_v44  ;;  %v12900_v50 = vadd.f32 %v6077_v46, %v6049_v38 }
 0x676   :  { %13483 = vst [vmem:[#allocation33_spill] sm:$0xff] %v12900_v50 }
 0x677   :  { %v6106_v23 = vpop.f32.mrf.mxu2 }
 0x678   :  { %v6107_v43 = vadd.f32 %v6106_v23, %v12861_v54 }
 0x679   :  { %v6135_v33 = vpop.f32.mrf.mxu3  ;;  %v6051_v21 = vpop.f32.mrf.mxu0 }
 0x67a   :  { %v6052_v37 = vadd.f32 %v6051_v21, %v12852_v6  ;;  %v12904_v42 = vadd.f32 %v6135_v33, %v6107_v43 }
 0x67b   :  { %v6080_v49 = vpop.f32.mrf.mxu1 }
 0x67c   :  { %13484 = vst [vmem:[#allocation35_spill] sm:$0xff] %v12904_v42  ;;  %v12906_v22 = vadd.f32 %v6080_v49, %v6052_v37  ;;  %6282 = vmatmul.bf16.gmra.mxu0 %v12820_v45  ;;  %6340 = vmatmul.bf16.gmra.mxu2 %v12820_v45 }
 0x67e   :  { %13485 = vst [vmem:[#allocation36_spill] sm:$0xff] %v12906_v22  ;;  %6311 = vmatmul.bf16.gmra.mxu1 %v12824_v41  ;;  %6369 = vmatmul.bf16.gmra.mxu3 %v12824_v41 }
 0x67f   :  { %v6109_v1 = vpop.f32.mrf.mxu2 }
 0x680   :  { %v6110_v16 = vadd.f32 %v6109_v1, %v12861_v54 }
 0x681   :  { %v6138_v25 = vpop.f32.mrf.mxu3  ;;  %v6053_v18 = vpop.f32.mrf.mxu0 }
 0x682   :  { %v6054_v53 = vadd.f32 %v6053_v18, %v12852_v6  ;;  %v12914_v13 = vadd.f32 %v6138_v25, %v6110_v16  ;;  %v12931_v6 = vperm.slane %v12849_v27, 3 }
 0x683   :  { %v6082_v9 = vpop.f32.mrf.mxu1 }
 0x684   :  { %13486 = vst [vmem:[#allocation37_spill] sm:$0xff] %v12914_v13  ;;  %v12916_v32 = vadd.f32 %v6082_v9, %v6054_v53 }
 0x686   :  { %13487 = vst [vmem:[#allocation54_spill] sm:$0xff] %v12916_v32 }
 0x687   :  { %v6111_v14 = vpop.f32.mrf.mxu2 }
 0x688   :  { %v6112_v34 = vadd.f32 %v6111_v14, %v12861_v54 }
 0x689   :  { %v6140_v28 = vpop.f32.mrf.mxu3  ;;  %v6152_v62 = vpop.f32.mrf.mxu0 }
 0x68a   :  { %v6153_v52 = vadd.f32 %v6152_v62, %v12919_v47  ;;  %v12923_v59 = vadd.f32 %v6140_v28, %v6112_v34 }
 0x68b   :  { %v6181_v58 = vpop.f32.mrf.mxu1 }
 0x68c   :  { %13488 = vst [vmem:[#allocation55_spill] sm:$0xff] %v12923_v59  ;;  %v12925_v61 = vadd.f32 %v6181_v58, %v6153_v52  ;;  %6383 = vmatmul.bf16.vlgmr.msrb.gmra.mxu0 %v12784_v0  ;;  %6441 = vmatmul.bf16.vlgmr.msrb.gmra.mxu2 %v12784_v0 }
 0x68e   :  { %6412 = vmatmul.bf16.vlgmr.msrb.gmra.mxu1 %v12788_v4  ;;  %6470 = vmatmul.bf16.vlgmr.msrb.gmra.mxu3 %v12788_v4 }
 0x68f   :  { %v6210_v54 = vpop.f32.mrf.mxu2 }
 0x690   :  { %v6211_v63 = vadd.f32 %v6210_v54, %v12931_v6 }
 0x691   :  { %v6239_v20 = vpop.f32.mrf.mxu3  ;;  %v6154_v35 = vpop.f32.mrf.mxu0 }
 0x692   :  { %v6155_v57 = vadd.f32 %v6154_v35, %v12919_v47  ;;  %v12936_v15 = vadd.f32 %v6239_v20, %v6211_v63 }
 0x693   :  { %v6183_v30 = vpop.f32.mrf.mxu1 }
 0x694   :  { %v12938_v29 = vadd.f32 %v6183_v30, %v6155_v57 }
 0x696   :  { %13489 = vst [vmem:[#allocation56_spill] sm:$0xff] %v12938_v29 }
 0x697   :  { %v6212_v7 = vpop.f32.mrf.mxu2 }
 0x698   :  { %v6213_v0 = vadd.f32 %v6212_v7, %v12931_v6 }
 0x699   :  { %v6241_v11 = vpop.f32.mrf.mxu3  ;;  %v6157_v39 = vpop.f32.mrf.mxu0 }
 0x69a   :  { %v6158_v55 = vadd.f32 %v6157_v39, %v12919_v47  ;;  %v12942_v5 = vadd.f32 %v6241_v11, %v6213_v0 }
 0x69b   :  { %v6186_v4 = vpop.f32.mrf.mxu1 }
 0x69c   :  { %13490 = vst [vmem:[#allocation58_spill] sm:$0xff] %v12942_v5  ;;  %v12944_v36 = vadd.f32 %v6186_v4, %v6158_v55  ;;  %6388 = vmatmul.bf16.gmra.mxu0 %v12796_v24  ;;  %6446 = vmatmul.bf16.gmra.mxu2 %v12796_v24 }
 0x69e   :  { %13491 = vst [vmem:[#allocation38_spill] sm:$0xff] %v12944_v36  ;;  %6417 = vmatmul.bf16.gmra.mxu1 %v12800_v2  ;;  %6475 = vmatmul.bf16.gmra.mxu3 %v12800_v2 }
 0x69f   :  { %v6215_v51 = vpop.f32.mrf.mxu2 }
 0x6a0   :  { %v6216_v40 = vadd.f32 %v6215_v51, %v12931_v6 }
 0x6a1   :  { %v6244_v38 = vpop.f32.mrf.mxu3  ;;  %v6159_v46 = vpop.f32.mrf.mxu0 }
 0x6a2   :  { %v6160_v23 = vadd.f32 %v6159_v46, %v12919_v47  ;;  %v12952_v33 = vadd.f32 %v6244_v38, %v6216_v40 }
 0x6a3   :  { %v6188_v43 = vpop.f32.mrf.mxu1 }
 0x6a4   :  { %13492 = vst [vmem:[#allocation39_spill] sm:$0xff] %v12952_v33  ;;  %v12954_v21 = vadd.f32 %v6188_v43, %v6160_v23 }
 0x6a6   :  { %13493 = vst [vmem:[#allocation40_spill] sm:$0xff] %v12954_v21 }
 0x6a7   :  { %v6217_v37 = vpop.f32.mrf.mxu2 }
 0x6a8   :  { %v6218_v49 = vadd.f32 %v6217_v37, %v12931_v6 }
 0x6a9   :  { %v6246_v1 = vpop.f32.mrf.mxu3  ;;  %v6162_v16 = vpop.f32.mrf.mxu0 }
 0x6aa   :  { %v6163_v24 = vadd.f32 %v6162_v16, %v12919_v47  ;;  %v12958_v25 = vadd.f32 %v6246_v1, %v6218_v49 }
 0x6ab   :  { %v6191_v2 = vpop.f32.mrf.mxu1 }
 0x6ac   :  { %13494 = vst [vmem:[#allocation42_spill] sm:$0xff] %v12958_v25  ;;  %v12960_v18 = vadd.f32 %v6191_v2, %v6163_v24  ;;  %6393 = vmatmul.bf16.gmra.mxu0 %v12808_v17  ;;  %6451 = vmatmul.bf16.gmra.mxu2 %v12808_v17 }
 0x6ae   :  { %13495 = vst [vmem:[#allocation49_spill] sm:$0xff] %v12960_v18  ;;  %6422 = vmatmul.bf16.gmra.mxu1 %v12812_v10  ;;  %6480 = vmatmul.bf16.gmra.mxu3 %v12812_v10 }
 0x6af   :  { %v6220_v53 = vpop.f32.mrf.mxu2 }
 0x6b0   :  { %v6221_v9 = vadd.f32 %v6220_v53, %v12931_v6 }
 0x6b1   :  { %v6249_v14 = vpop.f32.mrf.mxu3  ;;  %v6164_v34 = vpop.f32.mrf.mxu0 }
 0x6b2   :  { %v6165_v28 = vadd.f32 %v6164_v34, %v12919_v47  ;;  %v12968_v52 = vadd.f32 %v6249_v14, %v6221_v9 }
 0x6b3   :  { %v6193_v62 = vpop.f32.mrf.mxu1 }
 0x6b4   :  { %13496 = vst [vmem:[#allocation51_spill] sm:$0xff] %v12968_v52  ;;  %v12970_v58 = vadd.f32 %v6193_v62, %v6165_v28 }
 0x6b6   :  { %13497 = vst [vmem:[#allocation52_spill] sm:$0xff] %v12970_v58 }
 0x6b7   :  { %v6222_v54 = vpop.f32.mrf.mxu2 }
 0x6b8   :  { %v6223_v63 = vadd.f32 %v6222_v54, %v12931_v6 }
 0x6b9   :  { %v6251_v20 = vpop.f32.mrf.mxu3  ;;  %v6167_v35 = vpop.f32.mrf.mxu0 }
 0x6ba   :  { %v6168_v17 = vadd.f32 %v6167_v35, %v12919_v47  ;;  %v12974_v57 = vadd.f32 %v6251_v20, %v6223_v63 }
 0x6bb   :  { %v6196_v10 = vpop.f32.mrf.mxu1 }
 0x6bc   :  { %13498 = vst [vmem:[#allocation53_spill] sm:$0xff] %v12974_v57  ;;  %v12976_v30 = vadd.f32 %v6196_v10, %v6168_v17  ;;  %6398 = vmatmul.bf16.gmra.mxu0 %v12820_v45  ;;  %6456 = vmatmul.bf16.gmra.mxu2 %v12820_v45 }
 0x6be   :  { %13499 = vst [vmem:[#allocation41_spill] sm:$0xff] %v12976_v30  ;;  %6427 = vmatmul.bf16.gmra.mxu1 %v12824_v41  ;;  %6485 = vmatmul.bf16.gmra.mxu3 %v12824_v41 }
 0x6bf   :  { %v6225_v7 = vpop.f32.mrf.mxu2 }
 0x6c0   :  { %v6226_v0 = vadd.f32 %v6225_v7, %v12931_v6 }
 0x6c1   :  { %v6254_v11 = vpop.f32.mrf.mxu3  ;;  %v6169_v39 = vpop.f32.mrf.mxu0 }
 0x6c2   :  { %v6170_v55 = vadd.f32 %v6169_v39, %v12919_v47  ;;  %v12984_v51 = vadd.f32 %v6254_v11, %v6226_v0 }
 0x6c3   :  { %v6198_v4 = vpop.f32.mrf.mxu1 }
 0x6c4   :  { %13500 = vst [vmem:[#allocation43_spill] sm:$0xff] %v12984_v51  ;;  %v12986_v40 = vadd.f32 %v6198_v4, %v6170_v55  ;;  %v5375_v55 = vperm.slane %v12849_v27, 4 }
 0x6c6   :  { %13501 = vst [vmem:[#allocation44_spill] sm:$0xff] %v12986_v40 }
 0x6c7   :  { %v6227_v38 = vpop.f32.mrf.mxu2 }
 0x6c8   :  { %v6228_v46 = vadd.f32 %v6227_v38, %v12931_v6 }
 0x6c9   :  { %v6256_v23 = vpop.f32.mrf.mxu3  ;;  %v6268_v43 = vpop.f32.mrf.mxu0 }
 0x6ca   :  { %v12989_v37 = vadd.f32 %v6256_v23, %v6228_v46 }
 0x6cb   :  { %v6297_v45 = vpop.f32.mrf.mxu1 }
 0x6cc   :  { %13502 = vst [vmem:[#allocation45_spill] sm:$0xff] %v12989_v37 }
 0x6cf   :  { %v6326_v41 = vpop.f32.mrf.mxu2 }
 0x6d0   :  { %v5376_v41 = vperm.slane %v12849_v27, 5 }
 0x6d1   :  { %v6355_v49 = vpop.f32.mrf.mxu3  ;;  %v6270_v1 = vpop.f32.mrf.mxu0 }
 0x6d3   :  { %v6299_v16 = vpop.f32.mrf.mxu1 }
 0x6d7   :  { %v6328_v24 = vpop.f32.mrf.mxu2 }
 0x6d9   :  { %v6357_v2 = vpop.f32.mrf.mxu3  ;;  %v6273_v47 = vpop.f32.mrf.mxu0 }
 0x6db   :  { %v6302_v53 = vpop.f32.mrf.mxu1 }
 0x6df   :  { %v6331_v9 = vpop.f32.mrf.mxu2 }
 0x6e1   :  { %v6360_v14 = vpop.f32.mrf.mxu3  ;;  %v6275_v34 = vpop.f32.mrf.mxu0 }
 0x6e3   :  { %v6304_v28 = vpop.f32.mrf.mxu1 }
 0x6e7   :  { %v6333_v62 = vpop.f32.mrf.mxu2 }
 0x6e9   :  { %v6362_v54 = vpop.f32.mrf.mxu3  ;;  %v6278_v6 = vpop.f32.mrf.mxu0 }
 0x6eb   :  { %v6307_v63 = vpop.f32.mrf.mxu1 }
 0x6ef   :  { %v6336_v20 = vpop.f32.mrf.mxu2 }
 0x6f1   :  { %v6365_v35 = vpop.f32.mrf.mxu3  ;;  %v6280_v17 = vpop.f32.mrf.mxu0 }
 0x6f3   :  { %v6309_v10 = vpop.f32.mrf.mxu1 }
 0x6f7   :  { %v6338_v7 = vpop.f32.mrf.mxu2 }
 0x6f9   :  { %v6367_v0 = vpop.f32.mrf.mxu3  ;;  %v6283_v11 = vpop.f32.mrf.mxu0 }
 0x6fb   :  { %v6312_v39 = vpop.f32.mrf.mxu1 }
 0x6ff   :  { %v6341_v4 = vpop.f32.mrf.mxu2 }
 0x701   :  { %v6370_v38 = vpop.f32.mrf.mxu3  ;;  %v6285_v46 = vpop.f32.mrf.mxu0 }
 0x702   :  { %v6286_v23 = vadd.f32 %v6285_v46, %v5375_v55 }
 0x703   :  { %v6314_v43 = vpop.f32.mrf.mxu1 }
 0x704   :  { %v12992_v45 = vadd.f32 %v6314_v43, %v6286_v23 }
 0x707   :  { %v6343_v49 = vpop.f32.mrf.mxu2 }
 0x708   :  { %v6344_v1 = vadd.f32 %v6343_v49, %v5376_v41  ;;  %v5377_v49 = vperm.slane %v12849_v27, 6 }
 0x709   :  { %v6372_v16 = vpop.f32.mrf.mxu3  ;;  %v6384_v24 = vpop.f32.mrf.mxu0 }
 0x70a   :  { %v12995_v47 = vadd.f32 %v6372_v16, %v6344_v1 }
 0x70b   :  { %v6413_v2 = vpop.f32.mrf.mxu1 }
 0x70f   :  { %v6442_v53 = vpop.f32.mrf.mxu2 }
 0x711   :  { %v6471_v9 = vpop.f32.mrf.mxu3  ;;  %v6386_v14 = vpop.f32.mrf.mxu0 }
 0x712   :  { %v5378_v14 = vperm.slane %v12849_v27, 7 }
 0x713   :  { %v6415_v34 = vpop.f32.mrf.mxu1 }
 0x717   :  { %v6444_v28 = vpop.f32.mrf.mxu2 }
 0x719   :  { %v6473_v62 = vpop.f32.mrf.mxu3  ;;  %v6389_v54 = vpop.f32.mrf.mxu0 }
 0x71b   :  { %v6418_v6 = vpop.f32.mrf.mxu1 }
 0x71f   :  { %v6447_v63 = vpop.f32.mrf.mxu2 }
 0x721   :  { %v6476_v20 = vpop.f32.mrf.mxu3  ;;  %v6391_v35 = vpop.f32.mrf.mxu0 }
 0x723   :  { %v6420_v17 = vpop.f32.mrf.mxu1 }
 0x727   :  { %v6449_v10 = vpop.f32.mrf.mxu2 }
 0x729   :  { %v6478_v7 = vpop.f32.mrf.mxu3  ;;  %v6394_v0 = vpop.f32.mrf.mxu0 }
 0x72b   :  { %v6423_v11 = vpop.f32.mrf.mxu1 }
 0x72f   :  { %v6452_v39 = vpop.f32.mrf.mxu2 }
 0x731   :  { %v6481_v55 = vpop.f32.mrf.mxu3  ;;  %v6396_v4 = vpop.f32.mrf.mxu0 }
 0x733   :  { %v6425_v38 = vpop.f32.mrf.mxu1 }
 0x737   :  { %v6454_v46 = vpop.f32.mrf.mxu2 }
 0x739   :  { %v6483_v23 = vpop.f32.mrf.mxu3  ;;  %v6399_v43 = vpop.f32.mrf.mxu0 }
 0x73b   :  { %v6428_v41 = vpop.f32.mrf.mxu1 }
 0x73f   :  { %v6457_v1 = vpop.f32.mrf.mxu2 }
 0x741   :  { %v6486_v16 = vpop.f32.mrf.mxu3  ;;  %v6401_v24 = vpop.f32.mrf.mxu0 }
 0x742   :  { %v6402_v2 = vadd.f32 %v6401_v24, %v5377_v49 }
 0x743   :  { %v6430_v53 = vpop.f32.mrf.mxu1 }
 0x744   :  { %v12998_v9 = vadd.f32 %v6430_v53, %v6402_v2 }
 0x746   :  { %13503 = vst [vmem:[#allocation46_spill] sm:$0xff] %v12998_v9 }
 0x747   :  { %v6459_v34 = vpop.f32.mrf.mxu2 }
 0x748   :  { %v6460_v28 = vadd.f32 %v6459_v34, %v5378_v14 }
 0x749   :  { %v6488_v62 = vpop.f32.mrf.mxu3 }
 0x74a   :  { %v13001_v54 = vadd.f32 %v6488_v62, %v6460_v28 }
 0x74c   :  { %13504 = vst [vmem:[#allocation47_spill] sm:$0xff] %v13001_v54 }
 0x74d   :  { %12232 = dma.done.wait [#allocation8 + $0x1], 4096 }
 0x74e   :  { %12233 = vsyncadd [#allocation8 + $0x1], 4294963200 }
 0x74f   :  { %12234 = dma.done.wait [#allocation8 + $0x2], 4096 }
 0x750   :  { %12235 = vsyncadd [#allocation8 + $0x2], 4294963200  ;;  %v10797_v6 = vld [vmem:[#allocation3 + $0xe0] sm:$0xf]  ;;  %v11745_v63 = vld [vmem:[#allocation3 + $0xec] sm:$0xf0] }
 0x751   :  { %v11743_v20 = vld [vmem:[#allocation3 + $0xe4] sm:$0xf]  ;;  %v13003_v35 = vor.u32 %v11745_v63, %v10797_v6  ;;  %v10799_v17 = vld [vmem:[#allocation3 + $0xf0] sm:$0xf0]  ;;  %v10805_v10 = vld [vmem:[#allocation3 + $0xe8] sm:$0xf] }
 0x752   :  { %v11746_v7 = vld [vmem:[#allocation3 + $0xf4] sm:$0xf0]  ;;  %v13005_v0 = vor.u32 %v11743_v20, %v10799_v17  ;;  %v11744_v11 = vld [vmem:[#allocation3 + $0xec] sm:$0xf]  ;;  %v10807_v39 = vld [vmem:[#allocation3 + $0xf8] sm:$0xf0] }
 0x753   :  { %v13007_v27 = vor.u32 %v11746_v7, %v10805_v10  ;;  %v10781_v55 = vld [vmem:[#allocation3 + $0xc0] sm:$0xf]  ;;  %6757 = vmatpush.bf16.msra.mxu0 %v13003_v35  ;;  %v13010_v4 = vor.u32 %v11744_v11, %v10807_v39  ;;  %v11741_v38 = vld [vmem:[#allocation3 + $0xcc] sm:$0xf0]  ;;  %v11739_v46 = vld [vmem:[#allocation3 + $0xc4] sm:$0xf] }
 0x754   :  { %v10783_v23 = vld [vmem:[#allocation3 + $0xd0] sm:$0xf0]  ;;  %6770 = vmatpush.bf16.msra.mxu1 %v13005_v0  ;;  %v13014_v43 = vor.u32 %v11741_v38, %v10781_v55  ;;  %v10789_v49 = vld [vmem:[#allocation3 + $0xc8] sm:$0xf]  ;;  %v11742_v1 = vld [vmem:[#allocation3 + $0xd4] sm:$0xf0] }
 0x755   :  { %6783 = vmatpush.bf16.msra.mxu2 %v13007_v27  ;;  %v13016_v41 = vor.u32 %v11739_v46, %v10783_v23  ;;  %v11740_v16 = vld [vmem:[#allocation3 + $0xcc] sm:$0xf]  ;;  %6796 = vmatpush.bf16.msra.mxu3 %v13010_v4  ;;  %v13019_v24 = vor.u32 %v11742_v1, %v10789_v49  ;;  %v10791_v2 = vld [vmem:[#allocation3 + $0xd8] sm:$0xf0]  ;;  %v10765_v53 = vld [vmem:[#allocation3 + $0xa0] sm:$0xf] }
 0x756   :  { %v11737_v14 = vld [vmem:[#allocation3 + $0xac] sm:$0xf0]  ;;  %v13021_v34 = vor.u32 %v11740_v16, %v10791_v2  ;;  %v11735_v28 = vld [vmem:[#allocation3 + $0xa4] sm:$0xf]  ;;  %v10767_v62 = vld [vmem:[#allocation3 + $0xb0] sm:$0xf0] }
 0x757   :  { %v10773_v6 = vld [vmem:[#allocation3 + $0xa8] sm:$0xf]  ;;  %6758 = vmatpush.bf16.msra.mxu0 %v13014_v43  ;;  %v13024_v63 = vor.u32 %v11737_v14, %v10765_v53  ;;  %v11738_v20 = vld [vmem:[#allocation3 + $0xb4] sm:$0xf0]  ;;  %v11736_v17 = vld [vmem:[#allocation3 + $0xac] sm:$0xf]  ;;  %v13028_v7 = vor.u32 %v11735_v28, %v10767_v62 }
 0x758   :  { %v10775_v10 = vld [vmem:[#allocation3 + $0xb8] sm:$0xf0]  ;;  %6771 = vmatpush.bf16.msra.mxu1 %v13016_v41  ;;  %v13030_v11 = vor.u32 %v11738_v20, %v10773_v6  ;;  %v10749_v39 = vld [vmem:[#allocation3 + $0x80] sm:$0xf]  ;;  %v11733_v55 = vld [vmem:[#allocation3 + $0x8c] sm:$0xf0] }
 0x759   :  { %6784 = vmatpush.bf16.msra.mxu2 %v13019_v24  ;;  %v11731_v38 = vld [vmem:[#allocation3 + $0x84] sm:$0xf]  ;;  %6797 = vmatpush.bf16.msra.mxu3 %v13021_v34  ;;  %v13033_v46 = vor.u32 %v11736_v17, %v10775_v10  ;;  %v10751_v23 = vld [vmem:[#allocation3 + $0x90] sm:$0xf0]  ;;  %v10757_v49 = vld [vmem:[#allocation3 + $0x88] sm:$0xf]  ;;  %v13036_v53 = vor.u32 %v11733_v55, %v10749_v39 }
 0x75a   :  { %v11734_v1 = vld [vmem:[#allocation3 + $0x94] sm:$0xf0]  ;;  %v11732_v16 = vld [vmem:[#allocation3 + $0x8c] sm:$0xf]  ;;  %v10759_v2 = vld [vmem:[#allocation3 + $0x98] sm:$0xf0]  ;;  %v13040_v14 = vor.u32 %v11731_v38, %v10751_v23 }
 0x75b   :  { %6759 = vmatpush.bf16.msra.mxu0 %v13024_v63  ;;  %v13042_v28 = vor.u32 %v11734_v1, %v10757_v49  ;;  %v10733_v62 = vld [vmem:[#allocation3 + $0x60] sm:$0xf]  ;;  %v11729_v6 = vld [vmem:[#allocation3 + $0x6c] sm:$0xf0]  ;;  %v11727_v20 = vld [vmem:[#allocation3 + $0x64] sm:$0xf]  ;;  %v13045_v17 = vor.u32 %v11732_v16, %v10759_v2 }
 0x75c   :  { %6772 = vmatpush.bf16.msra.mxu1 %v13028_v7  ;;  %v10735_v10 = vld [vmem:[#allocation3 + $0x70] sm:$0xf0]  ;;  %v10741_v37 = vld [vmem:[#allocation3 + $0x68] sm:$0xf]  ;;  %v11730_v40 = vld [vmem:[#allocation3 + $0x74] sm:$0xf0]  ;;  %v13048_v59 = vor.u32 %v11729_v6, %v10733_v62 }
 0x75d   :  { %6785 = vmatpush.bf16.msra.mxu2 %v13030_v11  ;;  %6798 = vmatpush.bf16.msra.mxu3 %v13033_v46  ;;  %v11728_v39 = vld [vmem:[#allocation3 + $0x6c] sm:$0xf]  ;;  %v10743_v55 = vld [vmem:[#allocation3 + $0x78] sm:$0xf0]  ;;  %v13052_v38 = vor.u32 %v11727_v20, %v10735_v10  ;;  %v13054_v23 = vor.u32 %v11730_v40, %v10741_v37  ;;  %v10717_v49 = vld [vmem:[#allocation3 + $0x40] sm:$0xf] }
 0x75e   :  { %v11725_v1 = vld [vmem:[#allocation3 + $0x4c] sm:$0xf0]  ;;  %v11723_v16 = vld [vmem:[#allocation3 + $0x44] sm:$0xf]  ;;  %v13057_v2 = vor.u32 %v11728_v39, %v10743_v55  ;;  %v10719_v32 = vld [vmem:[#allocation3 + $0x50] sm:$0xf0] }
 0x75f   :  { %6760 = vmatpush.bf16.msra.mxu0 %v13036_v53  ;;  %v10725_v51 = vld [vmem:[#allocation3 + $0x48] sm:$0xf]  ;;  %v11726_v30 = vld [vmem:[#allocation3 + $0x54] sm:$0xf0]  ;;  %v11724_v62 = vld [vmem:[#allocation3 + $0x4c] sm:$0xf]  ;;  %v13060_v13 = vor.u32 %v11725_v1, %v10717_v49  ;;  %v13064_v40 = vor.u32 %v11723_v16, %v10719_v32 }
 0x760   :  { %6773 = vmatpush.bf16.msra.mxu1 %v13040_v14  ;;  %v10727_v6 = vld [vmem:[#allocation3 + $0x58] sm:$0xf0]  ;;  %v13066_v37 = vor.u32 %v11726_v30, %v10725_v51  ;;  %v10701_v20 = vld [vmem:[#allocation3 + $0x20] sm:$0xf]  ;;  %v11721_v10 = vld [vmem:[#allocation3 + $0x2c] sm:$0xf0] }
 0x761   :  { %6786 = vmatpush.bf16.msra.mxu2 %v13042_v28  ;;  %6799 = vmatpush.bf16.msra.mxu3 %v13045_v17  ;;  %v11719_v39 = vld [vmem:[#allocation3 + $0x24] sm:$0xf]  ;;  %v13069_v55 = vor.u32 %v11724_v62, %v10727_v6  ;;  %v10703_v22 = vld [vmem:[#allocation3 + $0x30] sm:$0xf0]  ;;  %v10709_v57 = vld [vmem:[#allocation3 + $0x28] sm:$0xf]  ;;  %v13072_v42 = vor.u32 %v11721_v10, %v10701_v20 }
 0x762   :  { %v11722_v58 = vld [vmem:[#allocation3 + $0x34] sm:$0xf0]  ;;  %v11720_v49 = vld [vmem:[#allocation3 + $0x2c] sm:$0xf]  ;;  %v10711_v1 = vld [vmem:[#allocation3 + $0x38] sm:$0xf0]  ;;  %v13076_v30 = vor.u32 %v11719_v39, %v10703_v22 }
 0x763   :  { %6761 = vmatpush.bf16.msra.mxu0 %v13048_v59  ;;  %v10685_v32 = vld [vmem:[#allocation3] sm:$0xf]  ;;  %v13078_v51 = vor.u32 %v11722_v58, %v10709_v57  ;;  %v11717_v16 = vld [vmem:[#allocation3 + $0xc] sm:$0xf0]  ;;  %v11715_v62 = vld [vmem:[#allocation3 + $0x4] sm:$0xf]  ;;  %v13081_v50 = vor.u32 %v11720_v49, %v10711_v1 }
 0x764   :  { %6774 = vmatpush.bf16.msra.mxu1 %v13052_v38  ;;  %v10687_v6 = vld [vmem:[#allocation3 + $0x10] sm:$0xf0]  ;;  %v10693_v52 = vld [vmem:[#allocation3 + $0x8] sm:$0xf]  ;;  %v11718_v18 = vld [vmem:[#allocation3 + $0x14] sm:$0xf0]  ;;  %v13084_v25 = vor.u32 %v11717_v16, %v10685_v32 }
 0x765   :  { %6787 = vmatpush.bf16.msra.mxu2 %v13054_v23  ;;  %6800 = vmatpush.bf16.msra.mxu3 %v13057_v2  ;;  %v11716_v20 = vld [vmem:[#allocation3 + $0xc] sm:$0xf]  ;;  %v10695_v10 = vld [vmem:[#allocation3 + $0x18] sm:$0xf0]  ;;  %v10925_v44 = vld [vmem:[#allocation4 + $0xe0] sm:$0xf]  ;;  %v13088_v57 = vor.u32 %v11715_v62, %v10687_v6  ;;  %v13090_v39 = vor.u32 %v11718_v18, %v10693_v52 }
 0x766   :  { %v11777_v26 = vld [vmem:[#allocation4 + $0xec] sm:$0xf0]  ;;  %v11775_v22 = vld [vmem:[#allocation4 + $0xe4] sm:$0xf]  ;;  %v10927_v58 = vld [vmem:[#allocation4 + $0xf0] sm:$0xf0]  ;;  %v13093_v49 = vor.u32 %v11716_v20, %v10695_v10 }
 0x767   :  { %6762 = vmatpush.bf16.msra.mxu0 %v13060_v13  ;;  %v10926_v1 = vor.u32 %v11777_v26, %v10925_v44  ;;  %v10933_v21 = vld [vmem:[#allocation4 + $0xe8] sm:$0xf]  ;;  %v11778_v12 = vld [vmem:[#allocation4 + $0xf4] sm:$0xf0]  ;;  %v11776_v60 = vld [vmem:[#allocation4 + $0xec] sm:$0xf]  ;;  %v10930_v32 = vor.u32 %v11775_v22, %v10927_v58 }
 0x768   :  { %6775 = vmatpush.bf16.msra.mxu1 %v13064_v40  ;;  %v10935_v16 = vld [vmem:[#allocation4 + $0xf8] sm:$0xf0]  ;;  %v10909_v33 = vld [vmem:[#allocation4 + $0xc0] sm:$0xf]  ;;  %v11773_v36 = vld [vmem:[#allocation4 + $0xcc] sm:$0xf0]  ;;  %v10934_v18 = vor.u32 %v11778_v12, %v10933_v21 }
 0x769   :  { %6788 = vmatpush.bf16.msra.mxu2 %v13066_v37  ;;  %6801 = vmatpush.bf16.msra.mxu3 %v13069_v55  ;;  %v11771_v19 = vld [vmem:[#allocation4 + $0xc4] sm:$0xf]  ;;  %v10911_v31 = vld [vmem:[#allocation4 + $0xd0] sm:$0xf0]  ;;  %v10938_v26 = vor.u32 %v11776_v60, %v10935_v16  ;;  %v10910_v44 = vor.u32 %v11773_v36, %v10909_v33  ;;  %v10917_v52 = vld [vmem:[#allocation4 + $0xc8] sm:$0xf] }
 0x76a   :  { %v11774_v62 = vld [vmem:[#allocation4 + $0xd4] sm:$0xf0]  ;;  %v11772_v6 = vld [vmem:[#allocation4 + $0xcc] sm:$0xf]  ;;  %v13505_v20 = vmov 0   ;;  %v10914_v10 = vor.u32 %v11771_v19, %v10911_v31 }
 0x76b   :  { %6763 = vmatpush.bf16.msra.mxu0 %v13072_v42  ;;  %v10919_v22 = vld [vmem:[#allocation4 + $0xd8] sm:$0xf0]  ;;  %v10893_v58 = vld [vmem:[#allocation4 + $0xa0] sm:$0xf]  ;;  %v11769_v5 = vld [vmem:[#allocation4 + $0xac] sm:$0xf0]  ;;  %v10918_v60 = vor.u32 %v11774_v62, %v10917_v52 }
 0x76c   :  { %6776 = vmatpush.bf16.msra.mxu1 %v13076_v30  ;;  %v11767_v12 = vld [vmem:[#allocation4 + $0xa4] sm:$0xf]  ;;  %v10895_v21 = vld [vmem:[#allocation4 + $0xb0] sm:$0xf0]  ;;  %v10922_v36 = vor.u32 %v11772_v6, %v10919_v22  ;;  %v10894_v33 = vor.u32 %v11769_v5, %v10893_v58  ;;  %v11768_v31 = vld [vmem:[#allocation4 + $0xac] sm:$0xf] }
 0x76d   :  { %6789 = vmatpush.bf16.msra.mxu2 %v13078_v51  ;;  %6802 = vmatpush.bf16.msra.mxu3 %v13081_v50  ;;  %v10898_v19 = vor.u32 %v11767_v12, %v10895_v21  ;;  %v10903_v16 = vld [vmem:[#allocation4 + $0xb8] sm:$0xf0]  ;;  %v10877_v29 = vld [vmem:[#allocation4 + $0x80] sm:$0xf]  ;;  %v11765_v8 = vld [vmem:[#allocation4 + $0x8c] sm:$0xf0] }
 0x76e   :  { %v11763_v48 = vld [vmem:[#allocation4 + $0x84] sm:$0xf]  ;;  %v10879_v54 = vld [vmem:[#allocation4 + $0x90] sm:$0xf0]  ;;  %v10878_v52 = vor.u32 %v11765_v8, %v10877_v29  ;;  %v11764_v62 = vld [vmem:[#allocation4 + $0x8c] sm:$0xf] }
 0x76f   :  { %6764 = vmatpush.bf16.msra.mxu0 %v13084_v25  ;;  %v10882_v5 = vor.u32 %v11763_v48, %v10879_v54  ;;  %v10887_v6 = vld [vmem:[#allocation4 + $0x98] sm:$0xf0]  ;;  %v10861_v22 = vld [vmem:[#allocation4 + $0x60] sm:$0xf]  ;;  %v11759_v58 = vld [vmem:[#allocation4 + $0x64] sm:$0xf] }
 0x770   :  { %6777 = vmatpush.bf16.msra.mxu1 %v13088_v57  ;;  %v10863_v12 = vld [vmem:[#allocation4 + $0x70] sm:$0xf0]  ;;  %v10871_v29 = vld [vmem:[#allocation4 + $0x78] sm:$0xf0]  ;;  %v11755_v48 = vld [vmem:[#allocation4 + $0x44] sm:$0xf] }
 0x771   :  { %6790 = vmatpush.bf16.msra.mxu2 %v13090_v39  ;;  %6803 = vmatpush.bf16.msra.mxu3 %v13093_v49  ;;  %v10866_v8 = vor.u32 %v11759_v58, %v10863_v12  ;;  %v10847_v54 = vld [vmem:[#allocation4 + $0x50] sm:$0xf0] }
 0x772   :  { %6765 = vmatmul.bf16.vlgmr.msra.gmra.mxu0 %v13505_v20  ;;  %v10831_v58 = vld [vmem:[#allocation4 + $0x30] sm:$0xf0] }
 0x773   :  { %7009 = vmatpush.bf16.msrb.mxu0 %v10926_v1  ;;  %6778 = vmatmul.bf16.vlgmr.msra.gmra.mxu1 %v13505_v20  ;;  %v10901_v1 = vld [vmem:[#allocation4 + $0xa8] sm:$0xf] }
 0x774   :  { %7022 = vmatpush.bf16.msrb.mxu1 %v10930_v32  ;;  %6791 = vmatmul.bf16.vlgmr.msra.gmra.mxu2 %v13505_v20  ;;  %v11770_v32 = vld [vmem:[#allocation4 + $0xb4] sm:$0xf0] }
 0x775   :  { %6804 = vmatmul.bf16.vlgmr.msra.gmra.mxu3 %v13505_v20  ;;  %7035 = vmatpush.bf16.msrb.mxu2 %v10934_v18  ;;  %v10902_v9 = vor.u32 %v11770_v32, %v10901_v1  ;;  %v10906_v18 = vor.u32 %v11768_v31, %v10903_v16  ;;  %v11760_v32 = vld [vmem:[#allocation4 + $0x6c] sm:$0xf]  ;;  %v10845_v31 = vld [vmem:[#allocation4 + $0x40] sm:$0xf] }
 0x776   :  { %7048 = vmatpush.bf16.msrb.mxu3 %v10938_v26  ;;  %v10885_v26 = vld [vmem:[#allocation4 + $0x88] sm:$0xf] }
 0x777   :  { %7010 = vmatpush.bf16.msrb.mxu0 %v10910_v44  ;;  %v11766_v44 = vld [vmem:[#allocation4 + $0x94] sm:$0xf0] }
 0x778   :  { %7023 = vmatpush.bf16.msrb.mxu1 %v10914_v10  ;;  %v11761_v10 = vld [vmem:[#allocation4 + $0x6c] sm:$0xf0]  ;;  %v10886_v21 = vor.u32 %v11766_v44, %v10885_v26  ;;  %v11756_v44 = vld [vmem:[#allocation4 + $0x4c] sm:$0xf] }
 0x779   :  { %7036 = vmatpush.bf16.msrb.mxu2 %v10918_v60  ;;  %v10890_v60 = vor.u32 %v11764_v62, %v10887_v6  ;;  %v10862_v1 = vor.u32 %v11761_v10, %v10861_v22  ;;  %v10850_v62 = vor.u32 %v11755_v48, %v10847_v54  ;;  %v10855_v6 = vld [vmem:[#allocation4 + $0x58] sm:$0xf0]  ;;  %v10829_v22 = vld [vmem:[#allocation4 + $0x20] sm:$0xf]  ;;  %v11751_v10 = vld [vmem:[#allocation4 + $0x24] sm:$0xf] }
 0x77a   :  { %7049 = vmatpush.bf16.msrb.mxu3 %v10922_v36  ;;  %v10869_v36 = vld [vmem:[#allocation4 + $0x68] sm:$0xf]  ;;  %v10815_v48 = vld [vmem:[#allocation4 + $0x10] sm:$0xf0] }
 0x77b   :  { %7011 = vmatpush.bf16.msrb.mxu0 %v10894_v33  ;;  %v11762_v33 = vld [vmem:[#allocation4 + $0x74] sm:$0xf0] }
 0x77c   :  { %7024 = vmatpush.bf16.msrb.mxu1 %v10898_v19  ;;  %v11757_v19 = vld [vmem:[#allocation4 + $0x4c] sm:$0xf0]  ;;  %v10870_v16 = vor.u32 %v11762_v33, %v10869_v36  ;;  %v11752_v33 = vld [vmem:[#allocation4 + $0x2c] sm:$0xf] }
 0x77d   :  { %7037 = vmatpush.bf16.msrb.mxu2 %v10902_v9  ;;  %v10874_v9 = vor.u32 %v11760_v32, %v10871_v29  ;;  %v10846_v26 = vor.u32 %v11757_v19, %v10845_v31  ;;  %v10834_v32 = vor.u32 %v11751_v10, %v10831_v58  ;;  %v10839_v29 = vld [vmem:[#allocation4 + $0x38] sm:$0xf0]  ;;  %v10813_v31 = vld [vmem:[#allocation4] sm:$0xf]  ;;  %v11747_v19 = vld [vmem:[#allocation4 + $0x4] sm:$0xf] }
 0x77e   :  { %7050 = vmatpush.bf16.msrb.mxu3 %v10906_v18  ;;  %v10853_v18 = vld [vmem:[#allocation4 + $0x48] sm:$0xf] }
 0x77f   :  { %7012 = vmatpush.bf16.msrb.mxu0 %v10878_v52  ;;  %v11758_v52 = vld [vmem:[#allocation4 + $0x54] sm:$0xf0] }
 0x780   :  { %7025 = vmatpush.bf16.msrb.mxu1 %v10882_v5  ;;  %v11753_v5 = vld [vmem:[#allocation4 + $0x2c] sm:$0xf0]  ;;  %v10854_v12 = vor.u32 %v11758_v52, %v10853_v18  ;;  %v10818_v52 = vor.u32 %v11747_v19, %v10815_v48 }
 0x781   :  { %7038 = vmatpush.bf16.msrb.mxu2 %v10886_v21  ;;  %v10858_v21 = vor.u32 %v11756_v44, %v10855_v6  ;;  %v10830_v36 = vor.u32 %v11753_v5, %v10829_v22  ;;  %v11748_v44 = vld [vmem:[#allocation4 + $0xc] sm:$0xf]  ;;  %v10823_v6 = vld [vmem:[#allocation4 + $0x18] sm:$0xf0] }
 0x782   :  { %7051 = vmatpush.bf16.msrb.mxu3 %v10890_v60  ;;  %v10837_v60 = vld [vmem:[#allocation4 + $0x28] sm:$0xf]  ;;  %v10826_v22 = vor.u32 %v11748_v44, %v10823_v6 }
 0x783   :  { %7013 = vmatpush.bf16.msrb.mxu0 %v10862_v1  ;;  %v11754_v1 = vld [vmem:[#allocation4 + $0x34] sm:$0xf0] }
 0x784   :  { %7026 = vmatpush.bf16.msrb.mxu1 %v10866_v8  ;;  %v11749_v8 = vld [vmem:[#allocation4 + $0xc] sm:$0xf0]  ;;  %v10838_v54 = vor.u32 %v11754_v1, %v10837_v60 }
 0x785   :  { %7039 = vmatpush.bf16.msrb.mxu2 %v10870_v16  ;;  %v10842_v16 = vor.u32 %v11752_v33, %v10839_v29  ;;  %v10814_v18 = vor.u32 %v11749_v8, %v10813_v31 }
 0x786   :  { %7052 = vmatpush.bf16.msrb.mxu3 %v10874_v9  ;;  %v10821_v9 = vld [vmem:[#allocation4 + $0x8] sm:$0xf] }
 0x787   :  { %7014 = vmatpush.bf16.msrb.mxu0 %v10846_v26  ;;  %v11750_v26 = vld [vmem:[#allocation4 + $0x14] sm:$0xf0] }
 0x788   :  { %7027 = vmatpush.bf16.msrb.mxu1 %v10850_v62  ;;  %v10822_v62 = vor.u32 %v11750_v26, %v10821_v9 }
 0x789   :  { %7040 = vmatpush.bf16.msrb.mxu2 %v10854_v12 }
 0x78a   :  { %7053 = vmatpush.bf16.msrb.mxu3 %v10858_v21 }
 0x78b   :  { %7015 = vmatpush.bf16.msrb.mxu0 %v10830_v36 }
 0x78c   :  { %7028 = vmatpush.bf16.msrb.mxu1 %v10834_v32 }
 0x78d   :  { %7041 = vmatpush.bf16.msrb.mxu2 %v10838_v54 }
 0x78e   :  { %7054 = vmatpush.bf16.msrb.mxu3 %v10842_v16 }
 0x78f   :  { %7016 = vmatpush.bf16.msrb.mxu0 %v10814_v18 }
 0x790   :  { %7029 = vmatpush.bf16.msrb.mxu1 %v10818_v52 }
 0x791   :  { %7042 = vmatpush.bf16.msrb.mxu2 %v10822_v62 }
 0x792   :  { %7017 = vmatmul.bf16.vlgmr.msrb.gmra.mxu0 %v13505_v20  ;;  %7055 = vmatpush.bf16.msrb.mxu3 %v10826_v22 }
 0x793   :  { %7106 = vmatpush.bf16.msra.mxu0 %v13003_v35  ;;  %7030 = vmatmul.bf16.vlgmr.msrb.gmra.mxu1 %v13505_v20 }
 0x794   :  { %7119 = vmatpush.bf16.msra.mxu1 %v13005_v0  ;;  %7043 = vmatmul.bf16.vlgmr.msrb.gmra.mxu2 %v13505_v20 }
 0x795   :  { %7132 = vmatpush.bf16.msra.mxu2 %v13007_v27  ;;  %7056 = vmatmul.bf16.vlgmr.msrb.gmra.mxu3 %v13505_v20 }
 0x796   :  { %7145 = vmatpush.bf16.msra.mxu3 %v13010_v4 }
 0x797   :  { %7107 = vmatpush.bf16.msra.mxu0 %v13014_v43 }
 0x798   :  { %7120 = vmatpush.bf16.msra.mxu1 %v13016_v41 }
 0x799   :  { %7133 = vmatpush.bf16.msra.mxu2 %v13019_v24 }
 0x79a   :  { %7146 = vmatpush.bf16.msra.mxu3 %v13021_v34 }
 0x79b   :  { %7108 = vmatpush.bf16.msra.mxu0 %v13024_v63 }
 0x79c   :  { %7121 = vmatpush.bf16.msra.mxu1 %v13028_v7 }
 0x79d   :  { %7134 = vmatpush.bf16.msra.mxu2 %v13030_v11 }
 0x79e   :  { %7147 = vmatpush.bf16.msra.mxu3 %v13033_v46 }
 0x79f   :  { %7109 = vmatpush.bf16.msra.mxu0 %v13036_v53 }
 0x7a0   :  { %7122 = vmatpush.bf16.msra.mxu1 %v13040_v14 }
 0x7a1   :  { %7135 = vmatpush.bf16.msra.mxu2 %v13042_v28 }
 0x7a2   :  { %7148 = vmatpush.bf16.msra.mxu3 %v13045_v17 }
 0x7a3   :  { %7110 = vmatpush.bf16.msra.mxu0 %v13048_v59 }
 0x7a4   :  { %7123 = vmatpush.bf16.msra.mxu1 %v13052_v38 }
 0x7a5   :  { %7136 = vmatpush.bf16.msra.mxu2 %v13054_v23 }
 0x7a6   :  { %7149 = vmatpush.bf16.msra.mxu3 %v13057_v2 }
 0x7a7   :  { %7111 = vmatpush.bf16.msra.mxu0 %v13060_v13 }
 0x7a8   :  { %7124 = vmatpush.bf16.msra.mxu1 %v13064_v40 }
 0x7a9   :  { %7137 = vmatpush.bf16.msra.mxu2 %v13066_v37 }
 0x7aa   :  { %7150 = vmatpush.bf16.msra.mxu3 %v13069_v55 }
 0x7ab   :  { %7112 = vmatpush.bf16.msra.mxu0 %v13072_v42 }
 0x7ac   :  { %7125 = vmatpush.bf16.msra.mxu1 %v13076_v30 }
 0x7ad   :  { %7138 = vmatpush.bf16.msra.mxu2 %v13078_v51 }
 0x7ae   :  { %7151 = vmatpush.bf16.msra.mxu3 %v13081_v50 }
 0x7af   :  { %7113 = vmatpush.bf16.msra.mxu0 %v13084_v25 }
 0x7b0   :  { %7126 = vmatpush.bf16.msra.mxu1 %v13088_v57 }
 0x7b1   :  { %7139 = vmatpush.bf16.msra.mxu2 %v13090_v39 }
 0x7b2   :  { %7152 = vmatpush.bf16.msra.mxu3 %v13093_v49 }
 0x7b3   :  { %7185 = vmatpush.bf16.msrb.mxu0 %v13003_v35 }
 0x7b4   :  { %7198 = vmatpush.bf16.msrb.mxu1 %v13005_v0 }
 0x7b5   :  { %7211 = vmatpush.bf16.msrb.mxu2 %v13007_v27 }
 0x7b6   :  { %7224 = vmatpush.bf16.msrb.mxu3 %v13010_v4 }
 0x7b7   :  { %7186 = vmatpush.bf16.msrb.mxu0 %v13014_v43 }
 0x7b8   :  { %7199 = vmatpush.bf16.msrb.mxu1 %v13016_v41 }
 0x7b9   :  { %7212 = vmatpush.bf16.msrb.mxu2 %v13019_v24 }
 0x7ba   :  { %7225 = vmatpush.bf16.msrb.mxu3 %v13021_v34 }
 0x7bb   :  { %7187 = vmatpush.bf16.msrb.mxu0 %v13024_v63 }
 0x7bc   :  { %7200 = vmatpush.bf16.msrb.mxu1 %v13028_v7 }
 0x7bd   :  { %7213 = vmatpush.bf16.msrb.mxu2 %v13030_v11 }
 0x7be   :  { %7226 = vmatpush.bf16.msrb.mxu3 %v13033_v46 }
 0x7bf   :  { %7188 = vmatpush.bf16.msrb.mxu0 %v13036_v53 }
 0x7c0   :  { %7201 = vmatpush.bf16.msrb.mxu1 %v13040_v14 }
 0x7c1   :  { %7214 = vmatpush.bf16.msrb.mxu2 %v13042_v28 }
 0x7c2   :  { %7227 = vmatpush.bf16.msrb.mxu3 %v13045_v17 }
 0x7c3   :  { %7189 = vmatpush.bf16.msrb.mxu0 %v13048_v59 }
 0x7c4   :  { %7202 = vmatpush.bf16.msrb.mxu1 %v13052_v38 }
 0x7c5   :  { %7215 = vmatpush.bf16.msrb.mxu2 %v13054_v23 }
 0x7c6   :  { %7228 = vmatpush.bf16.msrb.mxu3 %v13057_v2 }
 0x7c7   :  { %7190 = vmatpush.bf16.msrb.mxu0 %v13060_v13 }
 0x7c8   :  { %7203 = vmatpush.bf16.msrb.mxu1 %v13064_v40 }
 0x7c9   :  { %7216 = vmatpush.bf16.msrb.mxu2 %v13066_v37 }
 0x7ca   :  { %7229 = vmatpush.bf16.msrb.mxu3 %v13069_v55 }
 0x7cb   :  { %7191 = vmatpush.bf16.msrb.mxu0 %v13072_v42 }
 0x7cc   :  { %7204 = vmatpush.bf16.msrb.mxu1 %v13076_v30 }
 0x7cd   :  { %7217 = vmatpush.bf16.msrb.mxu2 %v13078_v51 }
 0x7ce   :  { %7230 = vmatpush.bf16.msrb.mxu3 %v13081_v50 }
 0x7cf   :  { %7192 = vmatpush.bf16.msrb.mxu0 %v13084_v25 }
 0x7d0   :  { %7205 = vmatpush.bf16.msrb.mxu1 %v13088_v57 }
 0x7d1   :  { %7218 = vmatpush.bf16.msrb.mxu2 %v13090_v39 }
 0x7d2   :  { %7231 = vmatpush.bf16.msrb.mxu3 %v13093_v49 }
 0x7ef   :  { %v6766_v20 = vpop.f32.mrf.mxu0 }
 0x7f0   :  { %v6809_v5 = vadd.f32 %v6766_v20, %v12855_v56  ;;  %v6779_v10 = vpop.f32.mrf.mxu1 }
 0x7f1   :  { %v6810_v58 = vadd.f32 %v6779_v10, %v12866_v3 }
 0x7f2   :  { %v7065_v12 = vmul.f32 0.5, %v6809_v5 }
 0x7f3   :  { %v7069_v21 = vmul.f32 0.5, %v6810_v58 }
 0x7f4   :  { %11967 = vtanh.f32 %v7065_v12 }
 0x7f5   :  { %11969 = vtanh.f32 %v7069_v21 }
 0x7f7   :  { %v6792_v36 = vpop.f32.mrf.mxu2  ;;  %v6768_v33 = vpop.f32.mrf.mxu0 }
 0x7f8   :  { %v6811_v60 = vadd.f32 %v6792_v36, %v12925_v61  ;;  %v6805_v1 = vpop.f32.mrf.mxu3  ;;  %v6781_v29 = vpop.f32.mrf.mxu1 }
 0x7f9   :  { %v6812_v32 = vadd.f32 %v6805_v1, %v12936_v15  ;;  %v13506_v1 = vld [vmem:[#allocation46_spill] sm:$0xff]  ;;  %v13507_v29 = vld [vmem:[#allocation47_spill] sm:$0xff] }
 0x7fa   :  { %11971 = vtanh.f32 %v6811_v60  ;;  %v11968_v31 = vpop.eup %11967 }
 0x7fb   :  { %v7074_v8 = vmul.f32 0.5, %v6812_v32  ;;  %v11970_v19 = vpop.eup %11969  ;;  %v7067_v56 = vmul.f32 0.5, %v11968_v31 }
 0x7fc   :  { %v7071_v48 = vmul.f32 0.5, %v11970_v19 }
 0x7fd   :  { %11973 = vtanh.f32 %v7074_v8  ;;  %v7068_v3 = vadd.f32 0.5, %v7067_v56 }
 0x7fe   :  { %v7072_v54 = vadd.f32 0.5, %v7071_v48 }
 0x7ff   :  { %v6794_v16 = vpop.f32.mrf.mxu2 }
 0x800   :  { %v11972_v18 = vpop.eup %11971  ;;  %v6807_v9 = vpop.f32.mrf.mxu3  ;;  %v7091_v26 = vmul.f32 0.0, %v7072_v54 }
 0x801   :  { %v7092_v52 = vmul.f32 %v11972_v18, %v7068_v3 }
 0x803   :  { %v11974_v61 = vpop.eup %11973  ;;  %v13175_v44 = vadd.f32 %v7092_v52, %v7091_v26 }
 0x804   :  { %v7076_v6 = vmul.f32 0.5, %v11974_v61 }
 0x805   :  { %11975 = vtanh.f32 %v13175_v44 }
 0x806   :  { %v7077_v15 = vadd.f32 0.5, %v7076_v6 }
 0x80b   :  { %v11976_v62 = vpop.eup %11975 }
 0x80c   :  { %v7098_v22 = vmul.f32 %v11976_v62, %v7077_v15 }
 0x80e   :  { %v7105_v20 = vpack.c.bf16 %v7098_v22, %v7098_v22 }
 0x80f   :  { %v7018_v5 = vpop.f32.mrf.mxu0 }
 0x810   :  { %v7061_v10 = vadd.f32 %v7018_v5, %v12992_v45  ;;  %7114 = vmatmul.bf16.vlgmr.msra.gmra.mxu0 %v7105_v20  ;;  %7127 = vmatmul.bf16.vlgmr.msra.gmra.mxu1 %v7105_v20  ;;  %v7031_v12 = vpop.f32.mrf.mxu1 }
 0x811   :  { %7140 = vmatmul.bf16.vlgmr.msra.gmra.mxu2 %v7105_v20  ;;  %7153 = vmatmul.bf16.vlgmr.msra.gmra.mxu3 %v7105_v20  ;;  %v7062_v21 = vadd.f32 %v7031_v12, %v12995_v47  ;;  %v13508_v12 = vld [vmem:[#allocation30_spill] sm:$0xff] }
 0x812   :  { %v7078_v58 = vmul.f32 0.5, %v7061_v10  ;;  %7264 = vmatpush.bf16.msra.mxu0 %v13003_v35  ;;  %7277 = vmatpush.bf16.msra.mxu1 %v13005_v0 }
 0x813   :  { %7290 = vmatpush.bf16.msra.mxu2 %v13007_v27  ;;  %7303 = vmatpush.bf16.msra.mxu3 %v13010_v4  ;;  %v7082_v36 = vmul.f32 0.5, %v7062_v21 }
 0x814   :  { %11977 = vtanh.f32 %v7078_v58 }
 0x815   :  { %11979 = vtanh.f32 %v7082_v36  ;;  %v13509_v36 = vld [vmem:[#allocation31_spill] sm:$0xff] }
 0x816   :  { %7265 = vmatpush.bf16.msra.mxu0 %v13014_v43  ;;  %7278 = vmatpush.bf16.msra.mxu1 %v13016_v41 }
 0x817   :  { %v7020_v60 = vpop.f32.mrf.mxu0  ;;  %v7044_v45 = vpop.f32.mrf.mxu2  ;;  %7291 = vmatpush.bf16.msra.mxu2 %v13019_v24  ;;  %7304 = vmatpush.bf16.msra.mxu3 %v13021_v34 }
 0x818   :  { %v7063_v33 = vadd.f32 %v7044_v45, %v13506_v1  ;;  %v7057_v32 = vpop.f32.mrf.mxu3  ;;  %v7033_v19 = vpop.f32.mrf.mxu1 }
 0x819   :  { %v7064_v31 = vadd.f32 %v7057_v32, %v13507_v29 }
 0x81a   :  { %v11978_v47 = vpop.eup %11977  ;;  %11981 = vtanh.f32 %v7063_v33  ;;  %7266 = vmatpush.bf16.msra.mxu0 %v13024_v63  ;;  %7279 = vmatpush.bf16.msra.mxu1 %v13028_v7 }
 0x81b   :  { %v7080_v8 = vmul.f32 0.5, %v11978_v47  ;;  %v7087_v56 = vmul.f32 0.5, %v7064_v31  ;;  %7292 = vmatpush.bf16.msra.mxu2 %v13030_v11  ;;  %7305 = vmatpush.bf16.msra.mxu3 %v13033_v46  ;;  %v11980_v48 = vpop.eup %11979  ;;  %v13510_v47 = vld [vmem:[#allocation56_spill] sm:$0xff]  ;;  %v13511_v31 = vld [vmem:[#allocation58_spill] sm:$0xff] }
 0x81c   :  { %v7084_v54 = vmul.f32 0.5, %v11980_v48 }
 0x81d   :  { %v7081_v3 = vadd.f32 0.5, %v7080_v8  ;;  %11983 = vtanh.f32 %v7087_v56 }
 0x81e   :  { %7267 = vmatpush.bf16.msra.mxu0 %v13036_v53  ;;  %7280 = vmatpush.bf16.msra.mxu1 %v13040_v14  ;;  %v7085_v9 = vadd.f32 0.5, %v7084_v54 }
 0x81f   :  { %v7046_v16 = vpop.f32.mrf.mxu2  ;;  %7293 = vmatpush.bf16.msra.mxu2 %v13042_v28  ;;  %7306 = vmatpush.bf16.msra.mxu3 %v13045_v17 }
 0x820   :  { %v11982_v18 = vpop.eup %11981  ;;  %v7059_v26 = vpop.f32.mrf.mxu3  ;;  %v7094_v61 = vmul.f32 0.0, %v7085_v9 }
 0x821   :  { %v7095_v52 = vmul.f32 %v11982_v18, %v7081_v3 }
 0x822   :  { %7268 = vmatpush.bf16.msra.mxu0 %v13048_v59  ;;  %7281 = vmatpush.bf16.msra.mxu1 %v13052_v38 }
 0x823   :  { %v11984_v6 = vpop.eup %11983  ;;  %7294 = vmatpush.bf16.msra.mxu2 %v13054_v23  ;;  %7307 = vmatpush.bf16.msra.mxu3 %v13057_v2  ;;  %v7096_v15 = vadd.f32 %v7095_v52, %v7094_v61 }
 0x824   :  { %v7089_v62 = vmul.f32 0.5, %v11984_v6 }
 0x825   :  { %11985 = vtanh.f32 %v7096_v15 }
 0x826   :  { %7269 = vmatpush.bf16.msra.mxu0 %v13060_v13  ;;  %7282 = vmatpush.bf16.msra.mxu1 %v13064_v40  ;;  %v7090_v22 = vadd.f32 0.5, %v7089_v62 }
 0x827   :  { %7295 = vmatpush.bf16.msra.mxu2 %v13066_v37  ;;  %7308 = vmatpush.bf16.msra.mxu3 %v13069_v55 }
 0x82a   :  { %7270 = vmatpush.bf16.msra.mxu0 %v13072_v42  ;;  %7283 = vmatpush.bf16.msra.mxu1 %v13076_v30 }
 0x82b   :  { %7296 = vmatpush.bf16.msra.mxu2 %v13078_v51  ;;  %7309 = vmatpush.bf16.msra.mxu3 %v13081_v50  ;;  %v11986_v20 = vpop.eup %11985 }
 0x82c   :  { %v13210_v5 = vmul.f32 %v11986_v20, %v7090_v22 }
 0x82e   :  { %7271 = vmatpush.bf16.msra.mxu0 %v13084_v25  ;;  %7284 = vmatpush.bf16.msra.mxu1 %v13088_v57 }
 0x82f   :  { %7297 = vmatpush.bf16.msra.mxu2 %v13090_v39  ;;  %7310 = vmatpush.bf16.msra.mxu3 %v13093_v49 }
 0x88d   :  { %v7115_v10 = vpop.f32.mrf.mxu0  ;;  %v7128_v58 = vpop.f32.mrf.mxu1 }
 0x88e   :  { %v7158_v21 = vadd.f32 %v7115_v10, %v13508_v12  ;;  %v7159_v60 = vadd.f32 %v7128_v58, %v13509_v36 }
 0x890   :  { %v7162_v45 = vmul.f32 0.5, %v7158_v21  ;;  %v7166_v1 = vmul.f32 0.5, %v7159_v60 }
 0x892   :  { %11987 = vtanh.f32 %v7162_v45  ;;  %v13512_v45 = vld [vmem:[#allocation32_spill] sm:$0xff] }
 0x893   :  { %11989 = vtanh.f32 %v7166_v1 }
 0x894   :  { %v7141_v33 = vpop.f32.mrf.mxu2  ;;  %v7154_v32 = vpop.f32.mrf.mxu3 }
 0x895   :  { %v7160_v29 = vadd.f32 %v7141_v33, %v13510_v47  ;;  %v7161_v8 = vadd.f32 %v7154_v32, %v13511_v31  ;;  %v7117_v19 = vpop.f32.mrf.mxu0  ;;  %v7130_v56 = vpop.f32.mrf.mxu1  ;;  %v13513_v33 = vld [vmem:[#allocation34_spill] sm:$0xff] }
 0x896   :  { %v13514_v19 = vld [vmem:[#allocation38_spill] sm:$0xff] }
 0x897   :  { %11991 = vtanh.f32 %v7160_v29  ;;  %v7171_v48 = vmul.f32 0.5, %v7161_v8 }
 0x898   :  { %v11988_v3 = vpop.eup %11987 }
 0x899   :  { %v11990_v54 = vpop.eup %11989  ;;  %v7164_v16 = vmul.f32 0.5, %v11988_v3  ;;  %11993 = vtanh.f32 %v7171_v48  ;;  %v13515_v48 = vld [vmem:[#allocation39_spill] sm:$0xff] }
 0x89a   :  { %v7168_v18 = vmul.f32 0.5, %v11990_v54 }
 0x89b   :  { %v7165_v9 = vadd.f32 0.5, %v7164_v16 }
 0x89c   :  { %v7169_v26 = vadd.f32 0.5, %v7168_v18  ;;  %v7143_v52 = vpop.f32.mrf.mxu2  ;;  %v7156_v61 = vpop.f32.mrf.mxu3 }
 0x89d   :  { %v11992_v6 = vpop.eup %11991 }
 0x89e   :  { %v7175_v15 = vmul.f32 %v7169_v26, %v13175_v44  ;;  %v7176_v62 = vmul.f32 %v11992_v6, %v7165_v9 }
 0x89f   :  { %v11994_v22 = vpop.eup %11993 }
 0x8a0   :  { %v13221_v20 = vadd.f32 %v7176_v62, %v7175_v15  ;;  %v7173_v10 = vmul.f32 0.5, %v11994_v22 }
 0x8a2   :  { %11995 = vtanh.f32 %v13221_v20  ;;  %v7174_v58 = vadd.f32 0.5, %v7173_v10 }
 0x8a8   :  { %v11996_v12 = vpop.eup %11995 }
 0x8a9   :  { %v7179_v21 = vmul.f32 %v11996_v12, %v7174_v58 }
 0x8ab   :  { %v7184_v36 = vpack.c.bf16 %v7179_v21, %v7179_v21 }
 0x8ad   :  { %7193 = vmatmul.bf16.vlgmr.msrb.gmra.mxu0 %v7184_v36  ;;  %7206 = vmatmul.bf16.vlgmr.msrb.gmra.mxu1 %v7184_v36 }
 0x8ae   :  { %7219 = vmatmul.bf16.vlgmr.msrb.gmra.mxu2 %v7184_v36  ;;  %7232 = vmatmul.bf16.vlgmr.msrb.gmra.mxu3 %v7184_v36 }
 0x8af   :  { %7343 = vmatpush.bf16.msrb.mxu0 %v13003_v35  ;;  %7356 = vmatpush.bf16.msrb.mxu1 %v13005_v0 }
 0x8b0   :  { %7369 = vmatpush.bf16.msrb.mxu2 %v13007_v27  ;;  %7382 = vmatpush.bf16.msrb.mxu3 %v13010_v4 }
 0x8b3   :  { %7344 = vmatpush.bf16.msrb.mxu0 %v13014_v43  ;;  %7357 = vmatpush.bf16.msrb.mxu1 %v13016_v41 }
 0x8b4   :  { %7370 = vmatpush.bf16.msrb.mxu2 %v13019_v24  ;;  %7383 = vmatpush.bf16.msrb.mxu3 %v13021_v34 }
 0x8b7   :  { %7345 = vmatpush.bf16.msrb.mxu0 %v13024_v63  ;;  %7358 = vmatpush.bf16.msrb.mxu1 %v13028_v7 }
 0x8b8   :  { %7371 = vmatpush.bf16.msrb.mxu2 %v13030_v11  ;;  %7384 = vmatpush.bf16.msrb.mxu3 %v13033_v46 }
 0x8bb   :  { %7346 = vmatpush.bf16.msrb.mxu0 %v13036_v53  ;;  %7359 = vmatpush.bf16.msrb.mxu1 %v13040_v14 }
 0x8bc   :  { %7372 = vmatpush.bf16.msrb.mxu2 %v13042_v28  ;;  %7385 = vmatpush.bf16.msrb.mxu3 %v13045_v17 }
 0x8bf   :  { %7347 = vmatpush.bf16.msrb.mxu0 %v13048_v59  ;;  %7360 = vmatpush.bf16.msrb.mxu1 %v13052_v38 }
 0x8c0   :  { %7373 = vmatpush.bf16.msrb.mxu2 %v13054_v23  ;;  %7386 = vmatpush.bf16.msrb.mxu3 %v13057_v2 }
 0x8c3   :  { %7348 = vmatpush.bf16.msrb.mxu0 %v13060_v13  ;;  %7361 = vmatpush.bf16.msrb.mxu1 %v13064_v40 }
 0x8c4   :  { %7374 = vmatpush.bf16.msrb.mxu2 %v13066_v37  ;;  %7387 = vmatpush.bf16.msrb.mxu3 %v13069_v55 }
 0x8c7   :  { %7349 = vmatpush.bf16.msrb.mxu0 %v13072_v42  ;;  %7362 = vmatpush.bf16.msrb.mxu1 %v13076_v30 }
 0x8c8   :  { %7375 = vmatpush.bf16.msrb.mxu2 %v13078_v51  ;;  %7388 = vmatpush.bf16.msrb.mxu3 %v13081_v50 }
 0x8cb   :  { %7350 = vmatpush.bf16.msrb.mxu0 %v13084_v25  ;;  %7363 = vmatpush.bf16.msrb.mxu1 %v13088_v57 }
 0x8cc   :  { %7376 = vmatpush.bf16.msrb.mxu2 %v13090_v39  ;;  %7389 = vmatpush.bf16.msrb.mxu3 %v13093_v49 }
 0x92a   :  { %v7194_v44 = vpop.f32.mrf.mxu0  ;;  %v7207_v60 = vpop.f32.mrf.mxu1 }
 0x92b   :  { %v7237_v1 = vadd.f32 %v7194_v44, %v13512_v45  ;;  %v7238_v32 = vadd.f32 %v7207_v60, %v13513_v33 }
 0x92d   :  { %v7241_v47 = vmul.f32 0.5, %v7237_v1  ;;  %v7245_v29 = vmul.f32 0.5, %v7238_v32 }
 0x92f   :  { %11997 = vtanh.f32 %v7241_v47  ;;  %v13516_v47 = vld [vmem:[#allocation57_spill] sm:$0xff] }
 0x930   :  { %11999 = vtanh.f32 %v7245_v29 }
 0x931   :  { %v7220_v31 = vpop.f32.mrf.mxu2  ;;  %v7233_v8 = vpop.f32.mrf.mxu3 }
 0x932   :  { %v7239_v56 = vadd.f32 %v7220_v31, %v13514_v19  ;;  %v7240_v3 = vadd.f32 %v7233_v8, %v13515_v48  ;;  %v7196_v54 = vpop.f32.mrf.mxu0  ;;  %v7209_v16 = vpop.f32.mrf.mxu1  ;;  %v13517_v31 = vld [vmem:[#allocation59_spill] sm:$0xff] }
 0x933   :  { %v13518_v54 = vld [vmem:[#allocation40_spill] sm:$0xff] }
 0x934   :  { %12001 = vtanh.f32 %v7239_v56  ;;  %v7250_v18 = vmul.f32 0.5, %v7240_v3 }
 0x935   :  { %v11998_v9 = vpop.eup %11997 }
 0x936   :  { %v12000_v26 = vpop.eup %11999  ;;  %v7243_v52 = vmul.f32 0.5, %v11998_v9  ;;  %12003 = vtanh.f32 %v7250_v18  ;;  %v13519_v18 = vld [vmem:[#allocation42_spill] sm:$0xff] }
 0x937   :  { %v7247_v61 = vmul.f32 0.5, %v12000_v26 }
 0x938   :  { %v7244_v6 = vadd.f32 0.5, %v7243_v52 }
 0x939   :  { %v7248_v15 = vadd.f32 0.5, %v7247_v61  ;;  %v7222_v62 = vpop.f32.mrf.mxu2  ;;  %v7235_v22 = vpop.f32.mrf.mxu3 }
 0x93a   :  { %v12002_v10 = vpop.eup %12001 }
 0x93b   :  { %v7254_v58 = vmul.f32 %v7248_v15, %v13221_v20  ;;  %v7255_v12 = vmul.f32 %v12002_v10, %v7244_v6 }
 0x93c   :  { %v12004_v21 = vpop.eup %12003 }
 0x93d   :  { %v13261_v36 = vadd.f32 %v7255_v12, %v7254_v58  ;;  %v7252_v44 = vmul.f32 0.5, %v12004_v21 }
 0x93f   :  { %12005 = vtanh.f32 %v13261_v36  ;;  %v7253_v60 = vadd.f32 0.5, %v7252_v44 }
 0x945   :  { %v12006_v45 = vpop.eup %12005 }
 0x946   :  { %v7258_v1 = vmul.f32 %v12006_v45, %v7253_v60 }
 0x948   :  { %v7263_v33 = vpack.c.bf16 %v7258_v1, %v7258_v1 }
 0x94a   :  { %7272 = vmatmul.bf16.vlgmr.msra.gmra.mxu0 %v7263_v33  ;;  %7285 = vmatmul.bf16.vlgmr.msra.gmra.mxu1 %v7263_v33 }
 0x94b   :  { %7298 = vmatmul.bf16.vlgmr.msra.gmra.mxu2 %v7263_v33  ;;  %7311 = vmatmul.bf16.vlgmr.msra.gmra.mxu3 %v7263_v33 }
 0x94c   :  { %7422 = vmatpush.bf16.msra.mxu0 %v13003_v35  ;;  %7435 = vmatpush.bf16.msra.mxu1 %v13005_v0 }
 0x94d   :  { %7448 = vmatpush.bf16.msra.mxu2 %v13007_v27  ;;  %7461 = vmatpush.bf16.msra.mxu3 %v13010_v4 }
 0x950   :  { %7423 = vmatpush.bf16.msra.mxu0 %v13014_v43  ;;  %7436 = vmatpush.bf16.msra.mxu1 %v13016_v41 }
 0x951   :  { %7449 = vmatpush.bf16.msra.mxu2 %v13019_v24  ;;  %7462 = vmatpush.bf16.msra.mxu3 %v13021_v34 }
 0x954   :  { %7424 = vmatpush.bf16.msra.mxu0 %v13024_v63  ;;  %7437 = vmatpush.bf16.msra.mxu1 %v13028_v7 }
 0x955   :  { %7450 = vmatpush.bf16.msra.mxu2 %v13030_v11  ;;  %7463 = vmatpush.bf16.msra.mxu3 %v13033_v46 }
 0x958   :  { %7425 = vmatpush.bf16.msra.mxu0 %v13036_v53  ;;  %7438 = vmatpush.bf16.msra.mxu1 %v13040_v14 }
 0x959   :  { %7451 = vmatpush.bf16.msra.mxu2 %v13042_v28  ;;  %7464 = vmatpush.bf16.msra.mxu3 %v13045_v17 }
 0x95c   :  { %7426 = vmatpush.bf16.msra.mxu0 %v13048_v59  ;;  %7439 = vmatpush.bf16.msra.mxu1 %v13052_v38 }
 0x95d   :  { %7452 = vmatpush.bf16.msra.mxu2 %v13054_v23  ;;  %7465 = vmatpush.bf16.msra.mxu3 %v13057_v2 }
 0x960   :  { %7427 = vmatpush.bf16.msra.mxu0 %v13060_v13  ;;  %7440 = vmatpush.bf16.msra.mxu1 %v13064_v40 }
 0x961   :  { %7453 = vmatpush.bf16.msra.mxu2 %v13066_v37  ;;  %7466 = vmatpush.bf16.msra.mxu3 %v13069_v55 }
 0x964   :  { %7428 = vmatpush.bf16.msra.mxu0 %v13072_v42  ;;  %7441 = vmatpush.bf16.msra.mxu1 %v13076_v30 }
 0x965   :  { %7454 = vmatpush.bf16.msra.mxu2 %v13078_v51  ;;  %7467 = vmatpush.bf16.msra.mxu3 %v13081_v50 }
 0x968   :  { %7429 = vmatpush.bf16.msra.mxu0 %v13084_v25  ;;  %7442 = vmatpush.bf16.msra.mxu1 %v13088_v57 }
 0x969   :  { %7455 = vmatpush.bf16.msra.mxu2 %v13090_v39  ;;  %7468 = vmatpush.bf16.msra.mxu3 %v13093_v49 }
 0x9c7   :  { %v7273_v20 = vpop.f32.mrf.mxu0  ;;  %v7286_v32 = vpop.f32.mrf.mxu1 }
 0x9c8   :  { %v7316_v29 = vadd.f32 %v7273_v20, %v13516_v47  ;;  %v7317_v8 = vadd.f32 %v7286_v32, %v13517_v31 }
 0x9ca   :  { %v7320_v19 = vmul.f32 0.5, %v7316_v29  ;;  %v7324_v56 = vmul.f32 0.5, %v7317_v8 }
 0x9cc   :  { %12007 = vtanh.f32 %v7320_v19  ;;  %v13520_v19 = vld [vmem:[#allocation60_spill] sm:$0xff] }
 0x9cd   :  { %12009 = vtanh.f32 %v7324_v56 }
 0x9ce   :  { %v7299_v48 = vpop.f32.mrf.mxu2  ;;  %v7312_v3 = vpop.f32.mrf.mxu3 }
 0x9cf   :  { %v7318_v16 = vadd.f32 %v7299_v48, %v13518_v54  ;;  %v7319_v9 = vadd.f32 %v7312_v3, %v13519_v18  ;;  %v7275_v26 = vpop.f32.mrf.mxu0  ;;  %v7288_v52 = vpop.f32.mrf.mxu1  ;;  %v13521_v48 = vld [vmem:[#allocation61_spill] sm:$0xff] }
 0x9d0   :  { %v13522_v26 = vld [vmem:[#allocation49_spill] sm:$0xff] }
 0x9d1   :  { %12011 = vtanh.f32 %v7318_v16  ;;  %v7329_v61 = vmul.f32 0.5, %v7319_v9 }
 0x9d2   :  { %v12008_v6 = vpop.eup %12007 }
 0x9d3   :  { %v12010_v15 = vpop.eup %12009  ;;  %v7322_v62 = vmul.f32 0.5, %v12008_v6  ;;  %12013 = vtanh.f32 %v7329_v61  ;;  %v13523_v61 = vld [vmem:[#allocation51_spill] sm:$0xff] }
 0x9d4   :  { %v7326_v22 = vmul.f32 0.5, %v12010_v15 }
 0x9d5   :  { %v7323_v10 = vadd.f32 0.5, %v7322_v62 }
 0x9d6   :  { %v7327_v58 = vadd.f32 0.5, %v7326_v22  ;;  %v7301_v12 = vpop.f32.mrf.mxu2  ;;  %v7314_v21 = vpop.f32.mrf.mxu3 }
 0x9d7   :  { %v12012_v44 = vpop.eup %12011 }
 0x9d8   :  { %v7333_v60 = vmul.f32 %v7327_v58, %v13261_v36  ;;  %v7334_v45 = vmul.f32 %v12012_v44, %v7323_v10 }
 0x9d9   :  { %v12014_v1 = vpop.eup %12013 }
 0x9da   :  { %v13301_v33 = vadd.f32 %v7334_v45, %v7333_v60  ;;  %v7331_v20 = vmul.f32 0.5, %v12014_v1 }
 0x9dc   :  { %12015 = vtanh.f32 %v13301_v33  ;;  %v7332_v32 = vadd.f32 0.5, %v7331_v20 }
 0x9e2   :  { %v12016_v47 = vpop.eup %12015 }
 0x9e3   :  { %v7337_v29 = vmul.f32 %v12016_v47, %v7332_v32 }
 0x9e5   :  { %v7342_v31 = vpack.c.bf16 %v7337_v29, %v7337_v29 }
 0x9e7   :  { %7351 = vmatmul.bf16.vlgmr.msrb.gmra.mxu0 %v7342_v31  ;;  %7364 = vmatmul.bf16.vlgmr.msrb.gmra.mxu1 %v7342_v31 }
 0x9e8   :  { %7377 = vmatmul.bf16.vlgmr.msrb.gmra.mxu2 %v7342_v31  ;;  %7390 = vmatmul.bf16.vlgmr.msrb.gmra.mxu3 %v7342_v31 }
 0x9e9   :  { %7501 = vmatpush.bf16.msrb.mxu0 %v13003_v35  ;;  %7514 = vmatpush.bf16.msrb.mxu1 %v13005_v0 }
 0x9ea   :  { %7527 = vmatpush.bf16.msrb.mxu2 %v13007_v27  ;;  %7540 = vmatpush.bf16.msrb.mxu3 %v13010_v4 }
 0x9ed   :  { %7502 = vmatpush.bf16.msrb.mxu0 %v13014_v43  ;;  %7515 = vmatpush.bf16.msrb.mxu1 %v13016_v41 }
 0x9ee   :  { %7528 = vmatpush.bf16.msrb.mxu2 %v13019_v24  ;;  %7541 = vmatpush.bf16.msrb.mxu3 %v13021_v34 }
 0x9f1   :  { %7503 = vmatpush.bf16.msrb.mxu0 %v13024_v63  ;;  %7516 = vmatpush.bf16.msrb.mxu1 %v13028_v7 }
 0x9f2   :  { %7529 = vmatpush.bf16.msrb.mxu2 %v13030_v11  ;;  %7542 = vmatpush.bf16.msrb.mxu3 %v13033_v46 }
 0x9f5   :  { %7504 = vmatpush.bf16.msrb.mxu0 %v13036_v53  ;;  %7517 = vmatpush.bf16.msrb.mxu1 %v13040_v14 }
 0x9f6   :  { %7530 = vmatpush.bf16.msrb.mxu2 %v13042_v28  ;;  %7543 = vmatpush.bf16.msrb.mxu3 %v13045_v17 }
 0x9f9   :  { %7505 = vmatpush.bf16.msrb.mxu0 %v13048_v59  ;;  %7518 = vmatpush.bf16.msrb.mxu1 %v13052_v38 }
 0x9fa   :  { %7531 = vmatpush.bf16.msrb.mxu2 %v13054_v23  ;;  %7544 = vmatpush.bf16.msrb.mxu3 %v13057_v2 }
 0x9fd   :  { %7506 = vmatpush.bf16.msrb.mxu0 %v13060_v13  ;;  %7519 = vmatpush.bf16.msrb.mxu1 %v13064_v40 }
 0x9fe   :  { %7532 = vmatpush.bf16.msrb.mxu2 %v13066_v37  ;;  %7545 = vmatpush.bf16.msrb.mxu3 %v13069_v55 }
 0xa01   :  { %7507 = vmatpush.bf16.msrb.mxu0 %v13072_v42  ;;  %7520 = vmatpush.bf16.msrb.mxu1 %v13076_v30 }
 0xa02   :  { %7533 = vmatpush.bf16.msrb.mxu2 %v13078_v51  ;;  %7546 = vmatpush.bf16.msrb.mxu3 %v13081_v50 }
 0xa05   :  { %7508 = vmatpush.bf16.msrb.mxu0 %v13084_v25  ;;  %7521 = vmatpush.bf16.msrb.mxu1 %v13088_v57 }
 0xa06   :  { %7534 = vmatpush.bf16.msrb.mxu2 %v13090_v39  ;;  %7547 = vmatpush.bf16.msrb.mxu3 %v13093_v49 }
 0xa64   :  { %v7352_v36 = vpop.f32.mrf.mxu0  ;;  %v7365_v8 = vpop.f32.mrf.mxu1 }
 0xa65   :  { %v7395_v56 = vadd.f32 %v7352_v36, %v13520_v19  ;;  %v7396_v3 = vadd.f32 %v7365_v8, %v13521_v48 }
 0xa67   :  { %v7399_v54 = vmul.f32 0.5, %v7395_v56  ;;  %v7403_v16 = vmul.f32 0.5, %v7396_v3 }
 0xa69   :  { %12017 = vtanh.f32 %v7399_v54 }
 0xa6a   :  { %12019 = vtanh.f32 %v7403_v16 }
 0xa6b   :  { %v7378_v18 = vpop.f32.mrf.mxu2  ;;  %v7391_v9 = vpop.f32.mrf.mxu3 }
 0xa6c   :  { %v7397_v52 = vadd.f32 %v7378_v18, %v13522_v26  ;;  %v7398_v6 = vadd.f32 %v7391_v9, %v13523_v61  ;;  %v7354_v15 = vpop.f32.mrf.mxu0  ;;  %v7367_v62 = vpop.f32.mrf.mxu1  ;;  %v13528_v9 = vld [vmem:[#allocation36_spill] sm:$0xff] }
 0xa6e   :  { %12021 = vtanh.f32 %v7397_v52  ;;  %v7408_v22 = vmul.f32 0.5, %v7398_v6  ;;  %v13529_v52 = vld [vmem:[#allocation37_spill] sm:$0xff] }
 0xa6f   :  { %v12018_v10 = vpop.eup %12017 }
 0xa70   :  { %v12020_v58 = vpop.eup %12019  ;;  %v7401_v12 = vmul.f32 0.5, %v12018_v10  ;;  %12023 = vtanh.f32 %v7408_v22  ;;  %v13530_v10 = vld [vmem:[#allocation41_spill] sm:$0xff] }
 0xa71   :  { %v7405_v21 = vmul.f32 0.5, %v12020_v58 }
 0xa72   :  { %v7402_v44 = vadd.f32 0.5, %v7401_v12  ;;  %v13531_v12 = vld [vmem:[#allocation43_spill] sm:$0xff] }
 0xa73   :  { %v7406_v60 = vadd.f32 0.5, %v7405_v21  ;;  %v7380_v45 = vpop.f32.mrf.mxu2  ;;  %v7393_v1 = vpop.f32.mrf.mxu3 }
 0xa74   :  { %v12022_v20 = vpop.eup %12021 }
 0xa75   :  { %v7412_v32 = vmul.f32 %v7406_v60, %v13301_v33  ;;  %v7413_v47 = vmul.f32 %v12022_v20, %v7402_v44 }
 0xa76   :  { %v12024_v29 = vpop.eup %12023 }
 0xa77   :  { %v13341_v31 = vadd.f32 %v7413_v47, %v7412_v32  ;;  %v7410_v36 = vmul.f32 0.5, %v12024_v29 }
 0xa79   :  { %12025 = vtanh.f32 %v13341_v31  ;;  %v7411_v8 = vadd.f32 0.5, %v7410_v36 }
 0xa7f   :  { %v12026_v19 = vpop.eup %12025 }
 0xa80   :  { %v7416_v56 = vmul.f32 %v12026_v19, %v7411_v8 }
 0xa82   :  { %v7421_v48 = vpack.c.bf16 %v7416_v56, %v7416_v56 }
 0xa84   :  { %7430 = vmatmul.bf16.vlgmr.msra.gmra.mxu0 %v7421_v48  ;;  %7443 = vmatmul.bf16.vlgmr.msra.gmra.mxu1 %v7421_v48 }
 0xa85   :  { %7456 = vmatmul.bf16.vlgmr.msra.gmra.mxu2 %v7421_v48  ;;  %7469 = vmatmul.bf16.vlgmr.msra.gmra.mxu3 %v7421_v48 }
 0xa86   :  { %7580 = vmatpush.bf16.msra.mxu0 %v13003_v35  ;;  %7593 = vmatpush.bf16.msra.mxu1 %v13005_v0  ;;  %v13524_v35 = vld [vmem:[#allocation33_spill] sm:$0xff] }
 0xa87   :  { %7606 = vmatpush.bf16.msra.mxu2 %v13007_v27  ;;  %7619 = vmatpush.bf16.msra.mxu3 %v13010_v4  ;;  %v13525_v27 = vld [vmem:[#allocation35_spill] sm:$0xff] }
 0xa8a   :  { %7581 = vmatpush.bf16.msra.mxu0 %v13014_v43  ;;  %7594 = vmatpush.bf16.msra.mxu1 %v13016_v41 }
 0xa8b   :  { %7607 = vmatpush.bf16.msra.mxu2 %v13019_v24  ;;  %7620 = vmatpush.bf16.msra.mxu3 %v13021_v34  ;;  %v13526_v24 = vld [vmem:[#allocation52_spill] sm:$0xff]  ;;  %v13527_v34 = vld [vmem:[#allocation53_spill] sm:$0xff] }
 0xa8e   :  { %7582 = vmatpush.bf16.msra.mxu0 %v13024_v63  ;;  %7595 = vmatpush.bf16.msra.mxu1 %v13028_v7 }
 0xa8f   :  { %7608 = vmatpush.bf16.msra.mxu2 %v13030_v11  ;;  %7621 = vmatpush.bf16.msra.mxu3 %v13033_v46 }
 0xa92   :  { %7583 = vmatpush.bf16.msra.mxu0 %v13036_v53  ;;  %7596 = vmatpush.bf16.msra.mxu1 %v13040_v14 }
 0xa93   :  { %7609 = vmatpush.bf16.msra.mxu2 %v13042_v28  ;;  %7622 = vmatpush.bf16.msra.mxu3 %v13045_v17 }
 0xa96   :  { %7584 = vmatpush.bf16.msra.mxu0 %v13048_v59  ;;  %7597 = vmatpush.bf16.msra.mxu1 %v13052_v38 }
 0xa97   :  { %7610 = vmatpush.bf16.msra.mxu2 %v13054_v23  ;;  %7623 = vmatpush.bf16.msra.mxu3 %v13057_v2 }
 0xa9a   :  { %7585 = vmatpush.bf16.msra.mxu0 %v13060_v13  ;;  %7598 = vmatpush.bf16.msra.mxu1 %v13064_v40 }
 0xa9b   :  { %7611 = vmatpush.bf16.msra.mxu2 %v13066_v37  ;;  %7624 = vmatpush.bf16.msra.mxu3 %v13069_v55 }
 0xa9e   :  { %7586 = vmatpush.bf16.msra.mxu0 %v13072_v42  ;;  %7599 = vmatpush.bf16.msra.mxu1 %v13076_v30 }
 0xa9f   :  { %7612 = vmatpush.bf16.msra.mxu2 %v13078_v51  ;;  %7625 = vmatpush.bf16.msra.mxu3 %v13081_v50 }
 0xaa2   :  { %7587 = vmatpush.bf16.msra.mxu0 %v13084_v25  ;;  %7600 = vmatpush.bf16.msra.mxu1 %v13088_v57 }
 0xaa3   :  { %7613 = vmatpush.bf16.msra.mxu2 %v13090_v39  ;;  %7626 = vmatpush.bf16.msra.mxu3 %v13093_v49 }
 0xb01   :  { %v7431_v13 = vpop.f32.mrf.mxu0  ;;  %v7444_v59 = vpop.f32.mrf.mxu1 }
 0xb02   :  { %v7474_v0 = vadd.f32 %v7431_v13, %v13524_v35  ;;  %v7475_v42 = vadd.f32 %v7444_v59, %v13525_v27 }
 0xb04   :  { %v7478_v4 = vmul.f32 0.5, %v7474_v0  ;;  %v7482_v43 = vmul.f32 0.5, %v7475_v42 }
 0xb06   :  { %12027 = vtanh.f32 %v7478_v4 }
 0xb07   :  { %12029 = vtanh.f32 %v7482_v43 }
 0xb08   :  { %v7457_v41 = vpop.f32.mrf.mxu2  ;;  %v7470_v50 = vpop.f32.mrf.mxu3 }
 0xb09   :  { %v7476_v25 = vadd.f32 %v7457_v41, %v13526_v24  ;;  %v7477_v63 = vadd.f32 %v7470_v50, %v13527_v34  ;;  %v7433_v7 = vpop.f32.mrf.mxu0  ;;  %v7446_v11 = vpop.f32.mrf.mxu1  ;;  %v13532_v50 = vld [vmem:[#allocation54_spill] sm:$0xff] }
 0xb0b   :  { %12031 = vtanh.f32 %v7476_v25  ;;  %v7487_v46 = vmul.f32 0.5, %v7477_v63  ;;  %v13533_v25 = vld [vmem:[#allocation55_spill] sm:$0xff] }
 0xb0c   :  { %v12028_v53 = vpop.eup %12027 }
 0xb0d   :  { %v12030_v14 = vpop.eup %12029  ;;  %v7480_v28 = vmul.f32 0.5, %v12028_v53  ;;  %12033 = vtanh.f32 %v7487_v46  ;;  %v13534_v53 = vld [vmem:[#allocation44_spill] sm:$0xff] }
 0xb0e   :  { %v7484_v17 = vmul.f32 0.5, %v12030_v14 }
 0xb0f   :  { %v7481_v38 = vadd.f32 0.5, %v7480_v28  ;;  %v13535_v28 = vld [vmem:[#allocation45_spill] sm:$0xff] }
 0xb10   :  { %v7485_v23 = vadd.f32 0.5, %v7484_v17  ;;  %v7459_v2 = vpop.f32.mrf.mxu2  ;;  %v7472_v40 = vpop.f32.mrf.mxu3 }
 0xb11   :  { %v12032_v37 = vpop.eup %12031 }
 0xb12   :  { %v7491_v55 = vmul.f32 %v7485_v23, %v13341_v31  ;;  %v7492_v30 = vmul.f32 %v12032_v37, %v7481_v38 }
 0xb13   :  { %v12034_v51 = vpop.eup %12033 }
 0xb14   :  { %v7493_v57 = vadd.f32 %v7492_v30, %v7491_v55  ;;  %v7489_v39 = vmul.f32 0.5, %v12034_v51 }
 0xb16   :  { %12035 = vtanh.f32 %v7493_v57  ;;  %v7490_v49 = vadd.f32 0.5, %v7489_v39 }
 0xb1c   :  { %v12036_v33 = vpop.eup %12035 }
 0xb1d   :  { %v7495_v3 = vmul.f32 %v12036_v33, %v7490_v49 }
 0xb1f   :  { %v7500_v54 = vpack.c.bf16 %v7495_v3, %v7495_v3 }
 0xb21   :  { %7509 = vmatmul.bf16.vlgmr.msrb.gmra.mxu0 %v7500_v54  ;;  %7522 = vmatmul.bf16.vlgmr.msrb.gmra.mxu1 %v7500_v54 }
 0xb22   :  { %7535 = vmatmul.bf16.vlgmr.msrb.gmra.mxu2 %v7500_v54  ;;  %7548 = vmatmul.bf16.vlgmr.msrb.gmra.mxu3 %v7500_v54 }
 0xb9e   :  { %v7510_v16 = vpop.f32.mrf.mxu0  ;;  %v7523_v18 = vpop.f32.mrf.mxu1 }
 0xb9f   :  { %v7553_v26 = vadd.f32 %v7510_v16, %v13528_v9  ;;  %v7554_v61 = vadd.f32 %v7523_v18, %v13529_v52 }
 0xba1   :  { %v7557_v6 = vmul.f32 0.5, %v7553_v26  ;;  %v7561_v15 = vmul.f32 0.5, %v7554_v61 }
 0xba3   :  { %12037 = vtanh.f32 %v7557_v6 }
 0xba4   :  { %12039 = vtanh.f32 %v7561_v15 }
 0xba5   :  { %v7536_v62 = vpop.f32.mrf.mxu2  ;;  %v7549_v22 = vpop.f32.mrf.mxu3 }
 0xba6   :  { %v7555_v58 = vadd.f32 %v7536_v62, %v13530_v10  ;;  %v7556_v21 = vadd.f32 %v7549_v22, %v13531_v12  ;;  %v7512_v44 = vpop.f32.mrf.mxu0  ;;  %v7525_v60 = vpop.f32.mrf.mxu1 }
 0xba8   :  { %12041 = vtanh.f32 %v7555_v58  ;;  %v7566_v45 = vmul.f32 0.5, %v7556_v21 }
 0xba9   :  { %v12038_v1 = vpop.eup %12037 }
 0xbaa   :  { %v12040_v20 = vpop.eup %12039  ;;  %v7559_v32 = vmul.f32 0.5, %v12038_v1  ;;  %12043 = vtanh.f32 %v7566_v45 }
 0xbab   :  { %v7563_v47 = vmul.f32 0.5, %v12040_v20 }
 0xbac   :  { %v7560_v29 = vadd.f32 0.5, %v7559_v32 }
 0xbad   :  { %v7564_v31 = vadd.f32 0.5, %v7563_v47  ;;  %v7538_v36 = vpop.f32.mrf.mxu2  ;;  %v7551_v8 = vpop.f32.mrf.mxu3 }
 0xbae   :  { %v12042_v19 = vpop.eup %12041 }
 0xbaf   :  { %v7570_v56 = vmul.f32 %v7564_v31, %v7493_v57  ;;  %v7571_v48 = vmul.f32 %v12042_v19, %v7560_v29 }
 0xbb0   :  { %v12044_v13 = vpop.eup %12043 }
 0xbb1   :  { %v7572_v59 = vadd.f32 %v7571_v48, %v7570_v56  ;;  %v7568_v35 = vmul.f32 0.5, %v12044_v13 }
 0xbb3   :  { %12045 = vtanh.f32 %v7572_v59  ;;  %v7569_v0 = vadd.f32 0.5, %v7568_v35 }
 0xbb9   :  { %v12046_v27 = vpop.eup %12045 }
 0xbba   :  { %v7574_v42 = vmul.f32 %v12046_v27, %v7569_v0 }
 0xbbc   :  { %v7579_v4 = vpack.c.bf16 %v7574_v42, %v7574_v42 }
 0xbbe   :  { %7588 = vmatmul.bf16.vlgmr.msra.gmra.mxu0 %v7579_v4  ;;  %7601 = vmatmul.bf16.vlgmr.msra.gmra.mxu1 %v7579_v4 }
 0xbbf   :  { %7614 = vmatmul.bf16.vlgmr.msra.gmra.mxu2 %v7579_v4  ;;  %7627 = vmatmul.bf16.vlgmr.msra.gmra.mxu3 %v7579_v4 }
 0xc3b   :  { %v7589_v43 = vpop.f32.mrf.mxu0  ;;  %v7602_v41 = vpop.f32.mrf.mxu1 }
 0xc3c   :  { %v7632_v24 = vadd.f32 %v7589_v43, %v13532_v50  ;;  %v7633_v34 = vadd.f32 %v7602_v41, %v13533_v25 }
 0xc3e   :  { %v7636_v63 = vmul.f32 0.5, %v7632_v24  ;;  %v7640_v7 = vmul.f32 0.5, %v7633_v34 }
 0xc40   :  { %12047 = vtanh.f32 %v7636_v63 }
 0xc41   :  { %12049 = vtanh.f32 %v7640_v7 }
 0xc42   :  { %v7615_v11 = vpop.f32.mrf.mxu2  ;;  %v7628_v46 = vpop.f32.mrf.mxu3 }
 0xc43   :  { %v7634_v14 = vadd.f32 %v7615_v11, %v13534_v53  ;;  %v7635_v17 = vadd.f32 %v7628_v46, %v13535_v28  ;;  %v7591_v38 = vpop.f32.mrf.mxu0  ;;  %v7604_v23 = vpop.f32.mrf.mxu1 }
 0xc45   :  { %12051 = vtanh.f32 %v7634_v14  ;;  %v7645_v2 = vmul.f32 0.5, %v7635_v17 }
 0xc46   :  { %v12048_v40 = vpop.eup %12047 }
 0xc47   :  { %v12050_v37 = vpop.eup %12049  ;;  %v7638_v55 = vmul.f32 0.5, %v12048_v40  ;;  %12053 = vtanh.f32 %v7645_v2 }
 0xc48   :  { %v7642_v30 = vmul.f32 0.5, %v12050_v37 }
 0xc49   :  { %v7639_v51 = vadd.f32 0.5, %v7638_v55 }
 0xc4a   :  { %v7643_v57 = vadd.f32 0.5, %v7642_v30  ;;  %v7617_v39 = vpop.f32.mrf.mxu2  ;;  %v7630_v49 = vpop.f32.mrf.mxu3 }
 0xc4b   :  { %v12052_v33 = vpop.eup %12051 }
 0xc4c   :  { %v7649_v3 = vmul.f32 %v7643_v57, %v7572_v59  ;;  %v7650_v54 = vmul.f32 %v12052_v33, %v7639_v51 }
 0xc4d   :  { %v12054_v16 = vpop.eup %12053 }
 0xc4e   :  { %v7651_v18 = vadd.f32 %v7650_v54, %v7649_v3  ;;  %v7647_v9 = vmul.f32 0.5, %v12054_v16 }
 0xc50   :  { %12055 = vtanh.f32 %v7651_v18  ;;  %v7648_v26 = vadd.f32 0.5, %v7647_v9 }
 0xc56   :  { %v12056_v52 = vpop.eup %12055 }
 0xc57   :  { %v7653_v61 = vmul.f32 %v12056_v52, %v7648_v26 }
 0xc58   :  { %12236 = dma.done.wait [#allocation8 + $0x3], 2048 }
 0xc59   :  { %12237 = vsyncadd [#allocation8 + $0x3], 4294965248  ;;  %v11786_v6 = vld [vmem:[#allocation5 + $0x38] sm:$0xff]  ;;  %v11785_v62 = vld [vmem:[#allocation5 + $0x30] sm:$0xff]  ;;  %v7657_v31 = vpack.c.bf16 %v7653_v61, %v7653_v61  ;;  %v7658_v36 = vpack.c.bf16 %v13210_v5, %v13210_v5 }
 0xc5a   :  { %v11794_v15 = vld [vmem:[#allocation5 + $0x78] sm:$0xff]  ;;  %7791 = vmatpush.bf16.msrb.mxu0 %v11786_v6  ;;  %v11793_v22 = vld [vmem:[#allocation5 + $0x70] sm:$0xff]  ;;  %v11784_v10 = vld [vmem:[#allocation5 + $0x28] sm:$0xff] }
 0xc5b   :  { %7804 = vmatpush.bf16.msrb.mxu1 %v11794_v15  ;;  %v11792_v58 = vld [vmem:[#allocation5 + $0x68] sm:$0xff]  ;;  %v11783_v12 = vld [vmem:[#allocation5 + $0x20] sm:$0xff]  ;;  %v11782_v44 = vld [vmem:[#allocation5 + $0x18] sm:$0xff] }
 0xc5c   :  { %v11791_v21 = vld [vmem:[#allocation5 + $0x60] sm:$0xff]  ;;  %v11790_v60 = vld [vmem:[#allocation5 + $0x58] sm:$0xff]  ;;  %v11781_v45 = vld [vmem:[#allocation5 + $0x10] sm:$0xff] }
 0xc5d   :  { %v11789_v1 = vld [vmem:[#allocation5 + $0x50] sm:$0xff]  ;;  %v11780_v20 = vld [vmem:[#allocation5 + $0x8] sm:$0xff]  ;;  %v11779_v47 = vld [vmem:[#allocation5] sm:$0xff] }
 0xc5e   :  { %7792 = vmatpush.bf16.msrb.mxu0 %v11785_v62  ;;  %v11788_v32 = vld [vmem:[#allocation5 + $0x48] sm:$0xff]  ;;  %v11787_v29 = vld [vmem:[#allocation5 + $0x40] sm:$0xff] }
 0xc5f   :  { %7805 = vmatpush.bf16.msrb.mxu1 %v11793_v22  ;;  %v12057_v8 = vld [vmem:[%s13407_s10] ss:$0 sm:$0xff] }
 0xc62   :  { %7793 = vmatpush.bf16.msrb.mxu0 %v11784_v10 }
 0xc63   :  { %7806 = vmatpush.bf16.msrb.mxu1 %v11792_v58 }
 0xc66   :  { %7794 = vmatpush.bf16.msrb.mxu0 %v11783_v12 }
 0xc67   :  { %7807 = vmatpush.bf16.msrb.mxu1 %v11791_v21 }
 0xc6a   :  { %7795 = vmatpush.bf16.msrb.mxu0 %v11782_v44 }
 0xc6b   :  { %7808 = vmatpush.bf16.msrb.mxu1 %v11790_v60 }
 0xc6e   :  { %7796 = vmatpush.bf16.msrb.mxu0 %v11781_v45 }
 0xc6f   :  { %7809 = vmatpush.bf16.msrb.mxu1 %v11789_v1 }
 0xc72   :  { %7797 = vmatpush.bf16.msrb.mxu0 %v11780_v20 }
 0xc73   :  { %7810 = vmatpush.bf16.msrb.mxu1 %v11788_v32 }
 0xc76   :  { %7798 = vmatpush.bf16.msrb.mxu0 %v11779_v47 }
 0xc77   :  { %7811 = vmatpush.bf16.msrb.mxu1 %v11787_v29 }
 0xc79   :  { %7799 = vmatmul.bf16.vlgmr.msrb.gmra.mxu0 %v7657_v31 }
 0xc7a   :  { %7812 = vmatmul.bf16.vlgmr.msrb.gmra.mxu1 %v7658_v36 }
 0xcf6   :  { %v7800_v19 = vpop.f32.mrf.mxu0 }
 0xcf7   :  { %v7813_v56 = vpop.f32.mrf.mxu1  ;;  %v7801_v48 = vadd.f32 %v12057_v8, %v7800_v19 }
 0xcf9   :  { %v7814_v13 = vadd.f32 %v7813_v56, %v7801_v48 }
 0xcfb   :  { %7817 = vst [vmem:[%s13408_s11] sm:$0xff] %v7814_v13 }
 0xcfe   :  { %v7802_v59 = vpop.f32.mrf.mxu0 }
 0xcff   :  { %v7815_v35 = vpop.f32.mrf.mxu1 }
 0xd00   :  { %7822 = vsyncpa [#allocation10], 1 }
 0xd01   :  { %7823 = vsyncpa [#allocation12], 1 }
 0xd02   :  { %7824 = vsyncmov [#allocation8] }
 0xd05   :  { %s7825_s21 = vpop.sfrf %7824 }
 0xd06   :  { %p11003_p0 = scmp.ne.s32.totalorder %s7825_s21, 0 }
 0xd08   :  { %7829 = shalt.err (%p11003_p0)  }
 0xd09   :  { %7831 = vsyncmov [#allocation8 + $0x1] }
 0xd0c   :  { %s7832_s0 = vpop.sfrf %7831 }
 0xd0d   :  { %p11004_p1 = scmp.ne.s32.totalorder %s7832_s0, 0 }
 0xd0f   :  { %7836 = shalt.err (%p11004_p1)  }
 0xd10   :  { %7838 = vsyncmov [#allocation8 + $0x2] }
 0xd13   :  { %s7839_s10 = vpop.sfrf %7838 }
 0xd14   :  { %p11005_p2 = scmp.ne.s32.totalorder %s7839_s10, 0 }
 0xd16   :  { %7843 = shalt.err (%p11005_p2)  }
 0xd17   :  { %7845 = vsyncmov [#allocation8 + $0x3] }
 0xd1a   :  { %s7846_s22 = vpop.sfrf %7845 }
 0xd1b   :  { %p11006_p3 = scmp.ne.s32.totalorder %s7846_s22, 0 }
 0xd1d   :  { %7850 = shalt.err (%p11006_p3)  }

</bundles_post_ra>
